<compile_context>
chip_gen: v6e
topology: v6e:2x2x1
jax: 0.10.0
libtpu: 0.0.40
codegen_flags: <defaults>
</compile_context>

<pallas_src>
import functools
import math

import jax
import jax.numpy as jnp
import numpy as np
from jax import lax
from jax.experimental import pallas as pl
from jax.experimental.pallas import tpu as pltpu


def _layer_norm(x, g, b, eps=1e-6):
    # The PyTorch module constructs nn.LayerNorm(d_model, eps=1e-06) explicitly.
    mu = jnp.mean(x, axis=-1, keepdims=True)
    var = jnp.mean(jnp.square(x - mu), axis=-1, keepdims=True)
    return (x - mu) * lax.rsqrt(var + eps) * g + b


# ---------------------------------------------------------------------------
# Fused Pallas kernel: the whole n_layers stack for Bt batch elements.
# ---------------------------------------------------------------------------
def fused_encoder_kernel(x_ref, pool_ref, eld_ref,
                         wqkv_ref, wfc_ref,
                         ln1_g_ref, ln1_b_ref,
                         w1_ref, b1_ref, w2_ref, b2_ref,
                         ln2_g_ref, ln2_b_ref,
                         out_ref, *, n_layers, n_head, d_k, d_v, bt, seq_len):
    L = seq_len
    hk = n_head * d_k
    x = x_ref[...]                       # (Bt*L, D) f32, resident across layers
    pool = pool_ref[...]                 # (Bt*L, Bt*L) block-diagonal avg-pool

    for layer in range(n_layers):        # unrolled; weights are VMEM-resident
        eld = eld_ref[layer]             # (L, L) f32  = alpha_c * (i - j)
        wfc = wfc_ref[layer]             # (H, d_v, D) bf16

        # ---- fused QKV projection: one bf16 MXU matmul, f32 accumulation ---
        # 1/sqrt(d_k) is already folded into the Q columns of wqkv.
        xb = x.astype(jnp.bfloat16)
        qkv = jnp.dot(xb, wqkv_ref[layer], preferred_element_type=jnp.float32)

        # ---- LaS smoothing --------------------------------------------------
        # avg_pool1d(softmax(.), k, stride=1, pad=(k-1)//2) is linear along the
        # key axis and P is symmetric, so it commutes with "@ V":
        #   (softmax(.) @ P) @ V == softmax(.) @ (P @ V).
        # P is block-diagonal over the folded batch, so all heads and all Bt
        # elements are smoothed with a single matmul.
        v_sm = jnp.dot(pool, qkv[:, 2 * hk:], preferred_element_type=jnp.float32)

        # ---- per-head attention, batched over the folded batch dimension ---
        proj = jnp.zeros_like(x)         # (Bt*L, D) f32
        for h in range(n_head):
            qh = qkv[:, h * d_k:(h + 1) * d_k].reshape(bt, L, d_k)
            kh = qkv[:, hk + h * d_k: hk + (h + 1) * d_k].reshape(bt, L, d_k)
            vh = v_sm[:, h * d_v:(h + 1) * d_v].reshape(bt, L, d_v)
            # Scores / softmax in f32: logits are eld-scaled, numerically touchy.
            s = jnp.einsum('bld,bmd->blm', qh, kh,
                           preferred_element_type=jnp.float32)      # (Bt,L,L)
            logits = eld[None, :, :] * s
            m = jnp.max(logits, axis=-1, keepdims=True)
            e = jnp.exp(logits - m)
            p = e * pl.reciprocal(jnp.sum(e, axis=-1, keepdims=True), approx=True)
            ho = jnp.einsum('blm,bmd->bld', p, vh,
                            preferred_element_type=jnp.float32)     # (Bt,L,dv)
            proj = proj + jnp.dot(ho.reshape(bt * L, d_v).astype(jnp.bfloat16),
                                  wfc[h], preferred_element_type=jnp.float32)

        y = _layer_norm(proj + x, ln1_g_ref[layer], ln1_b_ref[layer])

        # ---- position-wise FFN (bf16 MXU operands, f32 accumulation) -------
        h1 = jnp.maximum(
            jnp.dot(y.astype(jnp.bfloat16), w1_ref[layer],
                    preferred_element_type=jnp.float32) + b1_ref[layer], 0.0)
        h2 = jnp.dot(h1.astype(jnp.bfloat16), w2_ref[layer],
                     preferred_element_type=jnp.float32) + b2_ref[layer]
        x = _layer_norm(h2 + y, ln2_g_ref[layer], ln2_b_ref[layer])

    out_ref[...] = x


def _pick_block_batch(B):
    # Target M = Bt*L >= 128 while keeping >= 2 grid blocks on the "parallel"
    # batch axis so both v7x TensorCores receive work.
    for bt in (8, 4, 2):
        if B % bt == 0 and B // bt >= 2:
            return bt
    return 1 if B >= 2 else B


def encoder_stack_pallas(x, p, *, n_head, d_k, d_v):
    B, L, D = x.shape
    n_layers = p['wqkv'].shape[0]
    bt = _pick_block_batch(B)
    x2 = x.reshape(B * L, D)             # lane-dense 2-D activation layout

    # Block-diagonal pooling matrix (per folded batch element).
    pool_big = jnp.kron(jnp.eye(bt, dtype=jnp.float32), p['pool'])

    def resident(a):                     # whole array, constant index map
        return pl.BlockSpec(a.shape, lambda b, _nd=a.ndim: (0,) * _nd)

    layer_args = (p['eld'], p['wqkv'], p['wfc'],
                  p['ln1_g'], p['ln1_b'],
                  p['w1'], p['b1'], p['w2'], p['b2'],
                  p['ln2_g'], p['ln2_b'])

    kern = functools.partial(fused_encoder_kernel, n_layers=n_layers,
                             n_head=n_head, d_k=d_k, d_v=d_v,
                             bt=bt, seq_len=L)
    out = pl.pallas_call(
        kern,
        out_shape=jax.ShapeDtypeStruct((B * L, D), jnp.float32),
        grid=(B // bt,),
        in_specs=[pl.BlockSpec((bt * L, D), lambda b: (b, 0)),   # activations
                  resident(pool_big)]
                 + [resident(a) for a in layer_args],
        out_specs=pl.BlockSpec((bt * L, D), lambda b: (b, 0)),
        compiler_params=pltpu.CompilerParams(
            dimension_semantics=("parallel",),
            vmem_limit_bytes=32 * 1024 * 1024),
    )(x2, pool_big, *layer_args)
    return out.reshape(B, L, D)


def encoder_forward(params, src_seq, *, n_head, d_k, d_v):
    # TODO(synk): embedding gather + pre-stack LayerNorm stay in plain XLA in
    # the wrapper (a 256x32 gather gains nothing from Pallas at this size).
    idx = (src_seq * 255.0).astype(jnp.int32)          # (src_seq * 255).long()
    x = jnp.take(params['emb'], idx, axis=0)           # (B, L, D)
    # dropout treated as identity (inference); scale_emb=False.
    x = _layer_norm(x, params['enc_ln_g'], params['enc_ln_b'])
    out = encoder_stack_pallas(x, params, n_head=n_head, d_k=d_k, d_v=d_v)
    return out[:, :, None, :]     # PyTorch layers emit (B, L, 1, d_model)


# ---------------------------------------------------------------------------
# Deterministic parameter init (shapes follow the PyTorch module __init__).
# Weights are stored stacked over layers; matmul weights live in bf16.
# The 1/sqrt(d_k) LaS scale is folded into W_q (f32, before the bf16 cast).
# ---------------------------------------------------------------------------
def init_params(key, *, n_vocab, d_model, d_inner, n_head, d_k, d_v,
                n_layers, pad_idx, b_param, seq_len, kernel_size):
    assert kernel_size % 2 == 1, "pool re-association needs a symmetric P"
    keys = jax.random.split(key, 1 + n_layers)
    emb = jax.random.normal(keys[0], (n_vocab, d_model), jnp.float32) * 0.02
    emb = emb.at[pad_idx].set(0.0)                     # padding_idx row is zero

    def lin(kk, fan_in, fan_out, scale=1.0):
        w = jax.random.normal(kk, (fan_in, fan_out), jnp.float32)
        w = w * (scale / math.sqrt(fan_in))
        return w.astype(jnp.bfloat16)                  # bf16 MXU operands

    pos = jnp.arange(seq_len)
    d_l = (pos[None, :] - pos[:, None]).astype(jnp.float32)      # j - i
    half = (kernel_size - 1) // 2
    pool_mat = (jnp.abs(pos[:, None] - pos[None, :]) <= half).astype(jnp.float32)
    pool_mat = pool_mat / float(kernel_size)           # count_include_pad=True

    q_scale = 1.0 / math.sqrt(d_k)                     # LaS: q / sqrt(d_k)
    wqkv, wfc, w1, w2, elds = [], [], [], [], []
    for i in range(n_layers):
        k = jax.random.split(keys[1 + i], 6)
        wq = lin(k[0], d_model, n_head * d_k, scale=q_scale)   # scale folded in
        wk = lin(k[1], d_model, n_head * d_k)
        wv = lin(k[2], d_model, n_head * d_v)
        wqkv.append(jnp.concatenate([wq, wk, wv], axis=1))
        wfc.append(lin(k[3], n_head * d_v, d_model).reshape(n_head, d_v, d_model))
        w1.append(lin(k[4], d_model, d_inner))
        w2.append(lin(k[5], d_inner, d_model))
        # alpha_c exactly as in MultiHeadAttention.__init__ (current_head = i)
        alpha_c = 0.0 if i == 0 else -1.0 * math.log(b_param / (n_head - 1) * i)
        elds.append(alpha_c * -1.0 * d_l)

    ones = lambda *s: jnp.ones(s, jnp.float32)
    zeros = lambda *s: jnp.zeros(s, jnp.float32)
    return dict(
        emb=emb,
        enc_ln_g=ones(d_model), enc_ln_b=zeros(d_model),
        pool=pool_mat,
        eld=jnp.stack(elds),
        wqkv=jnp.stack(wqkv),
        wfc=jnp.stack(wfc),
        ln1_g=ones(n_layers, 1, d_model), ln1_b=zeros(n_layers, 1, d_model),
        w1=jnp.stack(w1), b1=zeros(n_layers, 1, d_inner),
        w2=jnp.stack(w2), b2=zeros(n_layers, 1, d_model),
        ln2_g=ones(n_layers, 1, d_model), ln2_b=zeros(n_layers, 1, d_model),
    )


# ---------------------------------------------------------------------------
# Pure-JAX reference (direct translation of the PyTorch graph, incl. explicit
# avg_pool1d on the softmax).  The stored W_q already contains the 1/sqrt(d_k)
# factor, so q @ k^T here equals PyTorch's (q/sqrt(d_k)) @ k^T with unfolded
# weights.  Same bf16-operand / f32-accumulate matmul policy as the kernel.
# ---------------------------------------------------------------------------
def reference_forward(params, src_seq, *, n_head, d_k, d_v, kernel_size):
    idx = (src_seq * 255.0).astype(jnp.int32)
    x = jnp.take(params['emb'], idx, axis=0)
    x = _layer_norm(x, params['enc_ln_g'], params['enc_ln_b'])
    n_layers = params['wqkv'].shape[0]
    H, dk, dv = n_head, d_k, d_v
    half = (kernel_size - 1) // 2
    for l in range(n_layers):
        B, L, D = x.shape
        qkv = jnp.dot(x.astype(jnp.bfloat16), params['wqkv'][l],
                      preferred_element_type=jnp.float32)
        q = qkv[..., :H * dk].reshape(B, L, H, dk).transpose(0, 2, 1, 3)
        k = qkv[..., H * dk:2 * H * dk].reshape(B, L, H, dk).transpose(0, 2, 1, 3)
        v = qkv[..., 2 * H * dk:].reshape(B, L, H, dv).transpose(0, 2, 1, 3)
        attn = jnp.einsum('bhld,bhmd->bhlm', q, k)
        logits = params['eld'][l][None, None] * attn
        p = jax.nn.softmax(logits, axis=-1)
        # avg_pool1d(kernel_size, stride=1, padding=half, count_include_pad=True)
        pad = jnp.pad(p, ((0, 0), (0, 0), (0, 0), (half, half)))
        pooled = sum(pad[..., j:j + L] for j in range(kernel_size)) / kernel_size
        out = jnp.einsum('bhlm,bhmd->bhld', pooled, v)
        out = out.transpose(0, 2, 1, 3).reshape(B, L, H * dv)
        wfc = params['wfc'][l].reshape(H * dv, D)
        proj = jnp.dot(out.astype(jnp.bfloat16), wfc,
                       preferred_element_type=jnp.float32)
        y = _layer_norm(proj + x, params['ln1_g'][l, 0], params['ln1_b'][l, 0])
        h = jax.nn.relu(
            jnp.dot(y.astype(jnp.bfloat16), params['w1'][l],
                    preferred_element_type=jnp.float32) + params['b1'][l, 0])
        z = jnp.dot(h.astype(jnp.bfloat16), params['w2'][l],
                    preferred_element_type=jnp.float32) + params['b2'][l, 0]
        x = _layer_norm(z + y, params['ln2_g'][l, 0], params['ln2_b'][l, 0])
    return x[:, :, None, :]


if __name__ == "__main__":
    # Small, module-consistent shapes.  B=16 so the kernel runs with Bt=8
    # (M = Bt*L = 128) and a 2-block parallel grid.
    B, L = 16, 16
    d_model, d_inner = 32, 64
    n_head, d_k, d_v = 4, 8, 8
    n_layers = 2
    n_vocab, pad_idx = 256, 0
    b_param = 0.001            # args.b default used in alpha_c
    kernel_size = 3            # args.kernel_size

    key = jax.random.PRNGKey(0)
    pkey, xkey = jax.random.split(key)
    params = init_params(pkey, n_vocab=n_vocab, d_model=d_model,
                         d_inner=d_inner, n_head=n_head, d_k=d_k, d_v=d_v,
                         n_layers=n_layers, pad_idx=pad_idx, b_param=b_param,
                         seq_len=L, kernel_size=kernel_size)

    # src_seq plays the role of flattened MNIST pixels in [0, 1).
    src_seq = jax.random.uniform(xkey, (B, L), jnp.float32)

    out = encoder_forward(params, src_seq, n_head=n_head, d_k=d_k, d_v=d_v)
    out = jax.block_until_ready(out)

    ref = reference_forward(params, src_seq, n_head=n_head, d_k=d_k, d_v=d_v,
                            kernel_size=kernel_size)
    out_np, ref_np = np.asarray(out), np.asarray(ref)
    np.testing.assert_allclose(out_np, ref_np, rtol=3e-2, atol=3e-2)
    assert float(np.abs(out_np - ref_np).mean()) < 3e-3
    assert out.shape == (B, L, 1, d_model)
    print("KERNEL_OK")
</pallas_src>

<mosaic_0001>
module attributes {stable_mosaic.version = 11 : i64} {
  func.func @fused_encoder_kernel(%arg0: i32, %arg1: memref<128x32xf32, #tpu.memory_space<vmem>>, %arg2: memref<128x128xf32, #tpu.memory_space<vmem>>, %arg3: memref<2x16x16xf32, #tpu.memory_space<vmem>>, %arg4: memref<2x32x96xbf16, #tpu.memory_space<vmem>>, %arg5: memref<2x4x8x32xbf16, #tpu.memory_space<vmem>>, %arg6: memref<2x1x32xf32, #tpu.memory_space<vmem>>, %arg7: memref<2x1x32xf32, #tpu.memory_space<vmem>>, %arg8: memref<2x32x64xbf16, #tpu.memory_space<vmem>>, %arg9: memref<2x1x64xf32, #tpu.memory_space<vmem>>, %arg10: memref<2x64x32xbf16, #tpu.memory_space<vmem>>, %arg11: memref<2x1x32xf32, #tpu.memory_space<vmem>>, %arg12: memref<2x1x32xf32, #tpu.memory_space<vmem>>, %arg13: memref<2x1x32xf32, #tpu.memory_space<vmem>>, %arg14: memref<128x32xf32, #tpu.memory_space<vmem>>) attributes {dimension_semantics = [#tpu.dimension_semantics<parallel>], iteration_bounds = array<i64: 2>, scalar_prefetch = 0 : i64, scratch_operands = 0 : i64, tpu.core_type = #tpu.core_type<tc>, window_params = [{transform_indices = @transform_0, window_bounds = array<i64: 128, 32>}, {pipeline_mode = #tpu.pipeline_mode<synchronous>, transform_indices = @transform_1, window_bounds = array<i64: 128, 128>}, {pipeline_mode = #tpu.pipeline_mode<synchronous>, transform_indices = @transform_2, window_bounds = array<i64: 2, 16, 16>}, {pipeline_mode = #tpu.pipeline_mode<synchronous>, transform_indices = @transform_3, window_bounds = array<i64: 2, 32, 96>}, {pipeline_mode = #tpu.pipeline_mode<synchronous>, transform_indices = @transform_4, window_bounds = array<i64: 2, 4, 8, 32>}, {pipeline_mode = #tpu.pipeline_mode<synchronous>, transform_indices = @transform_5, window_bounds = array<i64: 2, 1, 32>}, {pipeline_mode = #tpu.pipeline_mode<synchronous>, transform_indices = @transform_6, window_bounds = array<i64: 2, 1, 32>}, {pipeline_mode = #tpu.pipeline_mode<synchronous>, transform_indices = @transform_7, window_bounds = array<i64: 2, 32, 64>}, {pipeline_mode = #tpu.pipeline_mode<synchronous>, transform_indices = @transform_8, window_bounds = array<i64: 2, 1, 64>}, {pipeline_mode = #tpu.pipeline_mode<synchronous>, transform_indices = @transform_9, window_bounds = array<i64: 2, 64, 32>}, {pipeline_mode = #tpu.pipeline_mode<synchronous>, transform_indices = @transform_10, window_bounds = array<i64: 2, 1, 32>}, {pipeline_mode = #tpu.pipeline_mode<synchronous>, transform_indices = @transform_11, window_bounds = array<i64: 2, 1, 32>}, {pipeline_mode = #tpu.pipeline_mode<synchronous>, transform_indices = @transform_12, window_bounds = array<i64: 2, 1, 32>}, {transform_indices = @transform_13, window_bounds = array<i64: 128, 32>}]} {
    %c0 = arith.constant 0 : index
    %c0_0 = arith.constant 0 : index
    %0 = vector.load %arg1[%c0, %c0_0] : memref<128x32xf32, #tpu.memory_space<vmem>>, vector<128x32xf32>
    %c0_1 = arith.constant 0 : index
    %c0_2 = arith.constant 0 : index
    %1 = vector.load %arg2[%c0_1, %c0_2] : memref<128x128xf32, #tpu.memory_space<vmem>>, vector<128x128xf32>
    %c0_3 = arith.constant 0 : index
    %c0_4 = arith.constant 0 : index
    %c0_5 = arith.constant 0 : index
    %2 = vector.load %arg3[%c0_3, %c0_4, %c0_5] : memref<2x16x16xf32, #tpu.memory_space<vmem>>, vector<1x16x16xf32>
    %3 = vector.shape_cast %2 : vector<1x16x16xf32> to vector<16x16xf32>
    %c0_6 = arith.constant 0 : index
    %c0_7 = arith.constant 0 : index
    %c0_8 = arith.constant 0 : index
    %c0_9 = arith.constant 0 : index
    %4 = vector.load %arg5[%c0_6, %c0_7, %c0_8, %c0_9] : memref<2x4x8x32xbf16, #tpu.memory_space<vmem>>, vector<1x4x8x32xbf16>
    %5 = vector.shape_cast %4 : vector<1x4x8x32xbf16> to vector<4x8x32xbf16>
    %6 = arith.truncf %0 : vector<128x32xf32> to vector<128x32xbf16>
    %c0_10 = arith.constant 0 : index
    %c0_11 = arith.constant 0 : index
    %c0_12 = arith.constant 0 : index
    %7 = vector.load %arg4[%c0_10, %c0_11, %c0_12] : memref<2x32x96xbf16, #tpu.memory_space<vmem>>, vector<1x32x96xbf16>
    %8 = vector.shape_cast %7 : vector<1x32x96xbf16> to vector<32x96xbf16>
    %cst = arith.constant dense<0.000000e+00> : vector<128x96xf32>
    %9 = tpu.matmul %6, %8, %cst {dimension_numbers = #tpu.dot_dimension_numbers<[1], [0], [0], [1], [0, 0, 1, 1], [], []>} : vector<128x32xbf16>, vector<32x96xbf16>, vector<128x96xf32> -> vector<128x96xf32>
    %10 = vector.extract_strided_slice %9 {offsets = [0, 64], sizes = [128, 32], strides = [1, 1]} : vector<128x96xf32> to vector<128x32xf32>
    %cst_13 = arith.constant dense<0.000000e+00> : vector<128x32xf32>
    %11 = tpu.matmul %1, %10, %cst_13 {dimension_numbers = #tpu.dot_dimension_numbers<[1], [0], [0], [1], [0, 0, 1, 1], [], []>} : vector<128x128xf32>, vector<128x32xf32>, vector<128x32xf32> -> vector<128x32xf32>
    %cst_14 = arith.constant 0.000000e+00 : f32
    %12 = vector.broadcast %cst_14 : f32 to vector<128x32xf32>
    %13 = vector.extract_strided_slice %9 {offsets = [0, 0], sizes = [128, 8], strides = [1, 1]} : vector<128x96xf32> to vector<128x8xf32>
    %14 = vector.shape_cast %13 : vector<128x8xf32> to vector<8x16x8xf32>
    %15 = vector.extract_strided_slice %9 {offsets = [0, 32], sizes = [128, 8], strides = [1, 1]} : vector<128x96xf32> to vector<128x8xf32>
    %16 = vector.shape_cast %15 : vector<128x8xf32> to vector<8x16x8xf32>
    %17 = vector.extract_strided_slice %11 {offsets = [0, 0], sizes = [128, 8], strides = [1, 1]} : vector<128x32xf32> to vector<128x8xf32>
    %18 = vector.shape_cast %17 : vector<128x8xf32> to vector<8x16x8xf32>
    "tpu.trace_start"() <{level = 10 : i32, message = "bld,bmd->blm"}> : () -> ()
    %cst_15 = arith.constant dense<0.000000e+00> : vector<8x16x16xf32>
    %19 = tpu.matmul %14, %16, %cst_15 {dimension_numbers = #tpu.dot_dimension_numbers<[2], [2], [1], [1], [0, 0, 0, 1, 1, 1], [0], [0]>} : vector<8x16x8xf32>, vector<8x16x8xf32>, vector<8x16x16xf32> -> vector<8x16x16xf32>
    "tpu.trace_stop"() : () -> ()
    %20 = vector.shape_cast %3 : vector<16x16xf32> to vector<1x16x16xf32>
    %21 = vector.broadcast %20 : vector<1x16x16xf32> to vector<8x16x16xf32>
    %22 = arith.mulf %21, %19 : vector<8x16x16xf32>
    %cst_16 = arith.constant dense<0xFF800000> : vector<8x16xf32>
    %23 = vector.multi_reduction <maximumf>, %22, %cst_16 [2] : vector<8x16x16xf32> to vector<8x16xf32>
    %24 = vector.shape_cast %23 : vector<8x16xf32> to vector<8x16x1xf32>
    %25 = vector.broadcast %24 : vector<8x16x1xf32> to vector<8x16x16xf32>
    %26 = arith.subf %22, %25 : vector<8x16x16xf32>
    %27 = math.exp %26 : vector<8x16x16xf32>
    %cst_17 = arith.constant dense<0.000000e+00> : vector<8x16xf32>
    %28 = vector.multi_reduction <add>, %27, %cst_17 [2] : vector<8x16x16xf32> to vector<8x16xf32>
    %29 = vector.shape_cast %28 : vector<8x16xf32> to vector<8x16x1xf32>
    %30 = tpu.reciprocal %29 {approx = true} : vector<8x16x1xf32> -> vector<8x16x1xf32>
    %31 = vector.broadcast %30 : vector<8x16x1xf32> to vector<8x16x16xf32>
    %32 = arith.mulf %27, %31 : vector<8x16x16xf32>
    "tpu.trace_start"() <{level = 10 : i32, message = "blm,bmd->bld"}> : () -> ()
    %cst_18 = arith.constant dense<0.000000e+00> : vector<8x16x8xf32>
    %33 = tpu.matmul %32, %18, %cst_18 {dimension_numbers = #tpu.dot_dimension_numbers<[2], [1], [1], [2], [0, 0, 0, 1, 1, 2], [0], [0]>} : vector<8x16x16xf32>, vector<8x16x8xf32>, vector<8x16x8xf32> -> vector<8x16x8xf32>
    "tpu.trace_stop"() : () -> ()
    %34 = vector.shape_cast %33 : vector<8x16x8xf32> to vector<128x8xf32>
    %35 = arith.truncf %34 : vector<128x8xf32> to vector<128x8xbf16>
    %36 = vector.extract_strided_slice %5 {offsets = [0, 0, 0], sizes = [1, 8, 32], strides = [1, 1, 1]} : vector<4x8x32xbf16> to vector<1x8x32xbf16>
    %37 = vector.shape_cast %36 : vector<1x8x32xbf16> to vector<8x32xbf16>
    %cst_19 = arith.constant dense<0.000000e+00> : vector<128x32xf32>
    %38 = tpu.matmul %35, %37, %cst_19 {dimension_numbers = #tpu.dot_dimension_numbers<[1], [0], [0], [1], [0, 0, 1, 1], [], []>} : vector<128x8xbf16>, vector<8x32xbf16>, vector<128x32xf32> -> vector<128x32xf32>
    %39 = arith.addf %12, %38 : vector<128x32xf32>
    %40 = vector.extract_strided_slice %9 {offsets = [0, 8], sizes = [128, 8], strides = [1, 1]} : vector<128x96xf32> to vector<128x8xf32>
    %41 = vector.shape_cast %40 : vector<128x8xf32> to vector<8x16x8xf32>
    %42 = vector.extract_strided_slice %9 {offsets = [0, 40], sizes = [128, 8], strides = [1, 1]} : vector<128x96xf32> to vector<128x8xf32>
    %43 = vector.shape_cast %42 : vector<128x8xf32> to vector<8x16x8xf32>
    %44 = vector.extract_strided_slice %11 {offsets = [0, 8], sizes = [128, 8], strides = [1, 1]} : vector<128x32xf32> to vector<128x8xf32>
    %45 = vector.shape_cast %44 : vector<128x8xf32> to vector<8x16x8xf32>
    "tpu.trace_start"() <{level = 10 : i32, message = "bld,bmd->blm"}> : () -> ()
    %cst_20 = arith.constant dense<0.000000e+00> : vector<8x16x16xf32>
    %46 = tpu.matmul %41, %43, %cst_20 {dimension_numbers = #tpu.dot_dimension_numbers<[2], [2], [1], [1], [0, 0, 0, 1, 1, 1], [0], [0]>} : vector<8x16x8xf32>, vector<8x16x8xf32>, vector<8x16x16xf32> -> vector<8x16x16xf32>
    "tpu.trace_stop"() : () -> ()
    %47 = vector.shape_cast %3 : vector<16x16xf32> to vector<1x16x16xf32>
    %48 = vector.broadcast %47 : vector<1x16x16xf32> to vector<8x16x16xf32>
    %49 = arith.mulf %48, %46 : vector<8x16x16xf32>
    %cst_21 = arith.constant dense<0xFF800000> : vector<8x16xf32>
    %50 = vector.multi_reduction <maximumf>, %49, %cst_21 [2] : vector<8x16x16xf32> to vector<8x16xf32>
    %51 = vector.shape_cast %50 : vector<8x16xf32> to vector<8x16x1xf32>
    %52 = vector.broadcast %51 : vector<8x16x1xf32> to vector<8x16x16xf32>
    %53 = arith.subf %49, %52 : vector<8x16x16xf32>
    %54 = math.exp %53 : vector<8x16x16xf32>
    %cst_22 = arith.constant dense<0.000000e+00> : vector<8x16xf32>
    %55 = vector.multi_reduction <add>, %54, %cst_22 [2] : vector<8x16x16xf32> to vector<8x16xf32>
    %56 = vector.shape_cast %55 : vector<8x16xf32> to vector<8x16x1xf32>
    %57 = tpu.reciprocal %56 {approx = true} : vector<8x16x1xf32> -> vector<8x16x1xf32>
    %58 = vector.broadcast %57 : vector<8x16x1xf32> to vector<8x16x16xf32>
    %59 = arith.mulf %54, %58 : vector<8x16x16xf32>
    "tpu.trace_start"() <{level = 10 : i32, message = "blm,bmd->bld"}> : () -> ()
    %cst_23 = arith.constant dense<0.000000e+00> : vector<8x16x8xf32>
    %60 = tpu.matmul %59, %45, %cst_23 {dimension_numbers = #tpu.dot_dimension_numbers<[2], [1], [1], [2], [0, 0, 0, 1, 1, 2], [0], [0]>} : vector<8x16x16xf32>, vector<8x16x8xf32>, vector<8x16x8xf32> -> vector<8x16x8xf32>
    "tpu.trace_stop"() : () -> ()
    %61 = vector.shape_cast %60 : vector<8x16x8xf32> to vector<128x8xf32>
    %62 = arith.truncf %61 : vector<128x8xf32> to vector<128x8xbf16>
    %63 = vector.extract_strided_slice %5 {offsets = [1, 0, 0], sizes = [1, 8, 32], strides = [1, 1, 1]} : vector<4x8x32xbf16> to vector<1x8x32xbf16>
    %64 = vector.shape_cast %63 : vector<1x8x32xbf16> to vector<8x32xbf16>
    %cst_24 = arith.constant dense<0.000000e+00> : vector<128x32xf32>
    %65 = tpu.matmul %62, %64, %cst_24 {dimension_numbers = #tpu.dot_dimension_numbers<[1], [0], [0], [1], [0, 0, 1, 1], [], []>} : vector<128x8xbf16>, vector<8x32xbf16>, vector<128x32xf32> -> vector<128x32xf32>
    %66 = arith.addf %39, %65 : vector<128x32xf32>
    %67 = vector.extract_strided_slice %9 {offsets = [0, 16], sizes = [128, 8], strides = [1, 1]} : vector<128x96xf32> to vector<128x8xf32>
    %68 = vector.shape_cast %67 : vector<128x8xf32> to vector<8x16x8xf32>
    %69 = vector.extract_strided_slice %9 {offsets = [0, 48], sizes = [128, 8], strides = [1, 1]} : vector<128x96xf32> to vector<128x8xf32>
    %70 = vector.shape_cast %69 : vector<128x8xf32> to vector<8x16x8xf32>
    %71 = vector.extract_strided_slice %11 {offsets = [0, 16], sizes = [128, 8], strides = [1, 1]} : vector<128x32xf32> to vector<128x8xf32>
    %72 = vector.shape_cast %71 : vector<128x8xf32> to vector<8x16x8xf32>
    "tpu.trace_start"() <{level = 10 : i32, message = "bld,bmd->blm"}> : () -> ()
    %cst_25 = arith.constant dense<0.000000e+00> : vector<8x16x16xf32>
    %73 = tpu.matmul %68, %70, %cst_25 {dimension_numbers = #tpu.dot_dimension_numbers<[2], [2], [1], [1], [0, 0, 0, 1, 1, 1], [0], [0]>} : vector<8x16x8xf32>, vector<8x16x8xf32>, vector<8x16x16xf32> -> vector<8x16x16xf32>
    "tpu.trace_stop"() : () -> ()
    %74 = vector.shape_cast %3 : vector<16x16xf32> to vector<1x16x16xf32>
    %75 = vector.broadcast %74 : vector<1x16x16xf32> to vector<8x16x16xf32>
    %76 = arith.mulf %75, %73 : vector<8x16x16xf32>
    %cst_26 = arith.constant dense<0xFF800000> : vector<8x16xf32>
    %77 = vector.multi_reduction <maximumf>, %76, %cst_26 [2] : vector<8x16x16xf32> to vector<8x16xf32>
    %78 = vector.shape_cast %77 : vector<8x16xf32> to vector<8x16x1xf32>
    %79 = vector.broadcast %78 : vector<8x16x1xf32> to vector<8x16x16xf32>
    %80 = arith.subf %76, %79 : vector<8x16x16xf32>
    %81 = math.exp %80 : vector<8x16x16xf32>
    %cst_27 = arith.constant dense<0.000000e+00> : vector<8x16xf32>
    %82 = vector.multi_reduction <add>, %81, %cst_27 [2] : vector<8x16x16xf32> to vector<8x16xf32>
    %83 = vector.shape_cast %82 : vector<8x16xf32> to vector<8x16x1xf32>
    %84 = tpu.reciprocal %83 {approx = true} : vector<8x16x1xf32> -> vector<8x16x1xf32>
    %85 = vector.broadcast %84 : vector<8x16x1xf32> to vector<8x16x16xf32>
    %86 = arith.mulf %81, %85 : vector<8x16x16xf32>
    "tpu.trace_start"() <{level = 10 : i32, message = "blm,bmd->bld"}> : () -> ()
    %cst_28 = arith.constant dense<0.000000e+00> : vector<8x16x8xf32>
    %87 = tpu.matmul %86, %72, %cst_28 {dimension_numbers = #tpu.dot_dimension_numbers<[2], [1], [1], [2], [0, 0, 0, 1, 1, 2], [0], [0]>} : vector<8x16x16xf32>, vector<8x16x8xf32>, vector<8x16x8xf32> -> vector<8x16x8xf32>
    "tpu.trace_stop"() : () -> ()
    %88 = vector.shape_cast %87 : vector<8x16x8xf32> to vector<128x8xf32>
    %89 = arith.truncf %88 : vector<128x8xf32> to vector<128x8xbf16>
    %90 = vector.extract_strided_slice %5 {offsets = [2, 0, 0], sizes = [1, 8, 32], strides = [1, 1, 1]} : vector<4x8x32xbf16> to vector<1x8x32xbf16>
    %91 = vector.shape_cast %90 : vector<1x8x32xbf16> to vector<8x32xbf16>
    %cst_29 = arith.constant dense<0.000000e+00> : vector<128x32xf32>
    %92 = tpu.matmul %89, %91, %cst_29 {dimension_numbers = #tpu.dot_dimension_numbers<[1], [0], [0], [1], [0, 0, 1, 1], [], []>} : vector<128x8xbf16>, vector<8x32xbf16>, vector<128x32xf32> -> vector<128x32xf32>
    %93 = arith.addf %66, %92 : vector<128x32xf32>
    %94 = vector.extract_strided_slice %9 {offsets = [0, 24], sizes = [128, 8], strides = [1, 1]} : vector<128x96xf32> to vector<128x8xf32>
    %95 = vector.shape_cast %94 : vector<128x8xf32> to vector<8x16x8xf32>
    %96 = vector.extract_strided_slice %9 {offsets = [0, 56], sizes = [128, 8], strides = [1, 1]} : vector<128x96xf32> to vector<128x8xf32>
    %97 = vector.shape_cast %96 : vector<128x8xf32> to vector<8x16x8xf32>
    %98 = vector.extract_strided_slice %11 {offsets = [0, 24], sizes = [128, 8], strides = [1, 1]} : vector<128x32xf32> to vector<128x8xf32>
    %99 = vector.shape_cast %98 : vector<128x8xf32> to vector<8x16x8xf32>
    "tpu.trace_start"() <{level = 10 : i32, message = "bld,bmd->blm"}> : () -> ()
    %cst_30 = arith.constant dense<0.000000e+00> : vector<8x16x16xf32>
    %100 = tpu.matmul %95, %97, %cst_30 {dimension_numbers = #tpu.dot_dimension_numbers<[2], [2], [1], [1], [0, 0, 0, 1, 1, 1], [0], [0]>} : vector<8x16x8xf32>, vector<8x16x8xf32>, vector<8x16x16xf32> -> vector<8x16x16xf32>
    "tpu.trace_stop"() : () -> ()
    %101 = vector.shape_cast %3 : vector<16x16xf32> to vector<1x16x16xf32>
    %102 = vector.broadcast %101 : vector<1x16x16xf32> to vector<8x16x16xf32>
    %103 = arith.mulf %102, %100 : vector<8x16x16xf32>
    %cst_31 = arith.constant dense<0xFF800000> : vector<8x16xf32>
    %104 = vector.multi_reduction <maximumf>, %103, %cst_31 [2] : vector<8x16x16xf32> to vector<8x16xf32>
    %105 = vector.shape_cast %104 : vector<8x16xf32> to vector<8x16x1xf32>
    %106 = vector.broadcast %105 : vector<8x16x1xf32> to vector<8x16x16xf32>
    %107 = arith.subf %103, %106 : vector<8x16x16xf32>
    %108 = math.exp %107 : vector<8x16x16xf32>
    %cst_32 = arith.constant dense<0.000000e+00> : vector<8x16xf32>
    %109 = vector.multi_reduction <add>, %108, %cst_32 [2] : vector<8x16x16xf32> to vector<8x16xf32>
    %110 = vector.shape_cast %109 : vector<8x16xf32> to vector<8x16x1xf32>
    %111 = tpu.reciprocal %110 {approx = true} : vector<8x16x1xf32> -> vector<8x16x1xf32>
    %112 = vector.broadcast %111 : vector<8x16x1xf32> to vector<8x16x16xf32>
    %113 = arith.mulf %108, %112 : vector<8x16x16xf32>
    "tpu.trace_start"() <{level = 10 : i32, message = "blm,bmd->bld"}> : () -> ()
    %cst_33 = arith.constant dense<0.000000e+00> : vector<8x16x8xf32>
    %114 = tpu.matmul %113, %99, %cst_33 {dimension_numbers = #tpu.dot_dimension_numbers<[2], [1], [1], [2], [0, 0, 0, 1, 1, 2], [0], [0]>} : vector<8x16x16xf32>, vector<8x16x8xf32>, vector<8x16x8xf32> -> vector<8x16x8xf32>
    "tpu.trace_stop"() : () -> ()
    %115 = vector.shape_cast %114 : vector<8x16x8xf32> to vector<128x8xf32>
    %116 = arith.truncf %115 : vector<128x8xf32> to vector<128x8xbf16>
    %117 = vector.extract_strided_slice %5 {offsets = [3, 0, 0], sizes = [1, 8, 32], strides = [1, 1, 1]} : vector<4x8x32xbf16> to vector<1x8x32xbf16>
    %118 = vector.shape_cast %117 : vector<1x8x32xbf16> to vector<8x32xbf16>
    %cst_34 = arith.constant dense<0.000000e+00> : vector<128x32xf32>
    %119 = tpu.matmul %116, %118, %cst_34 {dimension_numbers = #tpu.dot_dimension_numbers<[1], [0], [0], [1], [0, 0, 1, 1], [], []>} : vector<128x8xbf16>, vector<8x32xbf16>, vector<128x32xf32> -> vector<128x32xf32>
    %120 = arith.addf %93, %119 : vector<128x32xf32>
    %121 = arith.addf %120, %0 : vector<128x32xf32>
    %c0_35 = arith.constant 0 : index
    %c0_36 = arith.constant 0 : index
    %c0_37 = arith.constant 0 : index
    %122 = vector.load %arg6[%c0_35, %c0_36, %c0_37] : memref<2x1x32xf32, #tpu.memory_space<vmem>>, vector<1x1x32xf32>
    %123 = vector.shape_cast %122 : vector<1x1x32xf32> to vector<1x32xf32>
    %c0_38 = arith.constant 0 : index
    %c0_39 = arith.constant 0 : index
    %c0_40 = arith.constant 0 : index
    %124 = vector.load %arg7[%c0_38, %c0_39, %c0_40] : memref<2x1x32xf32, #tpu.memory_space<vmem>>, vector<1x1x32xf32>
    %125 = vector.shape_cast %124 : vector<1x1x32xf32> to vector<1x32xf32>
    %cst_41 = arith.constant dense<0.000000e+00> : vector<128xf32>
    %126 = vector.multi_reduction <add>, %121, %cst_41 [1] : vector<128x32xf32> to vector<128xf32>
    %127 = vector.shape_cast %126 : vector<128xf32> to vector<128x1xf32>
    %cst_42 = arith.constant 3.200000e+01 : f32
    %128 = vector.broadcast %cst_42 : f32 to vector<128x1xf32>
    %129 = arith.divf %127, %128 : vector<128x1xf32>
    %130 = vector.broadcast %129 : vector<128x1xf32> to vector<128x32xf32>
    %131 = arith.subf %121, %130 : vector<128x32xf32>
    %132 = arith.mulf %131, %131 : vector<128x32xf32>
    %cst_43 = arith.constant dense<0.000000e+00> : vector<128xf32>
    %133 = vector.multi_reduction <add>, %132, %cst_43 [1] : vector<128x32xf32> to vector<128xf32>
    %134 = vector.shape_cast %133 : vector<128xf32> to vector<128x1xf32>
    %cst_44 = arith.constant 3.200000e+01 : f32
    %135 = vector.broadcast %cst_44 : f32 to vector<128x1xf32>
    %136 = arith.divf %134, %135 : vector<128x1xf32>
    %137 = vector.broadcast %129 : vector<128x1xf32> to vector<128x32xf32>
    %138 = arith.subf %121, %137 : vector<128x32xf32>
    %cst_45 = arith.constant 9.99999997E-7 : f32
    %139 = vector.broadcast %cst_45 : f32 to vector<128x1xf32>
    %140 = arith.addf %136, %139 : vector<128x1xf32>
    %141 = math.rsqrt %140 : vector<128x1xf32>
    %142 = vector.broadcast %141 : vector<128x1xf32> to vector<128x32xf32>
    %143 = arith.mulf %138, %142 : vector<128x32xf32>
    %144 = vector.broadcast %123 : vector<1x32xf32> to vector<128x32xf32>
    %145 = arith.mulf %143, %144 : vector<128x32xf32>
    %146 = vector.broadcast %125 : vector<1x32xf32> to vector<128x32xf32>
    %147 = arith.addf %145, %146 : vector<128x32xf32>
    %148 = arith.truncf %147 : vector<128x32xf32> to vector<128x32xbf16>
    %c0_46 = arith.constant 0 : index
    %c0_47 = arith.constant 0 : index
    %c0_48 = arith.constant 0 : index
    %149 = vector.load %arg8[%c0_46, %c0_47, %c0_48] : memref<2x32x64xbf16, #tpu.memory_space<vmem>>, vector<1x32x64xbf16>
    %150 = vector.shape_cast %149 : vector<1x32x64xbf16> to vector<32x64xbf16>
    %cst_49 = arith.constant dense<0.000000e+00> : vector<128x64xf32>
    %151 = tpu.matmul %148, %150, %cst_49 {dimension_numbers = #tpu.dot_dimension_numbers<[1], [0], [0], [1], [0, 0, 1, 1], [], []>} : vector<128x32xbf16>, vector<32x64xbf16>, vector<128x64xf32> -> vector<128x64xf32>
    %c0_50 = arith.constant 0 : index
    %c0_51 = arith.constant 0 : index
    %c0_52 = arith.constant 0 : index
    %152 = vector.load %arg9[%c0_50, %c0_51, %c0_52] : memref<2x1x64xf32, #tpu.memory_space<vmem>>, vector<1x1x64xf32>
    %153 = vector.shape_cast %152 : vector<1x1x64xf32> to vector<1x64xf32>
    %154 = vector.broadcast %153 : vector<1x64xf32> to vector<128x64xf32>
    %155 = arith.addf %151, %154 : vector<128x64xf32>
    %cst_53 = arith.constant 0.000000e+00 : f32
    %156 = vector.broadcast %cst_53 : f32 to vector<128x64xf32>
    %157 = arith.maximumf %155, %156 : vector<128x64xf32>
    %158 = arith.truncf %157 : vector<128x64xf32> to vector<128x64xbf16>
    %c0_54 = arith.constant 0 : index
    %c0_55 = arith.constant 0 : index
    %c0_56 = arith.constant 0 : index
    %159 = vector.load %arg10[%c0_54, %c0_55, %c0_56] : memref<2x64x32xbf16, #tpu.memory_space<vmem>>, vector<1x64x32xbf16>
    %160 = vector.shape_cast %159 : vector<1x64x32xbf16> to vector<64x32xbf16>
    %cst_57 = arith.constant dense<0.000000e+00> : vector<128x32xf32>
    %161 = tpu.matmul %158, %160, %cst_57 {dimension_numbers = #tpu.dot_dimension_numbers<[1], [0], [0], [1], [0, 0, 1, 1], [], []>} : vector<128x64xbf16>, vector<64x32xbf16>, vector<128x32xf32> -> vector<128x32xf32>
    %c0_58 = arith.constant 0 : index
    %c0_59 = arith.constant 0 : index
    %c0_60 = arith.constant 0 : index
    %162 = vector.load %arg11[%c0_58, %c0_59, %c0_60] : memref<2x1x32xf32, #tpu.memory_space<vmem>>, vector<1x1x32xf32>
    %163 = vector.shape_cast %162 : vector<1x1x32xf32> to vector<1x32xf32>
    %164 = vector.broadcast %163 : vector<1x32xf32> to vector<128x32xf32>
    %165 = arith.addf %161, %164 : vector<128x32xf32>
    %166 = arith.addf %165, %147 : vector<128x32xf32>
    %c0_61 = arith.constant 0 : index
    %c0_62 = arith.constant 0 : index
    %c0_63 = arith.constant 0 : index
    %167 = vector.load %arg12[%c0_61, %c0_62, %c0_63] : memref<2x1x32xf32, #tpu.memory_space<vmem>>, vector<1x1x32xf32>
    %168 = vector.shape_cast %167 : vector<1x1x32xf32> to vector<1x32xf32>
    %c0_64 = arith.constant 0 : index
    %c0_65 = arith.constant 0 : index
    %c0_66 = arith.constant 0 : index
    %169 = vector.load %arg13[%c0_64, %c0_65, %c0_66] : memref<2x1x32xf32, #tpu.memory_space<vmem>>, vector<1x1x32xf32>
    %170 = vector.shape_cast %169 : vector<1x1x32xf32> to vector<1x32xf32>
    %cst_67 = arith.constant dense<0.000000e+00> : vector<128xf32>
    %171 = vector.multi_reduction <add>, %166, %cst_67 [1] : vector<128x32xf32> to vector<128xf32>
    %172 = vector.shape_cast %171 : vector<128xf32> to vector<128x1xf32>
    %cst_68 = arith.constant 3.200000e+01 : f32
    %173 = vector.broadcast %cst_68 : f32 to vector<128x1xf32>
    %174 = arith.divf %172, %173 : vector<128x1xf32>
    %175 = vector.broadcast %174 : vector<128x1xf32> to vector<128x32xf32>
    %176 = arith.subf %166, %175 : vector<128x32xf32>
    %177 = arith.mulf %176, %176 : vector<128x32xf32>
    %cst_69 = arith.constant dense<0.000000e+00> : vector<128xf32>
    %178 = vector.multi_reduction <add>, %177, %cst_69 [1] : vector<128x32xf32> to vector<128xf32>
    %179 = vector.shape_cast %178 : vector<128xf32> to vector<128x1xf32>
    %cst_70 = arith.constant 3.200000e+01 : f32
    %180 = vector.broadcast %cst_70 : f32 to vector<128x1xf32>
    %181 = arith.divf %179, %180 : vector<128x1xf32>
    %182 = vector.broadcast %174 : vector<128x1xf32> to vector<128x32xf32>
    %183 = arith.subf %166, %182 : vector<128x32xf32>
    %cst_71 = arith.constant 9.99999997E-7 : f32
    %184 = vector.broadcast %cst_71 : f32 to vector<128x1xf32>
    %185 = arith.addf %181, %184 : vector<128x1xf32>
    %186 = math.rsqrt %185 : vector<128x1xf32>
    %187 = vector.broadcast %186 : vector<128x1xf32> to vector<128x32xf32>
    %188 = arith.mulf %183, %187 : vector<128x32xf32>
    %189 = vector.broadcast %168 : vector<1x32xf32> to vector<128x32xf32>
    %190 = arith.mulf %188, %189 : vector<128x32xf32>
    %191 = vector.broadcast %170 : vector<1x32xf32> to vector<128x32xf32>
    %192 = arith.addf %190, %191 : vector<128x32xf32>
    %c1 = arith.constant 1 : index
    %c0_72 = arith.constant 0 : index
    %c0_73 = arith.constant 0 : index
    %193 = vector.load %arg3[%c1, %c0_72, %c0_73] : memref<2x16x16xf32, #tpu.memory_space<vmem>>, vector<1x16x16xf32>
    %194 = vector.shape_cast %193 : vector<1x16x16xf32> to vector<16x16xf32>
    %c1_74 = arith.constant 1 : index
    %c0_75 = arith.constant 0 : index
    %c0_76 = arith.constant 0 : index
    %c0_77 = arith.constant 0 : index
    %195 = vector.load %arg5[%c1_74, %c0_75, %c0_76, %c0_77] : memref<2x4x8x32xbf16, #tpu.memory_space<vmem>>, vector<1x4x8x32xbf16>
    %196 = vector.shape_cast %195 : vector<1x4x8x32xbf16> to vector<4x8x32xbf16>
    %197 = arith.truncf %192 : vector<128x32xf32> to vector<128x32xbf16>
    %c1_78 = arith.constant 1 : index
    %c0_79 = arith.constant 0 : index
    %c0_80 = arith.constant 0 : index
    %198 = vector.load %arg4[%c1_78, %c0_79, %c0_80] : memref<2x32x96xbf16, #tpu.memory_space<vmem>>, vector<1x32x96xbf16>
    %199 = vector.shape_cast %198 : vector<1x32x96xbf16> to vector<32x96xbf16>
    %cst_81 = arith.constant dense<0.000000e+00> : vector<128x96xf32>
    %200 = tpu.matmul %197, %199, %cst_81 {dimension_numbers = #tpu.dot_dimension_numbers<[1], [0], [0], [1], [0, 0, 1, 1], [], []>} : vector<128x32xbf16>, vector<32x96xbf16>, vector<128x96xf32> -> vector<128x96xf32>
    %201 = vector.extract_strided_slice %200 {offsets = [0, 64], sizes = [128, 32], strides = [1, 1]} : vector<128x96xf32> to vector<128x32xf32>
    %cst_82 = arith.constant dense<0.000000e+00> : vector<128x32xf32>
    %202 = tpu.matmul %1, %201, %cst_82 {dimension_numbers = #tpu.dot_dimension_numbers<[1], [0], [0], [1], [0, 0, 1, 1], [], []>} : vector<128x128xf32>, vector<128x32xf32>, vector<128x32xf32> -> vector<128x32xf32>
    %cst_83 = arith.constant 0.000000e+00 : f32
    %203 = vector.broadcast %cst_83 : f32 to vector<128x32xf32>
    %204 = vector.extract_strided_slice %200 {offsets = [0, 0], sizes = [128, 8], strides = [1, 1]} : vector<128x96xf32> to vector<128x8xf32>
    %205 = vector.shape_cast %204 : vector<128x8xf32> to vector<8x16x8xf32>
    %206 = vector.extract_strided_slice %200 {offsets = [0, 32], sizes = [128, 8], strides = [1, 1]} : vector<128x96xf32> to vector<128x8xf32>
    %207 = vector.shape_cast %206 : vector<128x8xf32> to vector<8x16x8xf32>
    %208 = vector.extract_strided_slice %202 {offsets = [0, 0], sizes = [128, 8], strides = [1, 1]} : vector<128x32xf32> to vector<128x8xf32>
    %209 = vector.shape_cast %208 : vector<128x8xf32> to vector<8x16x8xf32>
    "tpu.trace_start"() <{level = 10 : i32, message = "bld,bmd->blm"}> : () -> ()
    %cst_84 = arith.constant dense<0.000000e+00> : vector<8x16x16xf32>
    %210 = tpu.matmul %205, %207, %cst_84 {dimension_numbers = #tpu.dot_dimension_numbers<[2], [2], [1], [1], [0, 0, 0, 1, 1, 1], [0], [0]>} : vector<8x16x8xf32>, vector<8x16x8xf32>, vector<8x16x16xf32> -> vector<8x16x16xf32>
    "tpu.trace_stop"() : () -> ()
    %211 = vector.shape_cast %194 : vector<16x16xf32> to vector<1x16x16xf32>
    %212 = vector.broadcast %211 : vector<1x16x16xf32> to vector<8x16x16xf32>
    %213 = arith.mulf %212, %210 : vector<8x16x16xf32>
    %cst_85 = arith.constant dense<0xFF800000> : vector<8x16xf32>
    %214 = vector.multi_reduction <maximumf>, %213, %cst_85 [2] : vector<8x16x16xf32> to vector<8x16xf32>
    %215 = vector.shape_cast %214 : vector<8x16xf32> to vector<8x16x1xf32>
    %216 = vector.broadcast %215 : vector<8x16x1xf32> to vector<8x16x16xf32>
    %217 = arith.subf %213, %216 : vector<8x16x16xf32>
    %218 = math.exp %217 : vector<8x16x16xf32>
    %cst_86 = arith.constant dense<0.000000e+00> : vector<8x16xf32>
    %219 = vector.multi_reduction <add>, %218, %cst_86 [2] : vector<8x16x16xf32> to vector<8x16xf32>
    %220 = vector.shape_cast %219 : vector<8x16xf32> to vector<8x16x1xf32>
    %221 = tpu.reciprocal %220 {approx = true} : vector<8x16x1xf32> -> vector<8x16x1xf32>
    %222 = vector.broadcast %221 : vector<8x16x1xf32> to vector<8x16x16xf32>
    %223 = arith.mulf %218, %222 : vector<8x16x16xf32>
    "tpu.trace_start"() <{level = 10 : i32, message = "blm,bmd->bld"}> : () -> ()
    %cst_87 = arith.constant dense<0.000000e+00> : vector<8x16x8xf32>
    %224 = tpu.matmul %223, %209, %cst_87 {dimension_numbers = #tpu.dot_dimension_numbers<[2], [1], [1], [2], [0, 0, 0, 1, 1, 2], [0], [0]>} : vector<8x16x16xf32>, vector<8x16x8xf32>, vector<8x16x8xf32> -> vector<8x16x8xf32>
    "tpu.trace_stop"() : () -> ()
    %225 = vector.shape_cast %224 : vector<8x16x8xf32> to vector<128x8xf32>
    %226 = arith.truncf %225 : vector<128x8xf32> to vector<128x8xbf16>
    %227 = vector.extract_strided_slice %196 {offsets = [0, 0, 0], sizes = [1, 8, 32], strides = [1, 1, 1]} : vector<4x8x32xbf16> to vector<1x8x32xbf16>
    %228 = vector.shape_cast %227 : vector<1x8x32xbf16> to vector<8x32xbf16>
    %cst_88 = arith.constant dense<0.000000e+00> : vector<128x32xf32>
    %229 = tpu.matmul %226, %228, %cst_88 {dimension_numbers = #tpu.dot_dimension_numbers<[1], [0], [0], [1], [0, 0, 1, 1], [], []>} : vector<128x8xbf16>, vector<8x32xbf16>, vector<128x32xf32> -> vector<128x32xf32>
    %230 = arith.addf %203, %229 : vector<128x32xf32>
    %231 = vector.extract_strided_slice %200 {offsets = [0, 8], sizes = [128, 8], strides = [1, 1]} : vector<128x96xf32> to vector<128x8xf32>
    %232 = vector.shape_cast %231 : vector<128x8xf32> to vector<8x16x8xf32>
    %233 = vector.extract_strided_slice %200 {offsets = [0, 40], sizes = [128, 8], strides = [1, 1]} : vector<128x96xf32> to vector<128x8xf32>
    %234 = vector.shape_cast %233 : vector<128x8xf32> to vector<8x16x8xf32>
    %235 = vector.extract_strided_slice %202 {offsets = [0, 8], sizes = [128, 8], strides = [1, 1]} : vector<128x32xf32> to vector<128x8xf32>
    %236 = vector.shape_cast %235 : vector<128x8xf32> to vector<8x16x8xf32>
    "tpu.trace_start"() <{level = 10 : i32, message = "bld,bmd->blm"}> : () -> ()
    %cst_89 = arith.constant dense<0.000000e+00> : vector<8x16x16xf32>
    %237 = tpu.matmul %232, %234, %cst_89 {dimension_numbers = #tpu.dot_dimension_numbers<[2], [2], [1], [1], [0, 0, 0, 1, 1, 1], [0], [0]>} : vector<8x16x8xf32>, vector<8x16x8xf32>, vector<8x16x16xf32> -> vector<8x16x16xf32>
    "tpu.trace_stop"() : () -> ()
    %238 = vector.shape_cast %194 : vector<16x16xf32> to vector<1x16x16xf32>
    %239 = vector.broadcast %238 : vector<1x16x16xf32> to vector<8x16x16xf32>
    %240 = arith.mulf %239, %237 : vector<8x16x16xf32>
    %cst_90 = arith.constant dense<0xFF800000> : vector<8x16xf32>
    %241 = vector.multi_reduction <maximumf>, %240, %cst_90 [2] : vector<8x16x16xf32> to vector<8x16xf32>
    %242 = vector.shape_cast %241 : vector<8x16xf32> to vector<8x16x1xf32>
    %243 = vector.broadcast %242 : vector<8x16x1xf32> to vector<8x16x16xf32>
    %244 = arith.subf %240, %243 : vector<8x16x16xf32>
    %245 = math.exp %244 : vector<8x16x16xf32>
    %cst_91 = arith.constant dense<0.000000e+00> : vector<8x16xf32>
    %246 = vector.multi_reduction <add>, %245, %cst_91 [2] : vector<8x16x16xf32> to vector<8x16xf32>
    %247 = vector.shape_cast %246 : vector<8x16xf32> to vector<8x16x1xf32>
    %248 = tpu.reciprocal %247 {approx = true} : vector<8x16x1xf32> -> vector<8x16x1xf32>
    %249 = vector.broadcast %248 : vector<8x16x1xf32> to vector<8x16x16xf32>
    %250 = arith.mulf %245, %249 : vector<8x16x16xf32>
    "tpu.trace_start"() <{level = 10 : i32, message = "blm,bmd->bld"}> : () -> ()
    %cst_92 = arith.constant dense<0.000000e+00> : vector<8x16x8xf32>
    %251 = tpu.matmul %250, %236, %cst_92 {dimension_numbers = #tpu.dot_dimension_numbers<[2], [1], [1], [2], [0, 0, 0, 1, 1, 2], [0], [0]>} : vector<8x16x16xf32>, vector<8x16x8xf32>, vector<8x16x8xf32> -> vector<8x16x8xf32>
    "tpu.trace_stop"() : () -> ()
    %252 = vector.shape_cast %251 : vector<8x16x8xf32> to vector<128x8xf32>
    %253 = arith.truncf %252 : vector<128x8xf32> to vector<128x8xbf16>
    %254 = vector.extract_strided_slice %196 {offsets = [1, 0, 0], sizes = [1, 8, 32], strides = [1, 1, 1]} : vector<4x8x32xbf16> to vector<1x8x32xbf16>
    %255 = vector.shape_cast %254 : vector<1x8x32xbf16> to vector<8x32xbf16>
    %cst_93 = arith.constant dense<0.000000e+00> : vector<128x32xf32>
    %256 = tpu.matmul %253, %255, %cst_93 {dimension_numbers = #tpu.dot_dimension_numbers<[1], [0], [0], [1], [0, 0, 1, 1], [], []>} : vector<128x8xbf16>, vector<8x32xbf16>, vector<128x32xf32> -> vector<128x32xf32>
    %257 = arith.addf %230, %256 : vector<128x32xf32>
    %258 = vector.extract_strided_slice %200 {offsets = [0, 16], sizes = [128, 8], strides = [1, 1]} : vector<128x96xf32> to vector<128x8xf32>
    %259 = vector.shape_cast %258 : vector<128x8xf32> to vector<8x16x8xf32>
    %260 = vector.extract_strided_slice %200 {offsets = [0, 48], sizes = [128, 8], strides = [1, 1]} : vector<128x96xf32> to vector<128x8xf32>
    %261 = vector.shape_cast %260 : vector<128x8xf32> to vector<8x16x8xf32>
    %262 = vector.extract_strided_slice %202 {offsets = [0, 16], sizes = [128, 8], strides = [1, 1]} : vector<128x32xf32> to vector<128x8xf32>
    %263 = vector.shape_cast %262 : vector<128x8xf32> to vector<8x16x8xf32>
    "tpu.trace_start"() <{level = 10 : i32, message = "bld,bmd->blm"}> : () -> ()
    %cst_94 = arith.constant dense<0.000000e+00> : vector<8x16x16xf32>
    %264 = tpu.matmul %259, %261, %cst_94 {dimension_numbers = #tpu.dot_dimension_numbers<[2], [2], [1], [1], [0, 0, 0, 1, 1, 1], [0], [0]>} : vector<8x16x8xf32>, vector<8x16x8xf32>, vector<8x16x16xf32> -> vector<8x16x16xf32>
    "tpu.trace_stop"() : () -> ()
    %265 = vector.shape_cast %194 : vector<16x16xf32> to vector<1x16x16xf32>
    %266 = vector.broadcast %265 : vector<1x16x16xf32> to vector<8x16x16xf32>
    %267 = arith.mulf %266, %264 : vector<8x16x16xf32>
    %cst_95 = arith.constant dense<0xFF800000> : vector<8x16xf32>
    %268 = vector.multi_reduction <maximumf>, %267, %cst_95 [2] : vector<8x16x16xf32> to vector<8x16xf32>
    %269 = vector.shape_cast %268 : vector<8x16xf32> to vector<8x16x1xf32>
    %270 = vector.broadcast %269 : vector<8x16x1xf32> to vector<8x16x16xf32>
    %271 = arith.subf %267, %270 : vector<8x16x16xf32>
    %272 = math.exp %271 : vector<8x16x16xf32>
    %cst_96 = arith.constant dense<0.000000e+00> : vector<8x16xf32>
    %273 = vector.multi_reduction <add>, %272, %cst_96 [2] : vector<8x16x16xf32> to vector<8x16xf32>
    %274 = vector.shape_cast %273 : vector<8x16xf32> to vector<8x16x1xf32>
    %275 = tpu.reciprocal %274 {approx = true} : vector<8x16x1xf32> -> vector<8x16x1xf32>
    %276 = vector.broadcast %275 : vector<8x16x1xf32> to vector<8x16x16xf32>
    %277 = arith.mulf %272, %276 : vector<8x16x16xf32>
    "tpu.trace_start"() <{level = 10 : i32, message = "blm,bmd->bld"}> : () -> ()
    %cst_97 = arith.constant dense<0.000000e+00> : vector<8x16x8xf32>
    %278 = tpu.matmul %277, %263, %cst_97 {dimension_numbers = #tpu.dot_dimension_numbers<[2], [1], [1], [2], [0, 0, 0, 1, 1, 2], [0], [0]>} : vector<8x16x16xf32>, vector<8x16x8xf32>, vector<8x16x8xf32> -> vector<8x16x8xf32>
    "tpu.trace_stop"() : () -> ()
    %279 = vector.shape_cast %278 : vector<8x16x8xf32> to vector<128x8xf32>
    %280 = arith.truncf %279 : vector<128x8xf32> to vector<128x8xbf16>
    %281 = vector.extract_strided_slice %196 {offsets = [2, 0, 0], sizes = [1, 8, 32], strides = [1, 1, 1]} : vector<4x8x32xbf16> to vector<1x8x32xbf16>
    %282 = vector.shape_cast %281 : vector<1x8x32xbf16> to vector<8x32xbf16>
    %cst_98 = arith.constant dense<0.000000e+00> : vector<128x32xf32>
    %283 = tpu.matmul %280, %282, %cst_98 {dimension_numbers = #tpu.dot_dimension_numbers<[1], [0], [0], [1], [0, 0, 1, 1], [], []>} : vector<128x8xbf16>, vector<8x32xbf16>, vector<128x32xf32> -> vector<128x32xf32>
    %284 = arith.addf %257, %283 : vector<128x32xf32>
    %285 = vector.extract_strided_slice %200 {offsets = [0, 24], sizes = [128, 8], strides = [1, 1]} : vector<128x96xf32> to vector<128x8xf32>
    %286 = vector.shape_cast %285 : vector<128x8xf32> to vector<8x16x8xf32>
    %287 = vector.extract_strided_slice %200 {offsets = [0, 56], sizes = [128, 8], strides = [1, 1]} : vector<128x96xf32> to vector<128x8xf32>
    %288 = vector.shape_cast %287 : vector<128x8xf32> to vector<8x16x8xf32>
    %289 = vector.extract_strided_slice %202 {offsets = [0, 24], sizes = [128, 8], strides = [1, 1]} : vector<128x32xf32> to vector<128x8xf32>
    %290 = vector.shape_cast %289 : vector<128x8xf32> to vector<8x16x8xf32>
    "tpu.trace_start"() <{level = 10 : i32, message = "bld,bmd->blm"}> : () -> ()
    %cst_99 = arith.constant dense<0.000000e+00> : vector<8x16x16xf32>
    %291 = tpu.matmul %286, %288, %cst_99 {dimension_numbers = #tpu.dot_dimension_numbers<[2], [2], [1], [1], [0, 0, 0, 1, 1, 1], [0], [0]>} : vector<8x16x8xf32>, vector<8x16x8xf32>, vector<8x16x16xf32> -> vector<8x16x16xf32>
    "tpu.trace_stop"() : () -> ()
    %292 = vector.shape_cast %194 : vector<16x16xf32> to vector<1x16x16xf32>
    %293 = vector.broadcast %292 : vector<1x16x16xf32> to vector<8x16x16xf32>
    %294 = arith.mulf %293, %291 : vector<8x16x16xf32>
    %cst_100 = arith.constant dense<0xFF800000> : vector<8x16xf32>
    %295 = vector.multi_reduction <maximumf>, %294, %cst_100 [2] : vector<8x16x16xf32> to vector<8x16xf32>
    %296 = vector.shape_cast %295 : vector<8x16xf32> to vector<8x16x1xf32>
    %297 = vector.broadcast %296 : vector<8x16x1xf32> to vector<8x16x16xf32>
    %298 = arith.subf %294, %297 : vector<8x16x16xf32>
    %299 = math.exp %298 : vector<8x16x16xf32>
    %cst_101 = arith.constant dense<0.000000e+00> : vector<8x16xf32>
    %300 = vector.multi_reduction <add>, %299, %cst_101 [2] : vector<8x16x16xf32> to vector<8x16xf32>
    %301 = vector.shape_cast %300 : vector<8x16xf32> to vector<8x16x1xf32>
    %302 = tpu.reciprocal %301 {approx = true} : vector<8x16x1xf32> -> vector<8x16x1xf32>
    %303 = vector.broadcast %302 : vector<8x16x1xf32> to vector<8x16x16xf32>
    %304 = arith.mulf %299, %303 : vector<8x16x16xf32>
    "tpu.trace_start"() <{level = 10 : i32, message = "blm,bmd->bld"}> : () -> ()
    %cst_102 = arith.constant dense<0.000000e+00> : vector<8x16x8xf32>
    %305 = tpu.matmul %304, %290, %cst_102 {dimension_numbers = #tpu.dot_dimension_numbers<[2], [1], [1], [2], [0, 0, 0, 1, 1, 2], [0], [0]>} : vector<8x16x16xf32>, vector<8x16x8xf32>, vector<8x16x8xf32> -> vector<8x16x8xf32>
    "tpu.trace_stop"() : () -> ()
    %306 = vector.shape_cast %305 : vector<8x16x8xf32> to vector<128x8xf32>
    %307 = arith.truncf %306 : vector<128x8xf32> to vector<128x8xbf16>
    %308 = vector.extract_strided_slice %196 {offsets = [3, 0, 0], sizes = [1, 8, 32], strides = [1, 1, 1]} : vector<4x8x32xbf16> to vector<1x8x32xbf16>
    %309 = vector.shape_cast %308 : vector<1x8x32xbf16> to vector<8x32xbf16>
    %cst_103 = arith.constant dense<0.000000e+00> : vector<128x32xf32>
    %310 = tpu.matmul %307, %309, %cst_103 {dimension_numbers = #tpu.dot_dimension_numbers<[1], [0], [0], [1], [0, 0, 1, 1], [], []>} : vector<128x8xbf16>, vector<8x32xbf16>, vector<128x32xf32> -> vector<128x32xf32>
    %311 = arith.addf %284, %310 : vector<128x32xf32>
    %312 = arith.addf %311, %192 : vector<128x32xf32>
    %c1_104 = arith.constant 1 : index
    %c0_105 = arith.constant 0 : index
    %c0_106 = arith.constant 0 : index
    %313 = vector.load %arg6[%c1_104, %c0_105, %c0_106] : memref<2x1x32xf32, #tpu.memory_space<vmem>>, vector<1x1x32xf32>
    %314 = vector.shape_cast %313 : vector<1x1x32xf32> to vector<1x32xf32>
    %c1_107 = arith.constant 1 : index
    %c0_108 = arith.constant 0 : index
    %c0_109 = arith.constant 0 : index
    %315 = vector.load %arg7[%c1_107, %c0_108, %c0_109] : memref<2x1x32xf32, #tpu.memory_space<vmem>>, vector<1x1x32xf32>
    %316 = vector.shape_cast %315 : vector<1x1x32xf32> to vector<1x32xf32>
    %cst_110 = arith.constant dense<0.000000e+00> : vector<128xf32>
    %317 = vector.multi_reduction <add>, %312, %cst_110 [1] : vector<128x32xf32> to vector<128xf32>
    %318 = vector.shape_cast %317 : vector<128xf32> to vector<128x1xf32>
    %cst_111 = arith.constant 3.200000e+01 : f32
    %319 = vector.broadcast %cst_111 : f32 to vector<128x1xf32>
    %320 = arith.divf %318, %319 : vector<128x1xf32>
    %321 = vector.broadcast %320 : vector<128x1xf32> to vector<128x32xf32>
    %322 = arith.subf %312, %321 : vector<128x32xf32>
    %323 = arith.mulf %322, %322 : vector<128x32xf32>
    %cst_112 = arith.constant dense<0.000000e+00> : vector<128xf32>
    %324 = vector.multi_reduction <add>, %323, %cst_112 [1] : vector<128x32xf32> to vector<128xf32>
    %325 = vector.shape_cast %324 : vector<128xf32> to vector<128x1xf32>
    %cst_113 = arith.constant 3.200000e+01 : f32
    %326 = vector.broadcast %cst_113 : f32 to vector<128x1xf32>
    %327 = arith.divf %325, %326 : vector<128x1xf32>
    %328 = vector.broadcast %320 : vector<128x1xf32> to vector<128x32xf32>
    %329 = arith.subf %312, %328 : vector<128x32xf32>
    %cst_114 = arith.constant 9.99999997E-7 : f32
    %330 = vector.broadcast %cst_114 : f32 to vector<128x1xf32>
    %331 = arith.addf %327, %330 : vector<128x1xf32>
    %332 = math.rsqrt %331 : vector<128x1xf32>
    %333 = vector.broadcast %332 : vector<128x1xf32> to vector<128x32xf32>
    %334 = arith.mulf %329, %333 : vector<128x32xf32>
    %335 = vector.broadcast %314 : vector<1x32xf32> to vector<128x32xf32>
    %336 = arith.mulf %334, %335 : vector<128x32xf32>
    %337 = vector.broadcast %316 : vector<1x32xf32> to vector<128x32xf32>
    %338 = arith.addf %336, %337 : vector<128x32xf32>
    %339 = arith.truncf %338 : vector<128x32xf32> to vector<128x32xbf16>
    %c1_115 = arith.constant 1 : index
    %c0_116 = arith.constant 0 : index
    %c0_117 = arith.constant 0 : index
    %340 = vector.load %arg8[%c1_115, %c0_116, %c0_117] : memref<2x32x64xbf16, #tpu.memory_space<vmem>>, vector<1x32x64xbf16>
    %341 = vector.shape_cast %340 : vector<1x32x64xbf16> to vector<32x64xbf16>
    %cst_118 = arith.constant dense<0.000000e+00> : vector<128x64xf32>
    %342 = tpu.matmul %339, %341, %cst_118 {dimension_numbers = #tpu.dot_dimension_numbers<[1], [0], [0], [1], [0, 0, 1, 1], [], []>} : vector<128x32xbf16>, vector<32x64xbf16>, vector<128x64xf32> -> vector<128x64xf32>
    %c1_119 = arith.constant 1 : index
    %c0_120 = arith.constant 0 : index
    %c0_121 = arith.constant 0 : index
    %343 = vector.load %arg9[%c1_119, %c0_120, %c0_121] : memref<2x1x64xf32, #tpu.memory_space<vmem>>, vector<1x1x64xf32>
    %344 = vector.shape_cast %343 : vector<1x1x64xf32> to vector<1x64xf32>
    %345 = vector.broadcast %344 : vector<1x64xf32> to vector<128x64xf32>
    %346 = arith.addf %342, %345 : vector<128x64xf32>
    %cst_122 = arith.constant 0.000000e+00 : f32
    %347 = vector.broadcast %cst_122 : f32 to vector<128x64xf32>
    %348 = arith.maximumf %346, %347 : vector<128x64xf32>
    %349 = arith.truncf %348 : vector<128x64xf32> to vector<128x64xbf16>
    %c1_123 = arith.constant 1 : index
    %c0_124 = arith.constant 0 : index
    %c0_125 = arith.constant 0 : index
    %350 = vector.load %arg10[%c1_123, %c0_124, %c0_125] : memref<2x64x32xbf16, #tpu.memory_space<vmem>>, vector<1x64x32xbf16>
    %351 = vector.shape_cast %350 : vector<1x64x32xbf16> to vector<64x32xbf16>
    %cst_126 = arith.constant dense<0.000000e+00> : vector<128x32xf32>
    %352 = tpu.matmul %349, %351, %cst_126 {dimension_numbers = #tpu.dot_dimension_numbers<[1], [0], [0], [1], [0, 0, 1, 1], [], []>} : vector<128x64xbf16>, vector<64x32xbf16>, vector<128x32xf32> -> vector<128x32xf32>
    %c1_127 = arith.constant 1 : index
    %c0_128 = arith.constant 0 : index
    %c0_129 = arith.constant 0 : index
    %353 = vector.load %arg11[%c1_127, %c0_128, %c0_129] : memref<2x1x32xf32, #tpu.memory_space<vmem>>, vector<1x1x32xf32>
    %354 = vector.shape_cast %353 : vector<1x1x32xf32> to vector<1x32xf32>
    %355 = vector.broadcast %354 : vector<1x32xf32> to vector<128x32xf32>
    %356 = arith.addf %352, %355 : vector<128x32xf32>
    %357 = arith.addf %356, %338 : vector<128x32xf32>
    %c1_130 = arith.constant 1 : index
    %c0_131 = arith.constant 0 : index
    %c0_132 = arith.constant 0 : index
    %358 = vector.load %arg12[%c1_130, %c0_131, %c0_132] : memref<2x1x32xf32, #tpu.memory_space<vmem>>, vector<1x1x32xf32>
    %359 = vector.shape_cast %358 : vector<1x1x32xf32> to vector<1x32xf32>
    %c1_133 = arith.constant 1 : index
    %c0_134 = arith.constant 0 : index
    %c0_135 = arith.constant 0 : index
    %360 = vector.load %arg13[%c1_133, %c0_134, %c0_135] : memref<2x1x32xf32, #tpu.memory_space<vmem>>, vector<1x1x32xf32>
    %361 = vector.shape_cast %360 : vector<1x1x32xf32> to vector<1x32xf32>
    %cst_136 = arith.constant dense<0.000000e+00> : vector<128xf32>
    %362 = vector.multi_reduction <add>, %357, %cst_136 [1] : vector<128x32xf32> to vector<128xf32>
    %363 = vector.shape_cast %362 : vector<128xf32> to vector<128x1xf32>
    %cst_137 = arith.constant 3.200000e+01 : f32
    %364 = vector.broadcast %cst_137 : f32 to vector<128x1xf32>
    %365 = arith.divf %363, %364 : vector<128x1xf32>
    %366 = vector.broadcast %365 : vector<128x1xf32> to vector<128x32xf32>
    %367 = arith.subf %357, %366 : vector<128x32xf32>
    %368 = arith.mulf %367, %367 : vector<128x32xf32>
    %cst_138 = arith.constant dense<0.000000e+00> : vector<128xf32>
    %369 = vector.multi_reduction <add>, %368, %cst_138 [1] : vector<128x32xf32> to vector<128xf32>
    %370 = vector.shape_cast %369 : vector<128xf32> to vector<128x1xf32>
    %cst_139 = arith.constant 3.200000e+01 : f32
    %371 = vector.broadcast %cst_139 : f32 to vector<128x1xf32>
    %372 = arith.divf %370, %371 : vector<128x1xf32>
    %373 = vector.broadcast %365 : vector<128x1xf32> to vector<128x32xf32>
    %374 = arith.subf %357, %373 : vector<128x32xf32>
    %cst_140 = arith.constant 9.99999997E-7 : f32
    %375 = vector.broadcast %cst_140 : f32 to vector<128x1xf32>
    %376 = arith.addf %372, %375 : vector<128x1xf32>
    %377 = math.rsqrt %376 : vector<128x1xf32>
    %378 = vector.broadcast %377 : vector<128x1xf32> to vector<128x32xf32>
    %379 = arith.mulf %374, %378 : vector<128x32xf32>
    %380 = vector.broadcast %359 : vector<1x32xf32> to vector<128x32xf32>
    %381 = arith.mulf %379, %380 : vector<128x32xf32>
    %382 = vector.broadcast %361 : vector<1x32xf32> to vector<128x32xf32>
    %383 = arith.addf %381, %382 : vector<128x32xf32>
    %c0_141 = arith.constant 0 : index
    %c0_142 = arith.constant 0 : index
    %384 = vector.load %arg14[%c0_141, %c0_142] : memref<128x32xf32, #tpu.memory_space<vmem>>, vector<128x32xf32>
    tpu.vector_store %arg14[%c0_141, %c0_142], %383 {strides = array<i32>} : memref<128x32xf32, #tpu.memory_space<vmem>>, vector<128x32xf32>,
    return
  }
  func.func @transform_0(%arg0: i32) -> (i32, i32) {
    %c0_i32 = arith.constant 0 : i32
    %c0_i32_0 = arith.constant 0 : i32
    return %arg0, %c0_i32 : i32, i32
  }
  func.func @transform_1(%arg0: i32) -> (i32, i32) {
    %c0_i32 = arith.constant 0 : i32
    %c0_i32_0 = arith.constant 0 : i32
    %c0_i32_1 = arith.constant 0 : i32
    return %c0_i32, %c0_i32_0 : i32, i32
  }
  func.func @transform_2(%arg0: i32) -> (i32, i32, i32) {
    %c0_i32 = arith.constant 0 : i32
    %c0_i32_0 = arith.constant 0 : i32
    %c0_i32_1 = arith.constant 0 : i32
    %c0_i32_2 = arith.constant 0 : i32
    return %c0_i32, %c0_i32_0, %c0_i32_1 : i32, i32, i32
  }
  func.func @transform_3(%arg0: i32) -> (i32, i32, i32) {
    %c0_i32 = arith.constant 0 : i32
    %c0_i32_0 = arith.constant 0 : i32
    %c0_i32_1 = arith.constant 0 : i32
    %c0_i32_2 = arith.constant 0 : i32
    return %c0_i32, %c0_i32_0, %c0_i32_1 : i32, i32, i32
  }
  func.func @transform_4(%arg0: i32) -> (i32, i32, i32, i32) {
    %c0_i32 = arith.constant 0 : i32
    %c0_i32_0 = arith.constant 0 : i32
    %c0_i32_1 = arith.constant 0 : i32
    %c0_i32_2 = arith.constant 0 : i32
    %c0_i32_3 = arith.constant 0 : i32
    return %c0_i32, %c0_i32_0, %c0_i32_1, %c0_i32_2 : i32, i32, i32, i32
  }
  func.func @transform_5(%arg0: i32) -> (i32, i32, i32) {
    %c0_i32 = arith.constant 0 : i32
    %c0_i32_0 = arith.constant 0 : i32
    %c0_i32_1 = arith.constant 0 : i32
    %c0_i32_2 = arith.constant 0 : i32
    return %c0_i32, %c0_i32_0, %c0_i32_1 : i32, i32, i32
  }
  func.func @transform_6(%arg0: i32) -> (i32, i32, i32) {
    %c0_i32 = arith.constant 0 : i32
    %c0_i32_0 = arith.constant 0 : i32
    %c0_i32_1 = arith.constant 0 : i32
    %c0_i32_2 = arith.constant 0 : i32
    return %c0_i32, %c0_i32_0, %c0_i32_1 : i32, i32, i32
  }
  func.func @transform_7(%arg0: i32) -> (i32, i32, i32) {
    %c0_i32 = arith.constant 0 : i32
    %c0_i32_0 = arith.constant 0 : i32
    %c0_i32_1 = arith.constant 0 : i32
    %c0_i32_2 = arith.constant 0 : i32
    return %c0_i32, %c0_i32_0, %c0_i32_1 : i32, i32, i32
  }
  func.func @transform_8(%arg0: i32) -> (i32, i32, i32) {
    %c0_i32 = arith.constant 0 : i32
    %c0_i32_0 = arith.constant 0 : i32
    %c0_i32_1 = arith.constant 0 : i32
    %c0_i32_2 = arith.constant 0 : i32
    return %c0_i32, %c0_i32_0, %c0_i32_1 : i32, i32, i32
  }
  func.func @transform_9(%arg0: i32) -> (i32, i32, i32) {
    %c0_i32 = arith.constant 0 : i32
    %c0_i32_0 = arith.constant 0 : i32
    %c0_i32_1 = arith.constant 0 : i32
    %c0_i32_2 = arith.constant 0 : i32
    return %c0_i32, %c0_i32_0, %c0_i32_1 : i32, i32, i32
  }
  func.func @transform_10(%arg0: i32) -> (i32, i32, i32) {
    %c0_i32 = arith.constant 0 : i32
    %c0_i32_0 = arith.constant 0 : i32
    %c0_i32_1 = arith.constant 0 : i32
    %c0_i32_2 = arith.constant 0 : i32
    return %c0_i32, %c0_i32_0, %c0_i32_1 : i32, i32, i32
  }
  func.func @transform_11(%arg0: i32) -> (i32, i32, i32) {
    %c0_i32 = arith.constant 0 : i32
    %c0_i32_0 = arith.constant 0 : i32
    %c0_i32_1 = arith.constant 0 : i32
    %c0_i32_2 = arith.constant 0 : i32
    return %c0_i32, %c0_i32_0, %c0_i32_1 : i32, i32, i32
  }
  func.func @transform_12(%arg0: i32) -> (i32, i32, i32) {
    %c0_i32 = arith.constant 0 : i32
    %c0_i32_0 = arith.constant 0 : i32
    %c0_i32_1 = arith.constant 0 : i32
    %c0_i32_2 = arith.constant 0 : i32
    return %c0_i32, %c0_i32_0, %c0_i32_1 : i32, i32, i32
  }
  func.func @transform_13(%arg0: i32) -> (i32, i32) {
    %c0_i32 = arith.constant 0 : i32
    %c0_i32_0 = arith.constant 0 : i32
    return %arg0, %c0_i32 : i32, i32
  }
}

</mosaic_0001>

<bundles_post_ra>
// kernel: tpu_custom_call.1
= control target key start
LH: loop header
LB: loop body
LE: loop exit
PB: predicated region body
PF: predicated region fallthrough
CT: control target
= control target key end

     0   :  { %s20353_s25 = smov 0   ;;  %s25415_s0 = inlined_call_operand.vmem [shape: f32[256,32], index: 0, kind: input, shape index: {}]   ;;  %s25416_s1 = inlined_call_operand.vmem [shape: f32[128,128], index: 1, kind: input, shape index: {}]   ;;  %s25417_s2 = inlined_call_operand.vmem [shape: f32[2,16,16], index: 2, kind: input, shape index: {}]   ;;  %s25418_s3 = inlined_call_operand.vmem [shape: bf16[2,32,96], index: 3, kind: input, shape index: {}]   ;;  %s25419_s4 = inlined_call_operand.vmem [shape: bf16[2,4,8,32], index: 4, kind: input, shape index: {}]   ;;  %s25420_s5 = inlined_call_operand.vmem [shape: f32[2,1,32], index: 5, kind: input, shape index: {}]   ;;  %s25421_s6 = inlined_call_operand.vmem [shape: f32[2,1,32], index: 6, kind: input, shape index: {}]   ;;  %s25422_s7 = inlined_call_operand.vmem [shape: bf16[2,32,64], index: 7, kind: input, shape index: {}]   ;;  %s25423_s8 = inlined_call_operand.vmem [shape: f32[2,1,64], index: 8, kind: input, shape index: {}]   ;;  %s25424_s9 = inlined_call_operand.vmem [shape: bf16[2,64,32], index: 9, kind: input, shape index: {}]   ;;  %s25425_s10 = inlined_call_operand.vmem [shape: f32[2,1,32], index: 10, kind: input, shape index: {}]   ;;  %s25426_s11 = inlined_call_operand.vmem [shape: f32[2,1,32], index: 11, kind: input, shape index: {}]   ;;  %s25427_s12 = inlined_call_operand.vmem [shape: f32[2,1,32], index: 12, kind: input, shape index: {}]   ;;  %s25428_s13 = inlined_call_operand.vmem [shape: f32[256,32], index: 13, kind: output, shape index: {}]  }
   0x1 LB: > { %s16958_s26 = sadd.s32 4294967295, %s20273_s25   ;;  %p16962_p0 = scmp.ge.s32.totalorder %s20273_s25, 1  ;;  %s20273_s25 = sphi %s20353_s25, %s23_s25  }
   0x2   : > { %p388_p1 = scmp.lt.s32.totalorder %s20273_s25, 3 }
   0x4   : > { %p389_p2 = pnand %p16962_p0, %p388_p1 }
   0x6   : > { %392 = sbr.rel (%p389_p2) target bundleno = 9237 (0x2415), region = 72 }
   0xb   : > { %v19569_v0 = vld [vmem:[%s25418_s3 + $0x8] sm:$0xff]   ;;  %s16963_s29 = sshll.u32 %s16958_s26, 4  ;;  %v19570_v1 = vld [vmem:[%s25418_s3] sm:$0xff]   ;;  %vm507_vm0 = vcmask 261120   ;;  %s20275_s19 = smov 64   ;;  %v467_v43 = vld [vmem:[%s25416_s1 + $0x30] sm:$0xff] }
   0xc   : > { %p433_p3 = scmp.lt.s32.totalorder %s16963_s29, 31  ;;  %18233 = vmatprep.subr.bf16.mxu0 %v19569_v0  ;;  %v461_v42 = vld [vmem:[%s25416_s1] sm:$0xff]  ;;  %18294 = vmatprep.mubr.f32.mxu1 %v467_v43  ;;  %s20276_s24 = smov 96   ;;  %v462_v61 = vld [vmem:[%s25416_s1 + $0x8] sm:$0xff]  ;;  %v468_v62 = vld [vmem:[%s25416_s1 + $0x38] sm:$0xff]  ;;  %vm842_vm1 = vcmask 64512  }
   0xd   : > { %18234 = vmatpush3.bf16.msra.mxu0 %v19569_v0  ;;  %s20277_s26 = smov 88   ;;  %s20278_s27 = smov 120   ;;  %v463_v63 = vld [vmem:[%s25416_s1 + $0x10] sm:$0xff]  ;;  %v469_v0 = vld [vmem:[%s25416_s1 + $0x40] sm:$0xff]  ;;  %vm1551_vm2 = vcmask 130048   ;;  %vm4048_vm3 = vcmask 1043456  }
   0xe   : > { %s25780_s29 = smov (!%p433_p3, %s16963_s29), 31  ;;  %18235 = vmatprep.subr.bf16.mxu0 %v19570_v1  ;;  %s20279_s20 = smov 80   ;;  %vm8287_vm4 = vcmask 523264  }
   0xf   : > { %s16964_s15 = sshll.u32 %s25780_s29, 3  ;;  %s20280_s21 = smov 112  }
  0x10   : > { %s20375_s18 = scalar_lea.vmem %s25415_s0, %s16964_s15  ;;  %s20281_s23 = smov 72  }
  0x11   : > { %18236 = vmatpush3.bf16.msra.mxu0 %v19570_v1  ;;  %v445_v2 = vld [vmem:[%s20375_s18] sm:$0xff]  ;;  %v446_v3 = vld [vmem:[%s20375_s18 + $0x8] sm:$0xff]  ;;  %v447_v4 = vld [vmem:[%s20375_s18 + $0x10] sm:$0xff]  ;;  %s20282_s28 = smov 104  }
  0x12   : > { %v483_v5 = vpack.c.bf16 %v446_v3, %v445_v2  ;;  %v448_v6 = vld [vmem:[%s20375_s18 + $0x18] sm:$0xff]  ;;  %v449_v7 = vld [vmem:[%s20375_s18 + $0x20] sm:$0xff]  ;;  %v450_v8 = vld [vmem:[%s20375_s18 + $0x28] sm:$0xff] }
  0x13   : > { %v484_v9 = vpack.c.bf16 %v448_v6, %v447_v4  ;;  %v485_v10 = vpack.c.bf16 %v450_v8, %v449_v7  ;;  %v451_v11 = vld [vmem:[%s20375_s18 + $0x30] sm:$0xff]  ;;  %v452_v12 = vld [vmem:[%s20375_s18 + $0x38] sm:$0xff]  ;;  %v453_v13 = vld [vmem:[%s20375_s18 + $0x40] sm:$0xff] }
  0x14   : > { %18237 = vmatprep.mubr.msk.bf16.mxu0 %vm507_vm0, %v483_v5  ;;  %v454_v14 = vld [vmem:[%s20375_s18 + $0x48] sm:$0xff]  ;;  %v486_v15 = vpack.c.bf16 %v452_v12, %v451_v11  ;;  %v455_v17 = vld [vmem:[%s20375_s18 + $0x50] sm:$0xff]  ;;  %v456_v18 = vld [vmem:[%s20375_s18 + $0x58] sm:$0xff] }
  0x15   : > { %18238 = vmatmul.mubr.msk.bf16.vlgmr.msra.gmra.mxu0 %vm507_vm0, %v484_v9  ;;  %v487_v16 = vpack.c.bf16 %v454_v14, %v453_v13  ;;  %v457_v19 = vld [vmem:[%s20375_s18 + $0x60] sm:$0xff]  ;;  %v458_v20 = vld [vmem:[%s20375_s18 + $0x68] sm:$0xff]  ;;  %v488_v21 = vpack.c.bf16 %v456_v18, %v455_v17  ;;  %v459_v23 = vld [vmem:[%s20375_s18 + $0x70] sm:$0xff] }
  0x16   : > { %18241 = vmatprep.mubr.msk.bf16.mxu0 %vm507_vm0, %v485_v10  ;;  %v489_v22 = vpack.c.bf16 %v458_v20, %v457_v19  ;;  %v460_v24 = vld [vmem:[%s20375_s18 + $0x78] sm:$0xff]  ;;  %v470_v3 = vld [vmem:[%s25416_s1 + $0x48] sm:$0xff]  ;;  %v465_v5 = vld [vmem:[%s25416_s1 + $0x20] sm:$0xff] }
  0x17   : > { %v490_v25 = vpack.c.bf16 %v460_v24, %v459_v23  ;;  %v464_v2 = vld [vmem:[%s25416_s1 + $0x18] sm:$0xff]  ;;  %v471_v6 = vld [vmem:[%s25416_s1 + $0x50] sm:$0xff]  ;;  %v466_v8 = vld [vmem:[%s25416_s1 + $0x28] sm:$0xff] }
  0x18   : > { %v472_v9 = vld [vmem:[%s25416_s1 + $0x58] sm:$0xff]  ;;  %v473_v10 = vld [vmem:[%s25416_s1 + $0x60] sm:$0xff]  ;;  %v474_v13 = vld [vmem:[%s25416_s1 + $0x68] sm:$0xff] }
  0x19   : > { %v475_v14 = vld [vmem:[%s25416_s1 + $0x70] sm:$0xff] }
  0x1d   : > { %18242 = vmatmul.mubr.msk.bf16.gmra.mxu0 %vm507_vm0, %v486_v15 }
  0x1e   : > { %18245 = vmatprep.mubr.msk.bf16.mxu0 %vm507_vm0, %v487_v16  ;;  %v476_v16 = vld [vmem:[%s25416_s1 + $0x78] sm:$0xff] }
  0x25   : > { %18246 = vmatmul.mubr.msk.bf16.gmra.mxu0 %vm507_vm0, %v488_v21 }
  0x26   : > { %18249 = vmatprep.mubr.msk.bf16.mxu0 %vm507_vm0, %v489_v22 }
  0x2d   : > { %18250 = vmatmul.mubr.msk.bf16.gmra.mxu0 %vm507_vm0, %v490_v25 }
  0x2e   : > { %18285 = vmatprep.mubr.f32.mxu0 %v461_v42 }
  0xd5   : > { %v20401_v26 = vpop.f32.mrf.mxu0 }
  0xd6   : > { %25524 = vst [vmem:[#allocation2_spill] sm:$0xff] %v20401_v26 }
  0xd7   : > { %v20403_v27 = vpop.f32.mrf.mxu0 }
  0xd8   : > { %25525 = vst [vmem:[#allocation3_spill] sm:$0xff] %v20403_v27 }
  0xd9   : > { %v20405_v28 = vpop.f32.mrf.mxu0 }
  0xda   : > { %25526 = vst [vmem:[#allocation4_spill] sm:$0xff] %v20405_v28 }
  0xdb   : > { %v20407_v29 = vpop.f32.mrf.mxu0 }
  0xdc   : > { %25527 = vst [vmem:[#allocation5_spill] sm:$0xff] %v20407_v29 }
  0xdd   : > { %v20409_v30 = vpop.f32.mrf.mxu0 }
  0xde   : > { %25528 = vst [vmem:[#allocation6_spill] sm:$0xff] %v20409_v30 }
  0xdf   : > { %v20411_v31 = vpop.f32.mrf.mxu0 }
  0xe0   : > { %25529 = vst [vmem:[#allocation7_spill] sm:$0xff] %v20411_v31 }
  0xe1   : > { %v20413_v32 = vpop.f32.mrf.mxu0 }
  0xe3   : > { %v20415_v33 = vpop.f32.mrf.mxu0 }
  0xe4   : > { %25530 = vst [vmem:[#allocation8_spill] sm:$0xff] %v20415_v33 }
  0xe5   : > { %v20417_v34 = vpop.f32.mrf.mxu0 }
  0xe7   : > { %v20419_v35 = vpop.f32.mrf.mxu0 }
  0xe8   : > { %25531 = vst [vmem:[#allocation9_spill] sm:$0xff] %v20419_v35 }
  0xe9   : > { %v20421_v36 = vpop.f32.mrf.mxu0 }
  0xeb   : > { %v20423_v37 = vpop.f32.mrf.mxu0 }
  0xed   : > { %v20425_v38 = vpop.f32.mrf.mxu0 }
  0xef   : > { %v20427_v39 = vpop.f32.mrf.mxu0 }
  0xf1   : > { %v20429_v40 = vpop.f32.mrf.mxu0 }
  0xf2   : > { %25532 = vst [vmem:[#allocation10_spill] sm:$0xff] %v20429_v40  ;;  %675 = vrot.lane.b32.xlu0 %v20429_v40, %s20275_s19 }
  0xf3   : > { %v20433_v41 = vpop.f32.mrf.mxu0 }
  0xf4   : > { %25533 = vst [vmem:[#allocation11_spill] sm:$0xff] %v20433_v41  ;;  %671 = vrot.lane.b32.xlu1 %v20433_v41, %s20275_s19 }
  0xf6   : > { %673 = vrot.lane.b32.xlu0 %v20425_v38, %s20275_s19 }
  0xf8   : > { %669 = vrot.lane.b32.xlu1 %v20427_v39, %s20275_s19 }
  0xfa   : > { %667 = vrot.lane.b32.xlu0 %v20421_v36, %s20275_s19 }
  0xfc   : > { %665 = vrot.lane.b32.xlu1 %v20417_v34, %s20275_s19 }
  0xfe   : > { %663 = vrot.lane.b32.xlu0 %v20423_v37, %s20275_s19 }
 0x100   : > { %661 = vrot.lane.b32.xlu1 %v20419_v35, %s20275_s19 }
 0x102   : > { %659 = vrot.lane.b32.xlu0 %v20413_v32, %s20275_s19 }
 0x104   : > { %657 = vrot.lane.b32.xlu1 %v20409_v30, %s20275_s19 }
 0x106   : > { %655 = vrot.lane.b32.xlu0 %v20415_v33, %s20275_s19 }
 0x108   : > { %653 = vrot.lane.b32.xlu1 %v20411_v31, %s20275_s19 }
 0x10a   : > { %651 = vrot.lane.b32.xlu0 %v20405_v28, %s20275_s19 }
 0x10c   : > { %649 = vrot.lane.b32.xlu1 %v20401_v26, %s20275_s19 }
 0x10e   : > { %647 = vrot.lane.b32.xlu0 %v20407_v29, %s20275_s19 }
 0x110   : > { %645 = vrot.lane.b32.xlu1 %v20403_v27, %s20275_s19 }
 0x112   : > { %840 = vrot.lane.b32.xlu0 %v20407_v29, %s20276_s24 }
 0x114   : > { %838 = vrot.lane.b32.xlu1 %v20403_v27, %s20276_s24 }
 0x116   : > { %928 = vrot.lane.b32.xlu0 %v20405_v28, %s20276_s24 }
 0x118   : > { %926 = vrot.lane.b32.xlu1 %v20401_v26, %s20276_s24 }
 0x11a   : > { %1015 = vrot.lane.b32.xlu0 %v20415_v33, %s20276_s24 }
 0x11c   : > { %1013 = vrot.lane.b32.xlu1 %v20411_v31, %s20276_s24 }
 0x11e   : > { %1102 = vrot.lane.b32.xlu0 %v20413_v32, %s20276_s24 }
 0x120   : > { %1100 = vrot.lane.b32.xlu1 %v20409_v30, %s20276_s24 }
 0x122   : > { %1189 = vrot.lane.b32.xlu0 %v20423_v37, %s20276_s24 }
 0x124   : > { %1276 = vrot.lane.b32.xlu1 %v20421_v36, %s20276_s24 }
 0x126   : > { %1187 = vrot.lane.b32.xlu0 %v20419_v35, %s20276_s24 }
 0x128   : > { %1274 = vrot.lane.b32.xlu1 %v20417_v34, %s20276_s24 }
 0x12a   : > { %1363 = vrot.lane.b32.xlu0 %v20433_v41, %s20276_s24 }
 0x12c   : > { %1450 = vrot.lane.b32.xlu1 %v20429_v40, %s20276_s24 }
 0x12e   : > { %1361 = vrot.lane.b32.xlu0 %v20427_v39, %s20276_s24 }
 0x130   : > { %1448 = vrot.lane.b32.xlu1 %v20425_v38, %s20276_s24 }
 0x132   : > { %2481 = vrot.lane.b32.xlu0 %v20405_v28, %s20277_s26 }
 0x134   : > { %2390 = vrot.lane.b32.xlu1 %v20407_v29, %s20277_s26 }
 0x136   : > { %2384 = vrot.lane.b32.xlu0 %v20403_v27, %s20278_s27 }
 0x138   : > { %2388 = vrot.lane.b32.xlu1 %v20403_v27, %s20277_s26 }
 0x13a   : > { %2475 = vrot.lane.b32.xlu0 %v20401_v26, %s20278_s27 }
 0x13c   : > { %2479 = vrot.lane.b32.xlu1 %v20401_v26, %s20277_s26 }
 0x13e   : > { %2477 = vrot.lane.b32.xlu0 %v20405_v28, %s20278_s27 }
 0x140   : > { %2386 = vrot.lane.b32.xlu1 %v20407_v29, %s20278_s27 }
 0x144   : > { %2572 = vrot.lane.b32.xlu1 %v20415_v33, %s20277_s26 }
 0x148   : > { %2663 = vrot.lane.b32.xlu1 %v20413_v32, %s20277_s26 }
 0x164   : > { %v676_v44 = vpop.permute.xlu0 %675 }
 0x165   : > { %18253 = vmatprep.subr.mxu0 %v676_v44  ;;  %19513 = vmatprep.subr.mxu1 %v676_v44 }
 0x166   : > { %18254 = vmatpush3.msra.mxu0 %v676_v44  ;;  %19529 = vmatpush3.msra.mxu1 %v676_v44  ;;  %v672_v45 = vpop.permute.xlu1 %671 }
 0x168   : > { %v674_v46 = vpop.permute.xlu0 %673 }
 0x169   : > { %18255 = vmatprep.subr.mxu0 %v674_v46  ;;  %19514 = vmatprep.subr.mxu1 %v674_v46 }
 0x16a   : > { %18256 = vmatpush3.msra.mxu0 %v674_v46  ;;  %19530 = vmatpush3.msra.mxu1 %v674_v46  ;;  %v670_v47 = vpop.permute.xlu1 %669 }
 0x16b   : > { %18257 = vmatprep.subr.mxu0 %v672_v45  ;;  %19515 = vmatprep.subr.mxu1 %v672_v45 }
 0x16c   : > { %v668_v48 = vpop.permute.xlu0 %667  ;;  %18258 = vmatpush3.msra.mxu0 %v672_v45  ;;  %19531 = vmatpush3.msra.mxu1 %v672_v45 }
 0x16d   : > { %18259 = vmatprep.subr.mxu0 %v670_v47  ;;  %19516 = vmatprep.subr.mxu1 %v670_v47 }
 0x16e   : > { %18260 = vmatpush3.msra.mxu0 %v670_v47  ;;  %19532 = vmatpush3.msra.mxu1 %v670_v47  ;;  %v666_v49 = vpop.permute.xlu1 %665 }
 0x16f   : > { %18261 = vmatprep.subr.mxu0 %v668_v48  ;;  %19517 = vmatprep.subr.mxu1 %v668_v48 }
 0x170   : > { %v664_v50 = vpop.permute.xlu0 %663  ;;  %18262 = vmatpush3.msra.mxu0 %v668_v48  ;;  %19533 = vmatpush3.msra.mxu1 %v668_v48 }
 0x171   : > { %18263 = vmatprep.subr.mxu0 %v666_v49  ;;  %19518 = vmatprep.subr.mxu1 %v666_v49 }
 0x172   : > { %18264 = vmatpush3.msra.mxu0 %v666_v49  ;;  %19534 = vmatpush3.msra.mxu1 %v666_v49  ;;  %v662_v51 = vpop.permute.xlu1 %661 }
 0x173   : > { %18265 = vmatprep.subr.mxu0 %v664_v50  ;;  %19519 = vmatprep.subr.mxu1 %v664_v50 }
 0x174   : > { %v660_v52 = vpop.permute.xlu0 %659  ;;  %18266 = vmatpush3.msra.mxu0 %v664_v50  ;;  %19535 = vmatpush3.msra.mxu1 %v664_v50 }
 0x175   : > { %18267 = vmatprep.subr.mxu0 %v662_v51  ;;  %19520 = vmatprep.subr.mxu1 %v662_v51 }
 0x176   : > { %18268 = vmatpush3.msra.mxu0 %v662_v51  ;;  %19536 = vmatpush3.msra.mxu1 %v662_v51  ;;  %v658_v53 = vpop.permute.xlu1 %657 }
 0x177   : > { %18269 = vmatprep.subr.mxu0 %v660_v52  ;;  %19521 = vmatprep.subr.mxu1 %v660_v52 }
 0x178   : > { %v656_v54 = vpop.permute.xlu0 %655  ;;  %18270 = vmatpush3.msra.mxu0 %v660_v52  ;;  %19537 = vmatpush3.msra.mxu1 %v660_v52 }
 0x179   : > { %18271 = vmatprep.subr.mxu0 %v658_v53  ;;  %19522 = vmatprep.subr.mxu1 %v658_v53 }
 0x17a   : > { %18272 = vmatpush3.msra.mxu0 %v658_v53  ;;  %19538 = vmatpush3.msra.mxu1 %v658_v53  ;;  %v654_v55 = vpop.permute.xlu1 %653 }
 0x17b   : > { %18273 = vmatprep.subr.mxu0 %v656_v54  ;;  %19523 = vmatprep.subr.mxu1 %v656_v54 }
 0x17c   : > { %v652_v56 = vpop.permute.xlu0 %651  ;;  %18274 = vmatpush3.msra.mxu0 %v656_v54  ;;  %19539 = vmatpush3.msra.mxu1 %v656_v54  ;;  %v20663_v54 = vld [vmem:[%s25417_s2 + $0x8] sm:$0xff] }
 0x17d   : > { %18275 = vmatprep.subr.mxu0 %v654_v55  ;;  %19524 = vmatprep.subr.mxu1 %v654_v55  ;;  %25545 = vst [vmem:[#allocation23_spill] sm:$0xff] %v20663_v54 }
 0x17e   : > { %18276 = vmatpush3.msra.mxu0 %v654_v55  ;;  %19540 = vmatpush3.msra.mxu1 %v654_v55  ;;  %v650_v57 = vpop.permute.xlu1 %649 }
 0x17f   : > { %18277 = vmatprep.subr.mxu0 %v652_v56  ;;  %19525 = vmatprep.subr.mxu1 %v652_v56 }
 0x180   : > { %v648_v58 = vpop.permute.xlu0 %647  ;;  %18278 = vmatpush3.msra.mxu0 %v652_v56  ;;  %19541 = vmatpush3.msra.mxu1 %v652_v56 }
 0x181   : > { %18279 = vmatprep.subr.mxu0 %v650_v57  ;;  %19526 = vmatprep.subr.mxu1 %v650_v57 }
 0x182   : > { %18280 = vmatpush3.msra.mxu0 %v650_v57  ;;  %19542 = vmatpush3.msra.mxu1 %v650_v57  ;;  %v646_v59 = vpop.permute.xlu1 %645  ;;  %v20672_v57 = vld [vmem:[%s25417_s2] sm:$0xff] }
 0x183   : > { %18281 = vmatprep.subr.mxu0 %v648_v58  ;;  %19527 = vmatprep.subr.mxu1 %v648_v58  ;;  %25546 = vst [vmem:[#allocation24_spill] sm:$0xff] %v20672_v57 }
 0x184   : > { %v841_v60 = vpop.permute.xlu0 %840  ;;  %18282 = vmatpush3.msra.mxu0 %v648_v58  ;;  %19543 = vmatpush3.msra.mxu1 %v648_v58 }
 0x185   : > { %18283 = vmatprep.subr.mxu0 %v646_v59  ;;  %19528 = vmatprep.subr.mxu1 %v646_v59 }
 0x186   : > { %18284 = vmatpush3.msra.mxu0 %v646_v59  ;;  %19544 = vmatpush3.msra.mxu1 %v646_v59  ;;  %v839_v4 = vpop.permute.xlu1 %838 }
 0x187   : > { %18286 = vmatmul.mubr.f32.vlgmr.msra.gmra.mxu0 %v462_v61  ;;  %18295 = vmatmul.mubr.f32.vlgmr.msra.gmra.mxu1 %v468_v62 }
 0x188   : > { %18309 = vmatprep.subr.msk.mxu0 %vm842_vm1, %v841_v60  ;;  %v929_v1 = vpop.permute.xlu0 %928  ;;  %18288 = vmatprep.mubr.f32.mxu0 %v463_v63 }
 0x189   : > { %18310 = vmatpush3.xpose.msk.msra.mxu0 %vm842_vm1, %v841_v60  ;;  %18297 = vmatprep.mubr.f32.mxu1 %v469_v0 }
 0x18a   : > { %18311 = vmatprep.subr.msk.mxu0 %vm842_vm1, %v839_v4  ;;  %v927_v11 = vpop.permute.xlu1 %926 }
 0x18b   : > { %18289 = vmatmul.mubr.f32.gmra.mxu0 %v464_v2  ;;  %18298 = vmatmul.mubr.f32.gmra.mxu1 %v470_v3 }
 0x18c   : > { %v1016_v7 = vpop.permute.xlu0 %1015  ;;  %18291 = vmatprep.mubr.f32.mxu0 %v465_v5  ;;  %18300 = vmatprep.mubr.f32.mxu1 %v471_v6 }
 0x18d   : > { %18312 = vmatpush3.xpose.msk.msra.mxu0 %vm842_vm1, %v839_v4 }
 0x18e   : > { %18316 = vmatprep.subr.msk.mxu0 %vm842_vm1, %v929_v1  ;;  %v1014_v17 = vpop.permute.xlu1 %1013 }
 0x18f   : > { %18292 = vmatmul.mubr.f32.gmra.mxu0 %v466_v8  ;;  %18301 = vmatmul.mubr.f32.gmra.mxu1 %v472_v9 }
 0x190   : > { %v1103_v12 = vpop.permute.xlu0 %1102  ;;  %18313 = vmatprep.mubr.msk.f32.mxu0 %vm842_vm1, %v20403_v27  ;;  %18303 = vmatprep.mubr.f32.mxu1 %v473_v10 }
 0x192   : > { %v1101_v19 = vpop.permute.xlu1 %1100 }
 0x193   : > { %18304 = vmatmul.mubr.f32.gmra.mxu1 %v474_v13  ;;  %18314 = vmatmul.mubr.msk.f32.vlgmr.msra.gmra.mxu0 %vm842_vm1, %v20407_v29 }
 0x194   : > { %18317 = vmatpush3.xpose.msk.msra.mxu0 %vm842_vm1, %v929_v1  ;;  %v1190_v15 = vpop.permute.xlu0 %1189  ;;  %18320 = vmatprep.mubr.msk.f32.mxu0 %vm842_vm1, %v20401_v26 }
 0x195   : > { %18318 = vmatprep.subr.msk.mxu0 %vm842_vm1, %v927_v11  ;;  %18337 = vmatprep.subr.msk.mxu1 %vm842_vm1, %v1190_v15 }
 0x196   : > { %18306 = vmatprep.mubr.f32.mxu1 %v475_v14  ;;  %18338 = vmatpush3.xpose.msk.msra.mxu1 %vm842_vm1, %v1190_v15  ;;  %v1277_v22 = vpop.permute.xlu1 %1276 }
 0x197   : > { %18307 = vmatmul.mubr.f32.gmra.mxu1 %v476_v16 }
 0x198   : > { %18319 = vmatpush3.xpose.msk.msra.mxu0 %vm842_vm1, %v927_v11  ;;  %v1188_v18 = vpop.permute.xlu0 %1187  ;;  %18341 = vmatprep.mubr.msk.f32.mxu1 %vm842_vm1, %v20419_v35 }
 0x199   : > { %18323 = vmatprep.subr.msk.mxu0 %vm842_vm1, %v1016_v7  ;;  %18339 = vmatprep.subr.msk.mxu1 %vm842_vm1, %v1188_v18 }
 0x19a   : > { %18340 = vmatpush3.xpose.msk.msra.mxu1 %vm842_vm1, %v1188_v18  ;;  %v1275_v23 = vpop.permute.xlu1 %1274 }
 0x19b   : > { %18321 = vmatmul.mubr.msk.f32.vlgmr.msra.gmra.mxu0 %vm842_vm1, %v20405_v28 }
 0x19c   : > { %18324 = vmatpush3.xpose.msk.msra.mxu0 %vm842_vm1, %v1016_v7  ;;  %18327 = vmatprep.mubr.msk.f32.mxu0 %vm842_vm1, %v20411_v31  ;;  %v1364_v20 = vpop.permute.xlu0 %1363 }
 0x19d   : > { %18325 = vmatprep.subr.msk.mxu0 %vm842_vm1, %v1014_v17  ;;  %18342 = vmatmul.mubr.msk.f32.vlgmr.msra.gmra.mxu1 %vm842_vm1, %v20423_v37 }
 0x19e   : > { %18351 = vmatprep.subr.msk.mxu1 %vm842_vm1, %v1364_v20  ;;  %18355 = vmatprep.mubr.msk.f32.mxu1 %vm842_vm1, %v20427_v39  ;;  %v1451_v24 = vpop.permute.xlu1 %1450 }
 0x19f   : > { %18352 = vmatpush3.xpose.msk.msra.mxu1 %vm842_vm1, %v1364_v20 }
 0x1a0   : > { %18326 = vmatpush3.xpose.msk.msra.mxu0 %vm842_vm1, %v1014_v17  ;;  %v1362_v21 = vpop.permute.xlu0 %1361 }
 0x1a1   : > { %18330 = vmatprep.subr.msk.mxu0 %vm842_vm1, %v1103_v12  ;;  %18353 = vmatprep.subr.msk.mxu1 %vm842_vm1, %v1362_v21 }
 0x1a2   : > { %v1449_v25 = vpop.permute.xlu1 %1448 }
 0x1a3   : > { %18328 = vmatmul.mubr.msk.f32.vlgmr.msra.gmra.mxu0 %vm842_vm1, %v20415_v33  ;;  %18354 = vmatpush3.xpose.msk.msra.mxu1 %vm842_vm1, %v1362_v21 }
 0x1a4   : > { %18331 = vmatpush3.xpose.msk.msra.mxu0 %vm842_vm1, %v1103_v12  ;;  %18334 = vmatprep.mubr.msk.f32.mxu0 %vm842_vm1, %v20409_v30 }
 0x1a5   : > { %18332 = vmatprep.subr.msk.mxu0 %vm842_vm1, %v1101_v19 }
 0x1a6   : > { %18356 = vmatmul.mubr.msk.f32.vlgmr.msra.gmra.mxu1 %vm842_vm1, %v20433_v41 }
 0x1a8   : > { %18333 = vmatpush3.xpose.msk.msra.mxu0 %vm842_vm1, %v1101_v19 }
 0x1a9   : > { %18344 = vmatprep.subr.msk.mxu0 %vm842_vm1, %v1277_v22 }
 0x1ab   : > { %18335 = vmatmul.mubr.msk.f32.vlgmr.msra.gmra.mxu0 %vm842_vm1, %v20413_v32 }
 0x1ac   : > { %18345 = vmatpush3.xpose.msk.msra.mxu0 %vm842_vm1, %v1277_v22  ;;  %18348 = vmatprep.mubr.msk.f32.mxu0 %vm842_vm1, %v20417_v34 }
 0x1ad   : > { %18346 = vmatprep.subr.msk.mxu0 %vm842_vm1, %v1275_v23 }
 0x1b0   : > { %18347 = vmatpush3.xpose.msk.msra.mxu0 %vm842_vm1, %v1275_v23 }
 0x1b1   : > { %18358 = vmatprep.subr.msk.mxu0 %vm842_vm1, %v1451_v24 }
 0x1b3   : > { %18349 = vmatmul.mubr.msk.f32.vlgmr.msra.gmra.mxu0 %vm842_vm1, %v20421_v36 }
 0x1b4   : > { %18359 = vmatpush3.xpose.msk.msra.mxu0 %vm842_vm1, %v1451_v24  ;;  %18362 = vmatprep.mubr.msk.f32.mxu0 %vm842_vm1, %v20425_v38 }
 0x1b5   : > { %18360 = vmatprep.subr.msk.mxu0 %vm842_vm1, %v1449_v25 }
 0x1b8   : > { %18361 = vmatpush3.xpose.msk.msra.mxu0 %vm842_vm1, %v1449_v25 }
 0x1bb   : > { %18363 = vmatmul.mubr.msk.f32.vlgmr.msra.gmra.mxu0 %vm842_vm1, %v20429_v40 }
 0x247   : > { %v20629_v42 = vpop.f32.mrf.mxu0  ;;  %v20631_v43 = vpop.f32.mrf.mxu1 }
 0x248   : > { %25534 = vst [vmem:[#allocation12_spill] sm:$0xff] %v20631_v43  ;;  %18365 = vmatprep.subr.mxu1 %v20629_v42 }
 0x249   : > { %v20634_v44 = vpop.f32.mrf.mxu0  ;;  %18366 = vmatpush3.msra.mxu1 %v20629_v42  ;;  %v20637_v45 = vpop.f32.mrf.mxu1 }
 0x24a   : > { %25535 = vst [vmem:[#allocation13_spill] sm:$0xff] %v20634_v44  ;;  %25536 = vst [vmem:[#allocation14_spill] sm:$0xff] %v20637_v45  ;;  %18367 = vmatprep.subr.mxu1 %v20634_v44 }
 0x24b   : > { %v20640_v46 = vpop.f32.mrf.mxu0  ;;  %18368 = vmatpush3.msra.mxu1 %v20634_v44  ;;  %v20643_v47 = vpop.f32.mrf.mxu1 }
 0x24c   : > { %25537 = vst [vmem:[#allocation15_spill] sm:$0xff] %v20640_v46  ;;  %25538 = vst [vmem:[#allocation16_spill] sm:$0xff] %v20643_v47  ;;  %18372 = vmatprep.subr.mxu1 %v20640_v46 }
 0x24d   : > { %v20646_v48 = vpop.f32.mrf.mxu0  ;;  %v20648_v49 = vpop.f32.mrf.mxu1 }
 0x24e   : > { %25539 = vst [vmem:[#allocation17_spill] sm:$0xff] %v20646_v48  ;;  %25540 = vst [vmem:[#allocation18_spill] sm:$0xff] %v20648_v49 }
 0x24f   : > { %v20650_v50 = vpop.f32.mrf.mxu0  ;;  %v20652_v51 = vpop.f32.mrf.mxu1 }
 0x250   : > { %25541 = vst [vmem:[#allocation19_spill] sm:$0xff] %v20650_v50  ;;  %25542 = vst [vmem:[#allocation20_spill] sm:$0xff] %v20652_v51  ;;  %18379 = vmatprep.subr.mxu0 %v20650_v50 }
 0x251   : > { %v20655_v52 = vpop.f32.mrf.mxu0  ;;  %18380 = vmatpush3.msra.mxu0 %v20650_v50  ;;  %v20658_v53 = vpop.f32.mrf.mxu1 }
 0x252   : > { %25543 = vst [vmem:[#allocation21_spill] sm:$0xff] %v20655_v52  ;;  %25544 = vst [vmem:[#allocation22_spill] sm:$0xff] %v20658_v53  ;;  %18381 = vmatprep.subr.mxu0 %v20655_v52 }
 0x253   : > { %v18315_v55 = vpop.f32.mrf.mxu0  ;;  %18382 = vmatpush3.msra.mxu0 %v20655_v52  ;;  %v20667_v56 = vpop.f32.mrf.mxu1 }
 0x254   : > { %v20675_v58 = vmul.f32 %v18315_v55, %v20663_v54  ;;  %18393 = vmatprep.subr.mxu0 %v20643_v47 }
 0x255   : > { %v917_v59 = vpop.f32.mrf.mxu0  ;;  %v20678_v60 = vpop.f32.mrf.mxu1 }
 0x256   : > { %25547 = vst [vmem:[#allocation25_spill] sm:$0xff] %v20678_v60  ;;  %v20681_v61 = vmul.f32 %v917_v59, %v20672_v57  ;;  %v1555_v62 = vsel %vm1551_vm2, %v20675_v58, -inf }
 0x257   : > { %1556 = vmax.xlane.f32.xlu1 %v1555_v62  ;;  %v20685_v63 = vpop.f32.mrf.mxu1 }
 0x258   : > { %v1552_v0 = vsel %vm1551_vm2, %v20681_v61, -inf }
 0x259   : > { %1553 = vmax.xlane.f32.xlu0 %v1552_v0  ;;  %v20689_v1 = vpop.f32.mrf.mxu1 }
 0x25b   : > { %v18322_v2 = vpop.f32.mrf.mxu0 }
 0x25c   : > { %v20692_v3 = vmul.f32 %v18322_v2, %v20663_v54 }
 0x25d   : > { %v18343_v4 = vpop.f32.mrf.mxu1  ;;  %v1004_v7 = vpop.f32.mrf.mxu0 }
 0x25e   : > { %v20695_v5 = vmul.f32 %v18343_v4, %v20663_v54  ;;  %v1561_v6 = vsel %vm1551_vm2, %v20692_v3, -inf  ;;  %v20705_v11 = vmul.f32 %v1004_v7, %v20672_v57 }
 0x25f   : > { %1562 = vmax.xlane.f32.xlu0 %v1561_v6  ;;  %v1265_v8 = vpop.f32.mrf.mxu1 }
 0x260   : > { %v20700_v9 = vmul.f32 %v1265_v8, %v20672_v57  ;;  %v1579_v10 = vsel %vm1551_vm2, %v20695_v5, -inf  ;;  %v1558_v18 = vsel %vm1551_vm2, %v20705_v11, -inf }
 0x262   : > { %v1576_v12 = vsel %vm1551_vm2, %v20700_v9, -inf }
 0x263   : > { %1580 = vmax.xlane.f32.xlu0 %v1579_v10  ;;  %v18329_v13 = vpop.f32.mrf.mxu0  ;;  %1577 = vmax.xlane.f32.xlu1 %v1576_v12 }
 0x264   : > { %v20710_v15 = vmul.f32 %v18329_v13, %v20663_v54 }
 0x265   : > { %v1091_v14 = vpop.f32.mrf.mxu0 }
 0x266   : > { %v20713_v16 = vmul.f32 %v1091_v14, %v20672_v57  ;;  %v18357_v17 = vpop.f32.mrf.mxu1  ;;  %v1567_v23 = vsel %vm1551_vm2, %v20710_v15, -inf }
 0x267   : > { %1559 = vmax.xlane.f32.xlu0 %v1558_v18  ;;  %v20723_v22 = vmul.f32 %v18357_v17, %v20663_v54 }
 0x268   : > { %v1439_v19 = vpop.f32.mrf.mxu1  ;;  %v1564_v20 = vsel %vm1551_vm2, %v20713_v16, -inf }
 0x269   : > { %v20720_v21 = vmul.f32 %v1439_v19, %v20672_v57  ;;  %1565 = vmax.xlane.f32.xlu1 %v1564_v20  ;;  %v1591_v0 = vsel %vm1551_vm2, %v20723_v22, -inf }
 0x26b   : > { %1568 = vmax.xlane.f32.xlu0 %v1567_v23  ;;  %v18336_v24 = vpop.f32.mrf.mxu0  ;;  %v1588_v25 = vsel %vm1551_vm2, %v20720_v21, -inf }
 0x26c   : > { %v20730_v59 = vmul.f32 %v18336_v24, %v20663_v54  ;;  %v20771_v24 = vpop.permute.xlu1 %2390 }
 0x26d   : > { %1589 = vmax.xlane.f32.xlu1 %v1588_v25  ;;  %v1178_v55 = vpop.f32.mrf.mxu0 }
 0x26e   : > { %v20733_v62 = vmul.f32 %v1178_v55, %v20672_v57  ;;  %v1573_v4 = vsel %vm1551_vm2, %v20730_v59, -inf }
 0x26f   : > { %1592 = vmax.xlane.f32.xlu0 %v1591_v0  ;;  %v20779_v0 = vpop.permute.xlu0 %2481 }
 0x270   : > { %v1570_v2 = vsel %vm1551_vm2, %v20733_v62, -inf  ;;  %v20775_v25 = vpop.permute.xlu1 %2388 }
 0x271   : > { %1571 = vmax.xlane.f32.xlu1 %v1570_v2 }
 0x273   : > { %1574 = vmax.xlane.f32.xlu0 %v1573_v4  ;;  %v18350_v6 = vpop.f32.mrf.mxu0  ;;  %v20783_v4 = vpop.permute.xlu0 %2384 }
 0x274   : > { %v20742_v7 = vmul.f32 %v18350_v6, %v20663_v54  ;;  %v20777_v55 = vpop.permute.xlu1 %2479 }
 0x275   : > { %v1352_v8 = vpop.f32.mrf.mxu0 }
 0x276   : > { %v20745_v10 = vmul.f32 %v1352_v8, %v20672_v57  ;;  %v1585_v12 = vsel %vm1551_vm2, %v20742_v7, -inf }
 0x277   : > { %1586 = vmax.xlane.f32.xlu0 %v1585_v12  ;;  %v20787_v8 = vpop.permute.xlu0 %2475 }
 0x278   : > { %v1582_v13 = vsel %vm1551_vm2, %v20745_v10, -inf  ;;  %v20781_v2 = vpop.permute.xlu1 %2386 }
 0x279   : > { %1583 = vmax.xlane.f32.xlu1 %v1582_v13 }
 0x27b   : > { %v18364_v14 = vpop.f32.mrf.mxu0  ;;  %v20791_v13 = vpop.permute.xlu0 %2477 }
 0x27c   : > { %v20752_v17 = vmul.f32 %v18364_v14, %v20663_v54  ;;  %v20785_v6 = vpop.permute.xlu1 %2572 }
 0x27d   : > { %v1526_v19 = vpop.f32.mrf.mxu0 }
 0x27e   : > { %v1597_v18 = vsel %vm1551_vm2, %v20752_v17, -inf  ;;  %v20767_v20 = vmul.f32 %v1526_v19, %v20672_v57 }
 0x27f   : > { %1598 = vmax.xlane.f32.xlu0 %v1597_v18 }
 0x280   : > { %v1594_v23 = vsel %vm1551_vm2, %v20767_v20, -inf  ;;  %v20789_v12 = vpop.permute.xlu1 %2663 }
 0x28a   : > { %2661 = vrot.lane.b32.xlu1 %v20409_v30, %s20277_s26 }
 0x28e   : > { %2568 = vrot.lane.b32.xlu1 %v20415_v33, %s20278_s27 }
 0x295   : > { %2570 = vrot.lane.b32.xlu0 %v20411_v31, %s20277_s26 }
 0x299   : > { %2566 = vrot.lane.b32.xlu0 %v20411_v31, %s20278_s27 }
 0x29d   : > { %2657 = vrot.lane.b32.xlu0 %v20409_v30, %s20278_s27 }
 0x2b2   : > { %1595 = vmax.xlane.f32.xlu1 %v1594_v23 }
 0x2c3   : > { %2754 = vrot.lane.b32.xlu1 %v20423_v37, %s20277_s26 }
 0x2e0   : > { %v1557_v14 = vpop.xlane.xlu1 %1556 }
 0x2e1   : > { %v1601_v18 = vsub.f32 %v20675_v58, %v1557_v14 }
 0x2e2   : > { %v1554_v19 = vpop.xlane.xlu0 %1553 }
 0x2e3   : > { %v1618_v23 = vmul.f32 1.442695, %v1601_v18  ;;  %v1600_v33 = vsub.f32 %v20681_v61, %v1554_v19 }
 0x2e5   : > { %19585 = vpow2.f32 %v1618_v23  ;;  %v1616_v30 = vmul.f32 1.442695, %v1600_v33 }
 0x2e7   : > { %19587 = vpow2.f32 %v1616_v30 }
 0x2e8   : > { %v1563_v31 = vpop.xlane.xlu0 %1562 }
 0x2e9   : > { %v1603_v28 = vsub.f32 %v20692_v3, %v1563_v31 }
 0x2eb   : > { %v1622_v26 = vmul.f32 1.442695, %v1603_v28 }
 0x2ec   : > { %v1581_v27 = vpop.xlane.xlu0 %1580  ;;  %v1578_v29 = vpop.xlane.xlu1 %1577 }
 0x2ed   : > { %19589 = vpow2.f32 %v1622_v26  ;;  %v1609_v52 = vsub.f32 %v20695_v5, %v1581_v27  ;;  %v1608_v54 = vsub.f32 %v20700_v9, %v1578_v29 }
 0x2ef   : > { %v1634_v57 = vmul.f32 1.442695, %v1609_v52  ;;  %v1632_v30 = vmul.f32 1.442695, %v1608_v54 }
 0x2f0   : > { %v1560_v58 = vpop.xlane.xlu0 %1559 }
 0x2f1   : > { %19591 = vpow2.f32 %v1634_v57  ;;  %v1602_v14 = vsub.f32 %v20705_v11, %v1560_v58 }
 0x2f2   : > { %v20799_v61 = vpop.eup %19585  ;;  %v1566_v33 = vpop.xlane.xlu1 %1565 }
 0x2f3   : > { %v1620_v18 = vmul.f32 1.442695, %v1602_v14  ;;  %v1604_v31 = vsub.f32 %v20713_v16, %v1566_v33  ;;  %v1651_v28 = vsel %vm1551_vm2, %v20799_v61, 0.0 }
 0x2f4   : > { %v20804_v26 = vpop.eup %19587  ;;  %v1569_v27 = vpop.xlane.xlu0 %1568  ;;  %1652 = vadd.xlane.f32.xlu0 %v1651_v28 }
 0x2f5   : > { %19593 = vpow2.f32 %v1620_v18  ;;  %v1605_v29 = vsub.f32 %v20710_v15, %v1569_v27  ;;  %v1648_v52 = vsel %vm1551_vm2, %v20804_v26, 0.0  ;;  %v1624_v57 = vmul.f32 1.442695, %v1604_v31 }
 0x2f6   : > { %v1590_v3 = vpop.xlane.xlu1 %1589  ;;  %1649 = vadd.xlane.f32.xlu1 %v1648_v52  ;;  %19595 = vpow2.f32 %v1632_v30 }
 0x2f7   : > { %v1626_v54 = vmul.f32 1.442695, %v1605_v29  ;;  %v1612_v5 = vsub.f32 %v20720_v21, %v1590_v3 }
 0x2f8   : > { %v1593_v9 = vpop.xlane.xlu0 %1592 }
 0x2f9   : > { %19597 = vpow2.f32 %v1626_v54  ;;  %v1613_v11 = vsub.f32 %v20723_v22, %v1593_v9  ;;  %v1640_v23 = vmul.f32 1.442695, %v1612_v5 }
 0x2fa   : > { %v20811_v16 = vpop.eup %19589  ;;  %19599 = vpow2.f32 %v1624_v57  ;;  %v1572_v19 = vpop.xlane.xlu1 %1571 }
 0x2fb   : > { %v1642_v15 = vmul.f32 1.442695, %v1613_v11  ;;  %v1606_v58 = vsub.f32 %v20733_v62, %v1572_v19  ;;  %v1657_v14 = vsel %vm1551_vm2, %v20811_v16, 0.0 }
 0x2fc   : > { %v1575_v33 = vpop.xlane.xlu0 %1574  ;;  %1658 = vadd.xlane.f32.xlu0 %v1657_v14 }
 0x2fd   : > { %19601 = vpow2.f32 %v1642_v15  ;;  %v1607_v21 = vsub.f32 %v20730_v59, %v1575_v33  ;;  %v1628_v22 = vmul.f32 1.442695, %v1606_v58 }
 0x2fe   : > { %v20817_v30 = vpop.eup %19591  ;;  %19603 = vpow2.f32 %v1640_v23 }
 0x2ff   : > { %v1630_v18 = vmul.f32 1.442695, %v1607_v21  ;;  %v1675_v31 = vsel %vm1551_vm2, %v20817_v30, 0.0 }
 0x300   : > { %v1587_v28 = vpop.xlane.xlu0 %1586  ;;  %1676 = vadd.xlane.f32.xlu0 %v1675_v31 }
 0x301   : > { %19605 = vpow2.f32 %v1630_v18  ;;  %v1611_v62 = vsub.f32 %v20742_v7, %v1587_v28 }
 0x302   : > { %v20822_v27 = vpop.eup %19593  ;;  %v1584_v29 = vpop.xlane.xlu1 %1583  ;;  %19607 = vpow2.f32 %v1628_v22 }
 0x303   : > { %v1638_v52 = vmul.f32 1.442695, %v1611_v62  ;;  %v1610_v59 = vsub.f32 %v20745_v10, %v1584_v29  ;;  %v1654_v57 = vsel %vm1551_vm2, %v20822_v27, 0.0  ;;  %v20827_v3 = vpop.eup %19595 }
 0x304   : > { %1655 = vadd.xlane.f32.xlu1 %v1654_v57  ;;  %v1672_v11 = vsel %vm1551_vm2, %v20827_v3, 0.0 }
 0x305   : > { %19609 = vpow2.f32 %v1638_v52  ;;  %v1636_v54 = vmul.f32 1.442695, %v1610_v59 }
 0x306   : > { %v20829_v5 = vpop.eup %19597 }
 0x307   : > { %v20831_v9 = vpop.eup %19599  ;;  %19611 = vpow2.f32 %v1636_v54  ;;  %v1663_v7 = vsel %vm1551_vm2, %v20829_v5, 0.0  ;;  %v20870_v54 = vpop.permute.xlu1 %2661 }
 0x308   : > { %v1599_v10 = vpop.xlane.xlu0 %1598  ;;  %1664 = vadd.xlane.f32.xlu0 %v1663_v7  ;;  %1673 = vadd.xlane.f32.xlu1 %v1672_v11  ;;  %v1660_v14 = vsel %vm1551_vm2, %v20831_v9, 0.0 }
 0x309   : > { %v1615_v19 = vsub.f32 %v20752_v17, %v1599_v10 }
 0x30a   : > { %v20838_v23 = vpop.eup %19601 }
 0x30b   : > { %v1646_v15 = vmul.f32 1.442695, %v1615_v19  ;;  %v1687_v58 = vsel %vm1551_vm2, %v20838_v23, 0.0  ;;  %v20844_v33 = vpop.eup %19603  ;;  %v20876_v7 = vpop.permute.xlu1 %2568 }
 0x30c   : > { %1688 = vadd.xlane.f32.xlu0 %v1687_v58  ;;  %1661 = vadd.xlane.f32.xlu1 %v1660_v14  ;;  %v1684_v17 = vsel %vm1551_vm2, %v20844_v33, 0.0  ;;  %v20909_v58 = vpop.permute.xlu0 %2570 }
 0x30d   : > { %19613 = vpow2.f32 %v1646_v15 }
 0x30e   : > { %v20846_v21 = vpop.eup %19605 }
 0x30f   : > { %v1669_v22 = vsel %vm1551_vm2, %v20846_v21, 0.0  ;;  %v20852_v18 = vpop.eup %19607 }
 0x310   : > { %1670 = vadd.xlane.f32.xlu0 %v1669_v22  ;;  %1685 = vadd.xlane.f32.xlu1 %v1684_v17  ;;  %v1666_v62 = vsel %vm1551_vm2, %v20852_v18, 0.0  ;;  %v20913_v14 = vpop.permute.xlu0 %2566 }
 0x312   : > { %v20854_v31 = vpop.eup %19609 }
 0x313   : > { %v1681_v28 = vsel %vm1551_vm2, %v20854_v31, 0.0 }
 0x314   : > { %v20860_v29 = vpop.eup %19611  ;;  %1682 = vadd.xlane.f32.xlu0 %v1681_v28  ;;  %1667 = vadd.xlane.f32.xlu1 %v1666_v62  ;;  %v20919_v22 = vpop.permute.xlu0 %2657 }
 0x315   : > { %v1678_v52 = vsel %vm1551_vm2, %v20860_v29, 0.0 }
 0x318   : > { %1679 = vadd.xlane.f32.xlu1 %v1678_v52 }
 0x31a   : > { %v20864_v59 = vpop.eup %19613 }
 0x31b   : > { %v1693_v57 = vsel %vm1551_vm2, %v20864_v59, 0.0 }
 0x31c   : > { %1694 = vadd.xlane.f32.xlu0 %v1693_v57 }
 0x329   : > { %2845 = vrot.lane.b32.xlu1 %v20421_v36, %s20277_s26 }
 0x332   : > { %2659 = vrot.lane.b32.xlu0 %v20413_v32, %s20278_s27 }
 0x336   : > { %2752 = vrot.lane.b32.xlu0 %v20419_v35, %s20277_s26 }
 0x33a   : > { %2748 = vrot.lane.b32.xlu0 %v20419_v35, %s20278_s27 }
 0x33b   : > { %v1596_v11 = vpop.xlane.xlu1 %1595 }
 0x33c   : > { %v1614_v10 = vsub.f32 %v20767_v20, %v1596_v11 }
 0x33e   : > { %v1644_v19 = vmul.f32 1.442695, %v1614_v10  ;;  %2839 = vrot.lane.b32.xlu0 %v20417_v34, %s20278_s27 }
 0x33f   : > { %v20921_v17 = vpop.permute.xlu1 %2754 }
 0x340   : > { %19615 = vpow2.f32 %v1644_v19 }
 0x342   : > { %2841 = vrot.lane.b32.xlu0 %v20421_v36, %s20278_s27 }
 0x346   : > { %2934 = vrot.lane.b32.xlu0 %v20427_v39, %s20277_s26 }
 0x34a   : > { %2930 = vrot.lane.b32.xlu0 %v20427_v39, %s20278_s27 }
 0x34d   : > { %v20889_v15 = vpop.eup %19615 }
 0x34e   : > { %3021 = vrot.lane.b32.xlu0 %v20425_v38, %s20278_s27  ;;  %v1690_v20 = vsel %vm1551_vm2, %v20889_v15, 0.0 }
 0x34f   : > { %1691 = vadd.xlane.f32.xlu1 %v1690_v20 }
 0x352   : > { %3308 = vrot.lane.b32.xlu0 %v20629_v42, %s20278_s27 }
 0x356   : > { %3306 = vrot.lane.b32.xlu0 %v20634_v44, %s20278_s27 }
 0x35a   : > { %3486 = vrot.lane.b32.xlu0 %v20650_v50, %s20278_s27 }
 0x360   : > { %2843 = vrot.lane.b32.xlu1 %v20417_v34, %s20277_s26 }
 0x364   : > { %2750 = vrot.lane.b32.xlu1 %v20423_v37, %s20278_s27 }
 0x368   : > { %2936 = vrot.lane.b32.xlu1 %v20433_v41, %s20277_s26 }
 0x36c   : > { %3027 = vrot.lane.b32.xlu1 %v20429_v40, %s20277_s26 }
 0x370   : > { %3025 = vrot.lane.b32.xlu1 %v20425_v38, %s20277_s26 }
 0x374   : > { %2932 = vrot.lane.b32.xlu1 %v20433_v41, %s20278_s27 }
 0x378   : > { %3023 = vrot.lane.b32.xlu1 %v20429_v40, %s20278_s27 }
 0x37c   : > { %3397 = vrot.lane.b32.xlu1 %v20640_v46, %s20278_s27 }
 0x37d   : > { %v1653_v28 = vpop.xlane.xlu0 %1652 }
 0x37e   : > { %19617 = vrcp.f32 %v1653_v28 }
 0x37f   : > { %v1650_v62 = vpop.xlane.xlu1 %1649 }
 0x380   : > { %3395 = vrot.lane.b32.xlu1 %v20646_v48, %s20278_s27  ;;  %19619 = vrcp.f32 %v1650_v62 }
 0x384   : > { %3575 = vrot.lane.b32.xlu1 %v20631_v43, %s20278_s27 }
 0x385   : > { %v1659_v52 = vpop.xlane.xlu0 %1658 }
 0x386   : > { %19621 = vrcp.f32 %v1659_v52 }
 0x389   : > { %v1677_v10 = vpop.xlane.xlu0 %1676 }
 0x38b   : > { %v19618_v57 = vpop.eup %19617 }
 0x38c   : > { %v1713_v40 = vmul.f32 %v19618_v57, %v20799_v61 }
 0x38d   : > { %v19620_v11 = vpop.eup %19619  ;;  %v1656_v19 = vpop.xlane.xlu1 %1655 }
 0x38e   : > { %19623 = vrcp.f32 %v1656_v19  ;;  %v1712_v20 = vmul.f32 %v19620_v11, %v20804_v26 }
 0x390   : > { %18369 = vmatprep.mubr.msk.f32.mxu1 %vm1551_vm2, %v1712_v20 }
 0x391   : > { %v1665_v28 = vpop.xlane.xlu0 %1664  ;;  %v1674_v41 = vpop.xlane.xlu1 %1673  ;;  %18370 = vmatmul.mubr.msk.f32.vlgmr.msra.gmra.mxu1 %vm1551_vm2, %v1713_v40 }
 0x392   : > { %18373 = vmatpush3.msra.mxu1 %v20640_v46  ;;  %19625 = vrcp.f32 %v1665_v28 }
 0x393   : > { %18374 = vmatprep.subr.mxu1 %v20646_v48  ;;  %19627 = vrcp.f32 %v1674_v41  ;;  %v19622_v26 = vpop.eup %19621 }
 0x394   : > { %18375 = vmatpush3.msra.mxu1 %v20646_v48  ;;  %v1715_v20 = vmul.f32 %v19622_v26, %v20811_v16 }
 0x395   : > { %v1689_v62 = vpop.xlane.xlu0 %1688  ;;  %18386 = vmatprep.subr.mxu1 %v20631_v43  ;;  %v1662_v52 = vpop.xlane.xlu1 %1661 }
 0x396   : > { %19629 = vrcp.f32 %v1662_v52 }
 0x397   : > { %19631 = vrcp.f32 %v1677_v10 }
 0x399   : > { %v1686_v61 = vpop.xlane.xlu1 %1685  ;;  %v1671_v57 = vpop.xlane.xlu0 %1670 }
 0x39a   : > { %19633 = vrcp.f32 %v1686_v61 }
 0x39b   : > { %v19624_v11 = vpop.eup %19623  ;;  %19635 = vrcp.f32 %v1689_v62 }
 0x39c   : > { %v1714_v40 = vmul.f32 %v19624_v11, %v20822_v27  ;;  %19637 = vrcp.f32 %v1671_v57 }
 0x39d   : > { %v1668_v19 = vpop.xlane.xlu1 %1667  ;;  %v1683_v41 = vpop.xlane.xlu0 %1682 }
 0x39e   : > { %18376 = vmatprep.mubr.msk.f32.mxu1 %vm1551_vm2, %v1714_v40  ;;  %19639 = vrcp.f32 %v1668_v19 }
 0x39f   : > { %18377 = vmatmul.mubr.msk.f32.vlgmr.msra.gmra.mxu1 %vm1551_vm2, %v1715_v20  ;;  %v19626_v28 = vpop.eup %19625 }
 0x3a0   : > { %18387 = vmatpush3.msra.mxu1 %v20631_v43  ;;  %v19628_v27 = vpop.eup %19627  ;;  %v1717_v52 = vmul.f32 %v19626_v28, %v20829_v5 }
 0x3a1   : > { %18388 = vmatprep.subr.mxu1 %v20637_v45  ;;  %v1680_v10 = vpop.xlane.xlu1 %1679  ;;  %v1720_v26 = vmul.f32 %v19628_v27, %v20827_v3 }
 0x3a2   : > { %18389 = vmatpush3.msra.mxu1 %v20637_v45  ;;  %19641 = vrcp.f32 %v1680_v10 }
 0x3a3   : > { %19643 = vrcp.f32 %v1683_v41  ;;  %18400 = vmatprep.subr.mxu1 %v20652_v51  ;;  %v19630_v16 = vpop.eup %19629 }
 0x3a4   : > { %v1716_v62 = vmul.f32 %v19630_v16, %v20831_v9  ;;  %v19632_v61 = vpop.eup %19631 }
 0x3a5   : > { %v1721_v40 = vmul.f32 %v19632_v61, %v20817_v30  ;;  %v1695_v41 = vpop.xlane.xlu0 %1694 }
 0x3a6   : > { %18383 = vmatprep.mubr.msk.f32.mxu0 %vm1551_vm2, %v1716_v62  ;;  %19645 = vrcp.f32 %v1695_v41 }
 0x3a7   : > { %v19634_v57 = vpop.eup %19633  ;;  %18384 = vmatmul.mubr.msk.f32.vlgmr.msra.gmra.mxu0 %vm1551_vm2, %v1717_v52 }
 0x3a8   : > { %18394 = vmatpush3.msra.mxu0 %v20643_v47  ;;  %18397 = vmatprep.mubr.msk.f32.mxu0 %vm1551_vm2, %v1720_v26  ;;  %v19636_v11 = vpop.eup %19635  ;;  %v1724_v5 = vmul.f32 %v19634_v57, %v20844_v33 }
 0x3a9   : > { %18395 = vmatprep.subr.mxu0 %v20648_v49  ;;  %v19638_v9 = vpop.eup %19637  ;;  %v1725_v33 = vmul.f32 %v19636_v11, %v20838_v23 }
 0x3aa   : > { %18396 = vmatpush3.msra.mxu0 %v20648_v49  ;;  %v1719_v30 = vmul.f32 %v19638_v9, %v20846_v21  ;;  %v20982_v21 = vpop.permute.xlu0 %2659 }
 0x3ab   : > { %v19640_v19 = vpop.eup %19639  ;;  %18407 = vmatprep.subr.mxu0 %v20667_v56  ;;  %18398 = vmatmul.mubr.msk.f32.vlgmr.msra.gmra.mxu0 %vm1551_vm2, %v1721_v40 }
 0x3ac   : > { %18408 = vmatpush3.msra.mxu0 %v20667_v56  ;;  %18411 = vmatprep.mubr.msk.f32.mxu0 %vm1551_vm2, %v1724_v5  ;;  %v1718_v3 = vmul.f32 %v19640_v19, %v20852_v18 }
 0x3ad   : > { %18409 = vmatprep.subr.mxu0 %v20678_v60 }
 0x3ae   : > { %18410 = vmatpush3.msra.mxu0 %v20678_v60  ;;  %18390 = vmatprep.mubr.msk.f32.mxu1 %vm1551_vm2, %v1718_v3 }
 0x3af   : > { %v19642_v20 = vpop.eup %19641  ;;  %18421 = vmatprep.subr.msk.mxu0 %vm842_vm1, %v20771_v24  ;;  %18391 = vmatmul.mubr.msk.f32.vlgmr.msra.gmra.mxu1 %vm1551_vm2, %v1719_v30  ;;  %v25550_v30 = vld [vmem:[#allocation23_spill] sm:$0xff] }
 0x3b0   : > { %v19644_v10 = vpop.eup %19643  ;;  %v1722_v18 = vmul.f32 %v19642_v20, %v20860_v29  ;;  %18401 = vmatpush3.msra.mxu1 %v20652_v51  ;;  %18412 = vmatmul.mubr.msk.f32.vlgmr.msra.gmra.mxu0 %vm1551_vm2, %v1725_v33  ;;  %v25551_v33 = vld [vmem:[#allocation24_spill] sm:$0xff] }
 0x3b1   : > { %18422 = vmatpush3.xpose.msk.msra.mxu0 %vm842_vm1, %v20771_v24  ;;  %18402 = vmatprep.subr.mxu1 %v20658_v53  ;;  %v1723_v23 = vmul.f32 %v19644_v10, %v20854_v31  ;;  %v2753_v24 = vpop.permute.xlu0 %2752 }
 0x3b2   : > { %18423 = vmatprep.subr.msk.mxu0 %vm842_vm1, %v20775_v25  ;;  %18425 = vmatprep.mubr.msk.f32.mxu0 %vm842_vm1, %v20783_v4 }
 0x3b3   : > { %18403 = vmatpush3.msra.mxu1 %v20658_v53  ;;  %18404 = vmatprep.mubr.msk.f32.mxu1 %vm1551_vm2, %v1722_v18  ;;  %v19646_v27 = vpop.eup %19645 }
 0x3b4   : > { %18414 = vmatprep.subr.mxu1 %v20685_v63  ;;  %18405 = vmatmul.mubr.msk.f32.vlgmr.msra.gmra.mxu1 %vm1551_vm2, %v1723_v23  ;;  %v1727_v61 = vmul.f32 %v19646_v27, %v20864_v59 }
 0x3b5   : > { %18415 = vmatpush3.msra.mxu1 %v20685_v63  ;;  %18424 = vmatpush3.xpose.msk.msra.mxu0 %vm842_vm1, %v20775_v25  ;;  %v2749_v25 = vpop.permute.xlu0 %2748 }
 0x3b6   : > { %18416 = vmatprep.subr.mxu1 %v20689_v1  ;;  %18435 = vmatprep.subr.msk.mxu0 %vm842_vm1, %v20785_v6 }
 0x3b7   : > { %18417 = vmatpush3.msra.mxu1 %v20689_v1 }
 0x3b8   : > { %18426 = vmatmul.mubr.msk.f32.vlgmr.msra.gmra.mxu0 %vm842_vm1, %v20781_v2  ;;  %18428 = vmatprep.subr.msk.mxu1 %vm842_vm1, %v20779_v0 }
 0x3b9   : > { %18436 = vmatpush3.xpose.msk.msra.mxu0 %vm842_vm1, %v20785_v6  ;;  %18439 = vmatprep.mubr.msk.f32.mxu0 %vm842_vm1, %v20913_v14  ;;  %v2840_v2 = vpop.permute.xlu0 %2839  ;;  %v2846_v6 = vpop.permute.xlu1 %2845 }
 0x3ba   : > { %18437 = vmatprep.subr.msk.mxu0 %vm842_vm1, %v20909_v58 }
 0x3bd   : > { %18438 = vmatpush3.xpose.msk.msra.mxu0 %vm842_vm1, %v20909_v58  ;;  %v2842_v4 = vpop.permute.xlu0 %2841 }
 0x3be   : > { %18449 = vmatprep.subr.msk.mxu0 %vm842_vm1, %v20921_v17 }
 0x3c0   : > { %18440 = vmatmul.mubr.msk.f32.vlgmr.msra.gmra.mxu0 %vm842_vm1, %v20876_v7 }
 0x3c1   : > { %18450 = vmatpush3.xpose.msk.msra.mxu0 %vm842_vm1, %v20921_v17  ;;  %18453 = vmatprep.mubr.msk.f32.mxu0 %vm842_vm1, %v2749_v25  ;;  %v2935_v31 = vpop.permute.xlu0 %2934 }
 0x3c2   : > { %18451 = vmatprep.subr.msk.mxu0 %vm842_vm1, %v2753_v24 }
 0x3c5   : > { %18452 = vmatpush3.xpose.msk.msra.mxu0 %vm842_vm1, %v2753_v24  ;;  %v2931_v14 = vpop.permute.xlu0 %2930 }
 0x3c9   : > { %v3022_v7 = vpop.permute.xlu0 %3021 }
 0x3cd   : > { %v3309_v26 = vpop.permute.xlu0 %3308 }
 0x3d1   : > { %v3307_v57 = vpop.permute.xlu0 %3306 }
 0x3d8   : > { %v1692_v29 = vpop.xlane.xlu1 %1691 }
 0x3d9   : > { %19647 = vrcp.f32 %v1692_v29 }
 0x3dc   : > { %v2844_v58 = vpop.permute.xlu1 %2843 }
 0x3e0   : > { %v2751_v28 = vpop.permute.xlu1 %2750 }
 0x3e1   : > { %18454 = vmatmul.mubr.msk.f32.vlgmr.msra.gmra.mxu0 %vm842_vm1, %v2751_v28 }
 0x3e2   : > { %18467 = vmatprep.mubr.msk.f32.mxu0 %vm842_vm1, %v2931_v14 }
 0x3e4   : > { %v2937_v17 = vpop.permute.xlu1 %2936 }
 0x3e5   : > { %18463 = vmatprep.subr.msk.mxu0 %vm842_vm1, %v2937_v17 }
 0x3e6   : > { %v19648_v16 = vpop.eup %19647  ;;  %18464 = vmatpush3.xpose.msk.msra.mxu0 %vm842_vm1, %v2937_v17 }
 0x3e7   : > { %18465 = vmatprep.subr.msk.mxu0 %vm842_vm1, %v2935_v31  ;;  %v1726_v62 = vmul.f32 %v19648_v16, %v20889_v15 }
 0x3e8   : > { %v3028_v52 = vpop.permute.xlu1 %3027 }
 0x3e9   : > { %18418 = vmatprep.mubr.msk.f32.mxu1 %vm1551_vm2, %v1726_v62 }
 0x3ea   : > { %18419 = vmatmul.mubr.msk.f32.vlgmr.msra.gmra.mxu1 %vm1551_vm2, %v1727_v61  ;;  %18466 = vmatpush3.xpose.msk.msra.mxu0 %vm842_vm1, %v2935_v31 }
 0x3eb   : > { %18429 = vmatpush3.xpose.msk.msra.mxu1 %vm842_vm1, %v20779_v0  ;;  %18432 = vmatprep.mubr.msk.f32.mxu1 %vm842_vm1, %v20787_v8 }
 0x3ec   : > { %18430 = vmatprep.subr.msk.mxu1 %vm842_vm1, %v20777_v55  ;;  %18477 = vmatprep.subr.mxu0 %v3309_v26  ;;  %v3026_v15 = vpop.permute.xlu1 %3025 }
 0x3ef   : > { %18431 = vmatpush3.xpose.msk.msra.mxu1 %vm842_vm1, %v20777_v55  ;;  %v21043_v55 = vpop.permute.xlu0 %3486 }
 0x3f0   : > { %18442 = vmatprep.subr.msk.mxu1 %vm842_vm1, %v20789_v12  ;;  %v2933_v59 = vpop.permute.xlu1 %2932 }
 0x3f1   : > { %18468 = vmatmul.mubr.msk.f32.vlgmr.msra.gmra.mxu0 %vm842_vm1, %v2933_v59 }
 0x3f2   : > { %18433 = vmatmul.mubr.msk.f32.vlgmr.msra.gmra.mxu1 %vm842_vm1, %v20791_v13  ;;  %18478 = vmatpush3.msra.mxu0 %v3309_v26 }
 0x3f3   : > { %18443 = vmatpush3.xpose.msk.msra.mxu1 %vm842_vm1, %v20789_v12  ;;  %18446 = vmatprep.mubr.msk.f32.mxu1 %vm842_vm1, %v20919_v22 }
 0x3f4   : > { %18479 = vmatprep.subr.mxu0 %v3307_v57  ;;  %18444 = vmatprep.subr.msk.mxu1 %vm842_vm1, %v20870_v54  ;;  %v3024_v0 = vpop.permute.xlu1 %3023 }
 0x3f5   : > { %18480 = vmatpush3.msra.mxu0 %v3307_v57 }
 0x3f6   : > { %18491 = vmatprep.subr.mxu0 %v21043_v55 }
 0x3f7   : > { %18445 = vmatpush3.xpose.msk.msra.mxu1 %vm842_vm1, %v20870_v54 }
 0x3f8   : > { %18456 = vmatprep.subr.msk.mxu1 %vm842_vm1, %v2846_v6  ;;  %v3398_v8 = vpop.permute.xlu1 %3397 }
 0x3fa   : > { %18447 = vmatmul.mubr.msk.f32.vlgmr.msra.gmra.mxu1 %vm842_vm1, %v20982_v21 }
 0x3fb   : > { %18457 = vmatpush3.xpose.msk.msra.mxu1 %vm842_vm1, %v2846_v6  ;;  %18460 = vmatprep.mubr.msk.f32.mxu1 %vm842_vm1, %v2840_v2 }
 0x3fc   : > { %18458 = vmatprep.subr.msk.mxu1 %vm842_vm1, %v2844_v58  ;;  %v3396_v12 = vpop.permute.xlu1 %3395 }
 0x3ff   : > { %18459 = vmatpush3.xpose.msk.msra.mxu1 %vm842_vm1, %v2844_v58 }
 0x400   : > { %18470 = vmatprep.subr.msk.mxu1 %vm842_vm1, %v3028_v52  ;;  %v21062_v13 = vpop.permute.xlu1 %3575 }
 0x402   : > { %18461 = vmatmul.mubr.msk.f32.vlgmr.msra.gmra.mxu1 %vm842_vm1, %v2842_v4 }
 0x403   : > { %18471 = vmatpush3.xpose.msk.msra.mxu1 %vm842_vm1, %v3028_v52  ;;  %18474 = vmatprep.mubr.msk.f32.mxu1 %vm842_vm1, %v3022_v7 }
 0x404   : > { %18472 = vmatprep.subr.msk.mxu1 %vm842_vm1, %v3026_v15 }
 0x407   : > { %18473 = vmatpush3.xpose.msk.msra.mxu1 %vm842_vm1, %v3026_v15 }
 0x408   : > { %18484 = vmatprep.subr.mxu1 %v3398_v8 }
 0x40a   : > { %18475 = vmatmul.mubr.msk.f32.vlgmr.msra.gmra.mxu1 %vm842_vm1, %v3024_v0 }
 0x40b   : > { %18485 = vmatpush3.msra.mxu1 %v3398_v8 }
 0x40c   : > { %18486 = vmatprep.subr.mxu1 %v3396_v12 }
 0x40d   : > { %18487 = vmatpush3.msra.mxu1 %v3396_v12 }
 0x40e   : > { %18498 = vmatprep.subr.mxu1 %v21062_v13 }
 0x451   : > { %v21099_v31 = vpop.f32.mrf.mxu1 }
 0x453   : > { %v21101_v29 = vpop.f32.mrf.mxu1 }
 0x45f   : > { %v21103_v58 = vpop.f32.mrf.mxu1 }
 0x461   : > { %v21105_v14 = vpop.f32.mrf.mxu1 }
 0x467   : > { %v21065_v54 = vpop.f32.mrf.mxu0 }
 0x469   : > { %v21067_v22 = vpop.f32.mrf.mxu0 }
 0x46b   : > { %v21071_v40 = vpop.f32.mrf.mxu0 }
 0x46d   : > { %v21073_v9 = vpop.f32.mrf.mxu0 }
 0x46f   : > { %v21107_v28 = vpop.f32.mrf.mxu1 }
 0x470   : > { %v21075_v5 = vpop.f32.mrf.mxu0 }
 0x471   : > { %25548 = vst [vmem:[#allocation26_spill] sm:$0xff] %v21075_v5  ;;  %v21109_v17 = vpop.f32.mrf.mxu1 }
 0x472   : > { %v21077_v19 = vpop.f32.mrf.mxu0 }
 0x473   : > { %25549 = vst [vmem:[#allocation27_spill] sm:$0xff] %v21077_v19 }
 0x474   : > { %v21114_v62 = vpop.f32.mrf.mxu1 }
 0x475   : > { %25552 = vst [vmem:[#allocation23_spill] sm:$0xff] %v21114_v62 }
 0x476   : > { %v21118_v61 = vpop.f32.mrf.mxu1 }
 0x477   : > { %25553 = vst [vmem:[#allocation24_spill] sm:$0xff] %v21118_v61 }
 0x478   : > { %v18427_v3 = vpop.f32.mrf.mxu0 }
 0x479   : > { %v21080_v20 = vmul.f32 %v18427_v3, %v25550_v30 }
 0x47a   : > { %v2466_v41 = vpop.f32.mrf.mxu0 }
 0x47b   : > { %v21083_v10 = vmul.f32 %v2466_v41, %v25551_v33  ;;  %v3131_v18 = vsel %vm1551_vm2, %v21080_v20, -inf }
 0x47c   : > { %3132 = vmax.xlane.f32.xlu1 %v3131_v18 }
 0x47d   : > { %v3128_v23 = vsel %vm1551_vm2, %v21083_v10, -inf }
 0x47e   : > { %3129 = vmax.xlane.f32.xlu0 %v3128_v23 }
 0x480   : > { %v18441_v21 = vpop.f32.mrf.mxu0 }
 0x481   : > { %v21090_v24 = vmul.f32 %v18441_v21, %v25550_v30 }
 0x482   : > { %v2648_v25 = vpop.f32.mrf.mxu0 }
 0x483   : > { %v21093_v2 = vmul.f32 %v2648_v25, %v25551_v33  ;;  %v3143_v4 = vsel %vm1551_vm2, %v21090_v24, -inf }
 0x484   : > { %3144 = vmax.xlane.f32.xlu0 %v3143_v4 }
 0x485   : > { %v3140_v6 = vsel %vm1551_vm2, %v21093_v2, -inf }
 0x486   : > { %3141 = vmax.xlane.f32.xlu1 %v3140_v6 }
 0x4a1   : > { %v18455_v7 = vpop.f32.mrf.mxu0 }
 0x4a2   : > { %v21128_v0 = vmul.f32 %v18455_v7, %v25550_v30 }
 0x4a3   : > { %v2830_v27 = vpop.f32.mrf.mxu0 }
 0x4a4   : > { %v21112_v16 = vmul.f32 %v2830_v27, %v25551_v33  ;;  %v3155_v18 = vsel %vm1551_vm2, %v21128_v0, -inf }
 0x4a6   : > { %v3152_v52 = vsel %vm1551_vm2, %v21112_v16, -inf }
 0x4a7   : > { %3153 = vmax.xlane.f32.xlu1 %v3152_v52 }
 0x4aa   : > { %v21120_v26 = vpop.f32.mrf.mxu1 }
 0x4ab   : > { %25554 = vst [vmem:[#allocation28_spill] sm:$0xff] %v21120_v26 }
 0x4ac   : > { %v21122_v15 = vpop.f32.mrf.mxu1 }
 0x4ad   : > { %25555 = vst [vmem:[#allocation29_spill] sm:$0xff] %v21122_v15 }
 0x4b1   : > { %v18469_v3 = vpop.f32.mrf.mxu0 }
 0x4b2   : > { %v18434_v57 = vpop.f32.mrf.mxu1 }
 0x4b3   : > { %v21125_v59 = vmul.f32 %v18434_v57, %v25550_v30  ;;  %v3012_v21 = vpop.f32.mrf.mxu0  ;;  %v21151_v57 = vmul.f32 %v18469_v3, %v25550_v30 }
 0x4b4   : > { %v2557_v12 = vpop.f32.mrf.mxu1  ;;  %v21146_v27 = vmul.f32 %v3012_v21, %v25551_v33 }
 0x4b5   : > { %v3137_v8 = vsel %vm1551_vm2, %v21125_v59, -inf  ;;  %v21133_v41 = vmul.f32 %v2557_v12, %v25551_v33  ;;  %v3167_v21 = vsel %vm1551_vm2, %v21151_v57, -inf }
 0x4b6   : > { %3138 = vmax.xlane.f32.xlu0 %v3137_v8 }
 0x4b7   : > { %v3134_v7 = vsel %vm1551_vm2, %v21133_v41, -inf }
 0x4ba   : > { %v18448_v23 = vpop.f32.mrf.mxu1  ;;  %3156 = vmax.xlane.f32.xlu0 %v3155_v18  ;;  %v3164_v18 = vsel %vm1551_vm2, %v21146_v27, -inf }
 0x4bb   : > { %v21138_v4 = vmul.f32 %v18448_v23, %v25550_v30 }
 0x4bc   : > { %v2739_v25 = vpop.f32.mrf.mxu1 }
 0x4bd   : > { %v21141_v6 = vmul.f32 %v2739_v25, %v25551_v33  ;;  %v3149_v8 = vsel %vm1551_vm2, %v21138_v4, -inf  ;;  %v25556_v25 = vld [vmem:[#allocation21_spill] sm:$0xff] }
 0x4be   : > { %3135 = vmax.xlane.f32.xlu0 %v3134_v7 }
 0x4bf   : > { %v3146_v52 = vsel %vm1551_vm2, %v21141_v6, -inf }
 0x4c0   : > { %3147 = vmax.xlane.f32.xlu1 %v3146_v52 }
 0x4c2   : > { %v18462_v12 = vpop.f32.mrf.mxu1  ;;  %3150 = vmax.xlane.f32.xlu0 %v3149_v8 }
 0x4c3   : > { %v21158_v23 = vmul.f32 %v18462_v12, %v25550_v30 }
 0x4c4   : > { %3165 = vmax.xlane.f32.xlu1 %v3164_v18  ;;  %v2921_v7 = vpop.f32.mrf.mxu1 }
 0x4c5   : > { %v3161_v3 = vsel %vm1551_vm2, %v21158_v23, -inf  ;;  %v21169_v52 = vmul.f32 %v2921_v7, %v25551_v33 }
 0x4c6   : > { %3168 = vmax.xlane.f32.xlu0 %v3167_v21 }
 0x4c7   : > { %v3158_v12 = vsel %vm1551_vm2, %v21169_v52, -inf }
 0x4ca   : > { %3162 = vmax.xlane.f32.xlu0 %v3161_v3  ;;  %v18476_v8 = vpop.f32.mrf.mxu1 }
 0x4cb   : > { %v21174_v18 = vmul.f32 %v18476_v8, %v25550_v30 }
 0x4cd   : > { %v3173_v21 = vsel %vm1551_vm2, %v21174_v18, -inf }
 0x4d5   : > { %3573 = vrot.lane.b32.xlu1 %v20637_v45, %s20278_s27 }
 0x4e0   : > { %3484 = vrot.lane.b32.xlu0 %v25556_v25, %s20278_s27 }
 0x4f9   : > { %3159 = vmax.xlane.f32.xlu1 %v3158_v12 }
 0x4ff   : > { %3174 = vmax.xlane.f32.xlu0 %v3173_v21 }
 0x505   : > { %v3133_v3 = vpop.xlane.xlu1 %3132 }
 0x506   : > { %v3177_v12 = vsub.f32 %v21080_v20, %v3133_v3 }
 0x507   : > { %v3130_v7 = vpop.xlane.xlu0 %3129 }
 0x508   : > { %v3176_v30 = vsub.f32 %v21083_v10, %v3130_v7  ;;  %v3194_v15 = vmul.f32 1.442695, %v3177_v12 }
 0x50a   : > { %3753 = vrot.lane.b32.xlu1 %v20652_v51, %s20278_s27  ;;  %v3192_v11 = vmul.f32 1.442695, %v3176_v30 }
 0x50c   : > { %19649 = vpow2.f32 %v3192_v11 }
 0x50d   : > { %v3145_v21 = vpop.xlane.xlu0 %3144  ;;  %19651 = vpow2.f32 %v3194_v15 }
 0x50e   : > { %3751 = vrot.lane.b32.xlu1 %v20658_v53, %s20278_s27  ;;  %v3181_v53 = vsub.f32 %v21090_v24, %v3145_v21 }
 0x50f   : > { %v3142_v8 = vpop.xlane.xlu1 %3141 }
 0x510   : > { %v3180_v26 = vsub.f32 %v21093_v2, %v3142_v8  ;;  %v3202_v19 = vmul.f32 1.442695, %v3181_v53 }
 0x512   : > { %v3200_v5 = vmul.f32 1.442695, %v3180_v26 }
 0x514   : > { %19653 = vpow2.f32 %v3200_v5 }
 0x515   : > { %3664 = vrot.lane.b32.xlu0 %v20643_v47, %s20278_s27  ;;  %19655 = vpow2.f32 %v3202_v19 }
 0x519   : > { %3662 = vrot.lane.b32.xlu0 %v20648_v49, %s20278_s27  ;;  %v3103_v49 = vpop.f32.mrf.mxu1  ;;  %v21195_v10 = vpop.eup %19649 }
 0x51a   : > { %v21191_v62 = vmul.f32 %v3103_v49, %v25551_v33  ;;  %v21197_v2 = vpop.eup %19651  ;;  %v3224_v11 = vsel %vm1551_vm2, %v21195_v10, 0.0 }
 0x51b   : > { %v3227_v53 = vsel %vm1551_vm2, %v21197_v2, 0.0 }
 0x51c   : > { %v3170_v20 = vsel %vm1551_vm2, %v21191_v62, -inf }
 0x521   : > { %v21201_v24 = vpop.eup %19653 }
 0x522   : > { %v21205_v5 = vpop.eup %19655  ;;  %v3236_v49 = vsel %vm1551_vm2, %v21201_v24, 0.0 }
 0x523   : > { %v3239_v19 = vsel %vm1551_vm2, %v21205_v5, 0.0 }
 0x530   : > { %v3154_v3 = vpop.xlane.xlu1 %3153 }
 0x531   : > { %v3184_v8 = vsub.f32 %v21112_v16, %v3154_v3 }
 0x532   : > { %3171 = vmax.xlane.f32.xlu1 %v3170_v20 }
 0x536   : > { %3225 = vadd.xlane.f32.xlu1 %v3224_v11 }
 0x538   : > { %3228 = vadd.xlane.f32.xlu0 %v3227_v53  ;;  %v3208_v53 = vmul.f32 1.442695, %v3184_v8 }
 0x53a   : > { %3237 = vadd.xlane.f32.xlu1 %v3236_v49 }
 0x53c   : > { %3240 = vadd.xlane.f32.xlu0 %v3239_v19 }
 0x53f   : > { %v3139_v33 = vpop.xlane.xlu0 %3138 }
 0x540   : > { %v3179_v26 = vsub.f32 %v21125_v59, %v3139_v33 }
 0x542   : > { %v3198_v15 = vmul.f32 1.442695, %v3179_v26 }
 0x543   : > { %v3157_v7 = vpop.xlane.xlu0 %3156 }
 0x544   : > { %19657 = vpow2.f32 %v3198_v15  ;;  %v3185_v30 = vsub.f32 %v21128_v0, %v3157_v7 }
 0x546   : > { %v3210_v12 = vmul.f32 1.442695, %v3185_v30 }
 0x547   : > { %v3136_v21 = vpop.xlane.xlu0 %3135 }
 0x548   : > { %19659 = vpow2.f32 %v3210_v12  ;;  %v3178_v20 = vsub.f32 %v21133_v41, %v3136_v21 }
 0x549   : > { %v3148_v11 = vpop.xlane.xlu1 %3147 }
 0x54a   : > { %v3196_v49 = vmul.f32 1.442695, %v3178_v20  ;;  %v3182_v19 = vsub.f32 %v21141_v6, %v3148_v11 }
 0x54b   : > { %v3151_v61 = vpop.xlane.xlu0 %3150 }
 0x54c   : > { %19661 = vpow2.f32 %v3196_v49  ;;  %v3183_v59 = vsub.f32 %v21138_v4, %v3151_v61  ;;  %v3204_v26 = vmul.f32 1.442695, %v3182_v19 }
 0x54d   : > { %v3166_v33 = vpop.xlane.xlu1 %3165  ;;  %19663 = vpow2.f32 %v3208_v53 }
 0x54e   : > { %v3206_v0 = vmul.f32 1.442695, %v3183_v59  ;;  %v3188_v16 = vsub.f32 %v21146_v27, %v3166_v33 }
 0x54f   : > { %v3169_v15 = vpop.xlane.xlu0 %3168 }
 0x550   : > { %19665 = vpow2.f32 %v3206_v0  ;;  %v3189_v3 = vsub.f32 %v21151_v57, %v3169_v15  ;;  %v3216_v7 = vmul.f32 1.442695, %v3188_v16 }
 0x551   : > { %v21219_v41 = vpop.eup %19657  ;;  %19667 = vpow2.f32 %v3204_v26 }
 0x552   : > { %v3218_v30 = vmul.f32 1.442695, %v3189_v3  ;;  %v3233_v6 = vsel %vm1551_vm2, %v21219_v41, 0.0  ;;  %v21260_v3 = vpop.permute.xlu1 %3573 }
 0x553   : > { %v3163_v8 = vpop.xlane.xlu0 %3162  ;;  %3234 = vadd.xlane.f32.xlu0 %v3233_v6 }
 0x554   : > { %19669 = vpow2.f32 %v3218_v30  ;;  %v3187_v61 = vsub.f32 %v21158_v23, %v3163_v8  ;;  %v25557_v8 = vld [vmem:[#allocation5_spill] sm:$0xff] }
 0x555   : > { %v21224_v4 = vpop.eup %19659  ;;  %19671 = vpow2.f32 %v3216_v7 }
 0x556   : > { %v3214_v27 = vmul.f32 1.442695, %v3187_v61  ;;  %v3251_v57 = vsel %vm1551_vm2, %v21224_v4, 0.0 }
 0x557   : > { %3252 = vadd.xlane.f32.xlu0 %v3251_v57  ;;  %v21265_v6 = vpop.permute.xlu0 %3484 }
 0x558   : > { %19673 = vpow2.f32 %v3214_v27 }
 0x559   : > { %v21228_v12 = vpop.eup %19661 }
 0x55a   : > { %v3230_v21 = vsel %vm1551_vm2, %v21228_v12, 0.0  ;;  %v21232_v20 = vpop.eup %19663 }
 0x55b   : > { %3231 = vadd.xlane.f32.xlu1 %v3230_v21  ;;  %v3248_v53 = vsel %vm1551_vm2, %v21232_v20, 0.0  ;;  %v25558_v21 = vld [vmem:[#allocation3_spill] sm:$0xff] }
 0x55d   : > { %v21234_v11 = vpop.eup %19665 }
 0x55e   : > { %v3245_v23 = vsel %vm1551_vm2, %v21234_v11, 0.0  ;;  %v21240_v49 = vpop.eup %19667 }
 0x55f   : > { %3246 = vadd.xlane.f32.xlu0 %v3245_v23  ;;  %3249 = vadd.xlane.f32.xlu1 %v3248_v53  ;;  %v3242_v33 = vsel %vm1551_vm2, %v21240_v49, 0.0  ;;  %v25560_v53 = vld [vmem:[#allocation4_spill] sm:$0xff] }
 0x561   : > { %v21242_v19 = vpop.eup %19669 }
 0x562   : > { %v3263_v59 = vsel %vm1551_vm2, %v21242_v19, 0.0  ;;  %v21248_v26 = vpop.eup %19671 }
 0x563   : > { %3264 = vadd.xlane.f32.xlu0 %v3263_v59  ;;  %3243 = vadd.xlane.f32.xlu1 %v3242_v33  ;;  %v3260_v15 = vsel %vm1551_vm2, %v21248_v26, 0.0 }
 0x565   : > { %v21250_v0 = vpop.eup %19673 }
 0x566   : > { %v3257_v16 = vsel %vm1551_vm2, %v21250_v0, 0.0 }
 0x567   : > { %3258 = vadd.xlane.f32.xlu0 %v3257_v16  ;;  %3261 = vadd.xlane.f32.xlu1 %v3260_v15 }
 0x578   : > { %3931 = vrot.lane.b32.xlu1 %v20685_v63, %s20278_s27 }
 0x57d   : > { %3842 = vrot.lane.b32.xlu0 %v20667_v56, %s20278_s27 }
 0x581   : > { %3840 = vrot.lane.b32.xlu0 %v20678_v60, %s20278_s27 }
 0x582   : > { %v3160_v7 = vpop.xlane.xlu1 %3159 }
 0x583   : > { %v3186_v30 = vsub.f32 %v21169_v52, %v3160_v7  ;;  %v25559_v52 = vld [vmem:[#allocation2_spill] sm:$0xff] }
 0x584   : > { %v25562_v7 = vld [vmem:[#allocation6_spill] sm:$0xff] }
 0x585   : > { %4279 = vrot.lane.b32.xlu0 %v25557_v8, %s20279_s20  ;;  %v3212_v61 = vmul.f32 1.442695, %v3186_v30 }
 0x586   : > { %v21298_v30 = vpop.permute.xlu1 %3753 }
 0x587   : > { %19675 = vpow2.f32 %v3212_v61 }
 0x588   : > { %v3175_v27 = vpop.xlane.xlu0 %3174 }
 0x589   : > { %v3191_v57 = vsub.f32 %v21174_v18, %v3175_v27  ;;  %4277 = vrot.lane.b32.xlu0 %v25558_v21, %s20279_s20  ;;  %v25561_v18 = vld [vmem:[#allocation7_spill] sm:$0xff] }
 0x58a   : > { %v21304_v61 = vpop.permute.xlu1 %3751 }
 0x58b   : > { %v3222_v23 = vmul.f32 1.442695, %v3191_v57 }
 0x58c   : > { %v3665_v27 = vpop.permute.xlu0 %3664 }
 0x58d   : > { %4273 = vrot.lane.b32.xlu0 %v25558_v21, %s20280_s21  ;;  %19677 = vpow2.f32 %v3222_v23 }
 0x591   : > { %4364 = vrot.lane.b32.xlu0 %v25559_v52, %s20280_s21 }
 0x594   : > { %v21278_v59 = vpop.eup %19675 }
 0x595   : > { %4366 = vrot.lane.b32.xlu0 %v25560_v53, %s20280_s21  ;;  %v3254_v33 = vsel %vm1551_vm2, %v21278_v59, 0.0 }
 0x599   : > { %4459 = vrot.lane.b32.xlu0 %v25561_v18, %s20279_s20 }
 0x59a   : > { %v21284_v16 = vpop.eup %19677 }
 0x59b   : > { %v3269_v15 = vsel %vm1551_vm2, %v21284_v16, 0.0 }
 0x59c   : > { %3255 = vadd.xlane.f32.xlu1 %v3254_v33  ;;  %v3663_v33 = vpop.permute.xlu0 %3662 }
 0x59d   : > { %4455 = vrot.lane.b32.xlu0 %v25561_v18, %s20280_s21 }
 0x5a0   : > { %3270 = vadd.xlane.f32.xlu1 %v3269_v15 }
 0x5a1   : > { %4546 = vrot.lane.b32.xlu0 %v25562_v7, %s20280_s21 }
 0x5a5   : > { %4548 = vrot.lane.b32.xlu0 %v20413_v32, %s20280_s21 }
 0x5a9   : > { %4641 = vrot.lane.b32.xlu0 %v20419_v35, %s20279_s20 }
 0x5ad   : > { %4637 = vrot.lane.b32.xlu0 %v20419_v35, %s20280_s21 }
 0x5b1   : > { %4728 = vrot.lane.b32.xlu0 %v20417_v34, %s20280_s21 }
 0x5b5   : > { %4730 = vrot.lane.b32.xlu0 %v20421_v36, %s20280_s21 }
 0x5b9   : > { %4823 = vrot.lane.b32.xlu0 %v20427_v39, %s20279_s20 }
 0x5bb   : > { %v3172_v57 = vpop.xlane.xlu1 %3171 }
 0x5bc   : > { %v3190_v23 = vsub.f32 %v21191_v62, %v3172_v57 }
 0x5bd   : > { %4819 = vrot.lane.b32.xlu0 %v20427_v39, %s20280_s21 }
 0x5be   : > { %v3220_v15 = vmul.f32 1.442695, %v3190_v23 }
 0x5bf   : > { %v3226_v35 = vpop.xlane.xlu1 %3225 }
 0x5c0   : > { %19679 = vpow2.f32 %v3220_v15 }
 0x5c1   : > { %19681 = vrcp.f32 %v3226_v35  ;;  %4910 = vrot.lane.b32.xlu0 %v20425_v38, %s20280_s21  ;;  %v3229_v18 = vpop.xlane.xlu0 %3228 }
 0x5c2   : > { %19683 = vrcp.f32 %v3229_v18 }
 0x5c3   : > { %v3238_v60 = vpop.xlane.xlu1 %3237 }
 0x5c4   : > { %19685 = vrcp.f32 %v3238_v60 }
 0x5c5   : > { %5195 = vrot.lane.b32.xlu0 %v20629_v42, %s20280_s21  ;;  %v3241_v21 = vpop.xlane.xlu0 %3240 }
 0x5c6   : > { %19687 = vrcp.f32 %v3241_v21 }
 0x5c9   : > { %5193 = vrot.lane.b32.xlu0 %v20634_v44, %s20280_s21 }
 0x5cd   : > { %v21317_v62 = vpop.eup %19679  ;;  %5369 = vrot.lane.b32.xlu0 %v20650_v50, %s20280_s21 }
 0x5ce   : > { %v19682_v35 = vpop.eup %19681  ;;  %v3266_v57 = vsel %vm1551_vm2, %v21317_v62, 0.0 }
 0x5cf   : > { %v19684_v18 = vpop.eup %19683  ;;  %3267 = vadd.xlane.f32.xlu1 %v3266_v57  ;;  %v3288_v60 = vmul.f32 %v19682_v35, %v21195_v10  ;;  %v25563_v35 = vld [vmem:[#allocation8_spill] sm:$0xff] }
 0x5d0   : > { %v3289_v23 = vmul.f32 %v19684_v18, %v21197_v2 }
 0x5d1   : > { %v19686_v15 = vpop.eup %19685  ;;  %18481 = vmatprep.mubr.msk.f32.mxu0 %vm1551_vm2, %v3288_v60  ;;  %5367 = vrot.lane.b32.xlu0 %v25556_v25, %s20280_s21 }
 0x5d2   : > { %18482 = vmatmul.mubr.msk.f32.vlgmr.msra.gmra.mxu0 %vm1551_vm2, %v3289_v23  ;;  %v3292_v21 = vmul.f32 %v19686_v15, %v21201_v24 }
 0x5d3   : > { %v19688_v50 = vpop.eup %19687  ;;  %18492 = vmatpush3.msra.mxu0 %v21043_v55 }
 0x5d4   : > { %18493 = vmatprep.subr.mxu0 %v21265_v6  ;;  %18495 = vmatprep.mubr.msk.f32.mxu0 %vm1551_vm2, %v3292_v21  ;;  %v3293_v10 = vmul.f32 %v19688_v50, %v21205_v5 }
 0x5d5   : > { %18494 = vmatpush3.msra.mxu0 %v21265_v6  ;;  %5543 = vrot.lane.b32.xlu0 %v20643_v47, %s20280_s21 }
 0x5d6   : > { %18505 = vmatprep.subr.mxu0 %v3665_v27  ;;  %18496 = vmatmul.mubr.msk.f32.vlgmr.msra.gmra.mxu0 %vm1551_vm2, %v3293_v10 }
 0x5d7   : > { %18506 = vmatpush3.msra.mxu0 %v3665_v27 }
 0x5d8   : > { %18507 = vmatprep.subr.mxu0 %v3663_v33 }
 0x5d9   : > { %18508 = vmatpush3.msra.mxu0 %v3663_v33 }
 0x5dc   : > { %v3235_v2 = vpop.xlane.xlu0 %3234 }
 0x5dd   : > { %19689 = vrcp.f32 %v3235_v2 }
 0x5e0   : > { %3929 = vrot.lane.b32.xlu1 %v20689_v1, %s20278_s27  ;;  %v3253_v55 = vpop.xlane.xlu0 %3252 }
 0x5e4   : > { %4370 = vrot.lane.b32.xlu1 %v25560_v53, %s20279_s20  ;;  %v3232_v50 = vpop.xlane.xlu1 %3231 }
 0x5e5   : > { %19691 = vrcp.f32 %v3232_v50 }
 0x5e6   : > { %19693 = vrcp.f32 %v3253_v55 }
 0x5e8   : > { %v3247_v24 = vpop.xlane.xlu0 %3246  ;;  %4368 = vrot.lane.b32.xlu1 %v25559_v52, %s20279_s20  ;;  %v3250_v5 = vpop.xlane.xlu1 %3249 }
 0x5e9   : > { %19695 = vrcp.f32 %v3250_v5 }
 0x5ea   : > { %19697 = vrcp.f32 %v3247_v24  ;;  %v19690_v18 = vpop.eup %19689 }
 0x5eb   : > { %v3291_v21 = vmul.f32 %v19690_v18, %v21219_v41 }
 0x5ec   : > { %v3265_v6 = vpop.xlane.xlu0 %3264  ;;  %4275 = vrot.lane.b32.xlu1 %v25557_v8, %s20280_s21  ;;  %v3244_v27 = vpop.xlane.xlu1 %3243 }
 0x5ed   : > { %19699 = vrcp.f32 %v3244_v27 }
 0x5ee   : > { %19701 = vrcp.f32 %v3265_v6 }
 0x5f0   : > { %v21346_v33 = vpop.xlane.xlu0 %3258  ;;  %4461 = vrot.lane.b32.xlu1 %v25563_v35, %s20279_s20  ;;  %v3262_v57 = vpop.xlane.xlu1 %3261 }
 0x5f1   : > { %19703 = vrcp.f32 %v3262_v57 }
 0x5f2   : > { %v19692_v60 = vpop.eup %19691  ;;  %19705 = vrcp.f32 %v21346_v33 }
 0x5f3   : > { %v3290_v23 = vmul.f32 %v19692_v60, %v21228_v12  ;;  %v19694_v10 = vpop.eup %19693 }
 0x5f4   : > { %v3843_v15 = vpop.permute.xlu0 %3842  ;;  %4552 = vrot.lane.b32.xlu1 %v20413_v32, %s20279_s20  ;;  %v3297_v41 = vmul.f32 %v19694_v10, %v21224_v4  ;;  %v3932_v27 = vpop.permute.xlu1 %3931 }
 0x5f5   : > { %18488 = vmatprep.mubr.msk.f32.mxu1 %vm1551_vm2, %v3290_v23  ;;  %18519 = vmatprep.subr.mxu0 %v3843_v15 }
 0x5f6   : > { %18489 = vmatmul.mubr.msk.f32.vlgmr.msra.gmra.mxu1 %vm1551_vm2, %v3291_v21  ;;  %v19696_v2 = vpop.eup %19695 }
 0x5f7   : > { %18499 = vmatpush3.msra.mxu1 %v21062_v13  ;;  %v3296_v12 = vmul.f32 %v19696_v2, %v21232_v20  ;;  %v19698_v55 = vpop.eup %19697  ;;  %v480_v20 = vld [vmem:[%s25419_s4 + $0x4] sm:$0xf] }
 0x5f8   : > { %18500 = vmatprep.subr.mxu1 %v21260_v3  ;;  %4550 = vrot.lane.b32.xlu1 %v25562_v7, %s20279_s20  ;;  %v3841_v13 = vpop.permute.xlu0 %3840  ;;  %v3295_v4 = vmul.f32 %v19698_v55, %v21234_v11  ;;  %v4050_v6 = vsel %vm4048_vm3, %v480_v20, 0 }
 0x5f9   : > { %18501 = vmatpush3.msra.mxu1 %v21260_v3  ;;  %18509 = vmatprep.mubr.msk.f32.mxu0 %vm1551_vm2, %v3296_v12 }
 0x5fa   : > { %18512 = vmatprep.subr.mxu1 %v21298_v30  ;;  %v19700_v50 = vpop.eup %19699  ;;  %18510 = vmatmul.mubr.msk.f32.vlgmr.msra.gmra.mxu0 %vm1551_vm2, %v3297_v41 }
 0x5fb   : > { %18520 = vmatpush3.msra.mxu0 %v3843_v15  ;;  %v3294_v24 = vmul.f32 %v19700_v50, %v21240_v49  ;;  %v19702_v3 = vpop.eup %19701 }
 0x5fc   : > { %4457 = vrot.lane.b32.xlu1 %v25563_v35, %s20280_s21  ;;  %18521 = vmatprep.subr.mxu0 %v3841_v13  ;;  %v3301_v11 = vmul.f32 %v19702_v3, %v21242_v19  ;;  %v25564_v19 = vld [vmem:[#allocation11_spill] sm:$0xff] }
 0x5fd   : > { %18522 = vmatpush3.msra.mxu0 %v3841_v13  ;;  %18502 = vmatprep.mubr.msk.f32.mxu1 %vm1551_vm2, %v3294_v24 }
 0x5fe   : > { %v19704_v5 = vpop.eup %19703  ;;  %18503 = vmatmul.mubr.msk.f32.vlgmr.msra.gmra.mxu1 %vm1551_vm2, %v3295_v4  ;;  %19545 = vmatprep.subr.msk.bf16.mxu0 %vm4048_vm3, %v480_v20 }
 0x5ff   : > { %18513 = vmatpush3.msra.mxu1 %v21298_v30  ;;  %v3300_v49 = vmul.f32 %v19704_v5, %v21248_v26  ;;  %v21386_v30 = vpop.permute.xlu0 %4279  ;;  %v25565_v26 = vld [vmem:[#allocation10_spill] sm:$0xff]  ;;  %v19706_v57 = vpop.eup %19705 }
 0x600   : > { %4643 = vrot.lane.b32.xlu1 %v20423_v37, %s20279_s20  ;;  %18514 = vmatprep.subr.mxu1 %v21304_v61  ;;  %v3299_v33 = vmul.f32 %v19706_v57, %v21250_v0  ;;  %v479_v0 = vld [vmem:[%s25419_s4] sm:$0xf]  ;;  %v25567_v57 = vld [vmem:[#allocation24_spill] sm:$0xff] }
 0x601   : > { %18515 = vmatpush3.msra.mxu1 %v21304_v61  ;;  %18523 = vmatprep.mubr.msk.f32.mxu0 %vm1551_vm2, %v3300_v49  ;;  %v4174_v49 = vsel %vm4048_vm3, %v479_v0, 0 }
 0x602   : > { %18526 = vmatprep.subr.mxu1 %v3932_v27  ;;  %18524 = vmatmul.mubr.msk.f32.vlgmr.msra.gmra.mxu0 %vm1551_vm2, %v3301_v11  ;;  %v2376_v11 = vpack.c.bf16 %v21099_v31, %v21101_v29  ;;  %v25566_v31 = vpack.c.bf16 %v21065_v54, %v21067_v22 }
 0x603   : > { %18534 = vmatpush3.bf16.msra.mxu0 %v4050_v6  ;;  %v21421_v23 = vpop.permute.xlu0 %4277 }
 0x604   : > { %4734 = vrot.lane.b32.xlu1 %v20421_v36, %s20279_s20  ;;  %18569 = vmatprep.subr.msk.mxu0 %vm842_vm1, %v21386_v30 }
 0x607   : > { %v21423_v15 = vpop.permute.xlu0 %4273 }
 0x608   : > { %4732 = vrot.lane.b32.xlu1 %v20417_v34, %s20279_s20 }
 0x60b   : > { %v4365_v10 = vpop.permute.xlu0 %4364 }
 0x60c   : > { %4639 = vrot.lane.b32.xlu1 %v20423_v37, %s20280_s21 }
 0x60f   : > { %v4367_v12 = vpop.permute.xlu0 %4366 }
 0x610   : > { %4825 = vrot.lane.b32.xlu1 %v25564_v19, %s20279_s20 }
 0x613   : > { %v21429_v55 = vpop.permute.xlu0 %4459 }
 0x614   : > { %4916 = vrot.lane.b32.xlu1 %v25565_v26, %s20279_s20 }
 0x617   : > { %v21432_v4 = vpop.permute.xlu0 %4455 }
 0x618   : > { %4914 = vrot.lane.b32.xlu1 %v20425_v38, %s20279_s20 }
 0x61c   : > { %4821 = vrot.lane.b32.xlu1 %v25564_v19, %s20280_s21 }
 0x620   : > { %4912 = vrot.lane.b32.xlu1 %v25565_v26, %s20280_s21 }
 0x624   : > { %5282 = vrot.lane.b32.xlu1 %v20640_v46, %s20280_s21 }
 0x625   : > { %v3256_v61 = vpop.xlane.xlu1 %3255 }
 0x626   : > { %19707 = vrcp.f32 %v3256_v61  ;;  %v2380_v61 = vpack.c.bf16 %v21071_v40, %v21073_v9 }
 0x628   : > { %5280 = vrot.lane.b32.xlu1 %v20646_v48, %s20280_s21 }
 0x629   : > { %v3271_v21 = vpop.xlane.xlu1 %3270 }
 0x62a   : > { %19709 = vrcp.f32 %v3271_v21 }
 0x62c   : > { %5456 = vrot.lane.b32.xlu1 %v20631_v43, %s20280_s21 }
 0x630   : > { %5454 = vrot.lane.b32.xlu1 %v20637_v45, %s20280_s21 }
 0x633   : > { %v19708_v18 = vpop.eup %19707 }
 0x634   : > { %5630 = vrot.lane.b32.xlu1 %v20652_v51, %s20280_s21  ;;  %v3298_v60 = vmul.f32 %v19708_v18, %v21278_v59  ;;  %v25568_v18 = vld [vmem:[#allocation23_spill] sm:$0xff] }
 0x636   : > { %18516 = vmatprep.mubr.msk.f32.mxu1 %vm1551_vm2, %v3298_v60  ;;  %v2381_v60 = vpack.c.bf16 %v25568_v18, %v25567_v57 }
 0x637   : > { %18517 = vmatmul.mubr.msk.f32.vlgmr.msra.gmra.mxu1 %vm1551_vm2, %v3299_v33  ;;  %v19710_v13 = vpop.eup %19709 }
 0x638   : > { %18527 = vmatpush3.msra.mxu1 %v3932_v27  ;;  %v3303_v5 = vmul.f32 %v19710_v13, %v21284_v16  ;;  %v4547_v16 = vpop.permute.xlu0 %4546 }
 0x658   : > { %v3268_v2 = vpop.xlane.xlu1 %3267 }
 0x659   : > { %19711 = vrcp.f32 %v3268_v2  ;;  %v25571_v2 = vld [vmem:[#allocation29_spill] sm:$0xff] }
 0x65c   : > { %v3930_v41 = vpop.permute.xlu1 %3929 }
 0x65d   : > { %18528 = vmatprep.subr.mxu1 %v3930_v41 }
 0x65e   : > { %18529 = vmatpush3.msra.mxu1 %v3930_v41  ;;  %v25572_v41 = vld [vmem:[#allocation28_spill] sm:$0xff] }
 0x65f   : > { %19546 = vmatprep.subr.msk.bf16.mxu1 %vm4048_vm3, %v479_v0  ;;  %v2383_v0 = vpack.c.bf16 %v25572_v41, %v25571_v2 }
 0x660   : > { %v4371_v59 = vpop.permute.xlu1 %4370 }
 0x664   : > { %v4369_v50 = vpop.permute.xlu1 %4368 }
 0x666   : > { %v19712_v24 = vpop.eup %19711 }
 0x667   : > { %v3302_v20 = vmul.f32 %v19712_v24, %v21317_v62  ;;  %v2377_v62 = vpack.c.bf16 %v21103_v58, %v21105_v14  ;;  %v2379_v58 = vpack.c.bf16 %v21107_v28, %v21109_v17  ;;  %v4549_v14 = vpop.permute.xlu0 %4548  ;;  %v25569_v28 = vld [vmem:[#allocation27_spill] sm:$0xff]  ;;  %v25570_v17 = vld [vmem:[#allocation26_spill] sm:$0xff] }
 0x668   : > { %v21434_v3 = vpop.permute.xlu1 %4275  ;;  %v2382_v21 = vpack.c.bf16 %v25570_v17, %v25569_v28 }
 0x669   : > { %18530 = vmatprep.mubr.msk.f32.mxu1 %vm1551_vm2, %v3302_v20 }
 0x66a   : > { %18531 = vmatmul.mubr.msk.f32.vlgmr.msra.gmra.mxu1 %vm1551_vm2, %v3303_v5 }
 0x66b   : > { %18552 = vmatpush3.bf16.msra.mxu1 %v4174_v49  ;;  %18553 = vmatprep.mubr.msk.bf16.mxu1 %vm842_vm1, %v2376_v11  ;;  %v21465_v22 = vpop.permute.xlu0 %4641 }
 0x66c   : > { %18576 = vmatprep.subr.msk.mxu1 %vm842_vm1, %v4371_v59  ;;  %v21446_v6 = vpop.permute.xlu1 %4461 }
 0x66e   : > { %18554 = vmatmul.mubr.msk.bf16.vlgmr.msra.gmra.mxu1 %vm842_vm1, %v2377_v62 }
 0x66f   : > { %18577 = vmatpush3.xpose.msk.msra.mxu1 %vm842_vm1, %v4371_v59  ;;  %18557 = vmatprep.mubr.msk.bf16.mxu1 %vm842_vm1, %v25566_v31  ;;  %v21475_v40 = vpop.permute.xlu0 %4637 }
 0x670   : > { %18578 = vmatprep.subr.msk.mxu1 %vm842_vm1, %v4369_v50  ;;  %v4553_v29 = vpop.permute.xlu1 %4552 }
 0x673   : > { %18579 = vmatpush3.xpose.msk.msra.mxu1 %vm842_vm1, %v4369_v50  ;;  %v4729_v50 = vpop.permute.xlu0 %4728 }
 0x674   : > { %18590 = vmatprep.subr.msk.mxu1 %vm842_vm1, %v4553_v29  ;;  %v4551_v27 = vpop.permute.xlu1 %4550 }
 0x676   : > { %18558 = vmatmul.mubr.msk.bf16.gmra.mxu1 %vm842_vm1, %v2379_v58 }
 0x677   : > { %18561 = vmatprep.mubr.msk.bf16.mxu1 %vm842_vm1, %v2380_v61  ;;  %v4731_v24 = vpop.permute.xlu0 %4730 }
 0x678   : > { %v21463_v54 = vpop.permute.xlu1 %4457 }
 0x67b   : > { %v21489_v49 = vpop.permute.xlu0 %4823 }
 0x67c   : > { %v21469_v33 = vpop.permute.xlu1 %4643 }
 0x67e   : > { %18562 = vmatmul.mubr.msk.bf16.gmra.mxu1 %vm842_vm1, %v2381_v60 }
 0x67f   : > { %18565 = vmatprep.mubr.msk.bf16.mxu1 %vm842_vm1, %v2382_v21 }
 0x680   : > { %v4735_v9 = vpop.permute.xlu1 %4734 }
 0x684   : > { %v4733_v59 = vpop.permute.xlu1 %4732 }
 0x686   : > { %18566 = vmatmul.mubr.msk.bf16.gmra.mxu1 %vm842_vm1, %v2383_v0 }
 0x687   : > { %18580 = vmatprep.mubr.msk.f32.mxu1 %vm842_vm1, %v4365_v10 }
 0x688   : > { %v21481_v13 = vpop.permute.xlu1 %4639 }
 0x68c   : > { %v21483_v20 = vpop.permute.xlu1 %4825 }
 0x68e   : > { %18581 = vmatmul.mubr.msk.f32.vlgmr.msra.gmra.mxu1 %vm842_vm1, %v4367_v12  ;;  %v21496_v12 = vpop.permute.xlu0 %4819 }
 0x68f   : > { %18591 = vmatpush3.xpose.msk.msra.mxu1 %vm842_vm1, %v4553_v29  ;;  %18594 = vmatprep.mubr.msk.f32.mxu1 %vm842_vm1, %v4547_v16 }
 0x690   : > { %18592 = vmatprep.subr.msk.mxu1 %vm842_vm1, %v4551_v27  ;;  %v4917_v5 = vpop.permute.xlu1 %4916 }
 0x692   : > { %v18483_v11 = vpop.f32.mrf.mxu0  ;;  %v4911_v58 = vpop.permute.xlu0 %4910 }
 0x693   : > { %18593 = vmatpush3.xpose.msk.msra.mxu1 %vm842_vm1, %v4551_v27 }
 0x694   : > { %18604 = vmatprep.subr.msk.mxu1 %vm842_vm1, %v4735_v9  ;;  %v3384_v10 = vpop.f32.mrf.mxu0  ;;  %v4915_v62 = vpop.permute.xlu1 %4914 }
 0x695   : > { %v4016_v31 = vpack.c.bf16 %v18483_v11, %v3384_v10 }
 0x696   : > { %18595 = vmatmul.mubr.msk.f32.vlgmr.msra.gmra.mxu1 %vm842_vm1, %v4549_v14  ;;  %v18497_v57 = vpop.f32.mrf.mxu0 }
 0x697   : > { %18605 = vmatpush3.xpose.msk.msra.mxu1 %vm842_vm1, %v4735_v9  ;;  %18608 = vmatprep.mubr.msk.f32.mxu1 %vm842_vm1, %v4729_v50 }
 0x698   : > { %18535 = vmatprep.mubr.msk.bf16.mxu0 %vm842_vm1, %v4016_v31  ;;  %18606 = vmatprep.subr.msk.mxu1 %vm842_vm1, %v4733_v59  ;;  %v21500_v16 = vpop.permute.xlu1 %4821  ;;  %v3562_v60 = vpop.f32.mrf.mxu0 }
 0x699   : > { %v4018_v21 = vpack.c.bf16 %v18497_v57, %v3562_v60 }
 0x69b   : > { %18607 = vmatpush3.xpose.msk.msra.mxu1 %vm842_vm1, %v4733_v59 }
 0x69c   : > { %18618 = vmatprep.subr.msk.mxu1 %vm842_vm1, %v4917_v5  ;;  %v4913_v29 = vpop.permute.xlu1 %4912 }
 0x69e   : > { %18609 = vmatmul.mubr.msk.f32.vlgmr.msra.gmra.mxu1 %vm842_vm1, %v4731_v24 }
 0x69f   : > { %18619 = vmatpush3.xpose.msk.msra.mxu1 %vm842_vm1, %v4917_v5  ;;  %18622 = vmatprep.mubr.msk.f32.mxu1 %vm842_vm1, %v4911_v58 }
 0x6a0   : > { %18620 = vmatprep.subr.msk.mxu1 %vm842_vm1, %v4915_v62  ;;  %v5283_v14 = vpop.permute.xlu1 %5282 }
 0x6a3   : > { %18621 = vmatpush3.xpose.msk.msra.mxu1 %vm842_vm1, %v4915_v62 }
 0x6a4   : > { %18632 = vmatprep.subr.mxu1 %v5283_v14  ;;  %v5281_v27 = vpop.permute.xlu1 %5280 }
 0x6a6   : > { %18623 = vmatmul.mubr.msk.f32.vlgmr.msra.gmra.mxu1 %vm842_vm1, %v4913_v29 }
 0x6a7   : > { %18633 = vmatpush3.msra.mxu1 %v5283_v14 }
 0x6a8   : > { %18634 = vmatprep.subr.mxu1 %v5281_v27  ;;  %v21510_v61 = vpop.permute.xlu1 %5456 }
 0x6a9   : > { %18635 = vmatpush3.msra.mxu1 %v5281_v27 }
 0x6aa   : > { %18646 = vmatprep.subr.mxu1 %v21510_v61 }
 0x6b6   : > { %v18490_v18 = vpop.f32.mrf.mxu1 }
 0x6b8   : > { %v3473_v28 = vpop.f32.mrf.mxu1 }
 0x6b9   : > { %v4017_v17 = vpack.c.bf16 %v18490_v18, %v3473_v28 }
 0x6ba   : > { %v18511_v9 = vpop.f32.mrf.mxu0 }
 0x6bb   : > { %18536 = vmatmul.mubr.msk.bf16.vlgmr.msra.gmra.mxu0 %vm842_vm1, %v4017_v17 }
 0x6bc   : > { %18570 = vmatpush3.xpose.msk.msra.mxu0 %vm842_vm1, %v21386_v30  ;;  %18539 = vmatprep.mubr.msk.bf16.mxu0 %vm842_vm1, %v4018_v21  ;;  %v3740_v41 = vpop.f32.mrf.mxu0 }
 0x6bd   : > { %18571 = vmatprep.subr.msk.mxu0 %vm842_vm1, %v21421_v23  ;;  %v4020_v50 = vpack.c.bf16 %v18511_v9, %v3740_v41 }
 0x6be   : > { %v18504_v2 = vpop.f32.mrf.mxu1 }
 0x6c0   : > { %18572 = vmatpush3.xpose.msk.msra.mxu0 %vm842_vm1, %v21421_v23  ;;  %v3651_v0 = vpop.f32.mrf.mxu1 }
 0x6c1   : > { %18583 = vmatprep.subr.msk.mxu0 %vm842_vm1, %v21446_v6  ;;  %v4019_v59 = vpack.c.bf16 %v18504_v2, %v3651_v0 }
 0x6c2   : > { %v18525_v30 = vpop.f32.mrf.mxu0 }
 0x6c3   : > { %18540 = vmatmul.mubr.msk.bf16.gmra.mxu0 %vm842_vm1, %v4019_v59 }
 0x6c4   : > { %18543 = vmatprep.mubr.msk.bf16.mxu0 %vm842_vm1, %v4020_v50  ;;  %v3918_v5 = vpop.f32.mrf.mxu0 }
 0x6c5   : > { %v4022_v62 = vpack.c.bf16 %v18525_v30, %v3918_v5 }
 0x6f7   : > { %v18518_v24 = vpop.f32.mrf.mxu1 }
 0x6f9   : > { %v3829_v11 = vpop.f32.mrf.mxu1 }
 0x6fa   : > { %v4021_v10 = vpack.c.bf16 %v18518_v24, %v3829_v11 }
 0x6fc   : > { %18544 = vmatmul.mubr.msk.bf16.gmra.mxu0 %vm842_vm1, %v4021_v10 }
 0x6fd   : > { %18547 = vmatprep.mubr.msk.bf16.mxu0 %vm842_vm1, %v4022_v62 }
 0x72a   : > { %v18532_v23 = vpop.f32.mrf.mxu1 }
 0x72c   : > { %v4007_v31 = vpop.f32.mrf.mxu1 }
 0x72d   : > { %v4023_v29 = vpack.c.bf16 %v18532_v23, %v4007_v31 }
 0x72e   : > { %v21527_v58 = vpop.f32.mrf.mxu1 }
 0x72f   : > { %18548 = vmatmul.mubr.msk.bf16.gmra.mxu0 %vm842_vm1, %v4023_v29 }
 0x730   : > { %v21530_v14 = vpop.f32.mrf.mxu1  ;;  %18573 = vmatprep.mubr.msk.f32.mxu0 %vm842_vm1, %v21423_v15 }
 0x731   : > { %25573 = vst [vmem:[#allocation5_spill] sm:$0xff] %v21530_v14 }
 0x732   : > { %v21534_v27 = vpop.f32.mrf.mxu1 }
 0x734   : > { %v21536_v57 = vpop.f32.mrf.mxu1 }
 0x735   : > { %25574 = vst [vmem:[#allocation2_spill] sm:$0xff] %v21536_v57 }
 0x736   : > { %v21538_v18 = vpop.f32.mrf.mxu1 }
 0x737   : > { %18574 = vmatmul.mubr.msk.f32.vlgmr.msra.gmra.mxu0 %vm842_vm1, %v21434_v3 }
 0x738   : > { %18584 = vmatpush3.xpose.msk.msra.mxu0 %vm842_vm1, %v21446_v6  ;;  %v21544_v60 = vpop.f32.mrf.mxu1  ;;  %18587 = vmatprep.mubr.msk.f32.mxu0 %vm842_vm1, %v21432_v4 }
 0x739   : > { %25575 = vst [vmem:[#allocation4_spill] sm:$0xff] %v21544_v60  ;;  %18585 = vmatprep.subr.msk.mxu0 %vm842_vm1, %v21429_v55 }
 0x73a   : > { %v21550_v15 = vpop.f32.mrf.mxu1 }
 0x73c   : > { %18586 = vmatpush3.xpose.msk.msra.mxu0 %vm842_vm1, %v21429_v55  ;;  %v21554_v28 = vpop.f32.mrf.mxu1 }
 0x73d   : > { %25576 = vst [vmem:[#allocation6_spill] sm:$0xff] %v21554_v28  ;;  %18597 = vmatprep.subr.msk.mxu0 %vm842_vm1, %v21469_v33 }
 0x73e   : > { %v21558_v3 = vpop.f32.mrf.mxu1 }
 0x73f   : > { %25577 = vst [vmem:[#allocation8_spill] sm:$0xff] %v21558_v3  ;;  %18588 = vmatmul.mubr.msk.f32.vlgmr.msra.gmra.mxu0 %vm842_vm1, %v21463_v54  ;;  %v5196_v54 = vpop.permute.xlu0 %5195 }
 0x740   : > { %18598 = vmatpush3.xpose.msk.msra.mxu0 %vm842_vm1, %v21469_v33  ;;  %18601 = vmatprep.mubr.msk.f32.mxu0 %vm842_vm1, %v21475_v40  ;;  %v21566_v4 = vpop.f32.mrf.mxu1 }
 0x741   : > { %25578 = vst [vmem:[#allocation11_spill] sm:$0xff] %v21566_v4  ;;  %18599 = vmatprep.subr.msk.mxu0 %vm842_vm1, %v21465_v22 }
 0x742   : > { %v21570_v55 = vpop.f32.mrf.mxu1 }
 0x743   : > { %25579 = vst [vmem:[#allocation10_spill] sm:$0xff] %v21570_v55  ;;  %v5194_v17 = vpop.permute.xlu0 %5193 }
 0x744   : > { %18600 = vmatpush3.xpose.msk.msra.mxu0 %vm842_vm1, %v21465_v22  ;;  %v21574_v6 = vpop.f32.mrf.mxu1 }
 0x745   : > { %25580 = vst [vmem:[#allocation24_spill] sm:$0xff] %v21574_v6  ;;  %18611 = vmatprep.subr.msk.mxu0 %vm842_vm1, %v21483_v20 }
 0x746   : > { %v21578_v33 = vpop.f32.mrf.mxu1 }
 0x747   : > { %25581 = vst [vmem:[#allocation23_spill] sm:$0xff] %v21578_v33  ;;  %18602 = vmatmul.mubr.msk.f32.vlgmr.msra.gmra.mxu0 %vm842_vm1, %v21481_v13  ;;  %v21611_v0 = vpop.permute.xlu0 %5369 }
 0x748   : > { %18612 = vmatpush3.xpose.msk.msra.mxu0 %vm842_vm1, %v21483_v20  ;;  %18615 = vmatprep.mubr.msk.f32.mxu0 %vm842_vm1, %v21496_v12  ;;  %v21586_v40 = vpop.f32.mrf.mxu1  ;;  %v21599_v20 = vld [vmem:[%s25417_s2 + $0x8] sm:$0xff] }
 0x749   : > { %25582 = vst [vmem:[#allocation27_spill] sm:$0xff] %v21586_v40  ;;  %18613 = vmatprep.subr.msk.mxu0 %vm842_vm1, %v21489_v49 }
 0x74a   : > { %v21590_v22 = vpop.f32.mrf.mxu1 }
 0x74b   : > { %25583 = vst [vmem:[#allocation26_spill] sm:$0xff] %v21590_v22 }
 0x74c   : > { %18614 = vmatpush3.xpose.msk.msra.mxu0 %vm842_vm1, %v21489_v49  ;;  %v21594_v21 = vpop.f32.mrf.mxu1  ;;  %v21607_v49 = vld [vmem:[%s25417_s2] sm:$0xff] }
 0x74d   : > { %25584 = vst [vmem:[#allocation29_spill] sm:$0xff] %v21594_v21  ;;  %18625 = vmatprep.subr.mxu0 %v5196_v54 }
 0x74e   : > { %v18582_v13 = vpop.f32.mrf.mxu1 }
 0x74f   : > { %v5004_v12 = vmul.f32 %v21599_v20, %v18582_v13  ;;  %18616 = vmatmul.mubr.msk.f32.vlgmr.msra.gmra.mxu0 %vm842_vm1, %v21500_v16 }
 0x750   : > { %18626 = vmatpush3.msra.mxu0 %v5196_v54  ;;  %v4446_v9 = vpop.f32.mrf.mxu1 }
 0x751   : > { %v5003_v2 = vmul.f32 %v21607_v49, %v4446_v9  ;;  %18627 = vmatprep.subr.mxu0 %v5194_v17  ;;  %v5026_v41 = vsel %vm1551_vm2, %v5004_v12, -inf }
 0x752   : > { %18628 = vmatpush3.msra.mxu0 %v5194_v17  ;;  %5027 = vmax.xlane.f32.xlu0 %v5026_v41 }
 0x753   : > { %18639 = vmatprep.subr.mxu0 %v21611_v0  ;;  %v5023_v16 = vsel %vm1551_vm2, %v5003_v2, -inf }
 0x756   : > { %v18596_v59 = vpop.f32.mrf.mxu1  ;;  %5024 = vmax.xlane.f32.xlu0 %v5023_v16 }
 0x757   : > { %v5008_v50 = vmul.f32 %v21599_v20, %v18596_v59 }
 0x758   : > { %v4628_v30 = vpop.f32.mrf.mxu1 }
 0x759   : > { %v5007_v24 = vmul.f32 %v21607_v49, %v4628_v30  ;;  %v5038_v5 = vsel %vm1551_vm2, %v5008_v50, -inf }
 0x75a   : > { %5039 = vmax.xlane.f32.xlu0 %v5038_v5 }
 0x75b   : > { %v5035_v11 = vsel %vm1551_vm2, %v5007_v24, -inf }
 0x75c   : > { %5036 = vmax.xlane.f32.xlu1 %v5035_v11 }
 0x75e   : > { %v18610_v10 = vpop.f32.mrf.mxu1 }
 0x75f   : > { %v5012_v62 = vmul.f32 %v21599_v20, %v18610_v10 }
 0x760   : > { %v4810_v23 = vpop.f32.mrf.mxu1 }
 0x761   : > { %v5011_v31 = vmul.f32 %v21607_v49, %v4810_v23  ;;  %v5050_v29 = vsel %vm1551_vm2, %v5012_v62, -inf  ;;  %v21638_v23 = vpop.permute.xlu0 %5367 }
 0x762   : > { %5051 = vmax.xlane.f32.xlu0 %v5050_v29 }
 0x763   : > { %v5047_v54 = vsel %vm1551_vm2, %v5011_v31, -inf }
 0x764   : > { %5048 = vmax.xlane.f32.xlu1 %v5047_v54 }
 0x765   : > { %v21642_v54 = vpop.permute.xlu0 %5543 }
 0x766   : > { %v18624_v17 = vpop.f32.mrf.mxu1 }
 0x767   : > { %v5016_v13 = vmul.f32 %v21599_v20, %v18624_v17 }
 0x768   : > { %v4992_v9 = vpop.f32.mrf.mxu1 }
 0x769   : > { %v21625_v41 = vmul.f32 %v21607_v49, %v4992_v9  ;;  %v5062_v16 = vsel %vm1551_vm2, %v5016_v13, -inf  ;;  %v21646_v9 = vpop.permute.xlu1 %5454 }
 0x76a   : > { %5063 = vmax.xlane.f32.xlu0 %v5062_v16 }
 0x76b   : > { %v5059_v59 = vsel %vm1551_vm2, %v21625_v41, -inf }
 0x76c   : > { %5060 = vmax.xlane.f32.xlu1 %v5059_v59 }
 0x76d   : > { %v21652_v60 = vpop.permute.xlu1 %5630 }
 0x77b   : > { %v21630_v30 = vpop.f32.mrf.mxu0 }
 0x77d   : > { %v21632_v5 = vpop.f32.mrf.mxu0 }
 0x77e   : > { %25585 = vst [vmem:[#allocation28_spill] sm:$0xff] %v21632_v5 }
 0x77f   : > { %v21634_v11 = vpop.f32.mrf.mxu0 }
 0x781   : > { %v21636_v10 = vpop.f32.mrf.mxu0 }
 0x782   : > { %25586 = vst [vmem:[#allocation30_spill] sm:$0xff] %v21636_v10 }
 0x783   : > { %v21640_v29 = vpop.f32.mrf.mxu0 }
 0x785   : > { %v21644_v17 = vpop.f32.mrf.mxu0 }
 0x786   : > { %25587 = vst [vmem:[#allocation31_spill] sm:$0xff] %v21644_v17 }
 0x787   : > { %v21648_v16 = vpop.f32.mrf.mxu0 }
 0x789   : > { %v21650_v6 = vpop.f32.mrf.mxu0 }
 0x78a   : > { %25588 = vst [vmem:[#allocation32_spill] sm:$0xff] %v21650_v6 }
 0x7bc   : > { %v21654_v57 = vpop.f32.mrf.mxu0 }
 0x7bd   : > { %25589 = vst [vmem:[#allocation33_spill] sm:$0xff] %v21654_v57 }
 0x7be   : > { %v21656_v5 = vpop.f32.mrf.mxu0 }
 0x7bf   : > { %25590 = vst [vmem:[#allocation34_spill] sm:$0xff] %v21656_v5 }
 0x7db   : > { %v5028_v59 = vpop.xlane.xlu0 %5027 }
 0x7dc   : > { %v5068_v21 = vsub.f32 %v5004_v12, %v5028_v59  ;;  %v21658_v12 = vpop.f32.mrf.mxu0 }
 0x7dd   : > { %25591 = vst [vmem:[#allocation35_spill] sm:$0xff] %v21658_v12 }
 0x7de   : > { %v5087_v40 = vmul.f32 1.442695, %v5068_v21  ;;  %v21662_v59 = vpop.f32.mrf.mxu0 }
 0x7df   : > { %v5025_v4 = vpop.xlane.xlu0 %5024  ;;  %25592 = vst [vmem:[#allocation36_spill] sm:$0xff] %v21662_v59 }
 0x7e0   : > { %19713 = vpow2.f32 %v5087_v40  ;;  %v5067_v28 = vsub.f32 %v5003_v2, %v5025_v4 }
 0x7e2   : > { %v5085_v10 = vmul.f32 1.442695, %v5067_v28 }
 0x7e3   : > { %v5040_v14 = vpop.xlane.xlu0 %5039 }
 0x7e4   : > { %19715 = vpow2.f32 %v5085_v10  ;;  %v5072_v17 = vsub.f32 %v5008_v50, %v5040_v14 }
 0x7e5   : > { %v5037_v47 = vpop.xlane.xlu1 %5036 }
 0x7e6   : > { %v5095_v25 = vmul.f32 1.442695, %v5072_v17  ;;  %v5071_v48 = vsub.f32 %v5007_v24, %v5037_v47 }
 0x7e8   : > { %19717 = vpow2.f32 %v5095_v25  ;;  %v5093_v21 = vmul.f32 1.442695, %v5071_v48 }
 0x7ea   : > { %19719 = vpow2.f32 %v5093_v21 }
 0x7eb   : > { %v5052_v40 = vpop.xlane.xlu0 %5051 }
 0x7ec   : > { %v5076_v4 = vsub.f32 %v5012_v62, %v5052_v40 }
 0x7ed   : > { %v21660_v2 = vpop.eup %19713  ;;  %v5049_v28 = vpop.xlane.xlu1 %5048 }
 0x7ee   : > { %v5103_v6 = vmul.f32 1.442695, %v5076_v4  ;;  %v5075_v10 = vsub.f32 %v5011_v31, %v5049_v28  ;;  %v5122_v14 = vsel %vm1551_vm2, %v21660_v2, 0.0 }
 0x7ef   : > { %v21666_v50 = vpop.f32.mrf.mxu0  ;;  %5123 = vadd.xlane.f32.xlu0 %v5122_v14 }
 0x7f0   : > { %25593 = vst [vmem:[#allocation37_spill] sm:$0xff] %v21666_v50  ;;  %19721 = vpow2.f32 %v5103_v6  ;;  %v5101_v47 = vmul.f32 1.442695, %v5075_v10 }
 0x7f1   : > { %v21668_v48 = vpop.eup %19715  ;;  %v21670_v25 = vpop.f32.mrf.mxu0 }
 0x7f2   : > { %25594 = vst [vmem:[#allocation38_spill] sm:$0xff] %v21670_v25  ;;  %19723 = vpow2.f32 %v5101_v47  ;;  %v5119_v24 = vsel %vm1551_vm2, %v21668_v48, 0.0 }
 0x7f3   : > { %v5064_v62 = vpop.xlane.xlu0 %5063  ;;  %v21674_v17 = vpop.f32.mrf.mxu0  ;;  %5120 = vadd.xlane.f32.xlu1 %v5119_v24 }
 0x7f4   : > { %25595 = vst [vmem:[#allocation39_spill] sm:$0xff] %v21674_v17  ;;  %v5080_v31 = vsub.f32 %v5016_v13, %v5064_v62 }
 0x7f5   : > { %v21676_v21 = vpop.eup %19717  ;;  %v5061_v40 = vpop.xlane.xlu1 %5060 }
 0x7f6   : > { %v21678_v4 = vpop.f32.mrf.mxu0  ;;  %v5111_v6 = vmul.f32 1.442695, %v5080_v31  ;;  %v5079_v28 = vsub.f32 %v21625_v41, %v5061_v40  ;;  %v5134_v10 = vsel %vm1551_vm2, %v21676_v21, 0.0 }
 0x7f7   : > { %25596 = vst [vmem:[#allocation40_spill] sm:$0xff] %v21678_v4  ;;  %v21683_v14 = vpop.eup %19719  ;;  %5135 = vadd.xlane.f32.xlu0 %v5134_v10 }
 0x7f8   : > { %v18575_v47 = vpop.f32.mrf.mxu0  ;;  %19725 = vpow2.f32 %v5111_v6  ;;  %v5109_v25 = vmul.f32 1.442695, %v5079_v28  ;;  %v5131_v13 = vsel %vm1551_vm2, %v21683_v14, 0.0 }
 0x7f9   : > { %v5002_v24 = vmul.f32 %v21599_v20, %v18575_v47  ;;  %5132 = vadd.xlane.f32.xlu1 %v5131_v13 }
 0x7fa   : > { %v4355_v62 = vpop.f32.mrf.mxu0  ;;  %19727 = vpow2.f32 %v5109_v25 }
 0x7fb   : > { %v5001_v31 = vmul.f32 %v21607_v49, %v4355_v62  ;;  %v5020_v41 = vsel %vm1551_vm2, %v5002_v24, -inf }
 0x7fd   : > { %v5017_v40 = vsel %vm1551_vm2, %v5001_v31, -inf  ;;  %v21691_v4 = vpop.eup %19721  ;;  %5021 = vmax.xlane.f32.xlu1 %v5020_v41 }
 0x7fe   : > { %5018 = vmax.xlane.f32.xlu0 %v5017_v40  ;;  %v5146_v13 = vsel %vm1551_vm2, %v21691_v4, 0.0 }
 0x7ff   : > { %v21693_v6 = vpop.eup %19723  ;;  %v18589_v28 = vpop.f32.mrf.mxu0 }
 0x800   : > { %v21696_v10 = vmul.f32 %v21599_v20, %v18589_v28  ;;  %v5143_v47 = vsel %vm1551_vm2, %v21693_v6, 0.0 }
 0x801   : > { %v4537_v62 = vpop.f32.mrf.mxu0  ;;  %5144 = vadd.xlane.f32.xlu1 %v5143_v47 }
 0x802   : > { %5147 = vadd.xlane.f32.xlu0 %v5146_v13  ;;  %v21703_v25 = vmul.f32 %v21607_v49, %v4537_v62  ;;  %v5032_v40 = vsel %vm1551_vm2, %v21696_v10, -inf }
 0x804   : > { %v5029_v41 = vsel %vm1551_vm2, %v21703_v25, -inf }
 0x805   : > { %v21709_v28 = vpop.eup %19725  ;;  %5030 = vmax.xlane.f32.xlu1 %v5029_v41 }
 0x806   : > { %5033 = vmax.xlane.f32.xlu0 %v5032_v40  ;;  %v5158_v47 = vsel %vm1551_vm2, %v21709_v28, 0.0 }
 0x807   : > { %v18603_v59 = vpop.f32.mrf.mxu0  ;;  %v21716_v13 = vpop.eup %19727 }
 0x808   : > { %v21712_v5 = vmul.f32 %v21599_v20, %v18603_v59  ;;  %v5155_v41 = vsel %vm1551_vm2, %v21716_v13, 0.0 }
 0x809   : > { %v4719_v62 = vpop.f32.mrf.mxu0  ;;  %5159 = vadd.xlane.f32.xlu1 %v5158_v47 }
 0x80a   : > { %v5044_v51 = vsel %vm1551_vm2, %v21712_v5, -inf  ;;  %v21721_v45 = vmul.f32 %v21607_v49, %v4719_v62 }
 0x80b   : > { %5045 = vmax.xlane.f32.xlu0 %v5044_v51 }
 0x80c   : > { %v5041_v43 = vsel %vm1551_vm2, %v21721_v45, -inf }
 0x80d   : > { %5156 = vadd.xlane.f32.xlu1 %v5155_v41  ;;  %v25597_v41 = vld [vmem:[#allocation22_spill] sm:$0xff] }
 0x80f   : > { %v18617_v59 = vpop.f32.mrf.mxu0 }
 0x810   : > { %v21726_v40 = vmul.f32 %v21599_v20, %v18617_v59  ;;  %v25598_v59 = vld [vmem:[#allocation18_spill] sm:$0xff] }
 0x811   : > { %v4901_v44 = vpop.f32.mrf.mxu0  ;;  %5042 = vmax.xlane.f32.xlu1 %v5041_v43 }
 0x812   : > { %v21731_v47 = vmul.f32 %v21607_v49, %v4901_v44  ;;  %v5056_v51 = vsel %vm1551_vm2, %v21726_v40, -inf }
 0x813   : > { %5057 = vmax.xlane.f32.xlu0 %v5056_v51 }
 0x814   : > { %v5053_v62 = vsel %vm1551_vm2, %v21731_v47, -inf }
 0x815   : > { %5054 = vmax.xlane.f32.xlu1 %v5053_v62 }
 0x826   : > { %5628 = vrot.lane.b32.xlu1 %v25597_v41, %s20280_s21 }
 0x829   : > { %5541 = vrot.lane.b32.xlu0 %v25598_v59, %s20280_s21 }
 0x878   : > { %v5124_v46 = vpop.xlane.xlu0 %5123 }
 0x879   : > { %19729 = vrcp.f32 %v5124_v46 }
 0x87c   : > { %v5121_v43 = vpop.xlane.xlu1 %5120 }
 0x87d   : > { %19731 = vrcp.f32 %v5121_v43 }
 0x880   : > { %v5136_v44 = vpop.xlane.xlu0 %5135 }
 0x881   : > { %19733 = vrcp.f32 %v5136_v44 }
 0x882   : > { %v5133_v22 = vpop.xlane.xlu1 %5132 }
 0x883   : > { %19735 = vrcp.f32 %v5133_v22 }
 0x886   : > { %v5022_v17 = vpop.xlane.xlu1 %5021  ;;  %v19730_v55 = vpop.eup %19729 }
 0x887   : > { %v5019_v51 = vpop.xlane.xlu0 %5018  ;;  %v5066_v33 = vsub.f32 %v5002_v24, %v5022_v17  ;;  %v5180_v46 = vmul.f32 %v19730_v55, %v21660_v2 }
 0x888   : > { %v5065_v50 = vsub.f32 %v5001_v31, %v5019_v51 }
 0x889   : > { %v5083_v62 = vmul.f32 1.442695, %v5066_v33 }
 0x88a   : > { %v5081_v12 = vmul.f32 1.442695, %v5065_v50  ;;  %v19732_v3 = vpop.eup %19731  ;;  %v5145_v41 = vpop.xlane.xlu1 %5144 }
 0x88b   : > { %v5148_v57 = vpop.xlane.xlu0 %5147  ;;  %19737 = vpow2.f32 %v5083_v62  ;;  %v5179_v59 = vmul.f32 %v19732_v3, %v21668_v48 }
 0x88c   : > { %19739 = vpow2.f32 %v5081_v12 }
 0x88d   : > { %19741 = vrcp.f32 %v5145_v41  ;;  %18636 = vmatprep.mubr.msk.f32.mxu1 %vm1551_vm2, %v5179_v59 }
 0x88e   : > { %v5031_v22 = vpop.xlane.xlu1 %5030  ;;  %18637 = vmatmul.mubr.msk.f32.vlgmr.msra.gmra.mxu1 %vm1551_vm2, %v5180_v46  ;;  %v19734_v17 = vpop.eup %19733  ;;  %19743 = vrcp.f32 %v5148_v57 }
 0x88f   : > { %v5034_v43 = vpop.xlane.xlu0 %5033  ;;  %18647 = vmatpush3.msra.mxu1 %v21510_v61  ;;  %v5184_v12 = vmul.f32 %v19734_v17, %v21676_v21  ;;  %v5069_v46 = vsub.f32 %v21703_v25, %v5031_v22 }
 0x890   : > { %v5070_v33 = vsub.f32 %v21696_v10, %v5034_v43  ;;  %v19736_v50 = vpop.eup %19735  ;;  %18648 = vmatprep.subr.mxu1 %v21646_v9 }
 0x891   : > { %18649 = vmatpush3.msra.mxu1 %v21646_v9  ;;  %v5183_v3 = vmul.f32 %v19736_v50, %v21683_v14  ;;  %v5089_v43 = vmul.f32 1.442695, %v5069_v46 }
 0x892   : > { %v5091_v24 = vmul.f32 1.442695, %v5070_v33  ;;  %18660 = vmatprep.subr.mxu1 %v21652_v60  ;;  %v21751_v55 = vpop.xlane.xlu1 %5159 }
 0x893   : > { %18650 = vmatprep.mubr.msk.f32.mxu1 %vm1551_vm2, %v5183_v3 }
 0x894   : > { %19745 = vpow2.f32 %v5091_v24  ;;  %18651 = vmatmul.mubr.msk.f32.vlgmr.msra.gmra.mxu1 %vm1551_vm2, %v5184_v12  ;;  %v5046_v17 = vpop.xlane.xlu0 %5045 }
 0x895   : > { %18661 = vmatpush3.msra.mxu1 %v21652_v60  ;;  %v5074_v33 = vsub.f32 %v21712_v5, %v5046_v17 }
 0x896   : > { %v5157_v61 = vpop.xlane.xlu1 %5156 }
 0x897   : > { %19747 = vrcp.f32 %v5157_v61  ;;  %v5099_v3 = vmul.f32 1.442695, %v5074_v33 }
 0x898   : > { %v21757_v2 = vpop.eup %19737  ;;  %19749 = vpow2.f32 %v5089_v43 }
 0x899   : > { %v21759_v9 = vpop.eup %19739  ;;  %v5116_v48 = vsel %vm1551_vm2, %v21757_v2, 0.0 }
 0x89a   : > { %v19742_v14 = vpop.eup %19741  ;;  %5117 = vadd.xlane.f32.xlu0 %v5116_v48  ;;  %v5043_v21 = vpop.xlane.xlu1 %5042  ;;  %v5113_v57 = vsel %vm1551_vm2, %v21759_v9, 0.0 }
 0x89b   : > { %5114 = vadd.xlane.f32.xlu1 %v5113_v57  ;;  %v5187_v31 = vmul.f32 %v19742_v14, %v21693_v6  ;;  %v19744_v10 = vpop.eup %19743 }
 0x89c   : > { %v5188_v51 = vmul.f32 %v19744_v10, %v21691_v4  ;;  %v5073_v4 = vsub.f32 %v21721_v45, %v5043_v21  ;;  %v5058_v24 = vpop.xlane.xlu0 %5057  ;;  %v25600_v10 = vld [vmem:[#allocation25_spill] sm:$0xff] }
 0x89d   : > { %18664 = vmatprep.mubr.msk.f32.mxu1 %vm1551_vm2, %v5187_v31  ;;  %v5078_v12 = vsub.f32 %v21726_v40, %v5058_v24 }
 0x89e   : > { %v5055_v60 = vpop.xlane.xlu1 %5054  ;;  %v5097_v50 = vmul.f32 1.442695, %v5073_v4 }
 0x89f   : > { %v5107_v25 = vmul.f32 1.442695, %v5078_v12 }
 0x8a0   : > { %19751 = vpow2.f32 %v5097_v50 }
 0x8a1   : > { %v21767_v41 = vpop.eup %19745  ;;  %19753 = vpow2.f32 %v5099_v3  ;;  %v481_v3 = vld [vmem:[%s25419_s4 + $0x8] sm:$0xf] }
 0x8a2   : > { %v5629_v59 = vpop.permute.xlu1 %5628  ;;  %v5128_v44 = vsel %vm1551_vm2, %v21767_v41, 0.0 }
 0x8a3   : > { %5129 = vadd.xlane.f32.xlu0 %v5128_v44  ;;  %18662 = vmatprep.subr.mxu1 %v5629_v59 }
 0x8a4   : > { %v19748_v62 = vpop.eup %19747  ;;  %18663 = vmatpush3.msra.mxu1 %v5629_v59  ;;  %v25601_v59 = vld [vmem:[#allocation7_spill] sm:$0xff] }
 0x8a5   : > { %18665 = vmatmul.mubr.msk.f32.vlgmr.msra.gmra.mxu1 %vm1551_vm2, %v5188_v51  ;;  %v5191_v6 = vmul.f32 %v19748_v62, %v21716_v13  ;;  %v5077_v13 = vsub.f32 %v21731_v47, %v5055_v60  ;;  %v21784_v22 = vpop.eup %19749  ;;  %v25599_v60 = vld [vmem:[#allocation3_spill] sm:$0xff] }
 0x8a6   : > { %v5125_v45 = vsel %vm1551_vm2, %v21784_v22, 0.0 }
 0x8a7   : > { %18678 = vmatprep.mubr.msk.f32.mxu1 %vm1551_vm2, %v5191_v6  ;;  %v5105_v61 = vmul.f32 1.442695, %v5077_v13 }
 0x8a9   : > { %19755 = vpow2.f32 %v5105_v61 }
 0x8aa   : > { %19757 = vpow2.f32 %v5107_v25 }
 0x8ac   : > { %5804 = vrot.lane.b32.xlu1 %v20685_v63, %s20280_s21 }
 0x8ad   : > { %v21788_v5 = vpop.eup %19751 }
 0x8ae   : > { %v21790_v48 = vpop.eup %19753  ;;  %v5137_v47 = vsel %vm1551_vm2, %v21788_v5, 0.0 }
 0x8af   : > { %v5140_v40 = vsel %vm1551_vm2, %v21790_v48, 0.0 }
 0x8b6   : > { %v21794_v14 = vpop.eup %19755 }
 0x8b7   : > { %v5149_v21 = vsel %vm1551_vm2, %v21794_v14, 0.0  ;;  %v21800_v57 = vpop.eup %19757 }
 0x8b8   : > { %v5152_v31 = vsel %vm1551_vm2, %v21800_v57, 0.0 }
 0x8b9   : > { %5717 = vrot.lane.b32.xlu0 %v20667_v56, %s20280_s21 }
 0x8d0   : > { %5126 = vadd.xlane.f32.xlu1 %v5125_v45 }
 0x8d4   : > { %5138 = vadd.xlane.f32.xlu1 %v5137_v47 }
 0x8d8   : > { %5141 = vadd.xlane.f32.xlu0 %v5140_v40  ;;  %5150 = vadd.xlane.f32.xlu1 %v5149_v21 }
 0x8dc   : > { %5153 = vadd.xlane.f32.xlu0 %v5152_v31 }
 0x8e9   : > { %5802 = vrot.lane.b32.xlu1 %v20689_v1, %s20280_s21 }
 0x8ed   : > { %6041 = vrot.lane.b32.xlu1 %v25599_v60, %s20281_s23 }
 0x8f1   : > { %6134 = vrot.lane.b32.xlu1 %v25560_v53, %s20281_s23 }
 0x8f2   : > { %5715 = vrot.lane.b32.xlu0 %v25600_v10, %s20280_s21 }
 0x8f5   : > { %6132 = vrot.lane.b32.xlu1 %v25559_v52, %s20281_s23 }
 0x8f6   : > { %6043 = vrot.lane.b32.xlu0 %v25557_v8, %s20281_s23 }
 0x8f9   : > { %6225 = vrot.lane.b32.xlu1 %v25563_v35, %s20281_s23 }
 0x8fa   : > { %6037 = vrot.lane.b32.xlu0 %v25599_v60, %s20282_s28 }
 0x8fd   : > { %6223 = vrot.lane.b32.xlu1 %v25601_v59, %s20281_s23 }
 0x8fe   : > { %6039 = vrot.lane.b32.xlu0 %v25557_v8, %s20282_s28  ;;  %v25602_v8 = vld [vmem:[#allocation9_spill] sm:$0xff] }
 0x901   : > { %6316 = vrot.lane.b32.xlu1 %v20413_v32, %s20281_s23 }
 0x902   : > { %6128 = vrot.lane.b32.xlu0 %v25559_v52, %s20282_s28  ;;  %v5542_v52 = vpop.permute.xlu0 %5541 }
 0x905   : > { %6314 = vrot.lane.b32.xlu1 %v25562_v7, %s20281_s23 }
 0x906   : > { %6130 = vrot.lane.b32.xlu0 %v25560_v53, %s20282_s28 }
 0x909   : > { %6407 = vrot.lane.b32.xlu1 %v20423_v37, %s20281_s23 }
 0x90a   : > { %6219 = vrot.lane.b32.xlu0 %v25601_v59, %s20282_s28 }
 0x90d   : > { %6498 = vrot.lane.b32.xlu1 %v20421_v36, %s20281_s23 }
 0x90e   : > { %6221 = vrot.lane.b32.xlu0 %v25563_v35, %s20282_s28 }
 0x911   : > { %6496 = vrot.lane.b32.xlu1 %v20417_v34, %s20281_s23 }
 0x912   : > { %6310 = vrot.lane.b32.xlu0 %v25562_v7, %s20282_s28 }
 0x915   : > { %6403 = vrot.lane.b32.xlu1 %v20423_v37, %s20282_s28 }
 0x916   : > { %6312 = vrot.lane.b32.xlu0 %v20413_v32, %s20282_s28 }
 0x919   : > { %6589 = vrot.lane.b32.xlu1 %v25564_v19, %s20281_s23 }
 0x91a   : > { %6405 = vrot.lane.b32.xlu0 %v25602_v8, %s20281_s23 }
 0x91d   : > { %6680 = vrot.lane.b32.xlu1 %v25565_v26, %s20281_s23 }
 0x91e   : > { %6401 = vrot.lane.b32.xlu0 %v25602_v8, %s20282_s28 }
 0x921   : > { %6678 = vrot.lane.b32.xlu1 %v20425_v38, %s20281_s23 }
 0x922   : > { %6492 = vrot.lane.b32.xlu0 %v20417_v34, %s20282_s28 }
 0x923   : > { %v5118_v32 = vpop.xlane.xlu0 %5117 }
 0x924   : > { %19759 = vrcp.f32 %v5118_v32  ;;  %v5115_v37 = vpop.xlane.xlu1 %5114 }
 0x925   : > { %19761 = vrcp.f32 %v5115_v37  ;;  %6585 = vrot.lane.b32.xlu1 %v25564_v19, %s20282_s28 }
 0x926   : > { %6494 = vrot.lane.b32.xlu0 %v20421_v36, %s20282_s28  ;;  %19763 = vrcp.f32 %v21751_v55 }
 0x928   : > { %v5805_v53 = vpop.permute.xlu1 %5804 }
 0x929   : > { %6676 = vrot.lane.b32.xlu1 %v25565_v26, %s20282_s28  ;;  %18674 = vmatprep.subr.mxu1 %v5805_v53 }
 0x92a   : > { %6587 = vrot.lane.b32.xlu0 %v20427_v39, %s20281_s23  ;;  %18675 = vmatpush3.msra.mxu1 %v5805_v53 }
 0x92d   : > { %6959 = vrot.lane.b32.xlu1 %v20629_v42, %s20282_s28 }
 0x92e   : > { %6583 = vrot.lane.b32.xlu0 %v20427_v39, %s20282_s28  ;;  %v5130_v39 = vpop.xlane.xlu0 %5129 }
 0x92f   : > { %19765 = vrcp.f32 %v5130_v39 }
 0x931   : > { %v19760_v34 = vpop.eup %19759 }
 0x932   : > { %v19762_v7 = vpop.eup %19761  ;;  %6674 = vrot.lane.b32.xlu0 %v20425_v38, %s20282_s28  ;;  %v5178_v35 = vmul.f32 %v19760_v34, %v21757_v2  ;;  %v5718_v42 = vpop.permute.xlu0 %5717 }
 0x933   : > { %v5177_v36 = vmul.f32 %v19762_v7, %v21759_v9 }
 0x935   : > { %18629 = vmatprep.mubr.msk.f32.mxu0 %vm1551_vm2, %v5177_v36 }
 0x936   : > { %18630 = vmatmul.mubr.msk.f32.vlgmr.msra.gmra.mxu0 %vm1551_vm2, %v5178_v35 }
 0x937   : > { %18640 = vmatpush3.msra.mxu0 %v21611_v0  ;;  %v19764_v0 = vpop.eup %19763 }
 0x938   : > { %18641 = vmatprep.subr.mxu0 %v21638_v23  ;;  %v5192_v62 = vmul.f32 %v19764_v0, %v21709_v28 }
 0x939   : > { %18642 = vmatpush3.msra.mxu0 %v21638_v23 }
 0x93a   : > { %18653 = vmatprep.subr.mxu0 %v21642_v54 }
 0x93c   : > { %v19766_v44 = vpop.eup %19765 }
 0x93d   : > { %v5182_v46 = vmul.f32 %v19766_v44, %v21767_v41 }
 0x959   : > { %v5127_v38 = vpop.xlane.xlu1 %5126 }
 0x95a   : > { %19767 = vrcp.f32 %v5127_v38 }
 0x95d   : > { %v5139_v19 = vpop.xlane.xlu1 %5138 }
 0x95e   : > { %19769 = vrcp.f32 %v5139_v19 }
 0x961   : > { %v5142_v26 = vpop.xlane.xlu0 %5141  ;;  %v5151_v2 = vpop.xlane.xlu1 %5150 }
 0x962   : > { %19771 = vrcp.f32 %v5142_v26 }
 0x963   : > { %19773 = vrcp.f32 %v5151_v2 }
 0x965   : > { %v5154_v9 = vpop.xlane.xlu0 %5153  ;;  %v5803_v23 = vpop.permute.xlu1 %5802 }
 0x966   : > { %19775 = vrcp.f32 %v5154_v9  ;;  %18676 = vmatprep.subr.mxu1 %v5803_v23  ;;  %v18638_v9 = vpop.f32.mrf.mxu1 }
 0x967   : > { %v19768_v51 = vpop.eup %19767  ;;  %18677 = vmatpush3.msra.mxu1 %v5803_v23 }
 0x968   : > { %v5181_v55 = vmul.f32 %v19768_v51, %v21784_v22  ;;  %18679 = vmatmul.mubr.msk.f32.vlgmr.msra.gmra.mxu1 %vm1551_vm2, %v5192_v62  ;;  %v5922_v22 = vsel %vm4048_vm3, %v481_v3, 0  ;;  %v5358_v23 = vpop.f32.mrf.mxu1 }
 0x969   : > { %v5716_v6 = vpop.permute.xlu0 %5715  ;;  %v6042_v43 = vpop.permute.xlu1 %6041 }
 0x96a   : > { %18643 = vmatprep.mubr.msk.f32.mxu0 %vm1551_vm2, %v5181_v55  ;;  %v5890_v55 = vpack.c.bf16 %v18638_v9, %v5358_v23 }
 0x96b   : > { %v19770_v17 = vpop.eup %19769  ;;  %18644 = vmatmul.mubr.msk.f32.vlgmr.msra.gmra.mxu0 %vm1551_vm2, %v5182_v46 }
 0x96c   : > { %18654 = vmatpush3.msra.mxu0 %v21642_v54  ;;  %v5185_v4 = vmul.f32 %v19770_v17, %v21788_v5 }
 0x96d   : > { %18655 = vmatprep.subr.mxu0 %v5542_v52  ;;  %v6044_v28 = vpop.permute.xlu0 %6043  ;;  %v6135_v33 = vpop.permute.xlu1 %6134 }
 0x96e   : > { %18656 = vmatpush3.msra.mxu0 %v5542_v52  ;;  %18657 = vmatprep.mubr.msk.f32.mxu0 %vm1551_vm2, %v5185_v4 }
 0x96f   : > { %v19772_v50 = vpop.eup %19771  ;;  %18667 = vmatprep.subr.mxu0 %v5718_v42  ;;  %18699 = vmatprep.subr.msk.mxu1 %vm842_vm1, %v6044_v28 }
 0x970   : > { %v19774_v41 = vpop.eup %19773  ;;  %18700 = vmatpush3.xpose.msk.msra.mxu1 %vm842_vm1, %v6044_v28  ;;  %v5186_v13 = vmul.f32 %v19772_v50, %v21790_v48 }
 0x971   : > { %18701 = vmatprep.subr.msk.mxu1 %vm842_vm1, %v6042_v43  ;;  %v6038_v54 = vpop.permute.xlu0 %6037  ;;  %v5189_v24 = vmul.f32 %v19774_v41, %v21794_v14  ;;  %v6133_v12 = vpop.permute.xlu1 %6132 }
 0x972   : > { %18658 = vmatmul.mubr.msk.f32.vlgmr.msra.gmra.mxu0 %vm1551_vm2, %v5186_v13  ;;  %18703 = vmatprep.mubr.msk.f32.mxu1 %vm842_vm1, %v6038_v54 }
 0x973   : > { %v19776_v61 = vpop.eup %19775  ;;  %18668 = vmatpush3.msra.mxu0 %v5718_v42  ;;  %18671 = vmatprep.mubr.msk.f32.mxu0 %vm1551_vm2, %v5189_v24 }
 0x974   : > { %18669 = vmatprep.subr.mxu0 %v5716_v6  ;;  %18702 = vmatpush3.xpose.msk.msra.mxu1 %vm842_vm1, %v6042_v43  ;;  %v5190_v25 = vmul.f32 %v19776_v61, %v21800_v57 }
 0x975   : > { %18670 = vmatpush3.msra.mxu0 %v5716_v6  ;;  %18706 = vmatprep.subr.msk.mxu1 %vm842_vm1, %v6135_v33  ;;  %v6040_v45 = vpop.permute.xlu0 %6039  ;;  %v6226_v5 = vpop.permute.xlu1 %6225 }
 0x976   : > { %18672 = vmatmul.mubr.msk.f32.vlgmr.msra.gmra.mxu0 %vm1551_vm2, %v5190_v25  ;;  %19547 = vmatprep.subr.msk.bf16.mxu0 %vm4048_vm3, %v481_v3  ;;  %v18652_v6 = vpop.f32.mrf.mxu1 }
 0x977   : > { %18704 = vmatmul.mubr.msk.f32.vlgmr.msra.gmra.mxu1 %vm842_vm1, %v6040_v45  ;;  %18682 = vmatpush3.bf16.msra.mxu0 %v5922_v22 }
 0x978   : > { %18707 = vmatpush3.xpose.msk.msra.mxu1 %vm842_vm1, %v6135_v33  ;;  %v5532_v46 = vpop.f32.mrf.mxu1 }
 0x979   : > { %18708 = vmatprep.subr.msk.mxu1 %vm842_vm1, %v6133_v12  ;;  %v6129_v48 = vpop.permute.xlu0 %6128  ;;  %v6224_v47 = vpop.permute.xlu1 %6223  ;;  %v5892_v33 = vpack.c.bf16 %v18652_v6, %v5532_v46 }
 0x97a   : > { %18710 = vmatprep.mubr.msk.f32.mxu1 %vm842_vm1, %v6129_v48  ;;  %v18666_v43 = vpop.f32.mrf.mxu1 }
 0x97c   : > { %18709 = vmatpush3.xpose.msk.msra.mxu1 %vm842_vm1, %v6133_v12  ;;  %v5706_v50 = vpop.f32.mrf.mxu1 }
 0x97d   : > { %18713 = vmatprep.subr.msk.mxu1 %vm842_vm1, %v6226_v5  ;;  %v6131_v14 = vpop.permute.xlu0 %6130  ;;  %v6317_v40 = vpop.permute.xlu1 %6316  ;;  %v5894_v61 = vpack.c.bf16 %v18666_v43, %v5706_v50 }
 0x97f   : > { %18711 = vmatmul.mubr.msk.f32.vlgmr.msra.gmra.mxu1 %vm842_vm1, %v6131_v14 }
 0x980   : > { %18714 = vmatpush3.xpose.msk.msra.mxu1 %vm842_vm1, %v6226_v5 }
 0x981   : > { %18715 = vmatprep.subr.msk.mxu1 %vm842_vm1, %v6224_v47  ;;  %v6220_v21 = vpop.permute.xlu0 %6219  ;;  %v6315_v57 = vpop.permute.xlu1 %6314 }
 0x982   : > { %18717 = vmatprep.mubr.msk.f32.mxu1 %vm842_vm1, %v6220_v21 }
 0x984   : > { %18716 = vmatpush3.xpose.msk.msra.mxu1 %vm842_vm1, %v6224_v47 }
 0x985   : > { %18720 = vmatprep.subr.msk.mxu1 %vm842_vm1, %v6317_v40  ;;  %v6222_v31 = vpop.permute.xlu0 %6221  ;;  %v6408_v60 = vpop.permute.xlu1 %6407 }
 0x986   : > { %18727 = vmatprep.subr.msk.mxu0 %vm842_vm1, %v6408_v60 }
 0x987   : > { %18718 = vmatmul.mubr.msk.f32.vlgmr.msra.gmra.mxu1 %vm842_vm1, %v6222_v31 }
 0x988   : > { %18721 = vmatpush3.xpose.msk.msra.mxu1 %vm842_vm1, %v6317_v40 }
 0x989   : > { %18722 = vmatprep.subr.msk.mxu1 %vm842_vm1, %v6315_v57  ;;  %v6311_v59 = vpop.permute.xlu0 %6310  ;;  %v6499_v8 = vpop.permute.xlu1 %6498 }
 0x98a   : > { %18724 = vmatprep.mubr.msk.f32.mxu1 %vm842_vm1, %v6311_v59 }
 0x98c   : > { %18723 = vmatpush3.xpose.msk.msra.mxu1 %vm842_vm1, %v6315_v57 }
 0x98d   : > { %18734 = vmatprep.subr.msk.mxu1 %vm842_vm1, %v6499_v8  ;;  %v6313_v52 = vpop.permute.xlu0 %6312  ;;  %v6497_v32 = vpop.permute.xlu1 %6496 }
 0x98f   : > { %18725 = vmatmul.mubr.msk.f32.vlgmr.msra.gmra.mxu1 %vm842_vm1, %v6313_v52 }
 0x990   : > { %18735 = vmatpush3.xpose.msk.msra.mxu1 %vm842_vm1, %v6499_v8 }
 0x991   : > { %18736 = vmatprep.subr.msk.mxu1 %vm842_vm1, %v6497_v32  ;;  %v6406_v37 = vpop.permute.xlu0 %6405  ;;  %v21931_v53 = vpop.permute.xlu1 %6403 }
 0x994   : > { %18737 = vmatpush3.xpose.msk.msra.mxu1 %vm842_vm1, %v6497_v32 }
 0x995   : > { %v21934_v34 = vpop.permute.xlu0 %6401  ;;  %v21936_v7 = vpop.permute.xlu1 %6589 }
 0x999   : > { %v6493_v36 = vpop.permute.xlu0 %6492  ;;  %v6681_v35 = vpop.permute.xlu1 %6680 }
 0x99a   : > { %18738 = vmatprep.mubr.msk.f32.mxu1 %vm842_vm1, %v6493_v36  ;;  %18748 = vmatprep.subr.msk.mxu1 %vm842_vm1, %v6681_v35 }
 0x99d   : > { %v6495_v39 = vpop.permute.xlu0 %6494  ;;  %v6679_v38 = vpop.permute.xlu1 %6678 }
 0x99e   : > { %18739 = vmatmul.mubr.msk.f32.vlgmr.msra.gmra.mxu1 %vm842_vm1, %v6495_v39 }
 0x99f   : > { %18749 = vmatpush3.xpose.msk.msra.mxu1 %vm842_vm1, %v6681_v35 }
 0x9a0   : > { %18750 = vmatprep.subr.msk.mxu1 %vm842_vm1, %v6679_v38 }
 0x9a1   : > { %v21943_v42 = vpop.permute.xlu0 %6587  ;;  %v21946_v19 = vpop.permute.xlu1 %6585 }
 0x9a3   : > { %18751 = vmatpush3.xpose.msk.msra.mxu1 %vm842_vm1, %v6679_v38 }
 0x9a5   : > { %v21948_v26 = vpop.permute.xlu0 %6583  ;;  %v6677_v0 = vpop.permute.xlu1 %6676 }
 0x9a9   : > { %v6675_v2 = vpop.permute.xlu0 %6674 }
 0x9aa   : > { %18752 = vmatprep.mubr.msk.f32.mxu1 %vm842_vm1, %v6675_v2 }
 0x9ab   : > { %18753 = vmatmul.mubr.msk.f32.vlgmr.msra.gmra.mxu1 %vm842_vm1, %v6677_v0 }
 0x9f6   : > { %v18631_v44 = vpop.f32.mrf.mxu0 }
 0x9f8   : > { %v5271_v51 = vpop.f32.mrf.mxu0 }
 0x9f9   : > { %v5889_v62 = vpack.c.bf16 %v18631_v44, %v5271_v51 }
 0x9fb   : > { %18683 = vmatprep.mubr.msk.bf16.mxu0 %vm842_vm1, %v5889_v62 }
 0x9fc   : > { %18684 = vmatmul.mubr.msk.bf16.vlgmr.msra.gmra.mxu0 %vm842_vm1, %v5890_v55 }
 0x9fd   : > { %18728 = vmatpush3.xpose.msk.msra.mxu0 %vm842_vm1, %v6408_v60 }
 0x9fe   : > { %18729 = vmatprep.subr.msk.mxu0 %vm842_vm1, %v6406_v37 }
 0xa01   : > { %18730 = vmatpush3.xpose.msk.msra.mxu0 %vm842_vm1, %v6406_v37 }
 0xa02   : > { %18741 = vmatprep.subr.msk.mxu0 %vm842_vm1, %v21936_v7 }
 0xa28   : > { %v18680_v41 = vpop.f32.mrf.mxu1 }
 0xa2a   : > { %v5880_v24 = vpop.f32.mrf.mxu1 }
 0xa2b   : > { %v18645_v17 = vpop.f32.mrf.mxu0  ;;  %v5896_v21 = vpack.c.bf16 %v18680_v41, %v5880_v24 }
 0xa2d   : > { %v5445_v4 = vpop.f32.mrf.mxu0 }
 0xa2e   : > { %v5891_v28 = vpack.c.bf16 %v18645_v17, %v5445_v4 }
 0xa30   : > { %18687 = vmatprep.mubr.msk.bf16.mxu0 %vm842_vm1, %v5891_v28  ;;  %v4219_v28 = vadd.f32 %v21527_v58, %v21630_v30 }
 0xa31   : > { %18688 = vmatmul.mubr.msk.bf16.gmra.mxu0 %vm842_vm1, %v5892_v33 }
 0xa32   : > { %v18659_v13 = vpop.f32.mrf.mxu0 }
 0xa34   : > { %v5619_v54 = vpop.f32.mrf.mxu0 }
 0xa35   : > { %v5893_v3 = vpack.c.bf16 %v18659_v13, %v5619_v54 }
 0xa36   : > { %v18673_v12 = vpop.f32.mrf.mxu0 }
 0xa37   : > { %v18705_v25 = vpop.f32.mrf.mxu1  ;;  %18691 = vmatprep.mubr.msk.bf16.mxu0 %vm842_vm1, %v5893_v3 }
 0xa38   : > { %v21963_v22 = vmul.f32 %v21599_v20, %v18705_v25  ;;  %v5793_v45 = vpop.f32.mrf.mxu0 }
 0xa39   : > { %v5895_v5 = vpack.c.bf16 %v18673_v12, %v5793_v45  ;;  %v6119_v48 = vpop.f32.mrf.mxu1  ;;  %18692 = vmatmul.mubr.msk.bf16.gmra.mxu0 %vm842_vm1, %v5894_v61 }
 0xa3a   : > { %v21967_v47 = vmul.f32 %v21607_v49, %v6119_v48  ;;  %v6784_v14 = vsel %vm1551_vm2, %v21963_v22, -inf }
 0xa3b   : > { %6785 = vmax.xlane.f32.xlu1 %v6784_v14  ;;  %18695 = vmatprep.mubr.msk.bf16.mxu0 %vm842_vm1, %v5895_v5 }
 0xa3c   : > { %v6781_v40 = vsel %vm1551_vm2, %v21967_v47, -inf }
 0xa3d   : > { %6782 = vmax.xlane.f32.xlu0 %v6781_v40 }
 0xa3f   : > { %v18712_v57 = vpop.f32.mrf.mxu1 }
 0xa40   : > { %v21975_v31 = vmul.f32 %v21599_v20, %v18712_v57 }
 0xa41   : > { %v6210_v60 = vpop.f32.mrf.mxu1  ;;  %18696 = vmatmul.mubr.msk.bf16.gmra.mxu0 %vm842_vm1, %v5896_v21 }
 0xa42   : > { %v21979_v59 = vmul.f32 %v21607_v49, %v6210_v60  ;;  %18731 = vmatprep.mubr.msk.f32.mxu0 %vm842_vm1, %v21934_v34  ;;  %v6790_v8 = vsel %vm1551_vm2, %v21975_v31, -inf }
 0xa43   : > { %6791 = vmax.xlane.f32.xlu0 %v6790_v8 }
 0xa44   : > { %v6787_v52 = vsel %vm1551_vm2, %v21979_v59, -inf }
 0xa47   : > { %6788 = vmax.xlane.f32.xlu0 %v6787_v52  ;;  %v18719_v32 = vpop.f32.mrf.mxu1 }
 0xa48   : > { %v21988_v37 = vmul.f32 %v21599_v20, %v18719_v32 }
 0xa49   : > { %v6301_v36 = vpop.f32.mrf.mxu1  ;;  %18732 = vmatmul.mubr.msk.f32.vlgmr.msra.gmra.mxu0 %vm842_vm1, %v21931_v53  ;;  %v6960_v53 = vpop.permute.xlu1 %6959 }
 0xa4a   : > { %v21993_v35 = vmul.f32 %v21607_v49, %v6301_v36  ;;  %18742 = vmatpush3.xpose.msk.msra.mxu0 %vm842_vm1, %v21936_v7  ;;  %v6796_v34 = vsel %vm1551_vm2, %v21988_v37, -inf  ;;  %18745 = vmatprep.mubr.msk.f32.mxu0 %vm842_vm1, %v21948_v26 }
 0xa4b   : > { %6797 = vmax.xlane.f32.xlu0 %v6796_v34  ;;  %18743 = vmatprep.subr.msk.mxu0 %vm842_vm1, %v21943_v42 }
 0xa4c   : > { %v6793_v39 = vsel %vm1551_vm2, %v21993_v35, -inf }
 0xa4d   : > { %6794 = vmax.xlane.f32.xlu1 %v6793_v39 }
 0xa4e   : > { %18744 = vmatpush3.xpose.msk.msra.mxu0 %vm842_vm1, %v21943_v42 }
 0xa4f   : > { %v18726_v38 = vpop.f32.mrf.mxu1  ;;  %18755 = vmatprep.subr.mxu0 %v6960_v53 }
 0xa50   : > { %v22008_v7 = vmul.f32 %v21599_v20, %v18726_v38 }
 0xa51   : > { %v6392_v2 = vpop.f32.mrf.mxu1  ;;  %18746 = vmatmul.mubr.msk.f32.vlgmr.msra.gmra.mxu0 %vm842_vm1, %v21946_v19 }
 0xa52   : > { %v22013_v26 = vmul.f32 %v21607_v49, %v6392_v2  ;;  %18756 = vmatpush3.msra.mxu0 %v6960_v53  ;;  %v6802_v0 = vsel %vm1551_vm2, %v22008_v7, -inf }
 0xa53   : > { %6803 = vmax.xlane.f32.xlu0 %v6802_v0 }
 0xa54   : > { %v6799_v42 = vsel %vm1551_vm2, %v22013_v26, -inf }
 0xa55   : > { %6800 = vmax.xlane.f32.xlu1 %v6799_v42 }
 0xa5e   : > { %v18740_v9 = vpop.f32.mrf.mxu1 }
 0xa5f   : > { %v22020_v44 = vmul.f32 %v21599_v20, %v18740_v9 }
 0xa60   : > { %v6574_v23 = vpop.f32.mrf.mxu1 }
 0xa61   : > { %v22023_v51 = vmul.f32 %v21607_v49, %v6574_v23  ;;  %v6814_v19 = vsel %vm1551_vm2, %v22020_v44, -inf }
 0xa62   : > { %6815 = vmax.xlane.f32.xlu0 %v6814_v19 }
 0xa63   : > { %v6811_v62 = vsel %vm1551_vm2, %v22023_v51, -inf }
 0xa64   : > { %6812 = vmax.xlane.f32.xlu1 %v6811_v62 }
 0xa6b   : > { %v18754_v55 = vpop.f32.mrf.mxu1 }
 0xa6c   : > { %v22030_v6 = vmul.f32 %v21599_v20, %v18754_v55 }
 0xa6d   : > { %v6756_v46 = vpop.f32.mrf.mxu1 }
 0xa6e   : > { %v22033_v43 = vmul.f32 %v21607_v49, %v6756_v46  ;;  %v6826_v17 = vsel %vm1551_vm2, %v22030_v6, -inf  ;;  %v4222_v49 = vadd.f32 %v21534_v27, %v21634_v11 }
 0xa6f   : > { %6827 = vmax.xlane.f32.xlu0 %v6826_v17 }
 0xa70   : > { %v6823_v4 = vsel %vm1551_vm2, %v22033_v43, -inf }
 0xa71   : > { %6824 = vmax.xlane.f32.xlu1 %v6823_v4 }
 0xabc   : > { %v18685_v33 = vpop.f32.mrf.mxu0 }
 0xabd   : > { %v22041_v50 = vadd.f32 %v18685_v33, %v4219_v28  ;;  %v4235_v28 = vadd.f32 %v21538_v18, %v21640_v29  ;;  %v25603_v29 = vld [vmem:[#allocation33_spill] sm:$0xff] }
 0xabe   : > { %v22043_v20 = vpop.f32.mrf.mxu0 }
 0xac0   : > { %v18686_v41 = vpop.f32.mrf.mxu0 }
 0xac1   : > { %v22047_v13 = vadd.f32 %v18686_v41, %v4222_v49 }
 0xac2   : > { %v22085_v46 = vpop.f32.mrf.mxu0 }
 0xac4   : > { %v6786_v54 = vpop.xlane.xlu1 %6785 }
 0xac5   : > { %v6830_v24 = vsub.f32 %v21963_v22, %v6786_v54  ;;  %v4238_v54 = vadd.f32 %v21550_v15, %v21648_v16 }
 0xac6   : > { %v6783_v3 = vpop.xlane.xlu0 %6782 }
 0xac7   : > { %v6847_v12 = vmul.f32 1.442695, %v6830_v24  ;;  %v6829_v61 = vsub.f32 %v21967_v47, %v6783_v3 }
 0xac9   : > { %19777 = vpow2.f32 %v6847_v12  ;;  %v6845_v58 = vmul.f32 1.442695, %v6829_v61  ;;  %v25604_v12 = vld [vmem:[#allocation8_spill] sm:$0xff] }
 0xaca   : > { %v4251_v61 = vadd.f32 %v25604_v12, %v25603_v29 }
 0xacb   : > { %19779 = vpow2.f32 %v6845_v58 }
 0xacc   : > { %v6792_v30 = vpop.xlane.xlu0 %6791 }
 0xacd   : > { %v6832_v25 = vsub.f32 %v21975_v31, %v6792_v30 }
 0xacf   : > { %v6851_v45 = vmul.f32 1.442695, %v6832_v25 }
 0xad0   : > { %v6789_v5 = vpop.xlane.xlu0 %6788 }
 0xad1   : > { %19781 = vpow2.f32 %v6851_v45  ;;  %v6831_v27 = vsub.f32 %v21979_v59, %v6789_v5 }
 0xad3   : > { %v6849_v11 = vmul.f32 1.442695, %v6831_v27  ;;  %v25605_v27 = vld [vmem:[#allocation35_spill] sm:$0xff] }
 0xad4   : > { %v6798_v48 = vpop.xlane.xlu0 %6797 }
 0xad5   : > { %19783 = vpow2.f32 %v6849_v11  ;;  %v6834_v22 = vsub.f32 %v21988_v37, %v6798_v48  ;;  %v25606_v11 = vld [vmem:[#allocation10_spill] sm:$0xff] }
 0xad6   : > { %v22054_v14 = vpop.eup %19777  ;;  %v6795_v40 = vpop.xlane.xlu1 %6794  ;;  %v4254_v48 = vadd.f32 %v25606_v11, %v25605_v27  ;;  %v25613_v27 = vld [vmem:[#allocation19_spill] sm:$0xff] }
 0xad7   : > { %v6855_v47 = vmul.f32 1.442695, %v6834_v22  ;;  %v6833_v21 = vsub.f32 %v21993_v35, %v6795_v40  ;;  %v6880_v57 = vsel %vm1551_vm2, %v22054_v14, 0.0 }
 0xad8   : > { %v22059_v31 = vpop.eup %19779  ;;  %6881 = vadd.xlane.f32.xlu0 %v6880_v57 }
 0xad9   : > { %19785 = vpow2.f32 %v6855_v47  ;;  %v6853_v60 = vmul.f32 1.442695, %v6833_v21  ;;  %v6877_v59 = vsel %vm1551_vm2, %v22059_v31, 0.0 }
 0xada   : > { %6878 = vadd.xlane.f32.xlu1 %v6877_v59 }
 0xadb   : > { %19787 = vpow2.f32 %v6853_v60  ;;  %v25608_v60 = vld [vmem:[#allocation23_spill] sm:$0xff] }
 0xadc   : > { %v6804_v8 = vpop.xlane.xlu0 %6803 }
 0xadd   : > { %v6836_v52 = vsub.f32 %v22008_v7, %v6804_v8 }
 0xade   : > { %v22064_v32 = vpop.eup %19781  ;;  %v6801_v37 = vpop.xlane.xlu1 %6800 }
 0xadf   : > { %v6859_v36 = vmul.f32 1.442695, %v6836_v52  ;;  %v6835_v35 = vsub.f32 %v22013_v26, %v6801_v37  ;;  %v6886_v34 = vsel %vm1551_vm2, %v22064_v32, 0.0 }
 0xae0   : > { %6887 = vadd.xlane.f32.xlu0 %v6886_v34  ;;  %v25610_v34 = vld [vmem:[#allocation26_spill] sm:$0xff] }
 0xae1   : > { %19789 = vpow2.f32 %v6859_v36  ;;  %v6857_v39 = vmul.f32 1.442695, %v6835_v35  ;;  %v25609_v35 = vld [vmem:[#allocation39_spill] sm:$0xff] }
 0xae2   : > { %v22069_v53 = vpop.eup %19783 }
 0xae3   : > { %19791 = vpow2.f32 %v6857_v39  ;;  %v6883_v38 = vsel %vm1551_vm2, %v22069_v53, 0.0  ;;  %v4270_v39 = vadd.f32 %v25610_v34, %v25609_v35  ;;  %v25619_v35 = vld [vmem:[#allocation21_spill] sm:$0xff]  ;;  %v25620_v34 = vld [vmem:[#allocation16_spill] sm:$0xff] }
 0xae4   : > { %6884 = vadd.xlane.f32.xlu1 %v6883_v38 }
 0xae6   : > { %v22073_v7 = vpop.eup %19785 }
 0xae7   : > { %v6892_v2 = vsel %vm1551_vm2, %v22073_v7, 0.0 }
 0xae8   : > { %v22077_v0 = vpop.eup %19787  ;;  %6893 = vadd.xlane.f32.xlu0 %v6892_v2 }
 0xae9   : > { %v6889_v26 = vsel %vm1551_vm2, %v22077_v0, 0.0 }
 0xaea   : > { %6890 = vadd.xlane.f32.xlu1 %v6889_v26 }
 0xaeb   : > { %v6816_v42 = vpop.xlane.xlu0 %6815 }
 0xaec   : > { %v6840_v9 = vsub.f32 %v22020_v44, %v6816_v42 }
 0xaed   : > { %v6813_v23 = vpop.xlane.xlu1 %6812 }
 0xaee   : > { %v22082_v19 = vpop.eup %19789  ;;  %v6867_v62 = vmul.f32 1.442695, %v6840_v9  ;;  %v6839_v55 = vsub.f32 %v22023_v51, %v6813_v23  ;;  %v20227_v9 = vld [vmem:[%s25417_s2 + $0x8] sm:$0xff] }
 0xaef   : > { %v6898_v17 = vsel %vm1551_vm2, %v22082_v19, 0.0 }
 0xaf0   : > { %v22089_v4 = vpop.eup %19791  ;;  %19793 = vpow2.f32 %v6867_v62  ;;  %v6865_v33 = vmul.f32 1.442695, %v6839_v55  ;;  %6899 = vadd.xlane.f32.xlu0 %v6898_v17  ;;  %v20228_v55 = vld [vmem:[%s25417_s2] sm:$0xff] }
 0xaf1   : > { %v18689_v44 = vpop.f32.mrf.mxu0  ;;  %v6895_v49 = vsel %vm1551_vm2, %v22089_v4, 0.0 }
 0xaf2   : > { %19795 = vpow2.f32 %v6865_v33  ;;  %v22095_v41 = vadd.f32 %v18689_v44, %v4235_v28  ;;  %6896 = vadd.xlane.f32.xlu1 %v6895_v49 }
 0xaf3   : > { %v22097_v51 = vpop.f32.mrf.mxu0 }
 0xaf5   : > { %v18690_v24 = vpop.f32.mrf.mxu0 }
 0xaf6   : > { %v22101_v3 = vadd.f32 %v18690_v24, %v4238_v54 }
 0xaf7   : > { %v22103_v18 = vpop.f32.mrf.mxu0 }
 0xaf8   : > { %v6828_v58 = vpop.xlane.xlu0 %6827 }
 0xaf9   : > { %v18693_v30 = vpop.f32.mrf.mxu0  ;;  %v6844_v25 = vsub.f32 %v22030_v6, %v6828_v58  ;;  %v25607_v6 = vld [vmem:[#allocation37_spill] sm:$0xff] }
 0xafa   : > { %v22108_v45 = vadd.f32 %v18693_v30, %v4251_v61  ;;  %v4267_v59 = vadd.f32 %v25608_v60, %v25607_v6  ;;  %v25611_v30 = vld [vmem:[#allocation15_spill] sm:$0xff]  ;;  %v6825_v11 = vpop.xlane.xlu1 %6824  ;;  %v25616_v6 = vld [vmem:[#allocation20_spill] sm:$0xff]  ;;  %v25617_v60 = vld [vmem:[#allocation22_spill] sm:$0xff] }
 0xafb   : > { %v22110_v5 = vpop.f32.mrf.mxu0  ;;  %v6875_v22 = vmul.f32 1.442695, %v6844_v25  ;;  %v25612_v25 = vld [vmem:[#allocation13_spill] sm:$0xff] }
 0xafd   : > { %v22114_v15 = vpop.eup %19793  ;;  %v18694_v16 = vpop.f32.mrf.mxu0  ;;  %19797 = vpow2.f32 %v6875_v22  ;;  %v25615_v22 = vld [vmem:[#allocation14_spill] sm:$0xff] }
 0xafe   : > { %v22116_v40 = vadd.f32 %v18694_v16, %v4254_v48  ;;  %v6910_v47 = vsel %vm1551_vm2, %v22114_v15, 0.0  ;;  %v25614_v48 = vld [vmem:[#allocation12_spill] sm:$0xff]  ;;  %v6843_v16 = vsub.f32 %v22033_v43, %v6825_v11  ;;  %v25618_v43 = vld [vmem:[#allocation17_spill] sm:$0xff] }
 0xaff   : > { %v22120_v21 = vpop.eup %19795  ;;  %v22122_v57 = vpop.f32.mrf.mxu0  ;;  %6911 = vadd.xlane.f32.xlu0 %v6910_v47 }
 0xb00   : > { %v6907_v8 = vsel %vm1551_vm2, %v22120_v21, 0.0  ;;  %v6873_v47 = vmul.f32 1.442695, %v6843_v16 }
 0xb01   : > { %v18697_v52 = vpop.f32.mrf.mxu0  ;;  %6908 = vadd.xlane.f32.xlu1 %v6907_v8 }
 0xb02   : > { %v22128_v37 = vadd.f32 %v18697_v52, %v4267_v59  ;;  %19799 = vpow2.f32 %v6873_v47 }
 0xb03   : > { %v22130_v36 = vpop.f32.mrf.mxu0 }
 0xb05   : > { %v18698_v38 = vpop.f32.mrf.mxu0 }
 0xb06   : > { %v22134_v2 = vadd.f32 %v18698_v38, %v4270_v39  ;;  %v25621_v39 = vld [vmem:[#allocation18_spill] sm:$0xff] }
 0xb07   : > { %v22136_v26 = vpop.f32.mrf.mxu0 }
 0xb09   : > { %v18733_v42 = vpop.f32.mrf.mxu0 }
 0xb0a   : > { %v6774_v23 = vmul.f32 %v20227_v9, %v18733_v42  ;;  %v22146_v44 = vpop.eup %19797 }
 0xb0b   : > { %v6483_v62 = vpop.f32.mrf.mxu0  ;;  %v6922_v24 = vsel %vm1551_vm2, %v22146_v44, 0.0 }
 0xb0c   : > { %v6773_v17 = vmul.f32 %v20228_v55, %v6483_v62  ;;  %v6808_v28 = vsel %vm1551_vm2, %v6774_v23, -inf }
 0xb0d   : > { %6809 = vmax.xlane.f32.xlu0 %v6808_v28 }
 0xb0e   : > { %v6805_v33 = vsel %vm1551_vm2, %v6773_v17, -inf }
 0xb0f   : > { %6806 = vmax.xlane.f32.xlu1 %v6805_v33  ;;  %v22175_v59 = vpop.eup %19799 }
 0xb10   : > { %v6919_v8 = vsel %vm1551_vm2, %v22175_v59, 0.0 }
 0xb11   : > { %v18747_v49 = vpop.f32.mrf.mxu0 }
 0xb12   : > { %v22148_v54 = vmul.f32 %v20227_v9, %v18747_v49 }
 0xb13   : > { %v6665_v29 = vpop.f32.mrf.mxu0  ;;  %6923 = vadd.xlane.f32.xlu1 %v6922_v24 }
 0xb14   : > { %v22152_v12 = vmul.f32 %v20228_v55, %v6665_v29  ;;  %v6820_v61 = vsel %vm1551_vm2, %v22148_v54, -inf }
 0xb15   : > { %6821 = vmax.xlane.f32.xlu0 %v6820_v61 }
 0xb16   : > { %v6817_v58 = vsel %vm1551_vm2, %v22152_v12, -inf }
 0xb17   : > { %6818 = vmax.xlane.f32.xlu1 %v6817_v58 }
 0xb28   : > { %7046 = vrot.lane.b32.xlu1 %v25611_v30, %s20282_s28 }
 0xb2b   : > { %6957 = vrot.lane.b32.xlu0 %v25612_v25, %s20282_s28 }
 0xb2c   : > { %7133 = vrot.lane.b32.xlu1 %v25613_v27, %s20282_s28 }
 0xb30   : > { %7220 = vrot.lane.b32.xlu1 %v25614_v48, %s20282_s28 }
 0xb34   : > { %7218 = vrot.lane.b32.xlu1 %v25615_v22, %s20282_s28 }
 0xb38   : > { %7394 = vrot.lane.b32.xlu1 %v25616_v6, %s20282_s28 }
 0xb3c   : > { %7392 = vrot.lane.b32.xlu1 %v25617_v60, %s20282_s28 }
 0xb40   : > { %7568 = vrot.lane.b32.xlu1 %v20685_v63, %s20282_s28 }
 0xb4a   : > { %6920 = vadd.xlane.f32.xlu0 %v6919_v8 }
 0xb60   : > { %7044 = vrot.lane.b32.xlu0 %v25618_v43, %s20282_s28 }
 0xb61   : > { %v6882_v55 = vpop.xlane.xlu0 %6881 }
 0xb63   : > { %v6879_v52 = vpop.xlane.xlu1 %6878 }
 0xb64   : > { %19801 = vrcp.f32 %v6879_v52  ;;  %7131 = vrot.lane.b32.xlu0 %v25619_v35, %s20282_s28 }
 0xb68   : > { %7307 = vrot.lane.b32.xlu0 %v25620_v34, %s20282_s28 }
 0xb69   : > { %v6888_v33 = vpop.xlane.xlu0 %6887 }
 0xb6c   : > { %7305 = vrot.lane.b32.xlu0 %v25621_v39, %s20282_s28 }
 0xb6d   : > { %v6885_v63 = vpop.xlane.xlu1 %6884 }
 0xb70   : > { %7481 = vrot.lane.b32.xlu0 %v20667_v56, %s20282_s28 }
 0xb71   : > { %v19802_v38 = vpop.eup %19801  ;;  %v6894_v49 = vpop.xlane.xlu0 %6893 }
 0xb72   : > { %v6941_v42 = vmul.f32 %v19802_v38, %v22059_v31 }
 0xb73   : > { %v6891_v9 = vpop.xlane.xlu1 %6890 }
 0xb74   : > { %19803 = vrcp.f32 %v6891_v9  ;;  %18759 = vmatprep.mubr.msk.f32.mxu0 %vm1551_vm2, %v6941_v42 }
 0xb75   : > { %19805 = vrcp.f32 %v6882_v55 }
 0xb76   : > { %19807 = vrcp.f32 %v6885_v63 }
 0xb79   : > { %v6900_v24 = vpop.xlane.xlu0 %6899 }
 0xb7b   : > { %v6897_v29 = vpop.xlane.xlu1 %6896 }
 0xb81   : > { %v19804_v62 = vpop.eup %19803 }
 0xb82   : > { %v6945_v28 = vmul.f32 %v19804_v62, %v22077_v0  ;;  %v19806_v22 = vpop.eup %19805 }
 0xb83   : > { %v19808_v6 = vpop.eup %19807 }
 0xb84   : > { %18773 = vmatprep.mubr.msk.f32.mxu1 %vm1551_vm2, %v6945_v28  ;;  %v6943_v35 = vmul.f32 %v19808_v6, %v22069_v53 }
 0xb88   : > { %v6912_v61 = vpop.xlane.xlu0 %6911 }
 0xb8a   : > { %v6909_v56 = vpop.xlane.xlu1 %6908 }
 0xb96   : > { %v6810_v58 = vpop.xlane.xlu0 %6809 }
 0xb97   : > { %v6838_v31 = vsub.f32 %v6774_v23, %v6810_v58 }
 0xb98   : > { %v6807_v30 = vpop.xlane.xlu1 %6806 }
 0xb99   : > { %v6863_v25 = vmul.f32 1.442695, %v6838_v31  ;;  %v6837_v27 = vsub.f32 %v6773_v17, %v6807_v30  ;;  %v6942_v17 = vmul.f32 %v19806_v22, %v22054_v14 }
 0xb9b   : > { %19809 = vpow2.f32 %v6863_v25  ;;  %v6861_v11 = vmul.f32 1.442695, %v6837_v27 }
 0xb9c   : > { %v22193_v48 = vpop.xlane.xlu1 %6923 }
 0xb9d   : > { %19811 = vpow2.f32 %v6861_v11 }
 0xb9e   : > { %v6822_v0 = vpop.xlane.xlu0 %6821 }
 0xb9f   : > { %v6842_v16 = vsub.f32 %v22148_v54, %v6822_v0 }
 0xba0   : > { %v6819_v47 = vpop.xlane.xlu1 %6818 }
 0xba1   : > { %v6871_v60 = vmul.f32 1.442695, %v6842_v16  ;;  %v6841_v8 = vsub.f32 %v22152_v12, %v6819_v47 }
 0xba2   : > { %v6958_v43 = vpop.permute.xlu0 %6957 }
 0xba3   : > { %19813 = vpow2.f32 %v6871_v60  ;;  %v6869_v23 = vmul.f32 1.442695, %v6841_v8  ;;  %18757 = vmatprep.subr.mxu0 %v6958_v43 }
 0xba4   : > { %18758 = vmatpush3.msra.mxu0 %v6958_v43  ;;  %v7047_v52 = vpop.permute.xlu1 %7046 }
 0xba5   : > { %19815 = vpow2.f32 %v6869_v23  ;;  %18760 = vmatmul.mubr.msk.f32.vlgmr.msra.gmra.mxu0 %vm1551_vm2, %v6942_v17  ;;  %18762 = vmatprep.subr.mxu0 %v7047_v52 }
 0xba6   : > { %18766 = vmatprep.mubr.msk.f32.mxu0 %vm1551_vm2, %v6943_v35  ;;  %18763 = vmatpush3.msra.mxu0 %v7047_v52  ;;  %19817 = vrcp.f32 %v6888_v33 }
 0xba7   : > { %19819 = vrcp.f32 %v6897_v29 }
 0xba8   : > { %v22201_v54 = vpop.eup %19809  ;;  %v7134_v12 = vpop.permute.xlu1 %7133  ;;  %19821 = vrcp.f32 %v6894_v49 }
 0xba9   : > { %18769 = vmatprep.subr.mxu1 %v7134_v12  ;;  %v6904_v34 = vsel %vm1551_vm2, %v22201_v54, 0.0  ;;  %19823 = vrcp.f32 %v6900_v24 }
 0xbaa   : > { %v22205_v39 = vpop.eup %19811  ;;  %6905 = vadd.xlane.f32.xlu0 %v6904_v34  ;;  %18770 = vmatpush3.msra.mxu1 %v7134_v12  ;;  %19825 = vrcp.f32 %v6909_v56 }
 0xbab   : > { %v6901_v14 = vsel %vm1551_vm2, %v22205_v39, 0.0  ;;  %19827 = vrcp.f32 %v6912_v61 }
 0xbac   : > { %6902 = vadd.xlane.f32.xlu1 %v6901_v14  ;;  %v7221_v9 = vpop.permute.xlu1 %7220 }
 0xbb0   : > { %v22209_v53 = vpop.eup %19813  ;;  %v7219_v62 = vpop.permute.xlu1 %7218 }
 0xbb1   : > { %v6916_v63 = vsel %vm1551_vm2, %v22209_v53, 0.0 }
 0xbb2   : > { %v22213_v38 = vpop.eup %19815  ;;  %6917 = vadd.xlane.f32.xlu1 %v6916_v63 }
 0xbb3   : > { %v6913_v42 = vsel %vm1551_vm2, %v22213_v38, 0.0  ;;  %v19818_v28 = vpop.eup %19817 }
 0xbb4   : > { %6914 = vadd.xlane.f32.xlu0 %v6913_v42  ;;  %v19820_v58 = vpop.eup %19819  ;;  %v7395_v31 = vpop.permute.xlu1 %7394 }
 0xbb5   : > { %v19822_v25 = vpop.eup %19821  ;;  %v6947_v29 = vmul.f32 %v19820_v58, %v22089_v4 }
 0xbb6   : > { %v19824_v33 = vpop.eup %19823  ;;  %v6946_v56 = vmul.f32 %v19822_v25, %v22073_v7 }
 0xbb7   : > { %v6948_v24 = vmul.f32 %v19824_v33, %v22082_v19 }
 0xbb8   : > { %v7393_v61 = vpop.permute.xlu1 %7392 }
 0xbbc   : > { %v7569_v7 = vpop.permute.xlu1 %7568 }
 0xbc3   : > { %7566 = vrot.lane.b32.xlu1 %v20689_v1, %s20282_s28  ;;  %v6944_v1 = vmul.f32 %v19818_v28, %v22064_v32 }
 0xbca   : > { %7479 = vrot.lane.b32.xlu0 %v25600_v10, %s20282_s28  ;;  %v19826_v10 = vpop.eup %19825 }
 0xbcb   : > { %v6951_v32 = vmul.f32 %v19826_v10, %v22120_v21  ;;  %v19828_v4 = vpop.eup %19827 }
 0xbcc   : > { %v6952_v11 = vmul.f32 %v19828_v4, %v22114_v15 }
 0xbd3   : > { %v6921_v55 = vpop.xlane.xlu0 %6920 }
 0xbd4   : > { %19829 = vrcp.f32 %v6921_v55 }
 0xbd5   : > { %19831 = vrcp.f32 %v22193_v48 }
 0xbd7   : > { %v7045_v30 = vpop.permute.xlu0 %7044 }
 0xbd8   : > { %18764 = vmatprep.subr.mxu0 %v7045_v30 }
 0xbd9   : > { %18765 = vmatpush3.msra.mxu0 %v7045_v30 }
 0xbda   : > { %18767 = vmatmul.mubr.msk.f32.vlgmr.msra.gmra.mxu0 %vm1551_vm2, %v6944_v1  ;;  %18776 = vmatprep.subr.mxu0 %v7221_v9 }
 0xbdb   : > { %v7132_v49 = vpop.permute.xlu0 %7131  ;;  %18777 = vmatpush3.msra.mxu0 %v7221_v9  ;;  %18780 = vmatprep.mubr.msk.f32.mxu0 %vm1551_vm2, %v6947_v29 }
 0xbdc   : > { %18771 = vmatprep.subr.mxu1 %v7132_v49  ;;  %18778 = vmatprep.subr.mxu0 %v7219_v62 }
 0xbdd   : > { %18772 = vmatpush3.msra.mxu1 %v7132_v49  ;;  %18779 = vmatpush3.msra.mxu0 %v7219_v62 }
 0xbde   : > { %18774 = vmatmul.mubr.msk.f32.vlgmr.msra.gmra.mxu1 %vm1551_vm2, %v6946_v56  ;;  %18781 = vmatmul.mubr.msk.f32.vlgmr.msra.gmra.mxu0 %vm1551_vm2, %v6948_v24 }
 0xbdf   : > { %18790 = vmatprep.subr.mxu0 %v7395_v31  ;;  %v7308_v27 = vpop.permute.xlu0 %7307  ;;  %18794 = vmatprep.mubr.msk.f32.mxu0 %vm1551_vm2, %v6951_v32 }
 0xbe0   : > { %18791 = vmatpush3.msra.mxu0 %v7395_v31  ;;  %18783 = vmatprep.subr.mxu1 %v7308_v27 }
 0xbe1   : > { %v19830_v19 = vpop.eup %19829  ;;  %18792 = vmatprep.subr.mxu0 %v7393_v61  ;;  %18784 = vmatpush3.msra.mxu1 %v7308_v27 }
 0xbe2   : > { %18793 = vmatpush3.msra.mxu0 %v7393_v61  ;;  %v6955_v21 = vmul.f32 %v19830_v19, %v22175_v59  ;;  %v19832_v6 = vpop.eup %19831  ;;  %v25622_v19 = vld [vmem:[#allocation28_spill] sm:$0xff] }
 0xbe3   : > { %18795 = vmatmul.mubr.msk.f32.vlgmr.msra.gmra.mxu0 %vm1551_vm2, %v6952_v11  ;;  %18804 = vmatprep.subr.mxu0 %v7569_v7  ;;  %v7306_v0 = vpop.permute.xlu0 %7305  ;;  %v6956_v8 = vmul.f32 %v19832_v6, %v22146_v44  ;;  %v482_v44 = vld [vmem:[%s25419_s4 + $0xc] sm:$0xf]  ;;  %v25623_v11 = vld [vmem:[#allocation5_spill] sm:$0xff] }
 0xbe4   : > { %18805 = vmatpush3.msra.mxu0 %v7569_v7  ;;  %18785 = vmatprep.subr.mxu1 %v7306_v0  ;;  %v4211_v7 = vadd.f32 %v25623_v11, %v25622_v19  ;;  %v25630_v19 = vld [vmem:[#allocation34_spill] sm:$0xff]  ;;  %v25631_v11 = vld [vmem:[#allocation11_spill] sm:$0xff] }
 0xbe5   : > { %18808 = vmatprep.mubr.msk.f32.mxu0 %vm1551_vm2, %v6955_v21  ;;  %18786 = vmatpush3.msra.mxu1 %v7306_v0 }
 0xbe6   : > { %v6021_v0 = vadd.f32 %v22043_v20, %v4211_v7  ;;  %v25627_v20 = vld [vmem:[#allocation4_spill] sm:$0xff]  ;;  %v4243_v7 = vadd.f32 %v25631_v11, %v25630_v19 }
 0xbe7   : > { %v7482_v16 = vpop.permute.xlu0 %7481 }
 0xbe8   : > { %18797 = vmatprep.subr.mxu1 %v7482_v16 }
 0xc33   : > { %v6906_v15 = vpop.xlane.xlu0 %6905 }
 0xc34   : > { %19833 = vrcp.f32 %v6906_v15  ;;  %v25624_v15 = vld [vmem:[#allocation30_spill] sm:$0xff] }
 0xc35   : > { %v6903_v22 = vpop.xlane.xlu1 %6902 }
 0xc36   : > { %19835 = vrcp.f32 %v6903_v22  ;;  %v25625_v22 = vld [vmem:[#allocation2_spill] sm:$0xff] }
 0xc3b   : > { %v6918_v47 = vpop.xlane.xlu1 %6917 }
 0xc3c   : > { %19837 = vrcp.f32 %v6918_v47  ;;  %v4214_v47 = vadd.f32 %v25625_v22, %v25624_v15  ;;  %v25632_v15 = vld [vmem:[#allocation36_spill] sm:$0xff] }
 0xc3d   : > { %v6915_v59 = vpop.xlane.xlu0 %6914  ;;  %v25633_v22 = vld [vmem:[#allocation24_spill] sm:$0xff] }
 0xc3e   : > { %19839 = vrcp.f32 %v6915_v59 }
 0xc3f   : > { %v7567_v60 = vpop.permute.xlu1 %7566 }
 0xc40   : > { %18806 = vmatprep.subr.mxu0 %v7567_v60 }
 0xc41   : > { %18807 = vmatpush3.msra.mxu0 %v7567_v60  ;;  %v19834_v43 = vpop.eup %19833  ;;  %v7480_v52 = vpop.permute.xlu0 %7479 }
 0xc42   : > { %18809 = vmatmul.mubr.msk.f32.vlgmr.msra.gmra.mxu0 %vm1551_vm2, %v6956_v8  ;;  %v6950_v17 = vmul.f32 %v19834_v43, %v22201_v54  ;;  %v6022_v8 = vadd.f32 %v22085_v46, %v4214_v47  ;;  %v20229_v43 = vld [vmem:[%s20375_s18] sm:$0xff]  ;;  %v4246_v47 = vadd.f32 %v25633_v22, %v25632_v15 }
 0xc43   : > { %v19836_v23 = vpop.eup %19835 }
 0xc44   : > { %v6949_v48 = vmul.f32 %v19836_v23, %v22205_v39  ;;  %v7686_v39 = vsel %vm4048_vm3, %v482_v44, 0 }
 0xc46   : > { %18787 = vmatprep.mubr.msk.f32.mxu1 %vm1551_vm2, %v6949_v48 }
 0xc47   : > { %18788 = vmatmul.mubr.msk.f32.vlgmr.msra.gmra.mxu1 %vm1551_vm2, %v6950_v17 }
 0xc48   : > { %18798 = vmatpush3.msra.mxu1 %v7482_v16 }
 0xc49   : > { %18799 = vmatprep.subr.mxu1 %v7480_v52  ;;  %v19838_v35 = vpop.eup %19837 }
 0xc4a   : > { %18800 = vmatpush3.msra.mxu1 %v7480_v52  ;;  %v6954_v54 = vmul.f32 %v19838_v35, %v22209_v53  ;;  %v25626_v52 = vld [vmem:[#allocation31_spill] sm:$0xff]  ;;  %v20230_v35 = vld [vmem:[%s20375_s18 + $0x10] sm:$0xff] }
 0xc4b   : > { %v19840_v12 = vpop.eup %19839  ;;  %19548 = vmatprep.subr.msk.bf16.mxu1 %vm4048_vm3, %v482_v44  ;;  %v4227_v44 = vadd.f32 %v25627_v20, %v25626_v52  ;;  %v25634_v20 = vld [vmem:[#allocation38_spill] sm:$0xff] }
 0xc4c   : > { %v6953_v34 = vmul.f32 %v19840_v12, %v22213_v38 }
 0xc4d   : > { %v6025_v46 = vadd.f32 %v22097_v51, %v4227_v44 }
 0xc4e   : > { %18801 = vmatprep.mubr.msk.f32.mxu1 %vm1551_vm2, %v6953_v34 }
 0xc4f   : > { %18802 = vmatmul.mubr.msk.f32.vlgmr.msra.gmra.mxu1 %vm1551_vm2, %v6954_v54 }
 0xc50   : > { %18812 = vmatpush3.bf16.msra.mxu1 %v7686_v39  ;;  %v20231_v39 = vld [vmem:[%s20375_s18 + $0x8] sm:$0xff] }
 0xc65   : > { %v18761_v14 = vpop.f32.mrf.mxu0 }
 0xc67   : > { %v7035_v63 = vpop.f32.mrf.mxu0 }
 0xc68   : > { %v7653_v42 = vpack.c.bf16 %v18761_v14, %v7035_v63  ;;  %v25629_v63 = vld [vmem:[#allocation6_spill] sm:$0xff] }
 0xc6a   : > { %18813 = vmatprep.mubr.msk.bf16.mxu1 %vm842_vm1, %v7653_v42 }
 0xc9a   : > { %v18768_v9 = vpop.f32.mrf.mxu0 }
 0xc9c   : > { %v7122_v62 = vpop.f32.mrf.mxu0 }
 0xc9d   : > { %v7654_v55 = vpack.c.bf16 %v18768_v9, %v7122_v62  ;;  %v20232_v9 = vld [vmem:[%s20375_s18 + $0x18] sm:$0xff] }
 0xc9e   : > { %v18775_v28 = vpop.f32.mrf.mxu1  ;;  %v18782_v58 = vpop.f32.mrf.mxu0 }
 0xc9f   : > { %18814 = vmatmul.mubr.msk.bf16.vlgmr.msra.gmra.mxu1 %vm842_vm1, %v7654_v55 }
 0xca0   : > { %v7209_v53 = vpop.f32.mrf.mxu1  ;;  %v7296_v31 = vpop.f32.mrf.mxu0 }
 0xca1   : > { %v7655_v38 = vpack.c.bf16 %v18775_v28, %v7209_v53  ;;  %v7656_v30 = vpack.c.bf16 %v18782_v58, %v7296_v31 }
 0xca3   : > { %18817 = vmatprep.mubr.msk.bf16.mxu1 %vm842_vm1, %v7655_v38  ;;  %v18796_v25 = vpop.f32.mrf.mxu0 }
 0xca5   : > { %v7470_v33 = vpop.f32.mrf.mxu0 }
 0xca6   : > { %v7658_v49 = vpack.c.bf16 %v18796_v25, %v7470_v33  ;;  %v20234_v33 = vld [vmem:[%s20375_s18 + $0x30] sm:$0xff] }
 0xca7   : > { %18818 = vmatmul.mubr.msk.bf16.gmra.mxu1 %vm842_vm1, %v7656_v30  ;;  %v20233_v30 = vld [vmem:[%s20375_s18 + $0x20] sm:$0xff] }
 0xd02   : > { %v18810_v24 = vpop.f32.mrf.mxu0 }
 0xd04   : > { %v7644_v56 = vpop.f32.mrf.mxu0 }
 0xd05   : > { %v7660_v27 = vpack.c.bf16 %v18810_v24, %v7644_v56  ;;  %v20236_v56 = vld [vmem:[%s20375_s18 + $0x38] sm:$0xff] }
 0xd07   : > { %v18789_v1 = vpop.f32.mrf.mxu1 }
 0xd09   : > { %v7383_v29 = vpop.f32.mrf.mxu1 }
 0xd0a   : > { %v7657_v10 = vpack.c.bf16 %v18789_v1, %v7383_v29 }
 0xd0c   : > { %18821 = vmatprep.mubr.msk.bf16.mxu1 %vm842_vm1, %v7657_v10 }
 0xd0d   : > { %18822 = vmatmul.mubr.msk.bf16.gmra.mxu1 %vm842_vm1, %v7658_v49 }
 0xd0f   : > { %v18803_v61 = vpop.f32.mrf.mxu1 }
 0xd11   : > { %v7557_v32 = vpop.f32.mrf.mxu1 }
 0xd12   : > { %v7659_v4 = vpack.c.bf16 %v18803_v61, %v7557_v32  ;;  %v20235_v61 = vld [vmem:[%s20375_s18 + $0x28] sm:$0xff] }
 0xd14   : > { %18825 = vmatprep.mubr.msk.bf16.mxu1 %vm842_vm1, %v7659_v4 }
 0xd15   : > { %18826 = vmatmul.mubr.msk.bf16.gmra.mxu1 %vm842_vm1, %v7660_v27 }
 0xd5f   : > { %v18815_v21 = vpop.f32.mrf.mxu1 }
 0xd60   : > { %v7787_v6 = vadd.f32 %v18815_v21, %v22041_v50 }
 0xd61   : > { %v7722_v16 = vpop.f32.mrf.mxu1 }
 0xd62   : > { %v7785_v59 = vadd.f32 %v7722_v16, %v6021_v0  ;;  %v22273_v12 = vadd.f32 %v20230_v35, %v7787_v6  ;;  %v6029_v0 = vadd.f32 %v22110_v5, %v4243_v7  ;;  %v25635_v5 = vld [vmem:[#allocation27_spill] sm:$0xff]  ;;  %v20238_v35 = vld [vmem:[%s20375_s18 + $0x50] sm:$0xff] }
 0xd63   : > { %v18816_v60 = vpop.f32.mrf.mxu1  ;;  %v4259_v44 = vadd.f32 %v25635_v5, %v25634_v20 }
 0xd64   : > { %v22267_v23 = vadd.f32 %v20229_v43, %v7785_v59  ;;  %v7788_v48 = vadd.f32 %v18816_v60, %v22047_v13  ;;  %v25628_v13 = vld [vmem:[#allocation32_spill] sm:$0xff]  ;;  %v7825_v53 = vsel %vm507_vm0, %v22273_v12, 0.0  ;;  %v20237_v43 = vld [vmem:[%s20375_s18 + $0x40] sm:$0xff] }
 0xd65   : > { %v7725_v17 = vpop.f32.mrf.mxu1  ;;  %v4230_v42 = vadd.f32 %v25629_v63, %v25628_v13  ;;  %v25637_v13 = vld [vmem:[#allocation29_spill] sm:$0xff] }
 0xd66   : > { %v7786_v34 = vadd.f32 %v7725_v17, %v6022_v8  ;;  %v7819_v50 = vsel %vm507_vm0, %v22267_v23, 0.0  ;;  %v22284_v62 = vadd.f32 %v20232_v9, %v7788_v48  ;;  %v6030_v8 = vadd.f32 %v22122_v57, %v4246_v47 }
 0xd67   : > { %7820 = vadd.xlane.f32.xlu0 %v7819_v50  ;;  %v18819_v54 = vpop.f32.mrf.mxu1  ;;  %v6026_v31 = vadd.f32 %v22103_v18, %v4230_v42  ;;  %v6033_v57 = vadd.f32 %v22130_v36, %v4259_v44  ;;  %v20240_v42 = vld [vmem:[%s20375_s18 + $0x58] sm:$0xff] }
 0xd68   : > { %v22279_v14 = vadd.f32 %v20231_v39, %v7786_v34  ;;  %v7791_v28 = vadd.f32 %v18819_v54, %v22095_v41  ;;  %v7828_v41 = vsel %vm507_vm0, %v22284_v62, 0.0 }
 0xd69   : > { %v7738_v55 = vpop.f32.mrf.mxu1 }
 0xd6a   : > { %v7789_v58 = vadd.f32 %v7738_v55, %v6025_v46  ;;  %v7822_v51 = vsel %vm507_vm0, %v22279_v14, 0.0  ;;  %v22298_v29 = vadd.f32 %v20234_v33, %v7791_v28  ;;  %v20239_v46 = vld [vmem:[%s20375_s18 + $0x48] sm:$0xff] }
 0xd6b   : > { %7826 = vadd.xlane.f32.xlu0 %v7825_v53  ;;  %7823 = vadd.xlane.f32.xlu1 %v7822_v51  ;;  %v18820_v38 = vpop.f32.mrf.mxu1 }
 0xd6c   : > { %v22293_v25 = vadd.f32 %v20233_v30, %v7789_v58  ;;  %v7792_v10 = vadd.f32 %v18820_v38, %v22101_v3  ;;  %v7837_v4 = vsel %vm507_vm0, %v22298_v29, 0.0 }
 0xd6d   : > { %v7741_v1 = vpop.f32.mrf.mxu1 }
 0xd6e   : > { %v7790_v49 = vadd.f32 %v7741_v1, %v6026_v31  ;;  %v7831_v24 = vsel %vm507_vm0, %v22293_v25, 0.0  ;;  %v22307_v32 = vadd.f32 %v20236_v56, %v7792_v10  ;;  %v20241_v31 = vld [vmem:[%s20375_s18 + $0x60] sm:$0xff]  ;;  %v20244_v56 = vld [vmem:[%s20375_s18 + $0x78] sm:$0xff] }
 0xd6f   : > { %7829 = vadd.xlane.f32.xlu0 %v7828_v41  ;;  %7832 = vadd.xlane.f32.xlu1 %v7831_v24  ;;  %v20242_v41 = vld [vmem:[%s20375_s18 + $0x70] sm:$0xff] }
 0xd70   : > { %v22304_v18 = vadd.f32 %v20235_v61, %v7790_v49  ;;  %v7840_v3 = vsel %vm507_vm0, %v22307_v32, 0.0  ;;  %v20243_v61 = vld [vmem:[%s20375_s18 + $0x68] sm:$0xff] }
 0xd72   : > { %v7834_v27 = vsel %vm507_vm0, %v22304_v18, 0.0 }
 0xd73   : > { %7838 = vadd.xlane.f32.xlu1 %v7837_v4  ;;  %7835 = vadd.xlane.f32.xlu0 %v7834_v27 }
 0xd77   : > { %7841 = vadd.xlane.f32.xlu0 %v7840_v3 }
 0xdcd   : > { %v18823_v21 = vpop.f32.mrf.mxu1 }
 0xdce   : > { %v7795_v6 = vadd.f32 %v18823_v21, %v22108_v45 }
 0xdcf   : > { %v7754_v16 = vpop.f32.mrf.mxu1 }
 0xdd0   : > { %v7793_v59 = vadd.f32 %v7754_v16, %v6029_v0  ;;  %v22329_v34 = vadd.f32 %v20238_v35, %v7795_v6 }
 0xdd1   : > { %v18824_v60 = vpop.f32.mrf.mxu1 }
 0xdd2   : > { %v22323_v48 = vadd.f32 %v20237_v43, %v7793_v59  ;;  %v7796_v17 = vadd.f32 %v18824_v60, %v22116_v40  ;;  %v25636_v40 = vld [vmem:[#allocation40_spill] sm:$0xff]  ;;  %v7849_v53 = vsel %vm507_vm0, %v22329_v34, 0.0 }
 0xdd3   : > { %v7757_v52 = vpop.f32.mrf.mxu1  ;;  %v4262_v63 = vadd.f32 %v25637_v13, %v25636_v40 }
 0xdd4   : > { %v7794_v50 = vadd.f32 %v7757_v52, %v6030_v8  ;;  %v7843_v45 = vsel %vm507_vm0, %v22323_v48, 0.0  ;;  %v22340_v9 = vadd.f32 %v20240_v42, %v7796_v17 }
 0xdd5   : > { %7844 = vadd.xlane.f32.xlu1 %v7843_v45  ;;  %v18827_v54 = vpop.f32.mrf.mxu1  ;;  %v6034_v38 = vadd.f32 %v22136_v26, %v4262_v63 }
 0xdd6   : > { %v22335_v39 = vadd.f32 %v20239_v46, %v7794_v50  ;;  %v7799_v28 = vadd.f32 %v18827_v54, %v22128_v37  ;;  %v7852_v37 = vsel %vm507_vm0, %v22340_v9, 0.0 }
 0xdd7   : > { %v7770_v55 = vpop.f32.mrf.mxu1 }
 0xdd8   : > { %v7797_v58 = vadd.f32 %v7770_v55, %v6033_v57  ;;  %v7846_v36 = vsel %vm507_vm0, %v22335_v39, 0.0  ;;  %v22354_v33 = vadd.f32 %v20242_v41, %v7799_v28 }
 0xdd9   : > { %7850 = vadd.xlane.f32.xlu1 %v7849_v53  ;;  %7847 = vadd.xlane.f32.xlu0 %v7846_v36  ;;  %v18828_v51 = vpop.f32.mrf.mxu1  ;;  %v19571_v36 = vld [vmem:[%s25422_s7 + $0x8] sm:$0xff]  }
 0xdda   : > { %v22349_v30 = vadd.f32 %v20241_v31, %v7797_v58  ;;  %v7800_v10 = vadd.f32 %v18828_v51, %v22134_v2  ;;  %v7861_v27 = vsel %vm507_vm0, %v22354_v33, 0.0  ;;  %18829 = vmatprep.subr.bf16.mxu0 %v19571_v36 }
 0xddb   : > { %v7773_v1 = vpop.f32.mrf.mxu1  ;;  %18830 = vmatpush3.bf16.msra.mxu0 %v19571_v36 }
 0xddc   : > { %v7798_v49 = vadd.f32 %v7773_v1, %v6034_v38  ;;  %v7855_v24 = vsel %vm507_vm0, %v22349_v30, 0.0  ;;  %v22363_v4 = vadd.f32 %v20244_v56, %v7800_v10 }
 0xddd   : > { %7853 = vadd.xlane.f32.xlu0 %v7852_v37  ;;  %7856 = vadd.xlane.f32.xlu1 %v7855_v24 }
 0xdde   : > { %v22360_v26 = vadd.f32 %v20243_v61, %v7798_v49  ;;  %v7864_v2 = vsel %vm507_vm0, %v22363_v4, 0.0 }
 0xde0   : > { %v7858_v3 = vsel %vm507_vm0, %v22360_v26, 0.0 }
 0xde1   : > { %7862 = vadd.xlane.f32.xlu1 %v7861_v27  ;;  %7859 = vadd.xlane.f32.xlu0 %v7858_v3 }
 0xde5   : > { %7865 = vadd.xlane.f32.xlu0 %v7864_v2 }
 0xdf0   : > { %v7821_v19 = vpop.xlane.xlu0 %7820 }
 0xdf1   : > { %v7868_v11 = vmul.f32 0.03125, %v7821_v19 }
 0xdf3   : > { %v22372_v7 = vsub.f32 %v22267_v23, %v7868_v11 }
 0xdf4   : > { %v7827_v21 = vpop.xlane.xlu0 %7826  ;;  %v7824_v0 = vpop.xlane.xlu1 %7823 }
 0xdf5   : > { %v7870_v16 = vmul.f32 0.03125, %v7827_v21  ;;  %v7869_v15 = vmul.f32 0.03125, %v7824_v0  ;;  %v7900_v22 = vmul.f32 %v22372_v7, %v22372_v7 }
 0xdf7   : > { %v22377_v47 = vsub.f32 %v22273_v12, %v7870_v16  ;;  %v22380_v6 = vsub.f32 %v22279_v14, %v7869_v15  ;;  %v7916_v59 = vsel %vm507_vm0, %v7900_v22, 0.0 }
 0xdf8   : > { %v7830_v60 = vpop.xlane.xlu0 %7829  ;;  %7917 = vadd.xlane.f32.xlu1 %v7916_v59  ;;  %v7833_v8 = vpop.xlane.xlu1 %7832 }
 0xdf9   : > { %v7871_v23 = vmul.f32 0.03125, %v7830_v60  ;;  %v7872_v43 = vmul.f32 0.03125, %v7833_v8  ;;  %v7902_v17 = vmul.f32 %v22377_v47, %v22377_v47  ;;  %v7901_v52 = vmul.f32 %v22380_v6, %v22380_v6 }
 0xdfb   : > { %v22388_v20 = vsub.f32 %v22284_v62, %v7871_v23  ;;  %v22391_v12 = vsub.f32 %v22293_v25, %v7872_v43  ;;  %v7922_v14 = vsel %vm507_vm0, %v7902_v17, 0.0  ;;  %v7919_v5 = vsel %vm507_vm0, %v7901_v52, 0.0 }
 0xdfc   : > { %v7836_v44 = vpop.xlane.xlu0 %7835  ;;  %7923 = vadd.xlane.f32.xlu1 %v7922_v14  ;;  %7920 = vadd.xlane.f32.xlu0 %v7919_v5  ;;  %v7839_v35 = vpop.xlane.xlu1 %7838 }
 0xdfd   : > { %v7873_v50 = vmul.f32 0.03125, %v7836_v44  ;;  %v7874_v45 = vmul.f32 0.03125, %v7839_v35  ;;  %v7903_v54 = vmul.f32 %v22388_v20, %v22388_v20  ;;  %v7904_v62 = vmul.f32 %v22391_v12, %v22391_v12 }
 0xdff   : > { %v22400_v57 = vsub.f32 %v22304_v18, %v7873_v50  ;;  %v22403_v25 = vsub.f32 %v22298_v29, %v7874_v45  ;;  %v7925_v46 = vsel %vm507_vm0, %v7903_v54, 0.0  ;;  %v7928_v40 = vsel %vm507_vm0, %v7904_v62, 0.0 }
 0xe00   : > { %v7842_v13 = vpop.xlane.xlu0 %7841  ;;  %7926 = vadd.xlane.f32.xlu0 %v7925_v46  ;;  %7929 = vadd.xlane.f32.xlu1 %v7928_v40 }
 0xe01   : > { %v7875_v63 = vmul.f32 0.03125, %v7842_v13  ;;  %v7905_v42 = vmul.f32 %v22400_v57, %v22400_v57  ;;  %v7906_v55 = vmul.f32 %v22403_v25, %v22403_v25 }
 0xe03   : > { %v22412_v18 = vsub.f32 %v22307_v32, %v7875_v63  ;;  %v7931_v29 = vsel %vm507_vm0, %v7905_v42, 0.0  ;;  %v7934_v28 = vsel %vm507_vm0, %v7906_v55, 0.0  ;;  %v19572_v32 = vld [vmem:[%s25422_s7] sm:$0xff]  }
 0xe04   : > { %7932 = vadd.xlane.f32.xlu0 %v7931_v29  ;;  %7935 = vadd.xlane.f32.xlu1 %v7934_v28 }
 0xe05   : > { %v7907_v58 = vmul.f32 %v22412_v18, %v22412_v18  ;;  %18831 = vmatprep.subr.bf16.mxu0 %v19572_v32 }
 0xe06   : > { %18832 = vmatpush3.bf16.msra.mxu0 %v19572_v32 }
 0xe07   : > { %v7937_v53 = vsel %vm507_vm0, %v7907_v58, 0.0 }
 0xe08   : > { %7938 = vadd.xlane.f32.xlu0 %v7937_v53 }
 0xe5e   : > { %v7845_v51 = vpop.xlane.xlu1 %7844 }
 0xe5f   : > { %v7876_v38 = vmul.f32 0.03125, %v7845_v51 }
 0xe61   : > { %v22426_v31 = vsub.f32 %v22323_v48, %v7876_v38 }
 0xe62   : > { %v7848_v1 = vpop.xlane.xlu0 %7847  ;;  %v7851_v37 = vpop.xlane.xlu1 %7850 }
 0xe63   : > { %v7877_v41 = vmul.f32 0.03125, %v7848_v1  ;;  %v7878_v10 = vmul.f32 0.03125, %v7851_v37  ;;  %v7908_v49 = vmul.f32 %v22426_v31, %v22426_v31 }
 0xe65   : > { %v22431_v24 = vsub.f32 %v22335_v39, %v7877_v41  ;;  %v22434_v61 = vsub.f32 %v22329_v34, %v7878_v10  ;;  %v7940_v56 = vsel %vm507_vm0, %v7908_v49, 0.0 }
 0xe66   : > { %v7854_v27 = vpop.xlane.xlu0 %7853  ;;  %7941 = vadd.xlane.f32.xlu1 %v7940_v56  ;;  %v7857_v3 = vpop.xlane.xlu1 %7856 }
 0xe67   : > { %v7879_v48 = vmul.f32 0.03125, %v7854_v27  ;;  %v7880_v2 = vmul.f32 0.03125, %v7857_v3  ;;  %v7909_v19 = vmul.f32 %v22431_v24, %v22431_v24  ;;  %v7910_v11 = vmul.f32 %v22434_v61, %v22434_v61 }
 0xe69   : > { %v22442_v21 = vsub.f32 %v22340_v9, %v7879_v48  ;;  %v22445_v39 = vsub.f32 %v22349_v30, %v7880_v2  ;;  %v7943_v34 = vsel %vm507_vm0, %v7909_v19, 0.0  ;;  %v7946_v0 = vsel %vm507_vm0, %v7910_v11, 0.0  ;;  %v22477_v48 = vld [vmem:[%s25420_s5] ss:$0 sm:$0xff] }
 0xe6a   : > { %v7860_v16 = vpop.xlane.xlu0 %7859  ;;  %7944 = vadd.xlane.f32.xlu0 %v7943_v34  ;;  %7947 = vadd.xlane.f32.xlu1 %v7946_v0  ;;  %v7863_v15 = vpop.xlane.xlu1 %7862 }
 0xe6b   : > { %v7881_v22 = vmul.f32 0.03125, %v7860_v16  ;;  %v7882_v59 = vmul.f32 0.03125, %v7863_v15  ;;  %v7911_v60 = vmul.f32 %v22442_v21, %v22442_v21  ;;  %v7912_v9 = vmul.f32 %v22445_v39, %v22445_v39  ;;  %v22485_v16 = vld [vmem:[%s25421_s6] ss:$0 sm:$0xff]  ;;  %v19573_v15 = vld [vmem:[%s25424_s9 + $0x18] sm:$0xff]  }
 0xe6c   : > { %18849 = vmatprep.subr.bf16.mxu1 %v19573_v15 }
 0xe6d   : > { %v22454_v8 = vsub.f32 %v22360_v26, %v7881_v22  ;;  %v22457_v30 = vsub.f32 %v22354_v33, %v7882_v59  ;;  %v7949_v23 = vsel %vm507_vm0, %v7911_v60, 0.0  ;;  %v7952_v43 = vsel %vm507_vm0, %v7912_v9, 0.0  ;;  %18850 = vmatpush3.bf16.msra.mxu1 %v19573_v15 }
 0xe6e   : > { %v7866_v17 = vpop.xlane.xlu0 %7865  ;;  %7950 = vadd.xlane.f32.xlu0 %v7949_v23  ;;  %7953 = vadd.xlane.f32.xlu1 %v7952_v43 }
 0xe6f   : > { %v7883_v52 = vmul.f32 0.03125, %v7866_v17  ;;  %v7913_v14 = vmul.f32 %v22454_v8, %v22454_v8  ;;  %v7914_v5 = vmul.f32 %v22457_v30, %v22457_v30 }
 0xe71   : > { %v22466_v26 = vsub.f32 %v22363_v4, %v7883_v52  ;;  %v7955_v33 = vsel %vm507_vm0, %v7913_v14, 0.0  ;;  %v7958_v44 = vsel %vm507_vm0, %v7914_v5, 0.0 }
 0xe72   : > { %7956 = vadd.xlane.f32.xlu0 %v7955_v33  ;;  %7959 = vadd.xlane.f32.xlu1 %v7958_v44 }
 0xe73   : > { %v7915_v35 = vmul.f32 %v22466_v26, %v22466_v26 }
 0xe75   : > { %v7961_v50 = vsel %vm507_vm0, %v7915_v35, 0.0 }
 0xe76   : > { %7962 = vadd.xlane.f32.xlu0 %v7961_v50 }
 0xe81   : > { %v7918_v45 = vpop.xlane.xlu1 %7917 }
 0xe82   : > { %v7964_v54 = vmul.f32 0.03125, %v7918_v45 }
 0xe84   : > { %v7980_v62 = vadd.f32 1e-06, %v7964_v54 }
 0xe85   : > { %v7921_v46 = vpop.xlane.xlu0 %7920  ;;  %v7924_v40 = vpop.xlane.xlu1 %7923 }
 0xe86   : > { %19841 = vrsqrt.f32 %v7980_v62  ;;  %v7965_v4 = vmul.f32 0.03125, %v7921_v46  ;;  %v7966_v13 = vmul.f32 0.03125, %v7924_v40 }
 0xe88   : > { %v7981_v63 = vadd.f32 1e-06, %v7965_v4  ;;  %v7982_v42 = vadd.f32 1e-06, %v7966_v13 }
 0xe89   : > { %v7927_v55 = vpop.xlane.xlu0 %7926  ;;  %v7930_v29 = vpop.xlane.xlu1 %7929 }
 0xe8a   : > { %19843 = vrsqrt.f32 %v7981_v63  ;;  %v7967_v28 = vmul.f32 0.03125, %v7927_v55  ;;  %v7968_v58 = vmul.f32 0.03125, %v7930_v29  ;;  %v19574_v63 = vld [vmem:[%s25424_s9 + $0x10] sm:$0xff]   ;;  %v19576_v55 = vld [vmem:[%s25424_s9] sm:$0xff]  }
 0xe8b   : > { %19845 = vrsqrt.f32 %v7982_v42  ;;  %18851 = vmatprep.subr.bf16.mxu1 %v19574_v63  ;;  %v19575_v42 = vld [vmem:[%s25424_s9 + $0x8] sm:$0xff]  }
 0xe8c   : > { %v7983_v53 = vadd.f32 1e-06, %v7967_v28  ;;  %v7984_v36 = vadd.f32 1e-06, %v7968_v58  ;;  %18852 = vmatpush3.bf16.msra.mxu1 %v19574_v63 }
 0xe8d   : > { %v7933_v32 = vpop.xlane.xlu0 %7932  ;;  %v7936_v51 = vpop.xlane.xlu1 %7935  ;;  %18853 = vmatprep.subr.bf16.mxu1 %v19575_v42 }
 0xe8e   : > { %19847 = vrsqrt.f32 %v7983_v53  ;;  %v7969_v38 = vmul.f32 0.03125, %v7933_v32  ;;  %v7970_v1 = vmul.f32 0.03125, %v7936_v51 }
 0xe8f   : > { %19849 = vrsqrt.f32 %v7984_v36 }
 0xe90   : > { %v7985_v37 = vadd.f32 1e-06, %v7969_v38  ;;  %v7986_v41 = vadd.f32 1e-06, %v7970_v1  ;;  %18854 = vmatpush3.bf16.msra.mxu1 %v19575_v42 }
 0xe91   : > { %v7939_v10 = vpop.xlane.xlu0 %7938  ;;  %18855 = vmatprep.subr.bf16.mxu1 %v19576_v55 }
 0xe92   : > { %19851 = vrsqrt.f32 %v7985_v37  ;;  %v7971_v49 = vmul.f32 0.03125, %v7939_v10 }
 0xe93   : > { %v19842_v56 = vpop.eup %19841  ;;  %19853 = vrsqrt.f32 %v7986_v41 }
 0xe94   : > { %v7987_v27 = vadd.f32 1e-06, %v7971_v49  ;;  %v8012_v3 = vmul.f32 %v19842_v56, %v22372_v7  ;;  %18856 = vmatpush3.bf16.msra.mxu1 %v19576_v55 }
 0xe96   : > { %19855 = vrsqrt.f32 %v7987_v27  ;;  %v8034_v34 = vmul.f32 %v22477_v48, %v8012_v3 }
 0xe97   : > { %v19844_v2 = vpop.eup %19843 }
 0xe98   : > { %v19846_v19 = vpop.eup %19845  ;;  %v8013_v11 = vmul.f32 %v19844_v2, %v22380_v6  ;;  %v22494_v9 = vadd.f32 %v22485_v16, %v8034_v34 }
 0xe99   : > { %v8014_v0 = vmul.f32 %v19846_v19, %v22377_v47 }
 0xe9a   : > { %v8035_v7 = vmul.f32 %v22477_v48, %v8013_v11 }
 0xe9b   : > { %v19848_v22 = vpop.eup %19847  ;;  %v8036_v60 = vmul.f32 %v22477_v48, %v8014_v0 }
 0xe9c   : > { %v19850_v59 = vpop.eup %19849  ;;  %v8015_v6 = vmul.f32 %v19848_v22, %v22388_v20  ;;  %v22497_v47 = vadd.f32 %v22485_v16, %v8035_v7 }
 0xe9d   : > { %v8016_v23 = vmul.f32 %v19850_v59, %v22391_v12  ;;  %v22505_v20 = vadd.f32 %v22485_v16, %v8036_v60 }
 0xe9e   : > { %v8037_v43 = vmul.f32 %v22477_v48, %v8015_v6  ;;  %v8072_v17 = vpack.c.bf16 %v22497_v47, %v22494_v9 }
 0xe9f   : > { %v19852_v52 = vpop.eup %19851  ;;  %v8038_v12 = vmul.f32 %v22477_v48, %v8016_v23 }
 0xea0   : > { %v19854_v14 = vpop.eup %19853  ;;  %18833 = vmatprep.mubr.msk.bf16.mxu0 %vm507_vm0, %v8072_v17  ;;  %v22508_v5 = vadd.f32 %v22485_v16, %v8037_v43  ;;  %v8017_v33 = vmul.f32 %v19852_v52, %v22400_v57 }
 0xea1   : > { %v8018_v44 = vmul.f32 %v19854_v14, %v22403_v25  ;;  %v22519_v62 = vadd.f32 %v22485_v16, %v8038_v12 }
 0xea2   : > { %v8073_v35 = vpack.c.bf16 %v22508_v5, %v22505_v20  ;;  %v8039_v50 = vmul.f32 %v22477_v48, %v8017_v33 }
 0xea3   : > { %v19856_v45 = vpop.eup %19855  ;;  %v8040_v57 = vmul.f32 %v22477_v48, %v8018_v44 }
 0xea4   : > { %v8019_v54 = vmul.f32 %v19856_v45, %v22412_v18  ;;  %18834 = vmatmul.mubr.msk.bf16.vlgmr.msra.gmra.mxu0 %vm507_vm0, %v8073_v35  ;;  %v22522_v46 = vadd.f32 %v22485_v16, %v8039_v50 }
 0xea5   : > { %v22530_v4 = vadd.f32 %v22485_v16, %v8040_v57 }
 0xea6   : > { %v8074_v25 = vpack.c.bf16 %v22522_v46, %v22519_v62  ;;  %v8041_v40 = vmul.f32 %v22477_v48, %v8019_v54 }
 0xea8   : > { %18837 = vmatprep.mubr.msk.bf16.mxu0 %vm507_vm0, %v8074_v25  ;;  %v22533_v18 = vadd.f32 %v22485_v16, %v8041_v40 }
 0xeaa   : > { %v8075_v13 = vpack.c.bf16 %v22533_v18, %v22530_v4 }
 0xeac   : > { %18838 = vmatmul.mubr.msk.bf16.gmra.mxu0 %vm507_vm0, %v8075_v13 }
 0xeef   : > { %v7942_v29 = vpop.xlane.xlu1 %7941 }
 0xef0   : > { %v7972_v28 = vmul.f32 0.03125, %v7942_v29 }
 0xef2   : > { %v7988_v58 = vadd.f32 1e-06, %v7972_v28 }
 0xef3   : > { %v7945_v53 = vpop.xlane.xlu0 %7944  ;;  %v7948_v36 = vpop.xlane.xlu1 %7947 }
 0xef4   : > { %19857 = vrsqrt.f32 %v7988_v58  ;;  %v7973_v32 = vmul.f32 0.03125, %v7945_v53  ;;  %v7974_v51 = vmul.f32 0.03125, %v7948_v36 }
 0xef6   : > { %v7989_v38 = vadd.f32 1e-06, %v7973_v32  ;;  %v7990_v1 = vadd.f32 1e-06, %v7974_v51 }
 0xef7   : > { %v7951_v37 = vpop.xlane.xlu0 %7950  ;;  %v7954_v41 = vpop.xlane.xlu1 %7953 }
 0xef8   : > { %19859 = vrsqrt.f32 %v7989_v38  ;;  %v7975_v10 = vmul.f32 0.03125, %v7951_v37  ;;  %v7976_v49 = vmul.f32 0.03125, %v7954_v41 }
 0xef9   : > { %19861 = vrsqrt.f32 %v7990_v1  ;;  %v17203_v1 = vld [vmem:[%s25423_s8] ss:$0 sm:$0xff] }
 0xefa   : > { %v7991_v56 = vadd.f32 1e-06, %v7975_v10  ;;  %v7992_v27 = vadd.f32 1e-06, %v7976_v49 }
 0xefb   : > { %v7957_v3 = vpop.xlane.xlu0 %7956  ;;  %v7960_v2 = vpop.xlane.xlu1 %7959 }
 0xefc   : > { %19863 = vrsqrt.f32 %v7991_v56  ;;  %v7977_v19 = vmul.f32 0.03125, %v7957_v3  ;;  %v7978_v11 = vmul.f32 0.03125, %v7960_v2 }
 0xefd   : > { %19865 = vrsqrt.f32 %v7992_v27 }
 0xefe   : > { %v7993_v34 = vadd.f32 1e-06, %v7977_v19  ;;  %v7994_v0 = vadd.f32 1e-06, %v7978_v11 }
 0xeff   : > { %v7963_v7 = vpop.xlane.xlu0 %7962 }
 0xf00   : > { %19867 = vrsqrt.f32 %v7993_v34  ;;  %v7979_v15 = vmul.f32 0.03125, %v7963_v7 }
 0xf01   : > { %v19858_v22 = vpop.eup %19857  ;;  %19869 = vrsqrt.f32 %v7994_v0 }
 0xf02   : > { %v7995_v59 = vadd.f32 1e-06, %v7979_v15  ;;  %v8020_v60 = vmul.f32 %v19858_v22, %v22426_v31 }
 0xf04   : > { %19871 = vrsqrt.f32 %v7995_v59  ;;  %v8042_v17 = vmul.f32 %v22477_v48, %v8020_v60 }
 0xf05   : > { %v19860_v6 = vpop.eup %19859 }
 0xf06   : > { %v19862_v23 = vpop.eup %19861  ;;  %v8021_v43 = vmul.f32 %v19860_v6, %v22431_v24  ;;  %v22554_v35 = vadd.f32 %v22485_v16, %v8042_v17 }
 0xf07   : > { %v8022_v52 = vmul.f32 %v19862_v23, %v22434_v61 }
 0xf08   : > { %v8043_v14 = vmul.f32 %v22477_v48, %v8021_v43 }
 0xf09   : > { %v19864_v33 = vpop.eup %19863  ;;  %v8044_v50 = vmul.f32 %v22477_v48, %v8022_v52 }
 0xf0a   : > { %v19866_v12 = vpop.eup %19865  ;;  %v8023_v44 = vmul.f32 %v19864_v33, %v22442_v21  ;;  %v22557_v31 = vadd.f32 %v22485_v16, %v8043_v14 }
 0xf0b   : > { %v8024_v24 = vmul.f32 %v19866_v12, %v22445_v39  ;;  %v22566_v21 = vadd.f32 %v22485_v16, %v8044_v50 }
 0xf0c   : > { %v8076_v45 = vpack.c.bf16 %v22557_v31, %v22554_v35  ;;  %v8045_v61 = vmul.f32 %v22477_v48, %v8023_v44 }
 0xf0d   : > { %v19868_v54 = vpop.eup %19867  ;;  %v8046_v13 = vmul.f32 %v22477_v48, %v8024_v24 }
 0xf0e   : > { %v19870_v57 = vpop.eup %19869  ;;  %18841 = vmatprep.mubr.msk.bf16.mxu0 %vm507_vm0, %v8076_v45  ;;  %v22569_v25 = vadd.f32 %v22485_v16, %v8045_v61  ;;  %v8025_v40 = vmul.f32 %v19868_v54, %v22454_v8 }
 0xf0f   : > { %v8026_v39 = vmul.f32 %v19870_v57, %v22457_v30  ;;  %v22580_v28 = vadd.f32 %v22485_v16, %v8046_v13 }
 0xf10   : > { %v8077_v63 = vpack.c.bf16 %v22569_v25, %v22566_v21  ;;  %v8047_v42 = vmul.f32 %v22477_v48, %v8025_v40 }
 0xf11   : > { %v19872_v55 = vpop.eup %19871  ;;  %v8048_v8 = vmul.f32 %v22477_v48, %v8026_v39 }
 0xf12   : > { %v8027_v29 = vmul.f32 %v19872_v55, %v22466_v26  ;;  %18842 = vmatmul.mubr.msk.bf16.gmra.mxu0 %vm507_vm0, %v8077_v63  ;;  %v22583_v58 = vadd.f32 %v22485_v16, %v8047_v42 }
 0xf13   : > { %v22591_v36 = vadd.f32 %v22485_v16, %v8048_v8 }
 0xf14   : > { %v8078_v30 = vpack.c.bf16 %v22583_v58, %v22580_v28  ;;  %v8049_v53 = vmul.f32 %v22477_v48, %v8027_v29 }
 0xf16   : > { %18845 = vmatprep.mubr.msk.bf16.mxu0 %vm507_vm0, %v8078_v30  ;;  %v22594_v26 = vadd.f32 %v22485_v16, %v8049_v53 }
 0xf18   : > { %v8079_v32 = vpack.c.bf16 %v22594_v26, %v22591_v36 }
 0xf1a   : > { %18846 = vmatmul.mubr.msk.bf16.gmra.mxu0 %vm507_vm0, %v8079_v32 }
 0xf64   : > { %v18835_v51 = vpop.f32.mrf.mxu0 }
 0xf65   : > { %v8170_v10 = vadd.f32 %v18835_v51, %v17203_v1 }
 0xf66   : > { %v8161_v38 = vpop.f32.mrf.mxu0 }
 0xf67   : > { %v8162_v37 = vadd.f32 %v17203_v1, %v8161_v38  ;;  %v8226_v19 = vmax.f32 %v8170_v10, 0.0 }
 0xf68   : > { %v18836_v48 = vpop.f32.mrf.mxu0 }
 0xf69   : > { %v8173_v41 = vadd.f32 %v18836_v48, %v17203_v1  ;;  %v8224_v3 = vmax.f32 %v8162_v37, 0.0 }
 0xf6a   : > { %v8164_v49 = vpop.f32.mrf.mxu0 }
 0xf6b   : > { %v8165_v56 = vadd.f32 %v17203_v1, %v8164_v49  ;;  %v8227_v27 = vmax.f32 %v8173_v41, 0.0 }
 0xf6c   : > { %v18839_v16 = vpop.f32.mrf.mxu0 }
 0xf6d   : > { %v8225_v2 = vmax.f32 %v8165_v56, 0.0  ;;  %v8241_v0 = vpack.c.bf16 %v8227_v27, %v8226_v19  ;;  %v8186_v59 = vadd.f32 %v18839_v16, %v17203_v1  ;;  %v20245_v16 = vld [vmem:[%s25416_s1] sm:$0xff] }
 0xf6e   : > { %v8177_v11 = vpop.f32.mrf.mxu0 }
 0xf6f   : > { %v8240_v34 = vpack.c.bf16 %v8225_v2, %v8224_v3  ;;  %v8178_v15 = vadd.f32 %v17203_v1, %v8177_v11  ;;  %v8230_v52 = vmax.f32 %v8186_v59, 0.0 }
 0xf70   : > { %v18840_v7 = vpop.f32.mrf.mxu0 }
 0xf71   : > { %v8189_v22 = vadd.f32 %v18840_v7, %v17203_v1  ;;  %18857 = vmatprep.mubr.msk.bf16.mxu1 %vm8287_vm4, %v8240_v34  ;;  %v8228_v43 = vmax.f32 %v8178_v15, 0.0 }
 0xf72   : > { %v8180_v60 = vpop.f32.mrf.mxu0  ;;  %18858 = vmatmul.mubr.msk.bf16.vlgmr.msra.gmra.mxu1 %vm8287_vm4, %v8241_v0 }
 0xf73   : > { %v8181_v6 = vadd.f32 %v17203_v1, %v8180_v60  ;;  %v8231_v23 = vmax.f32 %v8189_v22, 0.0 }
 0xf75   : > { %v8229_v17 = vmax.f32 %v8181_v6, 0.0  ;;  %v8243_v33 = vpack.c.bf16 %v8231_v23, %v8230_v52 }
 0xf77   : > { %v8242_v14 = vpack.c.bf16 %v8229_v17, %v8228_v43 }
 0xf79   : > { %18861 = vmatprep.mubr.msk.bf16.mxu1 %vm8287_vm4, %v8242_v14 }
 0xf7a   : > { %18862 = vmatmul.mubr.msk.bf16.gmra.mxu1 %vm8287_vm4, %v8243_v33 }
 0xfd2   : > { %v18843_v12 = vpop.f32.mrf.mxu0 }
 0xfd3   : > { %v8202_v61 = vadd.f32 %v18843_v12, %v17203_v1 }
 0xfd4   : > { %v8193_v44 = vpop.f32.mrf.mxu0 }
 0xfd5   : > { %v8194_v24 = vadd.f32 %v17203_v1, %v8193_v44  ;;  %v8234_v42 = vmax.f32 %v8202_v61, 0.0 }
 0xfd6   : > { %v18844_v50 = vpop.f32.mrf.mxu0 }
 0xfd7   : > { %v8205_v45 = vadd.f32 %v18844_v50, %v17203_v1  ;;  %v8232_v39 = vmax.f32 %v8194_v24, 0.0 }
 0xfd8   : > { %v8196_v54 = vpop.f32.mrf.mxu0 }
 0xfd9   : > { %v8197_v57 = vadd.f32 %v17203_v1, %v8196_v54  ;;  %v8235_v40 = vmax.f32 %v8205_v45, 0.0 }
 0xfda   : > { %v18847_v13 = vpop.f32.mrf.mxu0 }
 0xfdb   : > { %v8233_v63 = vmax.f32 %v8197_v57, 0.0  ;;  %v8245_v8 = vpack.c.bf16 %v8235_v40, %v8234_v42  ;;  %v8218_v51 = vadd.f32 %v18847_v13, %v17203_v1 }
 0xfdc   : > { %v8209_v55 = vpop.f32.mrf.mxu0 }
 0xfdd   : > { %v8244_v29 = vpack.c.bf16 %v8233_v63, %v8232_v39  ;;  %v8210_v53 = vadd.f32 %v17203_v1, %v8209_v55  ;;  %v8238_v49 = vmax.f32 %v8218_v51, 0.0 }
 0xfde   : > { %v18848_v30 = vpop.f32.mrf.mxu0 }
 0xfdf   : > { %v8221_v32 = vadd.f32 %v18848_v30, %v17203_v1  ;;  %18865 = vmatprep.mubr.msk.bf16.mxu1 %vm8287_vm4, %v8244_v29  ;;  %v8236_v41 = vmax.f32 %v8210_v53, 0.0 }
 0xfe0   : > { %v8212_v38 = vpop.f32.mrf.mxu0  ;;  %18866 = vmatmul.mubr.msk.bf16.gmra.mxu1 %vm8287_vm4, %v8245_v8 }
 0xfe1   : > { %v8213_v48 = vadd.f32 %v17203_v1, %v8212_v38  ;;  %v8239_v37 = vmax.f32 %v8221_v32, 0.0  ;;  %v22616_v1 = vld [vmem:[%s25425_s10] ss:$0 sm:$0xff] }
 0xfe3   : > { %v8237_v10 = vmax.f32 %v8213_v48, 0.0  ;;  %v8247_v27 = vpack.c.bf16 %v8239_v37, %v8238_v49 }
 0xfe5   : > { %v8246_v56 = vpack.c.bf16 %v8237_v10, %v8236_v41 }
 0xfe7   : > { %18869 = vmatprep.mubr.msk.bf16.mxu1 %vm8287_vm4, %v8246_v56 }
 0xfe8   : > { %18870 = vmatmul.mubr.msk.bf16.gmra.mxu1 %vm8287_vm4, %v8247_v27 }
 0xfe9   : > { %18925 = vmatprep.mubr.f32.mxu1 %v20245_v16 }
0x1032   : > { %v18859_v3 = vpop.f32.mrf.mxu1 }
0x1033   : > { %v8355_v19 = vadd.f32 %v18859_v3, %v22616_v1 }
0x1034   : > { %v8346_v2 = vpop.f32.mrf.mxu1 }
0x1035   : > { %v8347_v11 = vadd.f32 %v22616_v1, %v8346_v2  ;;  %v22625_v22 = vadd.f32 %v8355_v19, %v22505_v20 }
0x1036   : > { %v18860_v34 = vpop.f32.mrf.mxu1 }
0x1037   : > { %v22621_v0 = vadd.f32 %v8347_v11, %v22494_v9  ;;  %v8358_v7 = vadd.f32 %v18860_v34, %v22616_v1  ;;  %v8433_v14 = vsel %vm507_vm0, %v22625_v22, 0.0 }
0x1038   : > { %v8349_v15 = vpop.f32.mrf.mxu1 }
0x1039   : > { %v8350_v59 = vadd.f32 %v22616_v1, %v8349_v15  ;;  %v8427_v60 = vsel %vm507_vm0, %v22621_v0, 0.0  ;;  %v22634_v43 = vadd.f32 %v8358_v7, %v22508_v5 }
0x103a   : > { %8428 = vadd.xlane.f32.xlu1 %v8427_v60  ;;  %v18863_v6 = vpop.f32.mrf.mxu1 }
0x103b   : > { %v22631_v23 = vadd.f32 %v8350_v59, %v22497_v47  ;;  %v8371_v17 = vadd.f32 %v18863_v6, %v22616_v1  ;;  %v8436_v5 = vsel %vm507_vm0, %v22634_v43, 0.0 }
0x103c   : > { %v8362_v9 = vpop.f32.mrf.mxu1 }
0x103d   : > { %v8363_v52 = vadd.f32 %v22616_v1, %v8362_v9  ;;  %v8430_v20 = vsel %vm507_vm0, %v22631_v23, 0.0  ;;  %v22648_v44 = vadd.f32 %v8371_v17, %v22530_v4 }
0x103e   : > { %8431 = vadd.xlane.f32.xlu0 %v8430_v20  ;;  %8434 = vadd.xlane.f32.xlu1 %v8433_v14  ;;  %v18864_v33 = vpop.f32.mrf.mxu1 }
0x103f   : > { %v22643_v47 = vadd.f32 %v8363_v52, %v22519_v62  ;;  %v8374_v50 = vadd.f32 %v18864_v33, %v22616_v1  ;;  %v8445_v4 = vsel %vm507_vm0, %v22648_v44, 0.0 }
0x1040   : > { %v8365_v12 = vpop.f32.mrf.mxu1 }
0x1041   : > { %v8366_v24 = vadd.f32 %v22616_v1, %v8365_v12  ;;  %v8439_v45 = vsel %vm507_vm0, %v22643_v47, 0.0  ;;  %v22658_v62 = vadd.f32 %v8374_v50, %v22533_v18 }
0x1042   : > { %8437 = vadd.xlane.f32.xlu0 %v8436_v5  ;;  %8440 = vadd.xlane.f32.xlu1 %v8439_v45 }
0x1043   : > { %v22655_v61 = vadd.f32 %v8366_v24, %v22522_v46  ;;  %v8448_v57 = vsel %vm507_vm0, %v22658_v62, 0.0 }
0x1045   : > { %v8442_v54 = vsel %vm507_vm0, %v22655_v61, 0.0 }
0x1046   : > { %8443 = vadd.xlane.f32.xlu0 %v8442_v54  ;;  %8446 = vadd.xlane.f32.xlu1 %v8445_v4 }
0x104a   : > { %8449 = vadd.xlane.f32.xlu0 %v8448_v57 }
0x10a0   : > { %v18867_v40 = vpop.f32.mrf.mxu1 }
0x10a1   : > { %v8387_v46 = vadd.f32 %v18867_v40, %v22616_v1 }
0x10a2   : > { %v8378_v13 = vpop.f32.mrf.mxu1 }
0x10a3   : > { %v8379_v39 = vadd.f32 %v22616_v1, %v8378_v13  ;;  %v22673_v29 = vadd.f32 %v8387_v46, %v22566_v21 }
0x10a4   : > { %v18868_v18 = vpop.f32.mrf.mxu1 }
0x10a5   : > { %v22669_v63 = vadd.f32 %v8379_v39, %v22554_v35  ;;  %v8390_v42 = vadd.f32 %v18868_v18, %v22616_v1  ;;  %v8457_v37 = vsel %vm507_vm0, %v22673_v29, 0.0 }
0x10a6   : > { %v8381_v55 = vpop.f32.mrf.mxu1 }
0x10a7   : > { %v8382_v8 = vadd.f32 %v22616_v1, %v8381_v55  ;;  %v8451_v30 = vsel %vm507_vm0, %v22669_v63, 0.0  ;;  %v22682_v51 = vadd.f32 %v8390_v42, %v22569_v25 }
0x10a8   : > { %8452 = vadd.xlane.f32.xlu1 %v8451_v30  ;;  %v18871_v53 = vpop.f32.mrf.mxu1 }
0x10a9   : > { %v22679_v32 = vadd.f32 %v8382_v8, %v22557_v31  ;;  %v8403_v38 = vadd.f32 %v18871_v53, %v22616_v1  ;;  %v8460_v25 = vsel %vm507_vm0, %v22682_v51, 0.0  ;;  %v19577_v53 = vld [vmem:[%s25418_s3 + $0x18] sm:$0xff]  }
0x10aa   : > { %v8394_v35 = vpop.f32.mrf.mxu1  ;;  %18873 = vmatprep.subr.bf16.mxu0 %v19577_v53 }
0x10ab   : > { %v8395_v48 = vadd.f32 %v22616_v1, %v8394_v35  ;;  %v8454_v21 = vsel %vm507_vm0, %v22679_v32, 0.0  ;;  %v22696_v49 = vadd.f32 %v8403_v38, %v22591_v36  ;;  %18874 = vmatpush3.bf16.msra.mxu0 %v19577_v53 }
0x10ac   : > { %8455 = vadd.xlane.f32.xlu0 %v8454_v21  ;;  %8458 = vadd.xlane.f32.xlu1 %v8457_v37  ;;  %v18872_v41 = vpop.f32.mrf.mxu1 }
0x10ad   : > { %v22691_v31 = vadd.f32 %v8395_v48, %v22580_v28  ;;  %v8406_v56 = vadd.f32 %v18872_v41, %v22616_v1  ;;  %v8469_v36 = vsel %vm507_vm0, %v22696_v49, 0.0 }
0x10ae   : > { %v8397_v10 = vpop.f32.mrf.mxu1 }
0x10af   : > { %v8398_v27 = vadd.f32 %v22616_v1, %v8397_v10  ;;  %v8463_v16 = vsel %vm507_vm0, %v22691_v31, 0.0  ;;  %v22706_v28 = vadd.f32 %v8406_v56, %v22594_v26 }
0x10b0   : > { %8461 = vadd.xlane.f32.xlu0 %v8460_v25  ;;  %8464 = vadd.xlane.f32.xlu1 %v8463_v16 }
0x10b1   : > { %v22703_v3 = vadd.f32 %v8398_v27, %v22583_v58  ;;  %v8472_v1 = vsel %vm507_vm0, %v22706_v28, 0.0 }
0x10b3   : > { %v8466_v2 = vsel %vm507_vm0, %v22703_v3, 0.0 }
0x10b4   : > { %8467 = vadd.xlane.f32.xlu0 %v8466_v2  ;;  %8470 = vadd.xlane.f32.xlu1 %v8469_v36 }
0x10b8   : > { %8473 = vadd.xlane.f32.xlu0 %v8472_v1 }
0x10c3   : > { %v8429_v19 = vpop.xlane.xlu1 %8428 }
0x10c4   : > { %v8475_v11 = vmul.f32 0.03125, %v8429_v19 }
0x10c6   : > { %v22715_v58 = vsub.f32 %v22621_v0, %v8475_v11 }
0x10c7   : > { %v8432_v34 = vpop.xlane.xlu0 %8431  ;;  %v8435_v26 = vpop.xlane.xlu1 %8434 }
0x10c8   : > { %v8476_v7 = vmul.f32 0.03125, %v8432_v34  ;;  %v8477_v15 = vmul.f32 0.03125, %v8435_v26  ;;  %v8507_v59 = vmul.f32 %v22715_v58, %v22715_v58 }
0x10ca   : > { %v22720_v60 = vsub.f32 %v22631_v23, %v8476_v7  ;;  %v22723_v6 = vsub.f32 %v22625_v22, %v8477_v15  ;;  %v8523_v9 = vsel %vm507_vm0, %v8507_v59, 0.0 }
0x10cb   : > { %v8438_v17 = vpop.xlane.xlu0 %8437  ;;  %8524 = vadd.xlane.f32.xlu1 %v8523_v9  ;;  %v8441_v52 = vpop.xlane.xlu1 %8440 }
0x10cc   : > { %v8478_v0 = vmul.f32 0.03125, %v8438_v17  ;;  %v8479_v20 = vmul.f32 0.03125, %v8441_v52  ;;  %v8508_v14 = vmul.f32 %v22720_v60, %v22720_v60  ;;  %v8509_v33 = vmul.f32 %v22723_v6, %v22723_v6 }
0x10ce   : > { %v22731_v12 = vsub.f32 %v22634_v43, %v8478_v0  ;;  %v22734_v23 = vsub.f32 %v22643_v47, %v8479_v20  ;;  %v8526_v22 = vsel %vm507_vm0, %v8508_v14, 0.0  ;;  %v8529_v5 = vsel %vm507_vm0, %v8509_v33, 0.0 }
0x10cf   : > { %v8444_v50 = vpop.xlane.xlu0 %8443  ;;  %8527 = vadd.xlane.f32.xlu0 %v8526_v22  ;;  %8530 = vadd.xlane.f32.xlu1 %v8529_v5  ;;  %v8447_v24 = vpop.xlane.xlu1 %8446 }
0x10d0   : > { %v8480_v45 = vmul.f32 0.03125, %v8444_v50  ;;  %v8481_v54 = vmul.f32 0.03125, %v8447_v24  ;;  %v8510_v4 = vmul.f32 %v22731_v12, %v22731_v12  ;;  %v8511_v43 = vmul.f32 %v22734_v23, %v22734_v23 }
0x10d2   : > { %v22743_v57 = vsub.f32 %v22655_v61, %v8480_v45  ;;  %v22746_v47 = vsub.f32 %v22648_v44, %v8481_v54  ;;  %v8532_v40 = vsel %vm507_vm0, %v8510_v4, 0.0  ;;  %v8535_v13 = vsel %vm507_vm0, %v8511_v43, 0.0 }
0x10d3   : > { %v8450_v46 = vpop.xlane.xlu0 %8449  ;;  %8533 = vadd.xlane.f32.xlu0 %v8532_v40  ;;  %8536 = vadd.xlane.f32.xlu1 %v8535_v13 }
0x10d4   : > { %v8482_v39 = vmul.f32 0.03125, %v8450_v46  ;;  %v8512_v18 = vmul.f32 %v22743_v57, %v22743_v57  ;;  %v8513_v42 = vmul.f32 %v22746_v47, %v22746_v47 }
0x10d6   : > { %v22755_v61 = vsub.f32 %v22658_v62, %v8482_v39  ;;  %v8538_v44 = vsel %vm507_vm0, %v8512_v18, 0.0  ;;  %v8541_v55 = vsel %vm507_vm0, %v8513_v42, 0.0  ;;  %v19578_v62 = vld [vmem:[%s25418_s3 + $0x10] sm:$0xff]  }
0x10d7   : > { %8539 = vadd.xlane.f32.xlu0 %v8538_v44  ;;  %8542 = vadd.xlane.f32.xlu1 %v8541_v55 }
0x10d8   : > { %v8514_v8 = vmul.f32 %v22755_v61, %v22755_v61  ;;  %18875 = vmatprep.subr.bf16.mxu0 %v19578_v62 }
0x10d9   : > { %18876 = vmatpush3.bf16.msra.mxu0 %v19578_v62 }
0x10da   : > { %v8544_v30 = vsel %vm507_vm0, %v8514_v8, 0.0 }
0x10db   : > { %8545 = vadd.xlane.f32.xlu0 %v8544_v30 }
0x1131   : > { %v8453_v35 = vpop.xlane.xlu1 %8452 }
0x1132   : > { %v8483_v38 = vmul.f32 0.03125, %v8453_v35 }
0x1134   : > { %v22769_v48 = vsub.f32 %v22669_v63, %v8483_v38 }
0x1135   : > { %v8456_v21 = vpop.xlane.xlu0 %8455  ;;  %v8459_v37 = vpop.xlane.xlu1 %8458 }
0x1136   : > { %v8484_v41 = vmul.f32 0.03125, %v8456_v21  ;;  %v8485_v10 = vmul.f32 0.03125, %v8459_v37  ;;  %v8515_v25 = vmul.f32 %v22769_v48, %v22769_v48 }
0x1138   : > { %v22774_v56 = vsub.f32 %v22679_v32, %v8484_v41  ;;  %v22777_v27 = vsub.f32 %v22673_v29, %v8485_v10  ;;  %v8547_v16 = vsel %vm507_vm0, %v8515_v25, 0.0 }
0x1139   : > { %v8462_v2 = vpop.xlane.xlu0 %8461  ;;  %8548 = vadd.xlane.f32.xlu1 %v8547_v16  ;;  %v8465_v36 = vpop.xlane.xlu1 %8464 }
0x113a   : > { %v8486_v63 = vmul.f32 0.03125, %v8462_v2  ;;  %v8487_v1 = vmul.f32 0.03125, %v8465_v36  ;;  %v8516_v19 = vmul.f32 %v22774_v56, %v22774_v56  ;;  %v8517_v11 = vmul.f32 %v22777_v27, %v22777_v27 }
0x113c   : > { %v22785_v34 = vsub.f32 %v22682_v51, %v8486_v63  ;;  %v22788_v32 = vsub.f32 %v22691_v31, %v8487_v1  ;;  %v8550_v29 = vsel %vm507_vm0, %v8516_v19, 0.0  ;;  %v8553_v26 = vsel %vm507_vm0, %v8517_v11, 0.0  ;;  %v22820_v63 = vld [vmem:[%s25426_s11] ss:$0 sm:$0xff] }
0x113d   : > { %8551 = vadd.xlane.f32.xlu0 %v8550_v29  ;;  %v8468_v7 = vpop.xlane.xlu0 %8467  ;;  %8554 = vadd.xlane.f32.xlu1 %v8553_v26  ;;  %v8471_v15 = vpop.xlane.xlu1 %8470  ;;  %v22827_v26 = vld [vmem:[%s25427_s12] ss:$0 sm:$0xff] }
0x113e   : > { %v8488_v59 = vmul.f32 0.03125, %v8468_v7  ;;  %v8489_v9 = vmul.f32 0.03125, %v8471_v15  ;;  %v8518_v17 = vmul.f32 %v22785_v34, %v22785_v34  ;;  %v8519_v51 = vmul.f32 %v22788_v32, %v22788_v32 }
0x1140   : > { %v22797_v52 = vsub.f32 %v22703_v3, %v8488_v59  ;;  %v22800_v31 = vsub.f32 %v22696_v49, %v8489_v9  ;;  %v8556_v0 = vsel %vm507_vm0, %v8518_v17, 0.0  ;;  %v8559_v20 = vsel %vm507_vm0, %v8519_v51, 0.0 }
0x1141   : > { %8557 = vadd.xlane.f32.xlu0 %v8556_v0  ;;  %v8474_v14 = vpop.xlane.xlu0 %8473  ;;  %8560 = vadd.xlane.f32.xlu1 %v8559_v20 }
0x1142   : > { %v8490_v33 = vmul.f32 0.03125, %v8474_v14  ;;  %v8520_v22 = vmul.f32 %v22797_v52, %v22797_v52  ;;  %v8521_v5 = vmul.f32 %v22800_v31, %v22800_v31 }
0x1144   : > { %v22809_v3 = vsub.f32 %v22706_v28, %v8490_v33  ;;  %v8562_v49 = vsel %vm507_vm0, %v8520_v22, 0.0  ;;  %v8565_v50 = vsel %vm507_vm0, %v8521_v5, 0.0 }
0x1145   : > { %8563 = vadd.xlane.f32.xlu0 %v8562_v49  ;;  %8566 = vadd.xlane.f32.xlu1 %v8565_v50 }
0x1146   : > { %v8522_v24 = vmul.f32 %v22809_v3, %v22809_v3 }
0x1148   : > { %v8568_v45 = vsel %vm507_vm0, %v8522_v24, 0.0 }
0x1149   : > { %8569 = vadd.xlane.f32.xlu0 %v8568_v45 }
0x1154   : > { %v8525_v54 = vpop.xlane.xlu1 %8524 }
0x1155   : > { %v8571_v4 = vmul.f32 0.03125, %v8525_v54 }
0x1157   : > { %v8587_v43 = vadd.f32 1e-06, %v8571_v4 }
0x1158   : > { %v8528_v40 = vpop.xlane.xlu0 %8527  ;;  %v8531_v13 = vpop.xlane.xlu1 %8530 }
0x1159   : > { %19873 = vrsqrt.f32 %v8587_v43  ;;  %v8572_v28 = vmul.f32 0.03125, %v8528_v40  ;;  %v8573_v46 = vmul.f32 0.03125, %v8531_v13 }
0x115b   : > { %v8588_v39 = vadd.f32 1e-06, %v8572_v28  ;;  %v8589_v18 = vadd.f32 1e-06, %v8573_v46 }
0x115c   : > { %v8534_v42 = vpop.xlane.xlu0 %8533  ;;  %v8537_v44 = vpop.xlane.xlu1 %8536 }
0x115d   : > { %19875 = vrsqrt.f32 %v8588_v39  ;;  %v8574_v55 = vmul.f32 0.03125, %v8534_v42  ;;  %v8575_v8 = vmul.f32 0.03125, %v8537_v44 }
0x115e   : > { %19877 = vrsqrt.f32 %v8589_v18 }
0x115f   : > { %v8590_v30 = vadd.f32 1e-06, %v8574_v55  ;;  %v8591_v53 = vadd.f32 1e-06, %v8575_v8 }
0x1160   : > { %v8540_v62 = vpop.xlane.xlu0 %8539  ;;  %v8543_v35 = vpop.xlane.xlu1 %8542 }
0x1161   : > { %19879 = vrsqrt.f32 %v8590_v30  ;;  %v8576_v38 = vmul.f32 0.03125, %v8540_v62  ;;  %v8577_v21 = vmul.f32 0.03125, %v8543_v35 }
0x1162   : > { %19881 = vrsqrt.f32 %v8591_v53 }
0x1163   : > { %v8592_v37 = vadd.f32 1e-06, %v8576_v38  ;;  %v8593_v41 = vadd.f32 1e-06, %v8577_v21 }
0x1164   : > { %v8546_v10 = vpop.xlane.xlu0 %8545 }
0x1165   : > { %19883 = vrsqrt.f32 %v8592_v37  ;;  %v8578_v25 = vmul.f32 0.03125, %v8546_v10 }
0x1166   : > { %v19874_v16 = vpop.eup %19873  ;;  %19885 = vrsqrt.f32 %v8593_v41 }
0x1167   : > { %v8594_v2 = vadd.f32 1e-06, %v8578_v25  ;;  %v8619_v36 = vmul.f32 %v19874_v16, %v22715_v58 }
0x1169   : > { %19887 = vrsqrt.f32 %v8594_v2  ;;  %v8641_v29 = vmul.f32 %v22820_v63, %v8619_v36 }
0x116a   : > { %v19876_v1 = vpop.eup %19875 }
0x116b   : > { %v19878_v19 = vpop.eup %19877  ;;  %v8620_v11 = vmul.f32 %v19876_v1, %v22720_v60  ;;  %v22834_v51 = vadd.f32 %v22827_v26, %v8641_v29 }
0x116c   : > { %v8621_v7 = vmul.f32 %v19878_v19, %v22723_v6 }
0x116d   : > { %v8642_v58 = vmul.f32 %v22820_v63, %v8620_v11  ;;  %25638 = vst [vmem:[#allocation3_spill] sm:$0xff] %v22834_v51 }
0x116e   : > { %v19880_v15 = vpop.eup %19879  ;;  %v8643_v9 = vmul.f32 %v22820_v63, %v8621_v7 }
0x116f   : > { %v19882_v59 = vpop.eup %19881  ;;  %v8622_v17 = vmul.f32 %v19880_v15, %v22731_v12  ;;  %v22837_v60 = vadd.f32 %v22827_v26, %v8642_v58 }
0x1170   : > { %v8623_v0 = vmul.f32 %v19882_v59, %v22734_v23  ;;  %v22844_v22 = vadd.f32 %v22827_v26, %v8643_v9 }
0x1171   : > { %25639 = vst [vmem:[#allocation25_spill] sm:$0xff] %v22837_v60  ;;  %v8644_v20 = vmul.f32 %v22820_v63, %v8622_v17  ;;  %v8687_v6 = vpack.c.bf16 %v22837_v60, %v22834_v51 }
0x1172   : > { %v19884_v14 = vpop.eup %19883  ;;  %25640 = vst [vmem:[#allocation7_spill] sm:$0xff] %v22844_v22  ;;  %v8645_v49 = vmul.f32 %v22820_v63, %v8623_v0 }
0x1173   : > { %v19886_v33 = vpop.eup %19885  ;;  %v22847_v12 = vadd.f32 %v22827_v26, %v8644_v20  ;;  %18877 = vmatprep.mubr.msk.bf16.mxu0 %vm507_vm0, %v8687_v6  ;;  %v8624_v5 = vmul.f32 %v19884_v14, %v22743_v57 }
0x1174   : > { %v8625_v23 = vmul.f32 %v19886_v33, %v22746_v47  ;;  %v22859_v4 = vadd.f32 %v22827_v26, %v8645_v49 }
0x1175   : > { %25641 = vst [vmem:[#allocation9_spill] sm:$0xff] %v22847_v12  ;;  %v8688_v50 = vpack.c.bf16 %v22847_v12, %v22844_v22  ;;  %v8646_v24 = vmul.f32 %v22820_v63, %v8624_v5 }
0x1176   : > { %v19888_v45 = vpop.eup %19887  ;;  %25642 = vst [vmem:[#allocation33_spill] sm:$0xff] %v22859_v4  ;;  %v8647_v57 = vmul.f32 %v22820_v63, %v8625_v23 }
0x1177   : > { %v8626_v54 = vmul.f32 %v19888_v45, %v22755_v61  ;;  %18878 = vmatmul.mubr.msk.bf16.vlgmr.msra.gmra.mxu0 %vm507_vm0, %v8688_v50  ;;  %v22862_v43 = vadd.f32 %v22827_v26, %v8646_v24 }
0x1178   : > { %v22870_v13 = vadd.f32 %v22827_v26, %v8647_v57 }
0x1179   : > { %25643 = vst [vmem:[#allocation8_spill] sm:$0xff] %v22862_v43  ;;  %v8689_v47 = vpack.c.bf16 %v22862_v43, %v22859_v4  ;;  %v8648_v40 = vmul.f32 %v22820_v63, %v8626_v54 }
0x117a   : > { %25644 = vst [vmem:[#allocation35_spill] sm:$0xff] %v22870_v13 }
0x117b   : > { %18881 = vmatprep.mubr.msk.bf16.mxu0 %vm507_vm0, %v8689_v47  ;;  %v22873_v61 = vadd.f32 %v22827_v26, %v8648_v40 }
0x117d   : > { %25645 = vst [vmem:[#allocation10_spill] sm:$0xff] %v22873_v61  ;;  %v8690_v28 = vpack.c.bf16 %v22873_v61, %v22870_v13 }
0x117f   : > { %18882 = vmatmul.mubr.msk.bf16.gmra.mxu0 %vm507_vm0, %v8690_v28 }
0x11c2   : > { %v8549_v46 = vpop.xlane.xlu1 %8548 }
0x11c3   : > { %v8579_v39 = vmul.f32 0.03125, %v8549_v46 }
0x11c5   : > { %v8595_v18 = vadd.f32 1e-06, %v8579_v39 }
0x11c6   : > { %v8552_v42 = vpop.xlane.xlu0 %8551  ;;  %v8555_v44 = vpop.xlane.xlu1 %8554 }
0x11c7   : > { %19889 = vrsqrt.f32 %v8595_v18  ;;  %v8580_v55 = vmul.f32 0.03125, %v8552_v42  ;;  %v8581_v8 = vmul.f32 0.03125, %v8555_v44 }
0x11c9   : > { %v8596_v30 = vadd.f32 1e-06, %v8580_v55  ;;  %v8597_v53 = vadd.f32 1e-06, %v8581_v8 }
0x11ca   : > { %v8558_v62 = vpop.xlane.xlu0 %8557  ;;  %v8561_v35 = vpop.xlane.xlu1 %8560 }
0x11cb   : > { %19891 = vrsqrt.f32 %v8596_v30  ;;  %v8582_v38 = vmul.f32 0.03125, %v8558_v62  ;;  %v8583_v21 = vmul.f32 0.03125, %v8561_v35 }
0x11cc   : > { %19893 = vrsqrt.f32 %v8597_v53 }
0x11cd   : > { %v8598_v37 = vadd.f32 1e-06, %v8582_v38  ;;  %v8599_v41 = vadd.f32 1e-06, %v8583_v21 }
0x11ce   : > { %v8564_v10 = vpop.xlane.xlu0 %8563  ;;  %v8567_v25 = vpop.xlane.xlu1 %8566 }
0x11cf   : > { %19895 = vrsqrt.f32 %v8598_v37  ;;  %v8584_v16 = vmul.f32 0.03125, %v8564_v10  ;;  %v8585_v2 = vmul.f32 0.03125, %v8567_v25 }
0x11d0   : > { %19897 = vrsqrt.f32 %v8599_v41 }
0x11d1   : > { %v8600_v36 = vadd.f32 1e-06, %v8584_v16  ;;  %v8601_v1 = vadd.f32 1e-06, %v8585_v2 }
0x11d2   : > { %v8570_v19 = vpop.xlane.xlu0 %8569 }
0x11d3   : > { %19899 = vrsqrt.f32 %v8600_v36  ;;  %v8586_v11 = vmul.f32 0.03125, %v8570_v19 }
0x11d4   : > { %v19890_v29 = vpop.eup %19889  ;;  %19901 = vrsqrt.f32 %v8601_v1 }
0x11d5   : > { %v8602_v7 = vadd.f32 1e-06, %v8586_v11  ;;  %v8627_v58 = vmul.f32 %v19890_v29, %v22769_v48 }
0x11d7   : > { %19903 = vrsqrt.f32 %v8602_v7  ;;  %v8649_v17 = vmul.f32 %v22820_v63, %v8627_v58 }
0x11d8   : > { %v19892_v15 = vpop.eup %19891 }
0x11d9   : > { %v19894_v59 = vpop.eup %19893  ;;  %v8628_v9 = vmul.f32 %v19892_v15, %v22774_v56  ;;  %v22885_v5 = vadd.f32 %v22827_v26, %v8649_v17 }
0x11da   : > { %v8629_v0 = vmul.f32 %v19894_v59, %v22777_v27 }
0x11db   : > { %v8650_v20 = vmul.f32 %v22820_v63, %v8628_v9  ;;  %25646 = vst [vmem:[#allocation37_spill] sm:$0xff] %v22885_v5 }
0x11dc   : > { %v19896_v6 = vpop.eup %19895  ;;  %v8651_v49 = vmul.f32 %v22820_v63, %v8629_v0 }
0x11dd   : > { %v19898_v14 = vpop.eup %19897  ;;  %v8630_v33 = vmul.f32 %v19896_v6, %v22785_v34  ;;  %v22888_v48 = vadd.f32 %v22827_v26, %v8650_v20 }
0x11de   : > { %v8631_v56 = vmul.f32 %v19898_v14, %v22788_v32  ;;  %v22897_v34 = vadd.f32 %v22827_v26, %v8651_v49 }
0x11df   : > { %25647 = vst [vmem:[#allocation23_spill] sm:$0xff] %v22888_v48  ;;  %v8691_v23 = vpack.c.bf16 %v22888_v48, %v22885_v5  ;;  %v8652_v27 = vmul.f32 %v22820_v63, %v8630_v33 }
0x11e0   : > { %v19900_v50 = vpop.eup %19899  ;;  %25648 = vst [vmem:[#allocation39_spill] sm:$0xff] %v22897_v34  ;;  %v8653_v57 = vmul.f32 %v22820_v63, %v8631_v56 }
0x11e1   : > { %v19902_v24 = vpop.eup %19901  ;;  %18885 = vmatprep.mubr.msk.bf16.mxu0 %vm507_vm0, %v8691_v23  ;;  %v22900_v45 = vadd.f32 %v22827_v26, %v8652_v27  ;;  %v8632_v54 = vmul.f32 %v19900_v50, %v22797_v52 }
0x11e2   : > { %v8633_v32 = vmul.f32 %v19902_v24, %v22800_v31  ;;  %v22911_v39 = vadd.f32 %v22827_v26, %v8653_v57 }
0x11e3   : > { %25649 = vst [vmem:[#allocation26_spill] sm:$0xff] %v22900_v45  ;;  %v8692_v47 = vpack.c.bf16 %v22900_v45, %v22897_v34  ;;  %v8654_v40 = vmul.f32 %v22820_v63, %v8632_v54  ;;  %v20246_v54 = vld [vmem:[%s25416_s1 + $0x8] sm:$0xff] }
0x11e4   : > { %v19904_v28 = vpop.eup %19903  ;;  %25650 = vst [vmem:[#allocation15_spill] sm:$0xff] %v22911_v39  ;;  %v8655_v52 = vmul.f32 %v22820_v63, %v8633_v32  ;;  %v20247_v32 = vld [vmem:[%s25416_s1 + $0x10] sm:$0xff] }
0x11e5   : > { %v8634_v46 = vmul.f32 %v19904_v28, %v22809_v3  ;;  %18886 = vmatmul.mubr.msk.bf16.gmra.mxu0 %vm507_vm0, %v8692_v47  ;;  %v22914_v18 = vadd.f32 %v22827_v26, %v8654_v40  ;;  %v20248_v40 = vld [vmem:[%s25416_s1 + $0x18] sm:$0xff] }
0x11e6   : > { %v22922_v44 = vadd.f32 %v22827_v26, %v8655_v52 }
0x11e7   : > { %25651 = vst [vmem:[#allocation13_spill] sm:$0xff] %v22914_v18  ;;  %v8693_v31 = vpack.c.bf16 %v22914_v18, %v22911_v39  ;;  %v8656_v42 = vmul.f32 %v22820_v63, %v8634_v46  ;;  %v20249_v46 = vld [vmem:[%s25416_s1 + $0x20] sm:$0xff] }
0x11e8   : > { %25652 = vst [vmem:[#allocation19_spill] sm:$0xff] %v22922_v44 }
0x11e9   : > { %18889 = vmatprep.mubr.msk.bf16.mxu0 %vm507_vm0, %v8693_v31  ;;  %v22925_v3 = vadd.f32 %v22827_v26, %v8656_v42  ;;  %v20250_v31 = vld [vmem:[%s25416_s1 + $0x28] sm:$0xff] }
0x11eb   : > { %25653 = vst [vmem:[#allocation12_spill] sm:$0xff] %v22925_v3  ;;  %v8694_v55 = vpack.c.bf16 %v22925_v3, %v22922_v44 }
0x11ed   : > { %18890 = vmatmul.mubr.msk.bf16.gmra.mxu0 %vm507_vm0, %v8694_v55  ;;  %v20251_v55 = vld [vmem:[%s25416_s1 + $0x30] sm:$0xff] }
0x1237   : > { %v22930_v8 = vpop.f32.mrf.mxu0 }
0x1239   : > { %v22932_v30 = vpop.f32.mrf.mxu0 }
0x123a   : > { %18953 = vmatprep.mubr.msk.f32.mxu0 %vm842_vm1, %v22932_v30 }
0x123b   : > { %v22936_v63 = vpop.f32.mrf.mxu0 }
0x123d   : > { %v22938_v53 = vpop.f32.mrf.mxu0 }
0x123f   : > { %v22940_v62 = vpop.f32.mrf.mxu0 }
0x1241   : > { %v22942_v26 = vpop.f32.mrf.mxu0 }
0x1243   : > { %v22944_v35 = vpop.f32.mrf.mxu0 }
0x1245   : > { %v22946_v38 = vpop.f32.mrf.mxu0 }
0x12a5   : > { %v22948_v21 = vpop.f32.mrf.mxu0 }
0x12a7   : > { %v22950_v37 = vpop.f32.mrf.mxu0 }
0x12a9   : > { %v22952_v41 = vpop.f32.mrf.mxu0 }
0x12ab   : > { %v22954_v10 = vpop.f32.mrf.mxu0 }
0x12ad   : > { %v22956_v25 = vpop.f32.mrf.mxu0 }
0x12ae   : > { %8877 = vrot.lane.b32.xlu0 %v22956_v25, %s20275_s19 }
0x12af   : > { %v22960_v16 = vpop.f32.mrf.mxu0 }
0x12b0   : > { %8873 = vrot.lane.b32.xlu1 %v22960_v16, %s20275_s19 }
0x12b1   : > { %v22966_v2 = vpop.f32.mrf.mxu0 }
0x12b2   : > { %8871 = vrot.lane.b32.xlu0 %v22952_v41, %s20275_s19 }
0x12b3   : > { %v22972_v36 = vpop.f32.mrf.mxu0 }
0x12b4   : > { %8879 = vrot.lane.b32.xlu1 %v22966_v2, %s20275_s19 }
0x12b6   : > { %8867 = vrot.lane.b32.xlu0 %v22954_v10, %s20275_s19 }
0x12b8   : > { %8875 = vrot.lane.b32.xlu1 %v22972_v36, %s20275_s19 }
0x12ba   : > { %8863 = vrot.lane.b32.xlu0 %v22944_v35, %s20275_s19 }
0x12bc   : > { %8869 = vrot.lane.b32.xlu1 %v22948_v21, %s20275_s19 }
0x12be   : > { %8859 = vrot.lane.b32.xlu0 %v22946_v38, %s20275_s19 }
0x12c0   : > { %8865 = vrot.lane.b32.xlu1 %v22950_v37, %s20275_s19 }
0x12c2   : > { %8855 = vrot.lane.b32.xlu0 %v22936_v63, %s20275_s19 }
0x12c4   : > { %8861 = vrot.lane.b32.xlu1 %v22940_v62, %s20275_s19 }
0x12c6   : > { %8853 = vrot.lane.b32.xlu0 %v22930_v8, %s20275_s19 }
0x12c8   : > { %8857 = vrot.lane.b32.xlu1 %v22942_v26, %s20275_s19 }
0x12ca   : > { %9042 = vrot.lane.b32.xlu0 %v22932_v30, %s20276_s24 }
0x12cc   : > { %9044 = vrot.lane.b32.xlu1 %v22938_v53, %s20276_s24 }
0x12ce   : > { %9131 = vrot.lane.b32.xlu0 %v22936_v63, %s20276_s24 }
0x12d0   : > { %8851 = vrot.lane.b32.xlu1 %v22938_v53, %s20275_s19 }
0x12d2   : > { %9218 = vrot.lane.b32.xlu0 %v22946_v38, %s20276_s24 }
0x12d4   : > { %8849 = vrot.lane.b32.xlu1 %v22932_v30, %s20275_s19 }
0x12d6   : > { %9305 = vrot.lane.b32.xlu0 %v22944_v35, %s20276_s24 }
0x12d8   : > { %9129 = vrot.lane.b32.xlu1 %v22930_v8, %s20276_s24 }
0x12da   : > { %9392 = vrot.lane.b32.xlu0 %v22954_v10, %s20276_s24 }
0x12dc   : > { %9216 = vrot.lane.b32.xlu1 %v22942_v26, %s20276_s24 }
0x12de   : > { %9390 = vrot.lane.b32.xlu0 %v22950_v37, %s20276_s24 }
0x12e0   : > { %9303 = vrot.lane.b32.xlu1 %v22940_v62, %s20276_s24 }
0x12e2   : > { %9566 = vrot.lane.b32.xlu0 %v22972_v36, %s20276_s24 }
0x12e4   : > { %9479 = vrot.lane.b32.xlu1 %v22952_v41, %s20276_s24 }
0x12e6   : > { %9564 = vrot.lane.b32.xlu0 %v22960_v16, %s20276_s24 }
0x12e8   : > { %9477 = vrot.lane.b32.xlu1 %v22948_v21, %s20276_s24 }
0x12ec   : > { %9653 = vrot.lane.b32.xlu1 %v22966_v2, %s20276_s24 }
0x12f0   : > { %9651 = vrot.lane.b32.xlu1 %v22956_v25, %s20276_s24 }
0x12f4   : > { %10592 = vrot.lane.b32.xlu1 %v22938_v53, %s20277_s26 }
0x1320   : > { %v8878_v1 = vpop.permute.xlu0 %8877 }
0x1322   : > { %v8874_v19 = vpop.permute.xlu1 %8873 }
0x1324   : > { %v8872_v11 = vpop.permute.xlu0 %8871 }
0x1326   : > { %v8880_v29 = vpop.permute.xlu1 %8879 }
0x1327   : > { %18893 = vmatprep.subr.mxu1 %v8880_v29 }
0x1328   : > { %v8868_v7 = vpop.permute.xlu0 %8867  ;;  %18894 = vmatpush3.msra.mxu1 %v8880_v29  ;;  %v20253_v29 = vld [vmem:[%s25416_s1 + $0x40] sm:$0xff] }
0x1329   : > { %18895 = vmatprep.subr.mxu1 %v8878_v1 }
0x132a   : > { %18896 = vmatpush3.msra.mxu1 %v8878_v1  ;;  %v8876_v58 = vpop.permute.xlu1 %8875 }
0x132b   : > { %18897 = vmatprep.subr.mxu1 %v8876_v58 }
0x132c   : > { %v8864_v15 = vpop.permute.xlu0 %8863  ;;  %18898 = vmatpush3.msra.mxu1 %v8876_v58  ;;  %v20255_v58 = vld [vmem:[%s25416_s1 + $0x50] sm:$0xff] }
0x132d   : > { %18899 = vmatprep.subr.mxu1 %v8874_v19 }
0x132e   : > { %18900 = vmatpush3.msra.mxu1 %v8874_v19  ;;  %v8870_v59 = vpop.permute.xlu1 %8869  ;;  %v20252_v19 = vld [vmem:[%s25416_s1 + $0x38] sm:$0xff] }
0x132f   : > { %18901 = vmatprep.subr.mxu1 %v8872_v11 }
0x1330   : > { %v8860_v9 = vpop.permute.xlu0 %8859  ;;  %18902 = vmatpush3.msra.mxu1 %v8872_v11 }
0x1331   : > { %18903 = vmatprep.subr.mxu1 %v8870_v59 }
0x1332   : > { %18904 = vmatpush3.msra.mxu1 %v8870_v59  ;;  %v8866_v17 = vpop.permute.xlu1 %8865  ;;  %v20256_v59 = vld [vmem:[%s25416_s1 + $0x58] sm:$0xff] }
0x1333   : > { %18905 = vmatprep.subr.mxu1 %v8868_v7 }
0x1334   : > { %v8856_v0 = vpop.permute.xlu0 %8855  ;;  %18906 = vmatpush3.msra.mxu1 %v8868_v7  ;;  %v20254_v7 = vld [vmem:[%s25416_s1 + $0x48] sm:$0xff] }
0x1335   : > { %18907 = vmatprep.subr.mxu1 %v8866_v17 }
0x1336   : > { %18908 = vmatpush3.msra.mxu1 %v8866_v17  ;;  %v8862_v20 = vpop.permute.xlu1 %8861  ;;  %v20258_v17 = vld [vmem:[%s25416_s1 + $0x68] sm:$0xff] }
0x1337   : > { %18909 = vmatprep.subr.mxu1 %v8864_v15 }
0x1338   : > { %v8854_v6 = vpop.permute.xlu0 %8853  ;;  %18910 = vmatpush3.msra.mxu1 %v8864_v15 }
0x1339   : > { %18911 = vmatprep.subr.mxu1 %v8862_v20 }
0x133a   : > { %18912 = vmatpush3.msra.mxu1 %v8862_v20  ;;  %v8858_v14 = vpop.permute.xlu1 %8857  ;;  %v20259_v20 = vld [vmem:[%s25416_s1 + $0x70] sm:$0xff] }
0x133b   : > { %18913 = vmatprep.subr.mxu1 %v8860_v9 }
0x133c   : > { %v9043_v33 = vpop.permute.xlu0 %9042  ;;  %18914 = vmatpush3.msra.mxu1 %v8860_v9  ;;  %v20257_v9 = vld [vmem:[%s25416_s1 + $0x60] sm:$0xff] }
0x133d   : > { %18915 = vmatprep.subr.mxu1 %v8858_v14 }
0x133e   : > { %18916 = vmatpush3.msra.mxu1 %v8858_v14  ;;  %v9045_v49 = vpop.permute.xlu1 %9044 }
0x133f   : > { %18917 = vmatprep.subr.mxu1 %v8856_v0  ;;  %18949 = vmatprep.subr.msk.mxu0 %vm842_vm1, %v9045_v49 }
0x1340   : > { %v9132_v56 = vpop.permute.xlu0 %9131  ;;  %18918 = vmatpush3.msra.mxu1 %v8856_v0  ;;  %18950 = vmatpush3.xpose.msk.msra.mxu0 %vm842_vm1, %v9045_v49  ;;  %v23140_v49 = vld [vmem:[%s25417_s2 + $0x18] sm:$0xff] }
0x1341   : > { %18919 = vmatprep.subr.mxu1 %v8854_v6  ;;  %18951 = vmatprep.subr.msk.mxu0 %vm842_vm1, %v9043_v33 }
0x1342   : > { %18920 = vmatpush3.msra.mxu1 %v8854_v6  ;;  %v8852_v23 = vpop.permute.xlu1 %8851  ;;  %v20260_v6 = vld [vmem:[%s25416_s1 + $0x78] sm:$0xff] }
0x1343   : > { %18921 = vmatprep.subr.mxu1 %v8852_v23 }
0x1344   : > { %v9219_v27 = vpop.permute.xlu0 %9218  ;;  %18922 = vmatpush3.msra.mxu1 %v8852_v23  ;;  %18952 = vmatpush3.xpose.msk.msra.mxu0 %vm842_vm1, %v9043_v33  ;;  %v23145_v23 = vld [vmem:[%s25417_s2 + $0x10] sm:$0xff] }
0x1345   : > { %18956 = vmatprep.subr.msk.mxu0 %vm842_vm1, %v9132_v56 }
0x1346   : > { %v8850_v50 = vpop.permute.xlu1 %8849 }
0x1347   : > { %18923 = vmatprep.subr.mxu1 %v8850_v50  ;;  %18954 = vmatmul.mubr.msk.f32.vlgmr.msra.gmra.mxu0 %vm842_vm1, %v22938_v53 }
0x1348   : > { %v9306_v24 = vpop.permute.xlu0 %9305  ;;  %18924 = vmatpush3.msra.mxu1 %v8850_v50  ;;  %18957 = vmatpush3.xpose.msk.msra.mxu0 %vm842_vm1, %v9132_v56 }
0x1349   : > { %18960 = vmatprep.mubr.msk.f32.mxu0 %vm842_vm1, %v22930_v8  ;;  %18926 = vmatmul.mubr.f32.vlgmr.msra.gmra.mxu1 %v20246_v54 }
0x134a   : > { %v9130_v57 = vpop.permute.xlu1 %9129  ;;  %18928 = vmatprep.mubr.f32.mxu1 %v20247_v32 }
0x134b   : > { %18958 = vmatprep.subr.msk.mxu0 %vm842_vm1, %v9130_v57 }
0x134c   : > { %v9393_v47 = vpop.permute.xlu0 %9392  ;;  %18959 = vmatpush3.xpose.msk.msra.mxu0 %vm842_vm1, %v9130_v57 }
0x134d   : > { %18929 = vmatmul.mubr.f32.gmra.mxu1 %v20248_v40  ;;  %18963 = vmatprep.subr.msk.mxu0 %vm842_vm1, %v9219_v27 }
0x134e   : > { %18977 = vmatprep.subr.msk.mxu1 %vm842_vm1, %v9393_v47  ;;  %v9217_v28 = vpop.permute.xlu1 %9216  ;;  %18931 = vmatprep.mubr.f32.mxu1 %v20249_v46 }
0x134f   : > { %18978 = vmatpush3.xpose.msk.msra.mxu1 %vm842_vm1, %v9393_v47  ;;  %18961 = vmatmul.mubr.msk.f32.vlgmr.msra.gmra.mxu0 %vm842_vm1, %v22936_v63 }
0x1350   : > { %v9391_v52 = vpop.permute.xlu0 %9390  ;;  %18964 = vmatpush3.xpose.msk.msra.mxu0 %vm842_vm1, %v9219_v27  ;;  %18967 = vmatprep.mubr.msk.f32.mxu0 %vm842_vm1, %v22942_v26 }
0x1351   : > { %18932 = vmatmul.mubr.f32.gmra.mxu1 %v20250_v31  ;;  %18965 = vmatprep.subr.msk.mxu0 %vm842_vm1, %v9217_v28 }
0x1352   : > { %18979 = vmatprep.subr.msk.mxu1 %vm842_vm1, %v9391_v52  ;;  %v9304_v42 = vpop.permute.xlu1 %9303  ;;  %18934 = vmatprep.mubr.f32.mxu1 %v20251_v55 }
0x1353   : > { %18980 = vmatpush3.xpose.msk.msra.mxu1 %vm842_vm1, %v9391_v52 }
0x1354   : > { %v9567_v1 = vpop.permute.xlu0 %9566  ;;  %18966 = vmatpush3.xpose.msk.msra.mxu0 %vm842_vm1, %v9217_v28 }
0x1355   : > { %18935 = vmatmul.mubr.f32.gmra.mxu1 %v20252_v19  ;;  %18970 = vmatprep.subr.msk.mxu0 %vm842_vm1, %v9306_v24 }
0x1356   : > { %18991 = vmatprep.subr.msk.mxu1 %vm842_vm1, %v9567_v1  ;;  %v9480_v11 = vpop.permute.xlu1 %9479  ;;  %18937 = vmatprep.mubr.f32.mxu1 %v20253_v29 }
0x1357   : > { %18968 = vmatmul.mubr.msk.f32.vlgmr.msra.gmra.mxu0 %vm842_vm1, %v22946_v38 }
0x1358   : > { %18971 = vmatpush3.xpose.msk.msra.mxu0 %vm842_vm1, %v9306_v24  ;;  %18974 = vmatprep.mubr.msk.f32.mxu0 %vm842_vm1, %v22940_v62  ;;  %v9565_v33 = vpop.permute.xlu0 %9564 }
0x1359   : > { %18938 = vmatmul.mubr.f32.gmra.mxu1 %v20254_v7  ;;  %18972 = vmatprep.subr.msk.mxu0 %vm842_vm1, %v9304_v42 }
0x135a   : > { %18940 = vmatprep.mubr.f32.mxu1 %v20255_v58  ;;  %v9478_v15 = vpop.permute.xlu1 %9477 }
0x135c   : > { %18973 = vmatpush3.xpose.msk.msra.mxu0 %vm842_vm1, %v9304_v42 }
0x135d   : > { %18941 = vmatmul.mubr.f32.gmra.mxu1 %v20256_v59  ;;  %18984 = vmatprep.subr.msk.mxu0 %vm842_vm1, %v9480_v11 }
0x135e   : > { %18943 = vmatprep.mubr.f32.mxu1 %v20257_v9  ;;  %v9654_v0 = vpop.permute.xlu1 %9653 }
0x135f   : > { %18975 = vmatmul.mubr.msk.f32.vlgmr.msra.gmra.mxu0 %vm842_vm1, %v22944_v35 }
0x1360   : > { %18985 = vmatpush3.xpose.msk.msra.mxu0 %vm842_vm1, %v9480_v11  ;;  %18988 = vmatprep.mubr.msk.f32.mxu0 %vm842_vm1, %v22948_v21 }
0x1361   : > { %18944 = vmatmul.mubr.f32.gmra.mxu1 %v20258_v17  ;;  %18986 = vmatprep.subr.msk.mxu0 %vm842_vm1, %v9478_v15 }
0x1362   : > { %18946 = vmatprep.mubr.f32.mxu1 %v20259_v20  ;;  %v9652_v14 = vpop.permute.xlu1 %9651 }
0x1364   : > { %18987 = vmatpush3.xpose.msk.msra.mxu0 %vm842_vm1, %v9478_v15 }
0x1365   : > { %18947 = vmatmul.mubr.f32.gmra.mxu1 %v20260_v6  ;;  %18998 = vmatprep.subr.msk.mxu0 %vm842_vm1, %v9654_v0 }
0x1366   : > { %18981 = vmatprep.mubr.msk.f32.mxu1 %vm842_vm1, %v22950_v37 }
0x1367   : > { %18989 = vmatmul.mubr.msk.f32.vlgmr.msra.gmra.mxu0 %vm842_vm1, %v22952_v41 }
0x1368   : > { %18999 = vmatpush3.xpose.msk.msra.mxu0 %vm842_vm1, %v9654_v0  ;;  %19002 = vmatprep.mubr.msk.f32.mxu0 %vm842_vm1, %v22956_v25 }
0x1369   : > { %18982 = vmatmul.mubr.msk.f32.vlgmr.msra.gmra.mxu1 %vm842_vm1, %v22954_v10  ;;  %19000 = vmatprep.subr.msk.mxu0 %vm842_vm1, %v9652_v14 }
0x136a   : > { %18992 = vmatpush3.xpose.msk.msra.mxu1 %vm842_vm1, %v9567_v1  ;;  %18995 = vmatprep.mubr.msk.f32.mxu1 %vm842_vm1, %v22960_v16 }
0x136b   : > { %18993 = vmatprep.subr.msk.mxu1 %vm842_vm1, %v9565_v33 }
0x136c   : > { %19001 = vmatpush3.xpose.msk.msra.mxu0 %vm842_vm1, %v9652_v14 }
0x136e   : > { %18994 = vmatpush3.xpose.msk.msra.mxu1 %vm842_vm1, %v9565_v33 }
0x136f   : > { %19003 = vmatmul.mubr.msk.f32.vlgmr.msra.gmra.mxu0 %vm842_vm1, %v22966_v2 }
0x1371   : > { %18996 = vmatmul.mubr.msk.f32.vlgmr.msra.gmra.mxu1 %vm842_vm1, %v22972_v36 }
0x1407   : > { %v18955_v56 = vpop.f32.mrf.mxu0 }
0x1408   : > { %v9739_v27 = vmul.f32 %v18955_v56, %v23140_v49 }
0x1409   : > { %v23148_v50 = vpop.f32.mrf.mxu1  ;;  %v9120_v24 = vpop.f32.mrf.mxu0 }
0x140a   : > { %v9738_v54 = vmul.f32 %v23145_v23, %v9120_v24  ;;  %v9757_v57 = vsel %vm1551_vm2, %v9739_v27, -inf  ;;  %19005 = vmatprep.subr.mxu1 %v23148_v50 }
0x140b   : > { %9758 = vmax.xlane.f32.xlu1 %v9757_v57  ;;  %v23153_v32 = vpop.f32.mrf.mxu1  ;;  %19006 = vmatpush3.msra.mxu1 %v23148_v50 }
0x140c   : > { %25654 = vst [vmem:[#allocation14_spill] sm:$0xff] %v23153_v32  ;;  %v9754_v47 = vsel %vm1551_vm2, %v9738_v54, -inf  ;;  %19007 = vmatprep.subr.mxu1 %v23153_v32 }
0x140d   : > { %9755 = vmax.xlane.f32.xlu0 %v9754_v47  ;;  %v23158_v40 = vpop.f32.mrf.mxu1  ;;  %19008 = vmatpush3.msra.mxu1 %v23153_v32  ;;  %v23191_v47 = vpop.permute.xlu1 %10592 }
0x140e   : > { %25655 = vst [vmem:[#allocation20_spill] sm:$0xff] %v23158_v40  ;;  %19012 = vmatprep.subr.mxu1 %v23158_v40 }
0x140f   : > { %v23162_v28 = vpop.f32.mrf.mxu1  ;;  %v18962_v46 = vpop.f32.mrf.mxu0 }
0x1410   : > { %25656 = vst [vmem:[#allocation22_spill] sm:$0xff] %v23162_v28  ;;  %v9741_v52 = vmul.f32 %v18962_v46, %v23140_v49 }
0x1411   : > { %v23165_v31 = vpop.f32.mrf.mxu1  ;;  %v9207_v42 = vpop.f32.mrf.mxu0 }
0x1412   : > { %25657 = vst [vmem:[#allocation17_spill] sm:$0xff] %v23165_v31  ;;  %v9740_v55 = vmul.f32 %v23145_v23, %v9207_v42  ;;  %v9763_v1 = vsel %vm1551_vm2, %v9741_v52, -inf  ;;  %19019 = vmatprep.subr.mxu0 %v23165_v31 }
0x1413   : > { %v23170_v19 = vpop.f32.mrf.mxu1  ;;  %9764 = vmax.xlane.f32.xlu0 %v9763_v1  ;;  %19020 = vmatpush3.msra.mxu0 %v23165_v31 }
0x1414   : > { %25658 = vst [vmem:[#allocation21_spill] sm:$0xff] %v23170_v19  ;;  %19021 = vmatprep.subr.mxu0 %v23170_v19  ;;  %v9760_v29 = vsel %vm1551_vm2, %v9740_v55, -inf }
0x1415   : > { %v23174_v11 = vpop.f32.mrf.mxu1  ;;  %19022 = vmatpush3.msra.mxu0 %v23170_v19 }
0x1416   : > { %25659 = vst [vmem:[#allocation16_spill] sm:$0xff] %v23174_v11 }
0x1417   : > { %v23178_v7 = vpop.f32.mrf.mxu1  ;;  %9761 = vmax.xlane.f32.xlu0 %v9760_v29  ;;  %v18969_v58 = vpop.f32.mrf.mxu0 }
0x1418   : > { %25660 = vst [vmem:[#allocation18_spill] sm:$0xff] %v23178_v7  ;;  %v9743_v15 = vmul.f32 %v18969_v58, %v23140_v49 }
0x1419   : > { %v23181_v59 = vpop.f32.mrf.mxu1  ;;  %v9294_v9 = vpop.f32.mrf.mxu0 }
0x141a   : > { %25661 = vst [vmem:[#allocation28_spill] sm:$0xff] %v23181_v59  ;;  %v9742_v17 = vmul.f32 %v23145_v23, %v9294_v9  ;;  %v9769_v0 = vsel %vm1551_vm2, %v9743_v15, -inf  ;;  %19033 = vmatprep.subr.mxu0 %v23181_v59 }
0x141b   : > { %9770 = vmax.xlane.f32.xlu0 %v9769_v0  ;;  %v23195_v39 = vpop.f32.mrf.mxu1 }
0x141c   : > { %v9766_v20 = vsel %vm1551_vm2, %v9742_v17, -inf  ;;  %25662 = vst [vmem:[#allocation5_spill] sm:$0xff] %v23195_v39 }
0x141d   : > { %9767 = vmax.xlane.f32.xlu1 %v9766_v20 }
0x141f   : > { %v18976_v6 = vpop.f32.mrf.mxu0 }
0x1420   : > { %v9745_v14 = vmul.f32 %v18976_v6, %v23140_v49 }
0x1421   : > { %v9381_v33 = vpop.f32.mrf.mxu0 }
0x1422   : > { %v9744_v56 = vmul.f32 %v23145_v23, %v9381_v33  ;;  %v9775_v24 = vsel %vm1551_vm2, %v9745_v14, -inf }
0x1423   : > { %9776 = vmax.xlane.f32.xlu0 %v9775_v24 }
0x1424   : > { %v9772_v57 = vsel %vm1551_vm2, %v9744_v56, -inf }
0x1425   : > { %9773 = vmax.xlane.f32.xlu1 %v9772_v57 }
0x1494   : > { %v9759_v46 = vpop.xlane.xlu1 %9758 }
0x1495   : > { %v9803_v42 = vsub.f32 %v9739_v27, %v9759_v46 }
0x1496   : > { %v9756_v1 = vpop.xlane.xlu0 %9755 }
0x1497   : > { %v9820_v29 = vmul.f32 1.442695, %v9803_v42  ;;  %v9802_v58 = vsub.f32 %v9738_v54, %v9756_v1 }
0x1499   : > { %19905 = vpow2.f32 %v9820_v29  ;;  %v9818_v9 = vmul.f32 1.442695, %v9802_v58 }
0x149b   : > { %19907 = vpow2.f32 %v9818_v9 }
0x149c   : > { %v9765_v0 = vpop.xlane.xlu0 %9764 }
0x149d   : > { %v9805_v20 = vsub.f32 %v9741_v52, %v9765_v0 }
0x149f   : > { %v9824_v6 = vmul.f32 1.442695, %v9805_v20 }
0x14a0   : > { %v9762_v33 = vpop.xlane.xlu0 %9761 }
0x14a1   : > { %19909 = vpow2.f32 %v9824_v6  ;;  %v9804_v3 = vsub.f32 %v9740_v55, %v9762_v33  ;;  %v23203_v55 = vpop.f32.mrf.mxu1 }
0x14a2   : > { %25663 = vst [vmem:[#allocation30_spill] sm:$0xff] %v23203_v55 }
0x14a3   : > { %v9822_v24 = vmul.f32 1.442695, %v9804_v3 }
0x14a4   : > { %v9771_v18 = vpop.xlane.xlu0 %9770 }
0x14a5   : > { %19911 = vpow2.f32 %v9822_v24  ;;  %v9807_v57 = vsub.f32 %v9743_v15, %v9771_v18 }
0x14a6   : > { %v23193_v44 = vpop.eup %19905  ;;  %v9768_v27 = vpop.xlane.xlu1 %9767 }
0x14a7   : > { %v9828_v46 = vmul.f32 1.442695, %v9807_v57  ;;  %v9806_v54 = vsub.f32 %v9742_v17, %v9768_v27  ;;  %v9853_v42 = vsel %vm1551_vm2, %v23193_v44, 0.0  ;;  %v23207_v17 = vpop.f32.mrf.mxu1 }
0x14a8   : > { %v23199_v1 = vpop.eup %19907  ;;  %9854 = vadd.xlane.f32.xlu0 %v9853_v42  ;;  %25664 = vst [vmem:[#allocation2_spill] sm:$0xff] %v23207_v17 }
0x14a9   : > { %19913 = vpow2.f32 %v9828_v46  ;;  %v9826_v52 = vmul.f32 1.442695, %v9806_v54  ;;  %v9850_v3 = vsel %vm1551_vm2, %v23199_v1, 0.0  ;;  %v23213_v24 = vpop.f32.mrf.mxu1  ;;  %v18990_v54 = vpop.f32.mrf.mxu0 }
0x14aa   : > { %9851 = vadd.xlane.f32.xlu1 %v9850_v3  ;;  %25665 = vst [vmem:[#allocation31_spill] sm:$0xff] %v23213_v24 }
0x14ab   : > { %19915 = vpow2.f32 %v9826_v52  ;;  %v23219_v27 = vpop.f32.mrf.mxu1  ;;  %v9555_v3 = vpop.f32.mrf.mxu0 }
0x14ac   : > { %v9777_v18 = vpop.xlane.xlu0 %9776 }
0x14ad   : > { %v9809_v15 = vsub.f32 %v9745_v14, %v9777_v18  ;;  %v23227_v52 = vpop.f32.mrf.mxu1 }
0x14ae   : > { %v23205_v29 = vpop.eup %19909  ;;  %v9774_v58 = vpop.xlane.xlu1 %9773  ;;  %25666 = vst [vmem:[#allocation4_spill] sm:$0xff] %v23227_v52 }
0x14af   : > { %v9832_v9 = vmul.f32 1.442695, %v9809_v15  ;;  %v9808_v0 = vsub.f32 %v9744_v56, %v9774_v58  ;;  %v9859_v20 = vsel %vm1551_vm2, %v23205_v29, 0.0  ;;  %v23231_v15 = vpop.f32.mrf.mxu1  ;;  %v19004_v58 = vpop.f32.mrf.mxu0 }
0x14b0   : > { %9860 = vadd.xlane.f32.xlu0 %v9859_v20  ;;  %v23246_v45 = vmul.f32 %v19004_v58, %v23140_v49 }
0x14b1   : > { %19917 = vpow2.f32 %v9832_v9  ;;  %v9830_v6 = vmul.f32 1.442695, %v9808_v0  ;;  %v23234_v9 = vmul.f32 %v18990_v54, %v23140_v49 }
0x14b2   : > { %v23211_v33 = vpop.eup %19911 }
0x14b3   : > { %19919 = vpow2.f32 %v9830_v6  ;;  %v9856_v14 = vsel %vm1551_vm2, %v23211_v33, 0.0  ;;  %v23241_v6 = vmul.f32 %v23145_v23, %v9555_v3  ;;  %v9787_v54 = vsel %vm1551_vm2, %v23234_v9, -inf }
0x14b4   : > { %9857 = vadd.xlane.f32.xlu1 %v9856_v14 }
0x14b5   : > { %v9784_v3 = vsel %vm1551_vm2, %v23241_v6, -inf }
0x14b6   : > { %v23217_v57 = vpop.eup %19913 }
0x14b7   : > { %v9865_v56 = vsel %vm1551_vm2, %v23217_v57, 0.0 }
0x14b8   : > { %v23223_v46 = vpop.eup %19915  ;;  %9866 = vadd.xlane.f32.xlu0 %v9865_v56  ;;  %v18983_v56 = vpop.f32.mrf.mxu1 }
0x14b9   : > { %v9862_v42 = vsel %vm1551_vm2, %v23223_v46, 0.0  ;;  %v23256_v34 = vmul.f32 %v18983_v56, %v23140_v49 }
0x14ba   : > { %9863 = vadd.xlane.f32.xlu1 %v9862_v42  ;;  %v9729_v42 = vpop.f32.mrf.mxu0 }
0x14bb   : > { %v23251_v48 = vmul.f32 %v23145_v23, %v9729_v42 }
0x14bd   : > { %v9796_v42 = vsel %vm1551_vm2, %v23251_v48, -inf }
0x14be   : > { %v23229_v18 = vpop.eup %19917 }
0x14bf   : > { %v9871_v0 = vsel %vm1551_vm2, %v23229_v18, 0.0 }
0x14c0   : > { %v23238_v20 = vpop.eup %19919  ;;  %9872 = vadd.xlane.f32.xlu0 %v9871_v0  ;;  %v9468_v0 = vpop.f32.mrf.mxu1 }
0x14c1   : > { %v9868_v14 = vsel %vm1551_vm2, %v23238_v20, 0.0  ;;  %v23261_v5 = vmul.f32 %v23145_v23, %v9468_v0 }
0x14c2   : > { %9869 = vadd.xlane.f32.xlu1 %v9868_v14  ;;  %v9799_v14 = vsel %vm1551_vm2, %v23246_v45, -inf  ;;  %v18997_v58 = vpop.f32.mrf.mxu1 }
0x14c3   : > { %v9778_v56 = vsel %vm1551_vm2, %v23261_v5, -inf }
0x14c4   : > { %9788 = vmax.xlane.f32.xlu0 %v9787_v54  ;;  %v23266_v54 = vmul.f32 %v18997_v58, %v23140_v49  ;;  %v9642_v0 = vpop.f32.mrf.mxu1 }
0x14c5   : > { %v23289_v58 = vmul.f32 %v23145_v23, %v9642_v0 }
0x14c6   : > { %9785 = vmax.xlane.f32.xlu1 %v9784_v3  ;;  %v9781_v3 = vsel %vm1551_vm2, %v23256_v34, -inf }
0x14c8   : > { %9800 = vmax.xlane.f32.xlu0 %v9799_v14  ;;  %v9793_v14 = vsel %vm1551_vm2, %v23266_v54, -inf }
0x14ca   : > { %9797 = vmax.xlane.f32.xlu1 %v9796_v42  ;;  %v9790_v42 = vsel %vm1551_vm2, %v23289_v58, -inf }
0x14cc   : > { %9782 = vmax.xlane.f32.xlu0 %v9781_v3 }
0x14ce   : > { %9779 = vmax.xlane.f32.xlu1 %v9778_v56 }
0x14d0   : > { %9794 = vmax.xlane.f32.xlu0 %v9793_v14 }
0x14df   : > { %10590 = vrot.lane.b32.xlu1 %v22932_v30, %s20277_s26 }
0x14e6   : > { %10683 = vrot.lane.b32.xlu0 %v22936_v63, %s20277_s26 }
0x14ea   : > { %10586 = vrot.lane.b32.xlu0 %v22932_v30, %s20278_s27 }
0x14ee   : > { %10677 = vrot.lane.b32.xlu0 %v22930_v8, %s20278_s27 }
0x14f2   : > { %10679 = vrot.lane.b32.xlu0 %v22936_v63, %s20278_s27 }
0x14f6   : > { %10772 = vrot.lane.b32.xlu0 %v22942_v26, %s20277_s26 }
0x14fa   : > { %10768 = vrot.lane.b32.xlu0 %v22942_v26, %s20278_s27 }
0x14fe   : > { %10859 = vrot.lane.b32.xlu0 %v22940_v62, %s20278_s27 }
0x1503   : > { %9791 = vmax.xlane.f32.xlu1 %v9790_v42 }
0x1514   : > { %10681 = vrot.lane.b32.xlu1 %v22930_v8, %s20277_s26 }
0x1518   : > { %10588 = vrot.lane.b32.xlu1 %v22938_v53, %s20278_s27 }
0x151c   : > { %10774 = vrot.lane.b32.xlu1 %v22946_v38, %s20277_s26 }
0x1520   : > { %10865 = vrot.lane.b32.xlu1 %v22944_v35, %s20277_s26 }
0x1524   : > { %10863 = vrot.lane.b32.xlu1 %v22940_v62, %s20277_s26 }
0x1528   : > { %10770 = vrot.lane.b32.xlu1 %v22946_v38, %s20278_s27 }
0x152c   : > { %10956 = vrot.lane.b32.xlu1 %v22954_v10, %s20277_s26 }
0x1531   : > { %v9855_v3 = vpop.xlane.xlu0 %9854 }
0x1532   : > { %19921 = vrcp.f32 %v9855_v3 }
0x1533   : > { %v9852_v56 = vpop.xlane.xlu1 %9851 }
0x1534   : > { %19923 = vrcp.f32 %v9852_v56 }
0x1539   : > { %v9861_v14 = vpop.xlane.xlu0 %9860 }
0x153a   : > { %19925 = vrcp.f32 %v9861_v14 }
0x153d   : > { %v9858_v0 = vpop.xlane.xlu1 %9857 }
0x153e   : > { %19927 = vrcp.f32 %v9858_v0 }
0x153f   : > { %v19922_v42 = vpop.eup %19921 }
0x1540   : > { %v9915_v4 = vmul.f32 %v19922_v42, %v23193_v44 }
0x1541   : > { %v19924_v61 = vpop.eup %19923  ;;  %v9867_v43 = vpop.xlane.xlu0 %9866 }
0x1542   : > { %v9914_v13 = vmul.f32 %v19924_v61, %v23199_v1  ;;  %19929 = vrcp.f32 %v9867_v43 }
0x1543   : > { %v9864_v12 = vpop.xlane.xlu1 %9863 }
0x1544   : > { %19931 = vrcp.f32 %v9864_v12  ;;  %19009 = vmatprep.mubr.msk.f32.mxu1 %vm1551_vm2, %v9914_v13 }
0x1545   : > { %19010 = vmatmul.mubr.msk.f32.vlgmr.msra.gmra.mxu1 %vm1551_vm2, %v9915_v4 }
0x1546   : > { %19013 = vmatpush3.msra.mxu1 %v23158_v40 }
0x1547   : > { %19014 = vmatprep.subr.mxu1 %v23162_v28  ;;  %v19926_v56 = vpop.eup %19925 }
0x1548   : > { %19015 = vmatpush3.msra.mxu1 %v23162_v28  ;;  %v9917_v43 = vmul.f32 %v19926_v56, %v23205_v29 }
0x1549   : > { %19026 = vmatprep.subr.mxu1 %v23174_v11  ;;  %v9873_v3 = vpop.xlane.xlu0 %9872 }
0x154a   : > { %19933 = vrcp.f32 %v9873_v3 }
0x154b   : > { %v19928_v61 = vpop.eup %19927  ;;  %v9870_v44 = vpop.xlane.xlu1 %9869 }
0x154c   : > { %19935 = vrcp.f32 %v9870_v44  ;;  %v9916_v12 = vmul.f32 %v19928_v61, %v23211_v33 }
0x154d   : > { %v9789_v13 = vpop.xlane.xlu0 %9788 }
0x154e   : > { %v9813_v4 = vsub.f32 %v23234_v9, %v9789_v13  ;;  %19016 = vmatprep.mubr.msk.f32.mxu1 %vm1551_vm2, %v9916_v12 }
0x154f   : > { %19017 = vmatmul.mubr.msk.f32.vlgmr.msra.gmra.mxu1 %vm1551_vm2, %v9917_v43  ;;  %v9786_v1 = vpop.xlane.xlu1 %9785  ;;  %v19930_v14 = vpop.eup %19929 }
0x1550   : > { %v9840_v0 = vmul.f32 1.442695, %v9813_v4  ;;  %19027 = vmatpush3.msra.mxu1 %v23174_v11  ;;  %v9812_v42 = vsub.f32 %v23241_v6, %v9786_v1  ;;  %v9919_v61 = vmul.f32 %v19930_v14, %v23217_v57 }
0x1551   : > { %v19932_v3 = vpop.eup %19931  ;;  %19028 = vmatprep.subr.mxu1 %v23178_v7  ;;  %v9801_v33 = vpop.xlane.xlu0 %9800 }
0x1552   : > { %19937 = vpow2.f32 %v9840_v0  ;;  %v9838_v29 = vmul.f32 1.442695, %v9812_v42  ;;  %v9817_v56 = vsub.f32 %v23246_v45, %v9801_v33  ;;  %19029 = vmatpush3.msra.mxu1 %v23178_v7  ;;  %v9918_v9 = vmul.f32 %v19932_v3, %v23223_v46 }
0x1553   : > { %19040 = vmatprep.subr.mxu1 %v23203_v55  ;;  %v9798_v44 = vpop.xlane.xlu1 %9797 }
0x1554   : > { %19939 = vpow2.f32 %v9838_v29  ;;  %v9848_v12 = vmul.f32 1.442695, %v9817_v56  ;;  %v9816_v6 = vsub.f32 %v23251_v48, %v9798_v44  ;;  %19023 = vmatprep.mubr.msk.f32.mxu0 %vm1551_vm2, %v9918_v9 }
0x1555   : > { %v9783_v43 = vpop.xlane.xlu0 %9782  ;;  %19024 = vmatmul.mubr.msk.f32.vlgmr.msra.gmra.mxu0 %vm1551_vm2, %v9919_v61 }
0x1556   : > { %19941 = vpow2.f32 %v9848_v12  ;;  %v9846_v45 = vmul.f32 1.442695, %v9816_v6  ;;  %v9811_v13 = vsub.f32 %v23256_v34, %v9783_v43  ;;  %19034 = vmatpush3.msra.mxu0 %v23181_v59 }
0x1557   : > { %19035 = vmatprep.subr.mxu0 %v23195_v39  ;;  %v9780_v57 = vpop.xlane.xlu1 %9779  ;;  %v19934_v46 = vpop.eup %19933 }
0x1558   : > { %19943 = vpow2.f32 %v9846_v45  ;;  %v9836_v4 = vmul.f32 1.442695, %v9811_v13  ;;  %19036 = vmatpush3.msra.mxu0 %v23195_v39  ;;  %v9810_v48 = vsub.f32 %v23261_v5, %v9780_v57  ;;  %v9921_v3 = vmul.f32 %v19934_v46, %v23229_v18 }
0x1559   : > { %v19936_v1 = vpop.eup %19935  ;;  %19047 = vmatprep.subr.mxu0 %v23213_v24  ;;  %v9795_v14 = vpop.xlane.xlu0 %9794 }
0x155a   : > { %19945 = vpow2.f32 %v9836_v4  ;;  %v9834_v0 = vmul.f32 1.442695, %v9810_v48  ;;  %v9815_v34 = vsub.f32 %v23266_v54, %v9795_v14  ;;  %v9920_v42 = vmul.f32 %v19936_v1, %v23238_v20 }
0x155b   : > { %v23380_v57 = vpop.permute.xlu1 %10590 }
0x155c   : > { %19947 = vpow2.f32 %v9834_v0  ;;  %v9844_v33 = vmul.f32 1.442695, %v9815_v34  ;;  %19030 = vmatprep.mubr.msk.f32.mxu1 %vm1551_vm2, %v9920_v42 }
0x155d   : > { %19031 = vmatmul.mubr.msk.f32.vlgmr.msra.gmra.mxu1 %vm1551_vm2, %v9921_v3  ;;  %v10684_v14 = vpop.permute.xlu0 %10683 }
0x155e   : > { %19949 = vpow2.f32 %v9844_v33  ;;  %19041 = vmatpush3.msra.mxu1 %v23203_v55 }
0x155f   : > { %v23345_v5 = vpop.eup %19937  ;;  %19042 = vmatprep.subr.mxu1 %v23207_v17 }
0x1560   : > { %19043 = vmatpush3.msra.mxu1 %v23207_v17  ;;  %v9883_v20 = vsel %vm1551_vm2, %v23345_v5, 0.0 }
0x1561   : > { %v23351_v54 = vpop.eup %19939  ;;  %19054 = vmatprep.subr.mxu1 %v23227_v52  ;;  %9884 = vadd.xlane.f32.xlu0 %v9883_v20  ;;  %v23423_v34 = vpop.permute.xlu0 %10586 }
0x1562   : > { %v9880_v18 = vsel %vm1551_vm2, %v23351_v54, 0.0 }
0x1563   : > { %v23356_v29 = vpop.eup %19941  ;;  %9881 = vadd.xlane.f32.xlu1 %v9880_v18 }
0x1564   : > { %v9895_v56 = vsel %vm1551_vm2, %v23356_v29, 0.0 }
0x1565   : > { %v23360_v9 = vpop.eup %19943  ;;  %9896 = vadd.xlane.f32.xlu0 %v9895_v56  ;;  %v10678_v3 = vpop.permute.xlu0 %10677 }
0x1566   : > { %v9892_v61 = vsel %vm1551_vm2, %v23360_v9, 0.0 }
0x1567   : > { %v23364_v44 = vpop.eup %19945  ;;  %9893 = vadd.xlane.f32.xlu1 %v9892_v61 }
0x1568   : > { %v9877_v12 = vsel %vm1551_vm2, %v23364_v44, 0.0 }
0x1569   : > { %v23368_v6 = vpop.eup %19947  ;;  %9878 = vadd.xlane.f32.xlu0 %v9877_v12  ;;  %v10680_v20 = vpop.permute.xlu0 %10679 }
0x156a   : > { %v9874_v43 = vsel %vm1551_vm2, %v23368_v6, 0.0 }
0x156b   : > { %v23372_v45 = vpop.eup %19949  ;;  %9875 = vadd.xlane.f32.xlu1 %v9874_v43 }
0x156c   : > { %v9889_v13 = vsel %vm1551_vm2, %v23372_v45, 0.0 }
0x156d   : > { %9890 = vadd.xlane.f32.xlu0 %v9889_v13  ;;  %v23439_v56 = vpop.permute.xlu0 %10772 }
0x1571   : > { %v23443_v12 = vpop.permute.xlu0 %10768 }
0x1575   : > { %v10860_v13 = vpop.permute.xlu0 %10859 }
0x1583   : > { %10861 = vrot.lane.b32.xlu0 %v22944_v35, %s20278_s27 }
0x1587   : > { %10954 = vrot.lane.b32.xlu0 %v22950_v37, %s20277_s26 }
0x158b   : > { %10950 = vrot.lane.b32.xlu0 %v22950_v37, %s20278_s27 }
0x158c   : > { %v9792_v46 = vpop.xlane.xlu1 %9791 }
0x158d   : > { %v9814_v4 = vsub.f32 %v23289_v58, %v9792_v46 }
0x158f   : > { %v9842_v48 = vmul.f32 1.442695, %v9814_v4  ;;  %11041 = vrot.lane.b32.xlu0 %v22948_v21, %s20278_s27 }
0x1590   : > { %v23419_v0 = vpop.permute.xlu1 %10681 }
0x1591   : > { %19951 = vpow2.f32 %v9842_v48 }
0x1593   : > { %11043 = vrot.lane.b32.xlu0 %v22952_v41, %s20278_s27 }
0x1594   : > { %v23427_v42 = vpop.permute.xlu1 %10588 }
0x1597   : > { %11136 = vrot.lane.b32.xlu0 %v22960_v16, %s20277_s26 }
0x1598   : > { %v23431_v33 = vpop.permute.xlu1 %10774 }
0x159b   : > { %11132 = vrot.lane.b32.xlu0 %v22960_v16, %s20278_s27 }
0x159c   : > { %v10866_v18 = vpop.permute.xlu1 %10865 }
0x159e   : > { %v23393_v1 = vpop.eup %19951 }
0x159f   : > { %11223 = vrot.lane.b32.xlu0 %v22956_v25, %s20278_s27  ;;  %v9886_v58 = vsel %vm1551_vm2, %v23393_v1, 0.0 }
0x15a0   : > { %9887 = vadd.xlane.f32.xlu1 %v9886_v58  ;;  %v10864_v61 = vpop.permute.xlu1 %10863 }
0x15a3   : > { %11510 = vrot.lane.b32.xlu0 %v23148_v50, %s20278_s27 }
0x15a4   : > { %v23447_v43 = vpop.permute.xlu1 %10770 }
0x15a7   : > { %11508 = vrot.lane.b32.xlu0 %v23153_v32, %s20278_s27 }
0x15a8   : > { %v23449_v46 = vpop.permute.xlu1 %10956 }
0x15ab   : > { %11688 = vrot.lane.b32.xlu0 %v23165_v31, %s20278_s27 }
0x15af   : > { %11686 = vrot.lane.b32.xlu0 %v23170_v19, %s20278_s27 }
0x15b1   : > { %11047 = vrot.lane.b32.xlu1 %v22952_v41, %s20277_s26 }
0x15b3   : > { %11866 = vrot.lane.b32.xlu0 %v23181_v59, %s20278_s27 }
0x15b5   : > { %11045 = vrot.lane.b32.xlu1 %v22948_v21, %s20277_s26 }
0x15b9   : > { %10952 = vrot.lane.b32.xlu1 %v22954_v10, %s20278_s27 }
0x15bd   : > { %11138 = vrot.lane.b32.xlu1 %v22972_v36, %s20277_s26 }
0x15c1   : > { %11229 = vrot.lane.b32.xlu1 %v22966_v2, %s20277_s26 }
0x15c5   : > { %11227 = vrot.lane.b32.xlu1 %v22956_v25, %s20277_s26 }
0x15c9   : > { %11134 = vrot.lane.b32.xlu1 %v22972_v36, %s20278_s27 }
0x15cd   : > { %11225 = vrot.lane.b32.xlu1 %v22966_v2, %s20278_s27 }
0x15d1   : > { %11599 = vrot.lane.b32.xlu1 %v23158_v40, %s20278_s27 }
0x15d5   : > { %11597 = vrot.lane.b32.xlu1 %v23162_v28, %s20278_s27 }
0x15d9   : > { %11777 = vrot.lane.b32.xlu1 %v23174_v11, %s20278_s27 }
0x15dd   : > { %11775 = vrot.lane.b32.xlu1 %v23178_v7, %s20278_s27 }
0x15e1   : > { %11955 = vrot.lane.b32.xlu1 %v23203_v55, %s20278_s27 }
0x15ea   : > { %v9885_v4 = vpop.xlane.xlu0 %9884 }
0x15eb   : > { %19953 = vrcp.f32 %v9885_v4 }
0x15ec   : > { %v9882_v48 = vpop.xlane.xlu1 %9881 }
0x15ed   : > { %19955 = vrcp.f32 %v9882_v48 }
0x15ee   : > { %v9897_v58 = vpop.xlane.xlu0 %9896 }
0x15ef   : > { %19957 = vrcp.f32 %v9897_v58 }
0x15f0   : > { %v9894_v60 = vpop.xlane.xlu1 %9893 }
0x15f1   : > { %19959 = vrcp.f32 %v9894_v60 }
0x15f2   : > { %v9879_v22 = vpop.xlane.xlu0 %9878 }
0x15f3   : > { %19961 = vrcp.f32 %v9879_v22 }
0x15f4   : > { %v9876_v51 = vpop.xlane.xlu1 %9875 }
0x15f5   : > { %19963 = vrcp.f32 %v9876_v51 }
0x15f6   : > { %v9891_v55 = vpop.xlane.xlu0 %9890 }
0x15f7   : > { %19965 = vrcp.f32 %v9891_v55 }
0x15f8   : > { %v19954_v59 = vpop.eup %19953 }
0x15f9   : > { %v9925_v31 = vmul.f32 %v19954_v59, %v23345_v5 }
0x15fa   : > { %v19956_v19 = vpop.eup %19955  ;;  %v10862_v51 = vpop.permute.xlu0 %10861 }
0x15fb   : > { %v9924_v7 = vmul.f32 %v19956_v19, %v23351_v54 }
0x15fc   : > { %v19958_v11 = vpop.eup %19957 }
0x15fd   : > { %19044 = vmatprep.mubr.msk.f32.mxu1 %vm1551_vm2, %v9924_v7  ;;  %v9929_v22 = vmul.f32 %v19958_v11, %v23356_v29 }
0x15fe   : > { %v19960_v4 = vpop.eup %19959  ;;  %19045 = vmatmul.mubr.msk.f32.vlgmr.msra.gmra.mxu1 %vm1551_vm2, %v9925_v31  ;;  %v23472_v59 = vpop.permute.xlu0 %10954 }
0x15ff   : > { %19055 = vmatpush3.msra.mxu1 %v23227_v52  ;;  %v9928_v60 = vmul.f32 %v19960_v4, %v23360_v9 }
0x1600   : > { %19056 = vmatprep.subr.mxu1 %v23231_v15  ;;  %v19962_v48 = vpop.eup %19961 }
0x1601   : > { %19057 = vmatpush3.msra.mxu1 %v23231_v15  ;;  %19058 = vmatprep.mubr.msk.f32.mxu1 %vm1551_vm2, %v9928_v60  ;;  %v9923_v11 = vmul.f32 %v19962_v48, %v23364_v44 }
0x1602   : > { %v19964_v19 = vpop.eup %19963  ;;  %19068 = vmatprep.subr.msk.mxu1 %vm842_vm1, %v10684_v14  ;;  %19059 = vmatmul.mubr.msk.f32.vlgmr.msra.gmra.mxu1 %vm1551_vm2, %v9929_v22  ;;  %v10951_v29 = vpop.permute.xlu0 %10950 }
0x1603   : > { %19069 = vmatpush3.xpose.msk.msra.mxu1 %vm842_vm1, %v10684_v14  ;;  %19072 = vmatprep.mubr.msk.f32.mxu1 %vm842_vm1, %v10678_v3  ;;  %v9922_v31 = vmul.f32 %v19964_v19, %v23368_v6 }
0x1604   : > { %19070 = vmatprep.subr.msk.mxu1 %vm842_vm1, %v23419_v0  ;;  %v19966_v4 = vpop.eup %19965 }
0x1605   : > { %v23469_v7 = vpop.f32.mrf.mxu1  ;;  %19037 = vmatprep.mubr.msk.f32.mxu0 %vm1551_vm2, %v9922_v31 }
0x1606   : > { %19038 = vmatmul.mubr.msk.f32.vlgmr.msra.gmra.mxu0 %vm1551_vm2, %v9923_v11  ;;  %v11042_v6 = vpop.permute.xlu0 %11041 }
0x1607   : > { %19048 = vmatpush3.msra.mxu0 %v23213_v24  ;;  %19071 = vmatpush3.xpose.msk.msra.mxu1 %vm842_vm1, %v23419_v0  ;;  %v23478_v5 = vpop.f32.mrf.mxu1 }
0x1608   : > { %19049 = vmatprep.subr.mxu0 %v23219_v27  ;;  %19082 = vmatprep.subr.msk.mxu1 %vm842_vm1, %v10866_v18 }
0x1609   : > { %19050 = vmatpush3.msra.mxu0 %v23219_v27 }
0x160a   : > { %19061 = vmatprep.subr.msk.mxu0 %vm842_vm1, %v23191_v47  ;;  %19073 = vmatmul.mubr.msk.f32.vlgmr.msra.gmra.mxu1 %vm842_vm1, %v10680_v20  ;;  %v11044_v0 = vpop.permute.xlu0 %11043 }
0x160b   : > { %19083 = vmatpush3.xpose.msk.msra.mxu1 %vm842_vm1, %v10866_v18  ;;  %19086 = vmatprep.mubr.msk.f32.mxu1 %vm842_vm1, %v10860_v13 }
0x160c   : > { %19084 = vmatprep.subr.msk.mxu1 %vm842_vm1, %v10864_v61 }
0x160e   : > { %v11137_v20 = vpop.permute.xlu0 %11136 }
0x160f   : > { %19085 = vmatpush3.xpose.msk.msra.mxu1 %vm842_vm1, %v10864_v61  ;;  %v23492_v9 = vpop.f32.mrf.mxu1 }
0x1611   : > { %v23494_v44 = vpop.f32.mrf.mxu1 }
0x1612   : > { %25667 = vst [vmem:[#allocation32_spill] sm:$0xff] %v23494_v44  ;;  %19087 = vmatmul.mubr.msk.f32.vlgmr.msra.gmra.mxu1 %vm842_vm1, %v10862_v51  ;;  %v11133_v61 = vpop.permute.xlu0 %11132  ;;  %v9927_v51 = vmul.f32 %v19966_v4, %v23372_v45 }
0x1613   : > { %19100 = vmatprep.mubr.msk.f32.mxu1 %vm842_vm1, %v11042_v6 }
0x1615   : > { %v23565_v11 = vpop.f32.mrf.mxu0 }
0x1616   : > { %v11224_v60 = vpop.permute.xlu0 %11223 }
0x1629   : > { %v9888_v3 = vpop.xlane.xlu1 %9887 }
0x162a   : > { %19967 = vrcp.f32 %v9888_v3 }
0x162d   : > { %v11048_v18 = vpop.permute.xlu1 %11047 }
0x162e   : > { %19096 = vmatprep.subr.msk.mxu1 %vm842_vm1, %v11048_v18 }
0x162f   : > { %19097 = vmatpush3.xpose.msk.msra.mxu1 %vm842_vm1, %v11048_v18 }
0x1631   : > { %v11046_v13 = vpop.permute.xlu1 %11045 }
0x1632   : > { %19098 = vmatprep.subr.msk.mxu1 %vm842_vm1, %v11046_v13 }
0x1633   : > { %19099 = vmatpush3.xpose.msk.msra.mxu1 %vm842_vm1, %v11046_v13 }
0x1635   : > { %v10953_v58 = vpop.permute.xlu1 %10952 }
0x1636   : > { %19101 = vmatmul.mubr.msk.f32.vlgmr.msra.gmra.mxu1 %vm842_vm1, %v11044_v0  ;;  %v23573_v0 = vpop.f32.mrf.mxu0 }
0x1637   : > { %v19968_v55 = vpop.eup %19967  ;;  %19114 = vmatprep.mubr.msk.f32.mxu1 %vm842_vm1, %v11224_v60 }
0x1638   : > { %v9926_v22 = vmul.f32 %v19968_v55, %v23393_v1 }
0x1639   : > { %v11139_v48 = vpop.permute.xlu1 %11138 }
0x163a   : > { %19051 = vmatprep.mubr.msk.f32.mxu0 %vm1551_vm2, %v9926_v22 }
0x163b   : > { %19052 = vmatmul.mubr.msk.f32.vlgmr.msra.gmra.mxu0 %vm1551_vm2, %v9927_v51 }
0x163c   : > { %19062 = vmatpush3.xpose.msk.msra.mxu0 %vm842_vm1, %v23191_v47  ;;  %19065 = vmatprep.mubr.msk.f32.mxu0 %vm842_vm1, %v23423_v34 }
0x163d   : > { %19063 = vmatprep.subr.msk.mxu0 %vm842_vm1, %v23380_v57  ;;  %v11230_v19 = vpop.permute.xlu1 %11229 }
0x163e   : > { %19110 = vmatprep.subr.msk.mxu1 %vm842_vm1, %v11230_v19 }
0x163f   : > { %19111 = vmatpush3.xpose.msk.msra.mxu1 %vm842_vm1, %v11230_v19 }
0x1640   : > { %19064 = vmatpush3.xpose.msk.msra.mxu0 %vm842_vm1, %v23380_v57 }
0x1641   : > { %19075 = vmatprep.subr.msk.mxu0 %vm842_vm1, %v23431_v33  ;;  %v11228_v45 = vpop.permute.xlu1 %11227 }
0x1642   : > { %19112 = vmatprep.subr.msk.mxu1 %vm842_vm1, %v11228_v45 }
0x1643   : > { %19066 = vmatmul.mubr.msk.f32.vlgmr.msra.gmra.mxu0 %vm842_vm1, %v23427_v42  ;;  %19113 = vmatpush3.xpose.msk.msra.mxu1 %vm842_vm1, %v11228_v45  ;;  %v11511_v42 = vpop.permute.xlu0 %11510 }
0x1644   : > { %19076 = vmatpush3.xpose.msk.msra.mxu0 %vm842_vm1, %v23431_v33  ;;  %19079 = vmatprep.mubr.msk.f32.mxu0 %vm842_vm1, %v23443_v12 }
0x1645   : > { %19077 = vmatprep.subr.msk.mxu0 %vm842_vm1, %v23439_v56  ;;  %v11135_v47 = vpop.permute.xlu1 %11134 }
0x1648   : > { %19078 = vmatpush3.xpose.msk.msra.mxu0 %vm842_vm1, %v23439_v56  ;;  %v11509_v56 = vpop.permute.xlu0 %11508 }
0x1649   : > { %19089 = vmatprep.subr.msk.mxu0 %vm842_vm1, %v23449_v46  ;;  %v11226_v57 = vpop.permute.xlu1 %11225 }
0x164a   : > { %19115 = vmatmul.mubr.msk.f32.vlgmr.msra.gmra.mxu1 %vm842_vm1, %v11226_v57 }
0x164b   : > { %19080 = vmatmul.mubr.msk.f32.vlgmr.msra.gmra.mxu0 %vm842_vm1, %v23447_v43  ;;  %v23559_v43 = vpop.f32.mrf.mxu1 }
0x164c   : > { %19090 = vmatpush3.xpose.msk.msra.mxu0 %vm842_vm1, %v23449_v46  ;;  %19093 = vmatprep.mubr.msk.f32.mxu0 %vm842_vm1, %v10951_v29  ;;  %v23556_v12 = vpop.permute.xlu0 %11688  ;;  %25668 = vst [vmem:[#allocation6_spill] sm:$0xff] %v23559_v43 }
0x164d   : > { %19091 = vmatprep.subr.msk.mxu0 %vm842_vm1, %v23472_v59  ;;  %v11600_v1 = vpop.permute.xlu1 %11599  ;;  %v23561_v46 = vpop.f32.mrf.mxu1 }
0x164e   : > { %19124 = vmatprep.subr.mxu1 %v11600_v1  ;;  %25669 = vst [vmem:[#allocation34_spill] sm:$0xff] %v23561_v46 }
0x164f   : > { %19125 = vmatpush3.msra.mxu1 %v11600_v1 }
0x1650   : > { %19092 = vmatpush3.xpose.msk.msra.mxu0 %vm842_vm1, %v23472_v59 }
0x1651   : > { %19103 = vmatprep.subr.msk.mxu0 %vm842_vm1, %v11139_v48  ;;  %v11598_v34 = vpop.permute.xlu1 %11597 }
0x1652   : > { %19126 = vmatprep.subr.mxu1 %v11598_v34 }
0x1653   : > { %19094 = vmatmul.mubr.msk.f32.vlgmr.msra.gmra.mxu0 %vm842_vm1, %v10953_v58  ;;  %19127 = vmatpush3.msra.mxu1 %v11598_v34 }
0x1654   : > { %19104 = vmatpush3.xpose.msk.msra.mxu0 %vm842_vm1, %v11139_v48  ;;  %19107 = vmatprep.mubr.msk.f32.mxu0 %vm842_vm1, %v11133_v61 }
0x1655   : > { %19105 = vmatprep.subr.msk.mxu0 %vm842_vm1, %v11137_v20  ;;  %v23551_v33 = vpop.permute.xlu1 %11777 }
0x1656   : > { %19138 = vmatprep.subr.mxu1 %v23551_v33 }
0x1658   : > { %19106 = vmatpush3.xpose.msk.msra.mxu0 %vm842_vm1, %v11137_v20 }
0x1659   : > { %19117 = vmatprep.subr.mxu0 %v11511_v42 }
0x165b   : > { %19108 = vmatmul.mubr.msk.f32.vlgmr.msra.gmra.mxu0 %vm842_vm1, %v11135_v47 }
0x165c   : > { %19118 = vmatpush3.msra.mxu0 %v11511_v42 }
0x165d   : > { %19119 = vmatprep.subr.mxu0 %v11509_v56 }
0x165e   : > { %19120 = vmatpush3.msra.mxu0 %v11509_v56 }
0x165f   : > { %19131 = vmatprep.subr.mxu0 %v23556_v12 }
0x16be   : > { %v23563_v31 = vpop.f32.mrf.mxu1 }
0x16bf   : > { %25670 = vst [vmem:[#allocation11_spill] sm:$0xff] %v23563_v31 }
0x16c0   : > { %v23567_v59 = vpop.f32.mrf.mxu1 }
0x16c1   : > { %25671 = vst [vmem:[#allocation36_spill] sm:$0xff] %v23567_v59 }
0x16c2   : > { %v23571_v6 = vpop.f32.mrf.mxu1 }
0x16c3   : > { %25672 = vst [vmem:[#allocation24_spill] sm:$0xff] %v23571_v6 }
0x16c4   : > { %v23575_v3 = vpop.f32.mrf.mxu1 }
0x16c5   : > { %25673 = vst [vmem:[#allocation38_spill] sm:$0xff] %v23575_v3 }
0x16c6   : > { %v23579_v18 = vpop.f32.mrf.mxu0 }
0x16c7   : > { %25674 = vst [vmem:[#allocation27_spill] sm:$0xff] %v23579_v18 }
0x16c8   : > { %v23581_v61 = vpop.f32.mrf.mxu0 }
0x16c9   : > { %25675 = vst [vmem:[#allocation40_spill] sm:$0xff] %v23581_v61 }
0x16ca   : > { %v19074_v58 = vpop.f32.mrf.mxu1 }
0x16cb   : > { %v23586_v4 = vmul.f32 %v19074_v58, %v23140_v49 }
0x16cc   : > { %v10759_v60 = vpop.f32.mrf.mxu1 }
0x16cd   : > { %v23589_v55 = vmul.f32 %v23145_v23, %v10759_v60  ;;  %v11339_v22 = vsel %vm1551_vm2, %v23586_v4, -inf }
0x16ce   : > { %11340 = vmax.xlane.f32.xlu0 %v11339_v22 }
0x16cf   : > { %v11336_v51 = vsel %vm1551_vm2, %v23589_v55, -inf }
0x16d2   : > { %11337 = vmax.xlane.f32.xlu0 %v11336_v51  ;;  %v19088_v48 = vpop.f32.mrf.mxu1 }
0x16d3   : > { %v23596_v19 = vmul.f32 %v19088_v48, %v23140_v49 }
0x16d4   : > { %v10941_v45 = vpop.f32.mrf.mxu1 }
0x16d5   : > { %v23599_v47 = vmul.f32 %v23145_v23, %v10941_v45  ;;  %v11351_v57 = vsel %vm1551_vm2, %v23596_v19, -inf }
0x16d6   : > { %11352 = vmax.xlane.f32.xlu0 %v11351_v57 }
0x16d7   : > { %v11348_v1 = vsel %vm1551_vm2, %v23599_v47, -inf }
0x16d8   : > { %11349 = vmax.xlane.f32.xlu1 %v11348_v1 }
0x16f6   : > { %v19102_v34 = vpop.f32.mrf.mxu1 }
0x16f7   : > { %v23606_v42 = vmul.f32 %v19102_v34, %v23140_v49 }
0x16f8   : > { %v11123_v56 = vpop.f32.mrf.mxu1 }
0x16f9   : > { %v23609_v58 = vmul.f32 %v23145_v23, %v11123_v56  ;;  %v11363_v60 = vsel %vm1551_vm2, %v23606_v42, -inf }
0x16fa   : > { %11364 = vmax.xlane.f32.xlu0 %v11363_v60 }
0x16fb   : > { %v23613_v22 = vpop.f32.mrf.mxu0  ;;  %v11360_v51 = vsel %vm1551_vm2, %v23609_v58, -inf }
0x16fc   : > { %25676 = vst [vmem:[#allocation29_spill] sm:$0xff] %v23613_v22  ;;  %11361 = vmax.xlane.f32.xlu1 %v11360_v51 }
0x16fd   : > { %v23617_v48 = vpop.f32.mrf.mxu0 }
0x16fe   : > { %25677 = vst [vmem:[#allocation41_spill] sm:$0xff] %v23617_v48  ;;  %v23683_v48 = vpop.permute.xlu0 %11686 }
0x1703   : > { %v19067_v57 = vpop.f32.mrf.mxu0 }
0x1704   : > { %v23633_v45 = vmul.f32 %v19067_v57, %v23140_v49 }
0x1705   : > { %v10668_v1 = vpop.f32.mrf.mxu0 }
0x1706   : > { %v23625_v60 = vmul.f32 %v23145_v23, %v10668_v1  ;;  %v11333_v57 = vsel %vm1551_vm2, %v23633_v45, -inf }
0x1708   : > { %v11330_v1 = vsel %vm1551_vm2, %v23625_v60, -inf }
0x170a   : > { %v19116_v34 = vpop.f32.mrf.mxu1 }
0x170b   : > { %v23622_v56 = vmul.f32 %v19116_v34, %v23140_v49  ;;  %v19081_v20 = vpop.f32.mrf.mxu0 }
0x170c   : > { %v11305_v29 = vpop.f32.mrf.mxu1  ;;  %v23638_v54 = vmul.f32 %v19081_v20, %v23140_v49  ;;  %v23655_v20 = vld [vmem:[%s25417_s2 + $0x10] sm:$0xff] }
0x170d   : > { %v23628_v13 = vmul.f32 %v23145_v23, %v11305_v29  ;;  %v11375_v51 = vsel %vm1551_vm2, %v23622_v56, -inf  ;;  %v10850_v34 = vpop.f32.mrf.mxu0  ;;  %25678 = vst [vmem:[#allocation42_spill] sm:$0xff] %v23655_v20 }
0x170e   : > { %11376 = vmax.xlane.f32.xlu0 %v11375_v51  ;;  %v23643_v29 = vmul.f32 %v23145_v23, %v10850_v34 }
0x170f   : > { %v11372_v14 = vsel %vm1551_vm2, %v23628_v13, -inf }
0x1710   : > { %11373 = vmax.xlane.f32.xlu1 %v11372_v14  ;;  %v11345_v14 = vsel %vm1551_vm2, %v23638_v54, -inf  ;;  %v11342_v34 = vsel %vm1551_vm2, %v23643_v29, -inf }
0x1712   : > { %11331 = vmax.xlane.f32.xlu0 %v11330_v1 }
0x1713   : > { %v19095_v3 = vpop.f32.mrf.mxu0 }
0x1714   : > { %11334 = vmax.xlane.f32.xlu1 %v11333_v57  ;;  %v23648_v51 = vmul.f32 %v19095_v3, %v23140_v49  ;;  %v23669_v57 = vld [vmem:[%s25417_s2 + $0x18] sm:$0xff] }
0x1715   : > { %v11032_v6 = vpop.f32.mrf.mxu0  ;;  %25679 = vst [vmem:[#allocation43_spill] sm:$0xff] %v23669_v57 }
0x1716   : > { %11346 = vmax.xlane.f32.xlu0 %v11345_v14  ;;  %v23658_v23 = vmul.f32 %v23655_v20, %v11032_v6  ;;  %v11357_v49 = vsel %vm1551_vm2, %v23648_v51, -inf }
0x1718   : > { %11343 = vmax.xlane.f32.xlu1 %v11342_v34  ;;  %v11354_v1 = vsel %vm1551_vm2, %v23658_v23, -inf }
0x171a   : > { %11358 = vmax.xlane.f32.xlu0 %v11357_v49 }
0x171b   : > { %v19109_v3 = vpop.f32.mrf.mxu0 }
0x171c   : > { %v23672_v6 = vmul.f32 %v23669_v57, %v19109_v3  ;;  %11355 = vmax.xlane.f32.xlu1 %v11354_v1  ;;  %v23687_v1 = vpop.permute.xlu0 %11866  ;;  %v23689_v57 = vpop.permute.xlu1 %11775 }
0x171d   : > { %v11214_v34 = vpop.f32.mrf.mxu0 }
0x171e   : > { %v11369_v14 = vsel %vm1551_vm2, %v23672_v6, -inf  ;;  %v23681_v49 = vmul.f32 %v23655_v20, %v11214_v34 }
0x171f   : > { %11370 = vmax.xlane.f32.xlu0 %v11369_v14 }
0x1720   : > { %v11366_v3 = vsel %vm1551_vm2, %v23681_v49, -inf  ;;  %v23693_v34 = vpop.permute.xlu1 %11955 }
0x172d   : > { %11953 = vrot.lane.b32.xlu1 %v23207_v17, %s20278_s27 }
0x1735   : > { %11864 = vrot.lane.b32.xlu0 %v23195_v39, %s20278_s27 }
0x1751   : > { %11367 = vmax.xlane.f32.xlu1 %v11366_v3 }
0x1757   : > { %v11341_v14 = vpop.xlane.xlu0 %11340 }
0x1758   : > { %v11381_v17 = vsub.f32 %v23586_v4, %v11341_v14 }
0x175a   : > { %v11400_v22 = vmul.f32 1.442695, %v11381_v17 }
0x175b   : > { %v11338_v59 = vpop.xlane.xlu0 %11337 }
0x175c   : > { %19969 = vpow2.f32 %v11400_v22  ;;  %v11380_v39 = vsub.f32 %v23589_v55, %v11338_v59 }
0x175e   : > { %v11398_v20 = vmul.f32 1.442695, %v11380_v39 }
0x175f   : > { %v11353_v31 = vpop.xlane.xlu0 %11352 }
0x1760   : > { %19971 = vpow2.f32 %v11398_v20  ;;  %v11385_v61 = vsub.f32 %v23596_v19, %v11353_v31 }
0x1761   : > { %v11350_v3 = vpop.xlane.xlu1 %11349 }
0x1762   : > { %v11408_v18 = vmul.f32 1.442695, %v11385_v61  ;;  %v11384_v43 = vsub.f32 %v23599_v47, %v11350_v3 }
0x1764   : > { %19973 = vpow2.f32 %v11408_v18  ;;  %v11406_v46 = vmul.f32 1.442695, %v11384_v43 }
0x1766   : > { %19975 = vpow2.f32 %v11406_v46 }
0x1769   : > { %v23697_v4 = vpop.eup %19969 }
0x176a   : > { %v11435_v17 = vsel %vm1551_vm2, %v23697_v4, 0.0 }
0x176b   : > { %11436 = vadd.xlane.f32.xlu0 %v11435_v17 }
0x176d   : > { %v23701_v59 = vpop.eup %19971 }
0x176e   : > { %v11432_v39 = vsel %vm1551_vm2, %v23701_v59, 0.0 }
0x176f   : > { %11433 = vadd.xlane.f32.xlu1 %v11432_v39 }
0x1771   : > { %v23705_v31 = vpop.eup %19973 }
0x1772   : > { %v11447_v61 = vsel %vm1551_vm2, %v23705_v31, 0.0 }
0x1773   : > { %v23709_v18 = vpop.eup %19975  ;;  %11448 = vadd.xlane.f32.xlu0 %v11447_v61 }
0x1774   : > { %v11444_v43 = vsel %vm1551_vm2, %v23709_v18, 0.0 }
0x1775   : > { %11445 = vadd.xlane.f32.xlu1 %v11444_v43 }
0x1783   : > { %v11365_v46 = vpop.xlane.xlu0 %11364 }
0x1784   : > { %v11389_v55 = vsub.f32 %v23606_v42, %v11365_v46 }
0x1785   : > { %v11362_v19 = vpop.xlane.xlu1 %11361 }
0x1786   : > { %v11416_v47 = vmul.f32 1.442695, %v11389_v55  ;;  %v11388_v22 = vsub.f32 %v23609_v58, %v11362_v19 }
0x1788   : > { %19977 = vpow2.f32 %v11416_v47  ;;  %v11414_v20 = vmul.f32 1.442695, %v11388_v22 }
0x178a   : > { %19979 = vpow2.f32 %v11414_v20 }
0x1795   : > { %v23715_v14 = vpop.eup %19977 }
0x1796   : > { %v11459_v3 = vsel %vm1551_vm2, %v23715_v14, 0.0 }
0x1797   : > { %v23719_v17 = vpop.eup %19979  ;;  %11460 = vadd.xlane.f32.xlu0 %v11459_v3  ;;  %v11377_v39 = vpop.xlane.xlu0 %11376 }
0x1798   : > { %v11393_v61 = vsub.f32 %v23622_v56, %v11377_v39  ;;  %v11456_v42 = vsel %vm1551_vm2, %v23719_v17, 0.0 }
0x1799   : > { %11457 = vadd.xlane.f32.xlu1 %v11456_v42  ;;  %v11374_v43 = vpop.xlane.xlu1 %11373 }
0x179a   : > { %v11424_v58 = vmul.f32 1.442695, %v11393_v61  ;;  %v11392_v46 = vsub.f32 %v23628_v13, %v11374_v43 }
0x179b   : > { %v11332_v55 = vpop.xlane.xlu0 %11331 }
0x179c   : > { %19981 = vpow2.f32 %v11424_v58  ;;  %v11422_v19 = vmul.f32 1.442695, %v11392_v46  ;;  %v11378_v47 = vsub.f32 %v23625_v60, %v11332_v55 }
0x179d   : > { %v11335_v22 = vpop.xlane.xlu1 %11334 }
0x179e   : > { %19983 = vpow2.f32 %v11422_v19  ;;  %v11394_v20 = vmul.f32 1.442695, %v11378_v47  ;;  %v11379_v3 = vsub.f32 %v23633_v45, %v11335_v22 }
0x179f   : > { %v11347_v44 = vpop.xlane.xlu0 %11346 }
0x17a0   : > { %v11396_v56 = vmul.f32 1.442695, %v11379_v3  ;;  %v11383_v39 = vsub.f32 %v23638_v54, %v11347_v44  ;;  %19985 = vpow2.f32 %v11394_v20 }
0x17a1   : > { %v11344_v19 = vpop.xlane.xlu1 %11343 }
0x17a2   : > { %19987 = vpow2.f32 %v11396_v56  ;;  %v11404_v42 = vmul.f32 1.442695, %v11383_v39  ;;  %v11382_v22 = vsub.f32 %v23643_v29, %v11344_v19 }
0x17a3   : > { %v11359_v47 = vpop.xlane.xlu0 %11358 }
0x17a4   : > { %19989 = vpow2.f32 %v11404_v42  ;;  %v11387_v3 = vsub.f32 %v23648_v51, %v11359_v47  ;;  %v11402_v39 = vmul.f32 1.442695, %v11382_v22 }
0x17a5   : > { %v11356_v20 = vpop.xlane.xlu1 %11355 }
0x17a6   : > { %v11386_v42 = vsub.f32 %v23658_v23, %v11356_v20  ;;  %19991 = vpow2.f32 %v11402_v39 }
0x17a8   : > { %v11371_v56 = vpop.xlane.xlu0 %11370 }
0x17a9   : > { %v23728_v61 = vpop.eup %19981 }
0x17aa   : > { %v11471_v13 = vsel %vm1551_vm2, %v23728_v61, 0.0 }
0x17ab   : > { %v23732_v43 = vpop.eup %19983  ;;  %11472 = vadd.xlane.f32.xlu1 %v11471_v13  ;;  %v11412_v13 = vmul.f32 1.442695, %v11387_v3 }
0x17ac   : > { %v11468_v45 = vsel %vm1551_vm2, %v23732_v43, 0.0  ;;  %v23777_v3 = vpop.permute.xlu0 %11864 }
0x17ad   : > { %v23734_v60 = vpop.eup %19985  ;;  %19993 = vpow2.f32 %v11412_v13 }
0x17ae   : > { %v11426_v46 = vsel %vm1551_vm2, %v23734_v60, 0.0 }
0x17af   : > { %v23738_v58 = vpop.eup %19987  ;;  %11469 = vadd.xlane.f32.xlu1 %v11468_v45  ;;  %v11391_v45 = vsub.f32 %v23672_v6, %v11371_v56 }
0x17b0   : > { %v11429_v54 = vsel %vm1551_vm2, %v23738_v58, 0.0 }
0x17b1   : > { %v23742_v44 = vpop.eup %19989  ;;  %11430 = vadd.xlane.f32.xlu0 %v11429_v54  ;;  %v11954_v54 = vpop.permute.xlu1 %11953 }
0x17b2   : > { %v11441_v55 = vsel %vm1551_vm2, %v23742_v44, 0.0 }
0x17b3   : > { %11427 = vadd.xlane.f32.xlu1 %v11426_v46  ;;  %v11410_v46 = vmul.f32 1.442695, %v11386_v42  ;;  %v23757_v51 = vpop.eup %19991 }
0x17b4   : > { %v11438_v23 = vsel %vm1551_vm2, %v23757_v51, 0.0 }
0x17b5   : > { %11442 = vadd.xlane.f32.xlu0 %v11441_v55  ;;  %v11420_v55 = vmul.f32 1.442695, %v11391_v45  ;;  %19995 = vpow2.f32 %v11410_v46 }
0x17b7   : > { %19997 = vpow2.f32 %v11420_v55 }
0x17ba   : > { %v23759_v19 = vpop.eup %19993 }
0x17bb   : > { %v11453_v47 = vsel %vm1551_vm2, %v23759_v19, 0.0 }
0x17c2   : > { %v23763_v6 = vpop.eup %19995 }
0x17c4   : > { %12133 = vrot.lane.b32.xlu1 %v23227_v52, %s20278_s27  ;;  %v23767_v22 = vpop.eup %19997 }
0x17cb   : > { %12044 = vrot.lane.b32.xlu0 %v23213_v24, %s20278_s27 }
0x17da   : > { %v11368_v52 = vpop.xlane.xlu1 %11367 }
0x17db   : > { %v11390_v24 = vsub.f32 %v23681_v49, %v11368_v52  ;;  %v11465_v49 = vsel %vm1551_vm2, %v23767_v22, 0.0 }
0x17dd   : > { %v11418_v29 = vmul.f32 1.442695, %v11390_v24  ;;  %v11450_v24 = vsel %vm1551_vm2, %v23763_v6, 0.0 }
0x17df   : > { %19999 = vpow2.f32 %v11418_v29 }
0x17e8   : > { %11439 = vadd.xlane.f32.xlu1 %v11438_v23 }
0x17ea   : > { %11454 = vadd.xlane.f32.xlu0 %v11453_v47 }
0x17ec   : > { %v23771_v52 = vpop.eup %19999  ;;  %11451 = vadd.xlane.f32.xlu1 %v11450_v24 }
0x17ed   : > { %v11462_v20 = vsel %vm1551_vm2, %v23771_v52, 0.0 }
0x17ee   : > { %11466 = vadd.xlane.f32.xlu0 %v11465_v49 }
0x17f0   : > { %11463 = vadd.xlane.f32.xlu1 %v11462_v20 }
0x17f4   : > { %v11437_v56 = vpop.xlane.xlu0 %11436 }
0x17f5   : > { %20001 = vrcp.f32 %v11437_v56 }
0x17f8   : > { %v11434_v39 = vpop.xlane.xlu1 %11433 }
0x17f9   : > { %20003 = vrcp.f32 %v11434_v39 }
0x17fc   : > { %v11449_v42 = vpop.xlane.xlu0 %11448 }
0x17fd   : > { %20005 = vrcp.f32 %v11449_v42 }
0x17fe   : > { %v11446_v13 = vpop.xlane.xlu1 %11445 }
0x17ff   : > { %20007 = vrcp.f32 %v11446_v13 }
0x1801   : > { %12131 = vrot.lane.b32.xlu1 %v23231_v15, %s20278_s27 }
0x1802   : > { %v20002_v45 = vpop.eup %20001 }
0x1803   : > { %v11493_v29 = vmul.f32 %v20002_v45, %v23697_v4 }
0x1804   : > { %12042 = vrot.lane.b32.xlu0 %v23219_v27, %s20278_s27 }
0x1805   : > { %12571 = vrot.lane.b32.xlu1 %v22936_v63, %s20279_s20 }
0x1806   : > { %v20004_v46 = vpop.eup %20003 }
0x1807   : > { %v11492_v55 = vmul.f32 %v20004_v46, %v23701_v59 }
0x1808   : > { %12480 = vrot.lane.b32.xlu0 %v22938_v53, %s20279_s20 }
0x1809   : > { %19128 = vmatprep.mubr.msk.f32.mxu1 %vm1551_vm2, %v11492_v55  ;;  %12569 = vrot.lane.b32.xlu1 %v22930_v8, %s20279_s20  ;;  %v25680_v55 = vld [vmem:[#allocation16_spill] sm:$0xff] }
0x180a   : > { %19129 = vmatmul.mubr.msk.f32.vlgmr.msra.gmra.mxu1 %vm1551_vm2, %v11493_v29  ;;  %v20006_v23 = vpop.eup %20005  ;;  %v25684_v29 = vld [vmem:[#allocation30_spill] sm:$0xff] }
0x180b   : > { %19139 = vmatpush3.msra.mxu1 %v23551_v33  ;;  %v11497_v59 = vmul.f32 %v20006_v23, %v23705_v31 }
0x180c   : > { %v20008_v47 = vpop.eup %20007  ;;  %19140 = vmatprep.subr.mxu1 %v23689_v57  ;;  %12478 = vrot.lane.b32.xlu0 %v22932_v30, %s20279_s20 }
0x180d   : > { %19141 = vmatpush3.msra.mxu1 %v23689_v57  ;;  %12476 = vrot.lane.b32.xlu1 %v22938_v53, %s20280_s21  ;;  %v11496_v4 = vmul.f32 %v20008_v47, %v23709_v18 }
0x180e   : > { %19152 = vmatprep.subr.mxu1 %v23693_v34 }
0x180f   : > { %19142 = vmatprep.mubr.msk.f32.mxu1 %vm1551_vm2, %v11496_v4 }
0x1810   : > { %19143 = vmatmul.mubr.msk.f32.vlgmr.msra.gmra.mxu1 %vm1551_vm2, %v11497_v59  ;;  %12474 = vrot.lane.b32.xlu0 %v22932_v30, %s20280_s21 }
0x1811   : > { %19153 = vmatpush3.msra.mxu1 %v23693_v34  ;;  %12662 = vrot.lane.b32.xlu1 %v22946_v38, %s20279_s20 }
0x1812   : > { %19154 = vmatprep.subr.mxu1 %v11954_v54 }
0x1813   : > { %19155 = vmatpush3.msra.mxu1 %v11954_v54 }
0x1814   : > { %12565 = vrot.lane.b32.xlu0 %v22930_v8, %s20280_s21 }
0x1815   : > { %12753 = vrot.lane.b32.xlu1 %v22944_v35, %s20279_s20 }
0x1818   : > { %12567 = vrot.lane.b32.xlu0 %v22936_v63, %s20280_s21 }
0x1819   : > { %12751 = vrot.lane.b32.xlu1 %v22940_v62, %s20279_s20 }
0x181c   : > { %12660 = vrot.lane.b32.xlu0 %v22942_v26, %s20279_s20 }
0x181d   : > { %12658 = vrot.lane.b32.xlu1 %v22946_v38, %s20280_s21 }
0x1820   : > { %v11461_v33 = vpop.xlane.xlu0 %11460  ;;  %12656 = vrot.lane.b32.xlu0 %v22942_v26, %s20280_s21 }
0x1821   : > { %12844 = vrot.lane.b32.xlu1 %v22954_v10, %s20279_s20  ;;  %20009 = vrcp.f32 %v11461_v33 }
0x1822   : > { %v11458_v57 = vpop.xlane.xlu1 %11457 }
0x1823   : > { %20011 = vrcp.f32 %v11458_v57 }
0x1824   : > { %12747 = vrot.lane.b32.xlu0 %v22940_v62, %s20280_s21 }
0x1825   : > { %12935 = vrot.lane.b32.xlu1 %v22952_v41, %s20279_s20 }
0x1828   : > { %12749 = vrot.lane.b32.xlu0 %v22944_v35, %s20280_s21 }
0x1829   : > { %12933 = vrot.lane.b32.xlu1 %v22948_v21, %s20279_s20 }
0x182c   : > { %12842 = vrot.lane.b32.xlu0 %v22950_v37, %s20279_s20 }
0x182d   : > { %12840 = vrot.lane.b32.xlu1 %v22954_v10, %s20280_s21 }
0x182e   : > { %v20010_v34 = vpop.eup %20009 }
0x182f   : > { %v11501_v54 = vmul.f32 %v20010_v34, %v23715_v14 }
0x1830   : > { %v20012_v31 = vpop.eup %20011  ;;  %12838 = vrot.lane.b32.xlu0 %v22950_v37, %s20280_s21 }
0x1831   : > { %13026 = vrot.lane.b32.xlu1 %v22972_v36, %s20279_s20  ;;  %v11500_v18 = vmul.f32 %v20012_v31, %v23719_v17 }
0x1833   : > { %19156 = vmatprep.mubr.msk.f32.mxu1 %vm1551_vm2, %v11500_v18  ;;  %v17231_v18 = vld [vmem:[%s25419_s4 + $0x10] sm:$0xf] }
0x1834   : > { %12929 = vrot.lane.b32.xlu0 %v22948_v21, %s20280_s21  ;;  %19157 = vmatmul.mubr.msk.f32.vlgmr.msra.gmra.mxu1 %vm1551_vm2, %v11501_v54  ;;  %v11473_v24 = vpop.xlane.xlu1 %11472 }
0x1835   : > { %13117 = vrot.lane.b32.xlu1 %v22966_v2, %s20279_s20 }
0x1838   : > { %12931 = vrot.lane.b32.xlu0 %v22952_v41, %s20280_s21  ;;  %v11470_v49 = vpop.xlane.xlu1 %11469 }
0x1839   : > { %20013 = vrcp.f32 %v11470_v49  ;;  %13115 = vrot.lane.b32.xlu1 %v22956_v25, %s20279_s20 }
0x183a   : > { %v11431_v14 = vpop.xlane.xlu0 %11430 }
0x183b   : > { %20015 = vrcp.f32 %v11431_v14  ;;  %v12375_v14 = vsel %vm4048_vm3, %v17231_v18, 0 }
0x183c   : > { %13024 = vrot.lane.b32.xlu0 %v22960_v16, %s20279_s20  ;;  %v11428_v17 = vpop.xlane.xlu1 %11427 }
0x183d   : > { %20017 = vrcp.f32 %v11428_v17  ;;  %13022 = vrot.lane.b32.xlu1 %v22972_v36, %s20280_s21 }
0x183e   : > { %v11443_v23 = vpop.xlane.xlu0 %11442  ;;  %20019 = vrcp.f32 %v11473_v24 }
0x183f   : > { %20021 = vrcp.f32 %v11443_v23 }
0x1840   : > { %13020 = vrot.lane.b32.xlu0 %v22960_v16, %s20280_s21  ;;  %v12134_v20 = vpop.permute.xlu1 %12133 }
0x1841   : > { %13113 = vrot.lane.b32.xlu1 %v22966_v2, %s20280_s21  ;;  %19166 = vmatprep.subr.mxu1 %v12134_v20 }
0x1842   : > { %19167 = vmatpush3.msra.mxu1 %v12134_v20  ;;  %v12045_v47 = vpop.permute.xlu0 %12044 }
0x1844   : > { %13111 = vrot.lane.b32.xlu0 %v22956_v25, %s20280_s21 }
0x1845   : > { %13483 = vrot.lane.b32.xlu1 %v23158_v40, %s20280_s21 }
0x1846   : > { %v20014_v56 = vpop.eup %20013 }
0x1847   : > { %v11504_v39 = vmul.f32 %v20014_v56, %v23732_v43  ;;  %v25681_v43 = vld [vmem:[#allocation17_spill] sm:$0xff] }
0x1848   : > { %13396 = vrot.lane.b32.xlu0 %v23148_v50, %s20280_s21  ;;  %v20016_v42 = vpop.eup %20015 }
0x1849   : > { %13481 = vrot.lane.b32.xlu1 %v23162_v28, %s20280_s21  ;;  %19170 = vmatprep.mubr.msk.f32.mxu1 %vm1551_vm2, %v11504_v39  ;;  %v11491_v46 = vmul.f32 %v20016_v42, %v23738_v58  ;;  %v25683_v58 = vld [vmem:[#allocation21_spill] sm:$0xff]  ;;  %v25686_v42 = vpack.c.bf16 %v23469_v7, %v23478_v5  ;;  %v25687_v7 = vld [vmem:[#allocation32_spill] sm:$0xff] }
0x184a   : > { %v20018_v13 = vpop.eup %20017  ;;  %v25688_v5 = vpack.c.bf16 %v23492_v9, %v25687_v7  ;;  %v25700_v7 = vld [vmem:[#allocation24_spill] sm:$0xff] }
0x184b   : > { %v11490_v45 = vmul.f32 %v20018_v13, %v23734_v60  ;;  %v25682_v60 = vld [vmem:[#allocation18_spill] sm:$0xff]  ;;  %v20020_v34 = vpop.eup %20019 }
0x184c   : > { %13394 = vrot.lane.b32.xlu0 %v23153_v32, %s20280_s21  ;;  %v20022_v24 = vpop.eup %20021  ;;  %v11505_v49 = vmul.f32 %v20020_v34, %v23728_v61 }
0x184d   : > { %13657 = vrot.lane.b32.xlu1 %v25680_v55, %s20280_s21  ;;  %19121 = vmatprep.mubr.msk.f32.mxu0 %vm1551_vm2, %v11490_v45  ;;  %v11495_v39 = vmul.f32 %v20022_v24, %v23742_v44 }
0x184e   : > { %19122 = vmatmul.mubr.msk.f32.vlgmr.msra.gmra.mxu0 %vm1551_vm2, %v11491_v46  ;;  %v10580_v46 = vpack.c.bf16 %v23565_v11, %v23573_v0 }
0x184f   : > { %19132 = vmatpush3.msra.mxu0 %v23556_v12  ;;  %v25685_v12 = vld [vmem:[#allocation28_spill] sm:$0xff] }
0x1850   : > { %19133 = vmatprep.subr.mxu0 %v23683_v48  ;;  %13570 = vrot.lane.b32.xlu0 %v25681_v43, %s20280_s21 }
0x1851   : > { %19134 = vmatpush3.msra.mxu0 %v23683_v48  ;;  %13655 = vrot.lane.b32.xlu1 %v25682_v60, %s20280_s21 }
0x1852   : > { %19145 = vmatprep.subr.mxu0 %v23687_v1 }
0x1854   : > { %13568 = vrot.lane.b32.xlu0 %v25683_v58, %s20280_s21 }
0x1855   : > { %13831 = vrot.lane.b32.xlu1 %v25684_v29, %s20280_s21 }
0x1858   : > { %13744 = vrot.lane.b32.xlu0 %v25685_v12, %s20280_s21 }
0x1871   : > { %v11440_v4 = vpop.xlane.xlu1 %11439 }
0x1872   : > { %20023 = vrcp.f32 %v11440_v4 }
0x1873   : > { %v11455_v48 = vpop.xlane.xlu0 %11454 }
0x1874   : > { %20025 = vrcp.f32 %v11455_v48 }
0x1875   : > { %v11452_v59 = vpop.xlane.xlu1 %11451 }
0x1876   : > { %20027 = vrcp.f32 %v11452_v59  ;;  %v25689_v59 = vld [vmem:[#allocation34_spill] sm:$0xff] }
0x1877   : > { %v11467_v33 = vpop.xlane.xlu0 %11466 }
0x1878   : > { %20029 = vrcp.f32 %v11467_v33  ;;  %v25690_v33 = vld [vmem:[#allocation6_spill] sm:$0xff] }
0x1879   : > { %v11464_v57 = vpop.xlane.xlu1 %11463 }
0x187a   : > { %20031 = vrcp.f32 %v11464_v57  ;;  %v10581_v57 = vpack.c.bf16 %v25690_v33, %v25689_v59 }
0x187b   : > { %v12043_v31 = vpop.permute.xlu0 %12042 }
0x187d   : > { %v12132_v54 = vpop.permute.xlu1 %12131 }
0x187e   : > { %19168 = vmatprep.subr.mxu1 %v12132_v54 }
0x187f   : > { %v20024_v17 = vpop.eup %20023  ;;  %v23899_v20 = vpop.permute.xlu0 %12480  ;;  %19169 = vmatpush3.msra.mxu1 %v12132_v54 }
0x1880   : > { %19171 = vmatmul.mubr.msk.f32.vlgmr.msra.gmra.mxu1 %vm1551_vm2, %v11505_v49  ;;  %19550 = vmatprep.subr.msk.bf16.mxu1 %vm4048_vm3, %v17231_v18  ;;  %v11494_v56 = vmul.f32 %v20024_v17, %v23757_v51  ;;  %v25694_v49 = vld [vmem:[#allocation11_spill] sm:$0xff] }
0x1881   : > { %19192 = vmatpush3.bf16.msra.mxu1 %v12375_v14  ;;  %19193 = vmatprep.mubr.msk.bf16.mxu1 %vm842_vm1, %v25686_v42  ;;  %v12572_v61 = vpop.permute.xlu1 %12571  ;;  %v20026_v13 = vpop.eup %20025  ;;  %v25695_v14 = vld [vmem:[#allocation36_spill] sm:$0xff]  ;;  %v25698_v42 = vld [vmem:[#allocation41_spill] sm:$0xff] }
0x1882   : > { %19135 = vmatprep.mubr.msk.f32.mxu0 %vm1551_vm2, %v11494_v56  ;;  %19216 = vmatprep.subr.msk.mxu1 %vm842_vm1, %v12572_v61  ;;  %v11499_v11 = vmul.f32 %v20026_v13, %v23759_v19  ;;  %v25696_v17 = vpack.c.bf16 %v25694_v49, %v25695_v14 }
0x1883   : > { %v20028_v45 = vpop.eup %20027  ;;  %v23913_v23 = vpop.permute.xlu0 %12478  ;;  %19136 = vmatmul.mubr.msk.f32.vlgmr.msra.gmra.mxu0 %vm1551_vm2, %v11495_v39  ;;  %v25697_v39 = vld [vmem:[#allocation29_spill] sm:$0xff] }
0x1884   : > { %19146 = vmatpush3.msra.mxu0 %v23687_v1  ;;  %19194 = vmatmul.mubr.msk.bf16.vlgmr.msra.gmra.mxu1 %vm842_vm1, %v25688_v5  ;;  %v11498_v44 = vmul.f32 %v20028_v45, %v23763_v6  ;;  %v17232_v1 = vld [vmem:[%s25419_s4 + $0x14] sm:$0xf]  ;;  %v25701_v5 = vld [vmem:[#allocation38_spill] sm:$0xff] }
0x1885   : > { %19147 = vmatprep.subr.mxu0 %v23777_v3  ;;  %19197 = vmatprep.mubr.msk.bf16.mxu1 %vm842_vm1, %v10580_v46  ;;  %v12570_v51 = vpop.permute.xlu1 %12569  ;;  %v20030_v4 = vpop.eup %20029  ;;  %v12251_v48 = vsel %vm4048_vm3, %v17232_v1, 0 }
0x1886   : > { %19148 = vmatpush3.msra.mxu0 %v23777_v3  ;;  %19217 = vmatpush3.xpose.msk.msra.mxu1 %vm842_vm1, %v12572_v61  ;;  %v11503_v3 = vmul.f32 %v20030_v4, %v23767_v22  ;;  %v25699_v61 = vpack.c.bf16 %v25697_v39, %v25698_v42 }
0x1887   : > { %v20032_v0 = vpop.eup %20031  ;;  %19149 = vmatprep.mubr.msk.f32.mxu0 %vm1551_vm2, %v11498_v44  ;;  %19159 = vmatprep.subr.mxu0 %v12045_v47  ;;  %v23928_v9 = vpop.permute.xlu0 %12474  ;;  %v25702_v44 = vpack.c.bf16 %v25700_v7, %v25701_v5 }
0x1888   : > { %19218 = vmatprep.subr.msk.mxu1 %vm842_vm1, %v12570_v51  ;;  %19150 = vmatmul.mubr.msk.f32.vlgmr.msra.gmra.mxu0 %vm1551_vm2, %v11499_v11  ;;  %v11502_v19 = vmul.f32 %v20032_v0, %v23771_v52  ;;  %v25691_v52 = vld [vmem:[#allocation27_spill] sm:$0xff] }
0x1889   : > { %19160 = vmatpush3.msra.mxu0 %v12045_v47  ;;  %v23936_v6 = vpop.permute.xlu1 %12476  ;;  %v25692_v47 = vld [vmem:[#allocation40_spill] sm:$0xff] }
0x188a   : > { %19161 = vmatprep.subr.mxu0 %v12043_v31  ;;  %19219 = vmatpush3.xpose.msk.msra.mxu1 %vm842_vm1, %v12570_v51  ;;  %v25693_v18 = vpack.c.bf16 %v25691_v52, %v25692_v47 }
0x188b   : > { %19162 = vmatpush3.msra.mxu0 %v12043_v31  ;;  %19163 = vmatprep.mubr.msk.f32.mxu0 %vm1551_vm2, %v11502_v19  ;;  %v12566_v34 = vpop.permute.xlu0 %12565 }
0x188c   : > { %19549 = vmatprep.subr.msk.bf16.mxu0 %vm4048_vm3, %v17232_v1  ;;  %19164 = vmatmul.mubr.msk.f32.vlgmr.msra.gmra.mxu0 %vm1551_vm2, %v11503_v3 }
0x188d   : > { %19174 = vmatpush3.bf16.msra.mxu0 %v12251_v48  ;;  %19198 = vmatmul.mubr.msk.bf16.gmra.mxu1 %vm842_vm1, %v10581_v57  ;;  %v23947_v22 = vpop.permute.xlu1 %12662 }
0x188e   : > { %19209 = vmatprep.subr.msk.mxu0 %vm842_vm1, %v23899_v20  ;;  %19201 = vmatprep.mubr.msk.bf16.mxu1 %vm842_vm1, %v25693_v18 }
0x188f   : > { %v12568_v31 = vpop.permute.xlu0 %12567 }
0x1891   : > { %v12754_v54 = vpop.permute.xlu1 %12753 }
0x1892   : > { %19230 = vmatprep.subr.msk.mxu1 %vm842_vm1, %v12754_v54 }
0x1893   : > { %v23956_v24 = vpop.permute.xlu0 %12660 }
0x1895   : > { %19202 = vmatmul.mubr.msk.bf16.gmra.mxu1 %vm842_vm1, %v25696_v17  ;;  %v12752_v56 = vpop.permute.xlu1 %12751 }
0x1896   : > { %19205 = vmatprep.mubr.msk.bf16.mxu1 %vm842_vm1, %v25699_v61 }
0x1897   : > { %v23966_v13 = vpop.permute.xlu0 %12656 }
0x1899   : > { %v23968_v45 = vpop.permute.xlu1 %12658 }
0x189b   : > { %v12748_v46 = vpop.permute.xlu0 %12747 }
0x189d   : > { %19206 = vmatmul.mubr.msk.bf16.gmra.mxu1 %vm842_vm1, %v25702_v44  ;;  %v23974_v51 = vpop.permute.xlu1 %12844 }
0x189e   : > { %19220 = vmatprep.mubr.msk.f32.mxu1 %vm842_vm1, %v12566_v34 }
0x189f   : > { %v12750_v4 = vpop.permute.xlu0 %12749 }
0x18a1   : > { %v12936_v11 = vpop.permute.xlu1 %12935 }
0x18a3   : > { %v23977_v0 = vpop.permute.xlu0 %12842 }
0x18a5   : > { %19221 = vmatmul.mubr.msk.f32.vlgmr.msra.gmra.mxu1 %vm842_vm1, %v12568_v31  ;;  %v12934_v1 = vpop.permute.xlu1 %12933 }
0x18a6   : > { %19231 = vmatpush3.xpose.msk.msra.mxu1 %vm842_vm1, %v12754_v54  ;;  %19234 = vmatprep.mubr.msk.f32.mxu1 %vm842_vm1, %v12748_v46 }
0x18a7   : > { %19232 = vmatprep.subr.msk.mxu1 %vm842_vm1, %v12752_v56  ;;  %v23983_v19 = vpop.permute.xlu0 %12838 }
0x18a9   : > { %v23985_v3 = vpop.permute.xlu1 %12840 }
0x18aa   : > { %19233 = vmatpush3.xpose.msk.msra.mxu1 %vm842_vm1, %v12752_v56 }
0x18ab   : > { %19244 = vmatprep.subr.msk.mxu1 %vm842_vm1, %v12936_v11  ;;  %v12930_v48 = vpop.permute.xlu0 %12929 }
0x18ad   : > { %19235 = vmatmul.mubr.msk.f32.vlgmr.msra.gmra.mxu1 %vm842_vm1, %v12750_v4  ;;  %v23990_v59 = vpop.permute.xlu1 %13026 }
0x18ae   : > { %19245 = vmatpush3.xpose.msk.msra.mxu1 %vm842_vm1, %v12936_v11  ;;  %19248 = vmatprep.mubr.msk.f32.mxu1 %vm842_vm1, %v12930_v48 }
0x18af   : > { %19246 = vmatprep.subr.msk.mxu1 %vm842_vm1, %v12934_v1  ;;  %v12932_v33 = vpop.permute.xlu0 %12931 }
0x18b1   : > { %v13118_v57 = vpop.permute.xlu1 %13117 }
0x18b2   : > { %19247 = vmatpush3.xpose.msk.msra.mxu1 %vm842_vm1, %v12934_v1 }
0x18b3   : > { %19258 = vmatprep.subr.msk.mxu1 %vm842_vm1, %v13118_v57  ;;  %v23997_v34 = vpop.permute.xlu0 %13024 }
0x18b5   : > { %19249 = vmatmul.mubr.msk.f32.vlgmr.msra.gmra.mxu1 %vm842_vm1, %v12932_v33  ;;  %v13116_v52 = vpop.permute.xlu1 %13115 }
0x18b6   : > { %19259 = vmatpush3.xpose.msk.msra.mxu1 %vm842_vm1, %v13118_v57 }
0x18b7   : > { %19260 = vmatprep.subr.msk.mxu1 %vm842_vm1, %v13116_v52  ;;  %v24002_v47 = vpop.permute.xlu0 %13020 }
0x18b9   : > { %v24004_v18 = vpop.permute.xlu1 %13022 }
0x18ba   : > { %19261 = vmatpush3.xpose.msk.msra.mxu1 %vm842_vm1, %v13116_v52 }
0x18bb   : > { %v13112_v31 = vpop.permute.xlu0 %13111 }
0x18bc   : > { %19262 = vmatprep.mubr.msk.f32.mxu1 %vm842_vm1, %v13112_v31 }
0x18bd   : > { %v13114_v54 = vpop.permute.xlu1 %13113 }
0x18be   : > { %19263 = vmatmul.mubr.msk.f32.vlgmr.msra.gmra.mxu1 %vm842_vm1, %v13114_v54 }
0x18c1   : > { %v13484_v49 = vpop.permute.xlu1 %13483 }
0x18c2   : > { %19272 = vmatprep.subr.mxu1 %v13484_v49 }
0x18c3   : > { %19273 = vmatpush3.msra.mxu1 %v13484_v49 }
0x18c5   : > { %v13482_v14 = vpop.permute.xlu1 %13481 }
0x18c6   : > { %19274 = vmatprep.subr.mxu1 %v13482_v14 }
0x18c7   : > { %19275 = vmatpush3.msra.mxu1 %v13482_v14 }
0x18c9   : > { %v24009_v17 = vpop.permute.xlu1 %13657 }
0x18ca   : > { %19286 = vmatprep.subr.mxu1 %v24009_v17  ;;  %v19130_v56 = vpop.f32.mrf.mxu1 }
0x18cc   : > { %v11675_v42 = vpop.f32.mrf.mxu1 }
0x18cd   : > { %v12219_v7 = vpack.c.bf16 %v19130_v56, %v11675_v42 }
0x18d0   : > { %v19144_v5 = vpop.f32.mrf.mxu1 }
0x18d2   : > { %v11853_v44 = vpop.f32.mrf.mxu1 }
0x18d3   : > { %v12221_v54 = vpack.c.bf16 %v19144_v5, %v11853_v44 }
0x18f4   : > { %v19158_v4 = vpop.f32.mrf.mxu1 }
0x18f6   : > { %v12031_v11 = vpop.f32.mrf.mxu1 }
0x190e   : > { %v19123_v39 = vpop.f32.mrf.mxu0 }
0x1910   : > { %v11586_v61 = vpop.f32.mrf.mxu0 }
0x1911   : > { %v12218_v46 = vpack.c.bf16 %v19123_v39, %v11586_v61 }
0x1913   : > { %19175 = vmatprep.mubr.msk.bf16.mxu0 %vm842_vm1, %v12218_v46 }
0x1914   : > { %19176 = vmatmul.mubr.msk.bf16.vlgmr.msra.gmra.mxu0 %vm842_vm1, %v12219_v7  ;;  %v12223_v7 = vpack.c.bf16 %v19158_v4, %v12031_v11 }
0x1915   : > { %19210 = vmatpush3.xpose.msk.msra.mxu0 %vm842_vm1, %v23899_v20 }
0x1916   : > { %19211 = vmatprep.subr.msk.mxu0 %vm842_vm1, %v23913_v23 }
0x1919   : > { %19212 = vmatpush3.xpose.msk.msra.mxu0 %vm842_vm1, %v23913_v23 }
0x191a   : > { %19223 = vmatprep.subr.msk.mxu0 %vm842_vm1, %v23947_v22 }
0x1940   : > { %v19172_v1 = vpop.f32.mrf.mxu1 }
0x1942   : > { %v12209_v48 = vpop.f32.mrf.mxu1 }
0x1943   : > { %v19137_v33 = vpop.f32.mrf.mxu0 }
0x1944   : > { %v24022_v57 = vpop.f32.mrf.mxu1 }
0x1945   : > { %v11764_v52 = vpop.f32.mrf.mxu0 }
0x1946   : > { %v12220_v20 = vpack.c.bf16 %v19137_v33, %v11764_v52  ;;  %v24024_v31 = vpop.f32.mrf.mxu1 }
0x1948   : > { %v19151_v49 = vpop.f32.mrf.mxu0  ;;  %19179 = vmatprep.mubr.msk.bf16.mxu0 %vm842_vm1, %v12220_v20  ;;  %v24027_v23 = vpop.f32.mrf.mxu1 }
0x1949   : > { %19180 = vmatmul.mubr.msk.bf16.gmra.mxu0 %vm842_vm1, %v12221_v54  ;;  %v12225_v54 = vpack.c.bf16 %v19172_v1, %v12209_v48  ;;  %v25714_v48 = vld [vmem:[#allocation43_spill] sm:$0xff] }
0x194a   : > { %v11942_v14 = vpop.f32.mrf.mxu0  ;;  %v24030_v56 = vpop.f32.mrf.mxu1 }
0x194b   : > { %v12222_v39 = vpack.c.bf16 %v19151_v49, %v11942_v14 }
0x194c   : > { %v19165_v42 = vpop.f32.mrf.mxu0 }
0x194d   : > { %19183 = vmatprep.mubr.msk.bf16.mxu0 %vm842_vm1, %v12222_v39  ;;  %v24033_v61 = vpop.f32.mrf.mxu1 }
0x194e   : > { %v12120_v46 = vpop.f32.mrf.mxu0 }
0x194f   : > { %v24035_v33 = vpop.f32.mrf.mxu1  ;;  %v12224_v5 = vpack.c.bf16 %v19165_v42, %v12120_v46 }
0x1950   : > { %25703 = vst [vmem:[#allocation32_spill] sm:$0xff] %v24035_v33 }
0x1951   : > { %v24037_v44 = vpop.f32.mrf.mxu1  ;;  %19184 = vmatmul.mubr.msk.bf16.gmra.mxu0 %vm842_vm1, %v12223_v7 }
0x1952   : > { %25704 = vst [vmem:[#allocation34_spill] sm:$0xff] %v24037_v44  ;;  %19187 = vmatprep.mubr.msk.bf16.mxu0 %vm842_vm1, %v12224_v5 }
0x1953   : > { %v24041_v52 = vpop.f32.mrf.mxu1 }
0x1954   : > { %25705 = vst [vmem:[#allocation6_spill] sm:$0xff] %v24041_v52 }
0x1955   : > { %v24043_v20 = vpop.f32.mrf.mxu1 }
0x1956   : > { %25706 = vst [vmem:[#allocation27_spill] sm:$0xff] %v24043_v20 }
0x1957   : > { %v24045_v49 = vpop.f32.mrf.mxu1 }
0x1958   : > { %25707 = vst [vmem:[#allocation40_spill] sm:$0xff] %v24045_v49 }
0x1959   : > { %v24047_v14 = vpop.f32.mrf.mxu1  ;;  %19188 = vmatmul.mubr.msk.bf16.gmra.mxu0 %vm842_vm1, %v12225_v54 }
0x195a   : > { %25708 = vst [vmem:[#allocation11_spill] sm:$0xff] %v24047_v14  ;;  %19213 = vmatprep.mubr.msk.f32.mxu0 %vm842_vm1, %v23928_v9 }
0x195b   : > { %v24052_v4 = vpop.f32.mrf.mxu1 }
0x195c   : > { %25709 = vst [vmem:[#allocation36_spill] sm:$0xff] %v24052_v4  ;;  %v24200_v4 = vld [vmem:[%s25417_s2 + $0x10] sm:$0xff] }
0x195d   : > { %v24054_v11 = vpop.f32.mrf.mxu1 }
0x195e   : > { %25710 = vst [vmem:[#allocation29_spill] sm:$0xff] %v24054_v11 }
0x195f   : > { %v24056_v39 = vpop.f32.mrf.mxu1 }
0x1960   : > { %25711 = vst [vmem:[#allocation41_spill] sm:$0xff] %v24056_v39 }
0x1961   : > { %v24058_v42 = vpop.f32.mrf.mxu1  ;;  %19214 = vmatmul.mubr.msk.f32.vlgmr.msra.gmra.mxu0 %vm842_vm1, %v23936_v6  ;;  %v25715_v6 = vld [vmem:[#allocation42_spill] sm:$0xff] }
0x1962   : > { %25712 = vst [vmem:[#allocation24_spill] sm:$0xff] %v24058_v42  ;;  %19224 = vmatpush3.xpose.msk.msra.mxu0 %vm842_vm1, %v23947_v22  ;;  %19227 = vmatprep.mubr.msk.f32.mxu0 %vm842_vm1, %v23966_v13 }
0x1963   : > { %v24066_v1 = vpop.f32.mrf.mxu1  ;;  %19225 = vmatprep.subr.msk.mxu0 %vm842_vm1, %v23956_v24 }
0x1964   : > { %25713 = vst [vmem:[#allocation38_spill] sm:$0xff] %v24066_v1 }
0x1965   : > { %v19222_v9 = vpop.f32.mrf.mxu1 }
0x1966   : > { %v13205_v46 = vmul.f32 %v25714_v48, %v19222_v9  ;;  %19226 = vmatpush3.xpose.msk.msra.mxu0 %vm842_vm1, %v23956_v24 }
0x1967   : > { %v12647_v7 = vpop.f32.mrf.mxu1  ;;  %19237 = vmatprep.subr.msk.mxu0 %vm842_vm1, %v23974_v51 }
0x1968   : > { %v13204_v22 = vmul.f32 %v25715_v6, %v12647_v7  ;;  %v13227_v5 = vsel %vm1551_vm2, %v13205_v46, -inf }
0x1969   : > { %13228 = vmax.xlane.f32.xlu0 %v13227_v5  ;;  %19228 = vmatmul.mubr.msk.f32.vlgmr.msra.gmra.mxu0 %vm842_vm1, %v23968_v45  ;;  %v13397_v45 = vpop.permute.xlu0 %13396 }
0x196a   : > { %19238 = vmatpush3.xpose.msk.msra.mxu0 %vm842_vm1, %v23974_v51  ;;  %19241 = vmatprep.mubr.msk.f32.mxu0 %vm842_vm1, %v23983_v19  ;;  %v13224_v24 = vsel %vm1551_vm2, %v13204_v22, -inf }
0x196b   : > { %19239 = vmatprep.subr.msk.mxu0 %vm842_vm1, %v23977_v0 }
0x196d   : > { %v19236_v13 = vpop.f32.mrf.mxu1  ;;  %13225 = vmax.xlane.f32.xlu0 %v13224_v24  ;;  %v13395_v5 = vpop.permute.xlu0 %13394 }
0x196e   : > { %v13209_v54 = vmul.f32 %v25714_v48, %v19236_v13  ;;  %19240 = vmatpush3.xpose.msk.msra.mxu0 %vm842_vm1, %v23977_v0 }
0x196f   : > { %v12829_v9 = vpop.f32.mrf.mxu1  ;;  %19251 = vmatprep.subr.msk.mxu0 %vm842_vm1, %v23990_v59 }
0x1970   : > { %v13208_v51 = vmul.f32 %v25715_v6, %v12829_v9  ;;  %v13239_v19 = vsel %vm1551_vm2, %v13209_v54, -inf }
0x1971   : > { %13240 = vmax.xlane.f32.xlu0 %v13239_v19  ;;  %19242 = vmatmul.mubr.msk.f32.vlgmr.msra.gmra.mxu0 %vm842_vm1, %v23985_v3  ;;  %v24110_v9 = vpop.permute.xlu0 %13570 }
0x1972   : > { %v13236_v7 = vsel %vm1551_vm2, %v13208_v51, -inf  ;;  %19252 = vmatpush3.xpose.msk.msra.mxu0 %vm842_vm1, %v23990_v59  ;;  %19255 = vmatprep.mubr.msk.f32.mxu0 %vm842_vm1, %v24002_v47 }
0x1973   : > { %13237 = vmax.xlane.f32.xlu1 %v13236_v7  ;;  %19253 = vmatprep.subr.msk.mxu0 %vm842_vm1, %v23997_v34 }
0x1975   : > { %v19250_v0 = vpop.f32.mrf.mxu1 }
0x1976   : > { %v13213_v24 = vmul.f32 %v25714_v48, %v19250_v0  ;;  %19254 = vmatpush3.xpose.msk.msra.mxu0 %vm842_vm1, %v23997_v34 }
0x1977   : > { %v13011_v3 = vpop.f32.mrf.mxu1  ;;  %19265 = vmatprep.subr.mxu0 %v13397_v45 }
0x1978   : > { %v13212_v13 = vmul.f32 %v25715_v6, %v13011_v3  ;;  %v13251_v59 = vsel %vm1551_vm2, %v13213_v24, -inf }
0x1979   : > { %13252 = vmax.xlane.f32.xlu0 %v13251_v59  ;;  %19256 = vmatmul.mubr.msk.f32.vlgmr.msra.gmra.mxu0 %vm842_vm1, %v24004_v18 }
0x197a   : > { %v13248_v47 = vsel %vm1551_vm2, %v13212_v13, -inf  ;;  %19266 = vmatpush3.msra.mxu0 %v13397_v45  ;;  %v24117_v45 = vpop.permute.xlu0 %13568 }
0x197b   : > { %13249 = vmax.xlane.f32.xlu1 %v13248_v47  ;;  %19267 = vmatprep.subr.mxu0 %v13395_v5  ;;  %v24121_v47 = vpop.permute.xlu1 %13655 }
0x197c   : > { %19268 = vmatpush3.msra.mxu0 %v13395_v5 }
0x197d   : > { %19279 = vmatprep.subr.mxu0 %v24110_v9 }
0x197e   : > { %v19264_v34 = vpop.f32.mrf.mxu1  ;;  %v24119_v59 = vpop.permute.xlu0 %13744 }
0x197f   : > { %v13217_v19 = vmul.f32 %v25714_v48, %v19264_v34  ;;  %v24123_v34 = vpop.permute.xlu1 %13831 }
0x1980   : > { %v13193_v7 = vpop.f32.mrf.mxu1 }
0x1981   : > { %v13216_v0 = vmul.f32 %v25715_v6, %v13193_v7  ;;  %v13263_v3 = vsel %vm1551_vm2, %v13217_v19, -inf }
0x1982   : > { %13264 = vmax.xlane.f32.xlu0 %v13263_v3 }
0x1983   : > { %v13260_v18 = vsel %vm1551_vm2, %v13216_v0, -inf }
0x1984   : > { %13261 = vmax.xlane.f32.xlu1 %v13260_v18 }
0x19d4   : > { %v24125_v3 = vpop.f32.mrf.mxu0 }
0x19d6   : > { %v24127_v43 = vpop.f32.mrf.mxu0 }
0x19f2   : > { %v13229_v5 = vpop.xlane.xlu0 %13228 }
0x19f3   : > { %v13269_v12 = vsub.f32 %v13205_v46, %v13229_v5  ;;  %v24129_v46 = vpop.f32.mrf.mxu0 }
0x19f5   : > { %v13288_v58 = vmul.f32 1.442695, %v13269_v12 }
0x19f6   : > { %v13226_v28 = vpop.xlane.xlu0 %13225 }
0x19f7   : > { %20033 = vpow2.f32 %v13288_v58  ;;  %v13268_v48 = vsub.f32 %v13204_v22, %v13226_v28 }
0x19f9   : > { %v13286_v6 = vmul.f32 1.442695, %v13268_v48 }
0x19fa   : > { %v13241_v7 = vpop.xlane.xlu0 %13240 }
0x19fb   : > { %20035 = vpow2.f32 %v13286_v6  ;;  %v13273_v18 = vsub.f32 %v13209_v54, %v13241_v7  ;;  %v24135_v6 = vpop.f32.mrf.mxu0 }
0x19fc   : > { %v13238_v29 = vpop.xlane.xlu1 %13237 }
0x19fd   : > { %v13296_v60 = vmul.f32 1.442695, %v13273_v18  ;;  %v13272_v55 = vsub.f32 %v13208_v51, %v13238_v29 }
0x19ff   : > { %20037 = vpow2.f32 %v13296_v60  ;;  %v13294_v32 = vmul.f32 1.442695, %v13272_v55 }
0x1a01   : > { %20039 = vpow2.f32 %v13294_v32 }
0x1a02   : > { %v13253_v12 = vpop.xlane.xlu0 %13252 }
0x1a03   : > { %v13277_v28 = vsub.f32 %v13213_v24, %v13253_v12 }
0x1a04   : > { %v24131_v58 = vpop.eup %20033  ;;  %v13250_v22 = vpop.xlane.xlu1 %13249 }
0x1a05   : > { %v13304_v5 = vmul.f32 1.442695, %v13277_v28  ;;  %v13276_v48 = vsub.f32 %v13212_v13, %v13250_v22  ;;  %v13323_v54 = vsel %vm1551_vm2, %v24131_v58, 0.0 }
0x1a06   : > { %13324 = vadd.xlane.f32.xlu0 %v13323_v54 }
0x1a07   : > { %20041 = vpow2.f32 %v13304_v5  ;;  %v13302_v29 = vmul.f32 1.442695, %v13276_v48 }
0x1a08   : > { %v24137_v60 = vpop.eup %20035 }
0x1a09   : > { %20043 = vpow2.f32 %v13302_v29  ;;  %v24139_v32 = vpop.f32.mrf.mxu0  ;;  %v13320_v55 = vsel %vm1551_vm2, %v24137_v60, 0.0 }
0x1a0a   : > { %13321 = vadd.xlane.f32.xlu1 %v13320_v55 }
0x1a0b   : > { %v24143_v51 = vpop.f32.mrf.mxu0  ;;  %v13265_v24 = vpop.xlane.xlu0 %13264 }
0x1a0c   : > { %25716 = vst [vmem:[#allocation43_spill] sm:$0xff] %v24143_v51  ;;  %v24145_v13 = vpop.eup %20037  ;;  %v13281_v7 = vsub.f32 %v13217_v19, %v13265_v24 }
0x1a0d   : > { %v24147_v18 = vpop.f32.mrf.mxu0  ;;  %v13335_v12 = vsel %vm1551_vm2, %v24145_v13, 0.0  ;;  %v13262_v28 = vpop.xlane.xlu1 %13261 }
0x1a0e   : > { %25717 = vst [vmem:[#allocation42_spill] sm:$0xff] %v24147_v18  ;;  %v24151_v22 = vpop.eup %20039  ;;  %v13312_v5 = vmul.f32 1.442695, %v13281_v7  ;;  %13336 = vadd.xlane.f32.xlu0 %v13335_v12  ;;  %v13280_v48 = vsub.f32 %v13216_v0, %v13262_v28 }
0x1a0f   : > { %v13332_v54 = vsel %vm1551_vm2, %v24151_v22, 0.0  ;;  %v24155_v29 = vpop.f32.mrf.mxu0 }
0x1a10   : > { %25718 = vst [vmem:[#allocation44_spill] sm:$0xff] %v24155_v29  ;;  %20045 = vpow2.f32 %v13312_v5  ;;  %v13310_v55 = vmul.f32 1.442695, %v13280_v48  ;;  %13333 = vadd.xlane.f32.xlu1 %v13332_v54 }
0x1a11   : > { %v24157_v19 = vpop.f32.mrf.mxu0 }
0x1a12   : > { %25719 = vst [vmem:[#allocation45_spill] sm:$0xff] %v24157_v19  ;;  %20047 = vpow2.f32 %v13310_v55 }
0x1a13   : > { %v24159_v24 = vpop.f32.mrf.mxu0 }
0x1a14   : > { %25720 = vst [vmem:[#allocation46_spill] sm:$0xff] %v24159_v24  ;;  %v24161_v40 = vpop.eup %20041 }
0x1a15   : > { %v13347_v7 = vsel %vm1551_vm2, %v24161_v40, 0.0  ;;  %v24165_v12 = vpop.f32.mrf.mxu0 }
0x1a16   : > { %25721 = vst [vmem:[#allocation47_spill] sm:$0xff] %v24165_v12  ;;  %v24167_v0 = vpop.eup %20043  ;;  %13348 = vadd.xlane.f32.xlu0 %v13347_v7 }
0x1a17   : > { %v13344_v28 = vsel %vm1551_vm2, %v24167_v0, 0.0  ;;  %v24171_v5 = vpop.f32.mrf.mxu0 }
0x1a18   : > { %25722 = vst [vmem:[#allocation48_spill] sm:$0xff] %v24171_v5  ;;  %13345 = vadd.xlane.f32.xlu1 %v13344_v28  ;;  %v24190_v28 = vld [vmem:[%s25417_s2 + $0x18] sm:$0xff] }
0x1a19   : > { %v24173_v48 = vpop.f32.mrf.mxu0 }
0x1a1a   : > { %25723 = vst [vmem:[#allocation49_spill] sm:$0xff] %v24173_v48 }
0x1a1b   : > { %v24175_v54 = vpop.f32.mrf.mxu0 }
0x1a1c   : > { %25724 = vst [vmem:[#allocation50_spill] sm:$0xff] %v24175_v54 }
0x1a1d   : > { %v24177_v55 = vpop.eup %20045  ;;  %v24179_v1 = vpop.f32.mrf.mxu0 }
0x1a1e   : > { %25725 = vst [vmem:[#allocation51_spill] sm:$0xff] %v24179_v1  ;;  %v13359_v42 = vsel %vm1551_vm2, %v24177_v55, 0.0 }
0x1a1f   : > { %v24183_v39 = vpop.eup %20047  ;;  %v24185_v7 = vpop.f32.mrf.mxu0  ;;  %13360 = vadd.xlane.f32.xlu1 %v13359_v42 }
0x1a20   : > { %25726 = vst [vmem:[#allocation52_spill] sm:$0xff] %v24185_v7  ;;  %v13356_v1 = vsel %vm1551_vm2, %v24183_v39, 0.0 }
0x1a21   : > { %v19215_v11 = vpop.f32.mrf.mxu0 }
0x1a22   : > { %v24193_v54 = vmul.f32 %v24190_v28, %v19215_v11 }
0x1a23   : > { %v12556_v48 = vpop.f32.mrf.mxu0  ;;  %13357 = vadd.xlane.f32.xlu1 %v13356_v1 }
0x1a24   : > { %v24203_v42 = vmul.f32 %v24200_v4, %v12556_v48  ;;  %v13221_v11 = vsel %vm1551_vm2, %v24193_v54, -inf }
0x1a26   : > { %v13218_v7 = vsel %vm1551_vm2, %v24203_v42, -inf }
0x1a27   : > { %13219 = vmax.xlane.f32.xlu0 %v13218_v7  ;;  %13222 = vmax.xlane.f32.xlu1 %v13221_v11 }
0x1a29   : > { %v19229_v5 = vpop.f32.mrf.mxu0 }
0x1a2a   : > { %v24210_v14 = vmul.f32 %v24190_v28, %v19229_v5 }
0x1a2b   : > { %v12738_v1 = vpop.f32.mrf.mxu0 }
0x1a2c   : > { %v24213_v12 = vmul.f32 %v24200_v4, %v12738_v1  ;;  %v13233_v48 = vsel %vm1551_vm2, %v24210_v14, -inf }
0x1a2d   : > { %13234 = vmax.xlane.f32.xlu0 %v13233_v48 }
0x1a2e   : > { %v13230_v49 = vsel %vm1551_vm2, %v24213_v12, -inf }
0x1a2f   : > { %13231 = vmax.xlane.f32.xlu1 %v13230_v49 }
0x1a31   : > { %v19243_v24 = vpop.f32.mrf.mxu0 }
0x1a32   : > { %v24220_v7 = vmul.f32 %v24190_v28, %v19243_v24 }
0x1a33   : > { %v12920_v11 = vpop.f32.mrf.mxu0 }
0x1a34   : > { %v24223_v5 = vmul.f32 %v24200_v4, %v12920_v11  ;;  %v13245_v1 = vsel %vm1551_vm2, %v24220_v7, -inf }
0x1a35   : > { %13246 = vmax.xlane.f32.xlu0 %v13245_v1  ;;  %v25727_v1 = vld [vmem:[#allocation2_spill] sm:$0xff] }
0x1a36   : > { %v13242_v20 = vsel %vm1551_vm2, %v24223_v5, -inf }
0x1a37   : > { %13243 = vmax.xlane.f32.xlu1 %v13242_v20  ;;  %v25728_v20 = vld [vmem:[#allocation5_spill] sm:$0xff] }
0x1a39   : > { %v19257_v48 = vpop.f32.mrf.mxu0 }
0x1a3a   : > { %v24230_v19 = vmul.f32 %v24190_v28, %v19257_v48 }
0x1a3b   : > { %v13102_v49 = vpop.f32.mrf.mxu0 }
0x1a3c   : > { %v24233_v24 = vmul.f32 %v24200_v4, %v13102_v49  ;;  %v13257_v11 = vsel %vm1551_vm2, %v24230_v19, -inf }
0x1a3d   : > { %13258 = vmax.xlane.f32.xlu0 %v13257_v11 }
0x1a3e   : > { %v13254_v52 = vsel %vm1551_vm2, %v24233_v24, -inf }
0x1a3f   : > { %13255 = vmax.xlane.f32.xlu1 %v13254_v52 }
0x1a50   : > { %13829 = vrot.lane.b32.xlu1 %v25727_v1, %s20280_s21 }
0x1a53   : > { %13742 = vrot.lane.b32.xlu0 %v25728_v20, %s20280_s21 }
0x1a8f   : > { %v13325_v48 = vpop.xlane.xlu0 %13324 }
0x1a90   : > { %20049 = vrcp.f32 %v13325_v48 }
0x1a93   : > { %v13322_v29 = vpop.xlane.xlu1 %13321 }
0x1a94   : > { %20051 = vrcp.f32 %v13322_v29 }
0x1a97   : > { %v13337_v49 = vpop.xlane.xlu0 %13336 }
0x1a98   : > { %20053 = vrcp.f32 %v13337_v49 }
0x1a99   : > { %v13334_v44 = vpop.xlane.xlu1 %13333 }
0x1a9a   : > { %20055 = vrcp.f32 %v13334_v44 }
0x1a9d   : > { %v20050_v18 = vpop.eup %20049 }
0x1a9e   : > { %v13381_v51 = vmul.f32 %v20050_v18, %v24131_v58 }
0x1a9f   : > { %v13349_v58 = vpop.xlane.xlu0 %13348 }
0x1aa1   : > { %v20052_v11 = vpop.eup %20051  ;;  %v13346_v33 = vpop.xlane.xlu1 %13345 }
0x1aa2   : > { %20057 = vrcp.f32 %v13346_v33  ;;  %v13380_v52 = vmul.f32 %v20052_v11, %v24137_v60 }
0x1aa4   : > { %19276 = vmatprep.mubr.msk.f32.mxu1 %vm1551_vm2, %v13380_v52 }
0x1aa5   : > { %19277 = vmatmul.mubr.msk.f32.vlgmr.msra.gmra.mxu1 %vm1551_vm2, %v13381_v51  ;;  %v20054_v20 = vpop.eup %20053 }
0x1aa6   : > { %19287 = vmatpush3.msra.mxu1 %v24009_v17  ;;  %v13385_v33 = vmul.f32 %v20054_v20, %v24145_v13 }
0x1aa7   : > { %v20056_v29 = vpop.eup %20055  ;;  %19288 = vmatprep.subr.mxu1 %v24121_v47 }
0x1aa8   : > { %19289 = vmatpush3.msra.mxu1 %v24121_v47  ;;  %v13384_v44 = vmul.f32 %v20056_v29, %v24151_v22  ;;  %v24251_v48 = vpop.xlane.xlu1 %13360 }
0x1aa9   : > { %19300 = vmatprep.subr.mxu1 %v24123_v34 }
0x1aaa   : > { %19290 = vmatprep.mubr.msk.f32.mxu1 %vm1551_vm2, %v13384_v44 }
0x1aab   : > { %19291 = vmatmul.mubr.msk.f32.vlgmr.msra.gmra.mxu1 %vm1551_vm2, %v13385_v33 }
0x1aac   : > { %19301 = vmatpush3.msra.mxu1 %v24123_v34  ;;  %v13358_v17 = vpop.xlane.xlu1 %13357 }
0x1aaf   : > { %v20058_v60 = vpop.eup %20057 }
0x1ab0   : > { %v13220_v51 = vpop.xlane.xlu0 %13219  ;;  %v13388_v47 = vmul.f32 %v20058_v60, %v24167_v0  ;;  %v13223_v18 = vpop.xlane.xlu1 %13222 }
0x1ab1   : > { %v13266_v22 = vsub.f32 %v24203_v42, %v13220_v51  ;;  %v13267_v49 = vsub.f32 %v24193_v54, %v13223_v18 }
0x1ab2   : > { %19304 = vmatprep.mubr.msk.f32.mxu1 %vm1551_vm2, %v13388_v47 }
0x1ab3   : > { %v13282_v13 = vmul.f32 1.442695, %v13266_v22  ;;  %v13284_v20 = vmul.f32 1.442695, %v13267_v49  ;;  %v25729_v49 = vld [vmem:[#allocation4_spill] sm:$0xff] }
0x1ab5   : > { %20059 = vpow2.f32 %v13282_v13 }
0x1ab6   : > { %20061 = vpow2.f32 %v13284_v20  ;;  %v13235_v11 = vpop.xlane.xlu0 %13234  ;;  %v25730_v20 = vld [vmem:[#allocation31_spill] sm:$0xff] }
0x1ab7   : > { %v13271_v52 = vsub.f32 %v24210_v14, %v13235_v11 }
0x1ab8   : > { %v13232_v29 = vpop.xlane.xlu1 %13231 }
0x1ab9   : > { %v13292_v34 = vmul.f32 1.442695, %v13271_v52  ;;  %v13270_v13 = vsub.f32 %v24213_v12, %v13232_v29 }
0x1abb   : > { %20063 = vpow2.f32 %v13292_v34  ;;  %v13290_v52 = vmul.f32 1.442695, %v13270_v13 }
0x1abc   : > { %20065 = vrcp.f32 %v13349_v58 }
0x1abd   : > { %20067 = vrcp.f32 %v13358_v17 }
0x1abe   : > { %v13247_v11 = vpop.xlane.xlu0 %13246  ;;  %20069 = vpow2.f32 %v13290_v52 }
0x1abf   : > { %v13275_v34 = vsub.f32 %v24220_v7, %v13247_v11 }
0x1ac0   : > { %v13244_v42 = vpop.xlane.xlu1 %13243 }
0x1ac2   : > { %v24263_v0 = vpop.eup %20059 }
0x1ac3   : > { %v24265_v44 = vpop.eup %20061  ;;  %v13314_v54 = vsel %vm1551_vm2, %v24263_v0, 0.0 }
0x1ac4   : > { %13315 = vadd.xlane.f32.xlu1 %v13314_v54  ;;  %v13317_v33 = vsel %vm1551_vm2, %v24265_v44, 0.0 }
0x1ac5   : > { %13318 = vadd.xlane.f32.xlu0 %v13317_v33 }
0x1ac6   : > { %v13259_v54 = vpop.xlane.xlu0 %13258 }
0x1ac8   : > { %v24271_v60 = vpop.eup %20063  ;;  %v13256_v14 = vpop.xlane.xlu1 %13255 }
0x1ac9   : > { %v13329_v58 = vsel %vm1551_vm2, %v24271_v60, 0.0  ;;  %v20066_v17 = vpop.eup %20065  ;;  %v13278_v33 = vsub.f32 %v24233_v24, %v13256_v14 }
0x1aca   : > { %13330 = vadd.xlane.f32.xlu0 %v13329_v58  ;;  %v20068_v51 = vpop.eup %20067  ;;  %v13389_v18 = vmul.f32 %v20066_v17, %v24161_v40  ;;  %v13274_v40 = vsub.f32 %v24223_v5, %v13244_v42  ;;  %v13300_v58 = vmul.f32 1.442695, %v13275_v34  ;;  %v13279_v17 = vsub.f32 %v24230_v19, %v13259_v54 }
0x1acb   : > { %v13392_v22 = vmul.f32 %v20068_v51, %v24183_v39  ;;  %v13306_v51 = vmul.f32 1.442695, %v13278_v33  ;;  %v24288_v29 = vpop.eup %20069 }
0x1acc   : > { %v13830_v47 = vpop.permute.xlu1 %13829  ;;  %v13298_v39 = vmul.f32 1.442695, %v13274_v40  ;;  %v13308_v12 = vmul.f32 1.442695, %v13279_v17  ;;  %v13326_v5 = vsel %vm1551_vm2, %v24288_v29, 0.0 }
0x1acd   : > { %19302 = vmatprep.subr.mxu1 %v13830_v47 }
0x1ace   : > { %19303 = vmatpush3.msra.mxu1 %v13830_v47  ;;  %20071 = vpow2.f32 %v13298_v39 }
0x1acf   : > { %19305 = vmatmul.mubr.msk.f32.vlgmr.msra.gmra.mxu1 %vm1551_vm2, %v13389_v18  ;;  %20073 = vpow2.f32 %v13300_v58  ;;  %v17233_v58 = vld [vmem:[%s25419_s4 + $0x18] sm:$0xf] }
0x1ad0   : > { %19318 = vmatprep.mubr.msk.f32.mxu1 %vm1551_vm2, %v13392_v22  ;;  %20075 = vpow2.f32 %v13306_v51 }
0x1ad1   : > { %20077 = vpow2.f32 %v13308_v12 }
0x1ad5   : > { %14005 = vrot.lane.b32.xlu1 %v25729_v49, %s20280_s21 }
0x1adb   : > { %v24292_v7 = vpop.eup %20071 }
0x1adc   : > { %v24294_v42 = vpop.eup %20073  ;;  %v13338_v24 = vsel %vm1551_vm2, %v24292_v7, 0.0 }
0x1add   : > { %v24298_v19 = vpop.eup %20075  ;;  %v13341_v14 = vsel %vm1551_vm2, %v24294_v42, 0.0 }
0x1ade   : > { %v24302_v47 = vpop.eup %20077  ;;  %v13350_v18 = vsel %vm1551_vm2, %v24298_v19, 0.0 }
0x1adf   : > { %v13353_v22 = vsel %vm1551_vm2, %v24302_v47, 0.0 }
0x1ae0   : > { %13918 = vrot.lane.b32.xlu0 %v25730_v20, %s20280_s21 }
0x1af9   : > { %13327 = vadd.xlane.f32.xlu1 %v13326_v5  ;;  %v14123_v5 = vsel %vm4048_vm3, %v17233_v58, 0 }
0x1afd   : > { %13339 = vadd.xlane.f32.xlu1 %v13338_v24 }
0x1aff   : > { %13342 = vadd.xlane.f32.xlu0 %v13341_v14 }
0x1b01   : > { %13351 = vadd.xlane.f32.xlu1 %v13350_v18 }
0x1b03   : > { %13354 = vadd.xlane.f32.xlu0 %v13353_v22 }
0x1b12   : > { %14003 = vrot.lane.b32.xlu1 %v23231_v15, %s20280_s21 }
0x1b16   : > { %14242 = vrot.lane.b32.xlu1 %v22932_v30, %s20281_s23 }
0x1b19   : > { %13916 = vrot.lane.b32.xlu0 %v23219_v27, %s20280_s21 }
0x1b1a   : > { %14335 = vrot.lane.b32.xlu1 %v22936_v63, %s20281_s23 }
0x1b1d   : > { %14244 = vrot.lane.b32.xlu0 %v22938_v53, %s20281_s23 }
0x1b1e   : > { %14333 = vrot.lane.b32.xlu1 %v22930_v8, %s20281_s23 }
0x1b21   : > { %14238 = vrot.lane.b32.xlu0 %v22932_v30, %s20282_s28 }
0x1b22   : > { %14426 = vrot.lane.b32.xlu1 %v22946_v38, %s20281_s23 }
0x1b25   : > { %14240 = vrot.lane.b32.xlu0 %v22938_v53, %s20282_s28 }
0x1b26   : > { %14424 = vrot.lane.b32.xlu1 %v22942_v26, %s20281_s23 }
0x1b29   : > { %14329 = vrot.lane.b32.xlu0 %v22930_v8, %s20282_s28  ;;  %v24362_v8 = vpop.permute.xlu0 %13742 }
0x1b2a   : > { %14517 = vrot.lane.b32.xlu1 %v22944_v35, %s20281_s23 }
0x1b2d   : > { %14331 = vrot.lane.b32.xlu0 %v22936_v63, %s20282_s28 }
0x1b2e   : > { %14515 = vrot.lane.b32.xlu1 %v22940_v62, %s20281_s23 }
0x1b31   : > { %14420 = vrot.lane.b32.xlu0 %v22942_v26, %s20282_s28 }
0x1b32   : > { %14608 = vrot.lane.b32.xlu1 %v22954_v10, %s20281_s23 }
0x1b35   : > { %14422 = vrot.lane.b32.xlu0 %v22946_v38, %s20282_s28 }
0x1b36   : > { %14699 = vrot.lane.b32.xlu1 %v22952_v41, %s20281_s23 }
0x1b39   : > { %14511 = vrot.lane.b32.xlu0 %v22940_v62, %s20282_s28 }
0x1b3a   : > { %14697 = vrot.lane.b32.xlu1 %v22948_v21, %s20281_s23 }
0x1b3d   : > { %14513 = vrot.lane.b32.xlu0 %v22944_v35, %s20282_s28 }
0x1b3e   : > { %14604 = vrot.lane.b32.xlu1 %v22954_v10, %s20282_s28 }
0x1b41   : > { %14606 = vrot.lane.b32.xlu0 %v22950_v37, %s20281_s23 }
0x1b42   : > { %14790 = vrot.lane.b32.xlu1 %v22972_v36, %s20281_s23 }
0x1b45   : > { %14602 = vrot.lane.b32.xlu0 %v22950_v37, %s20282_s28 }
0x1b46   : > { %14881 = vrot.lane.b32.xlu1 %v22966_v2, %s20281_s23 }
0x1b49   : > { %14693 = vrot.lane.b32.xlu0 %v22948_v21, %s20282_s28 }
0x1b4a   : > { %14879 = vrot.lane.b32.xlu1 %v22956_v25, %s20281_s23 }
0x1b4d   : > { %14695 = vrot.lane.b32.xlu0 %v22952_v41, %s20282_s28  ;;  %v13316_v30 = vpop.xlane.xlu1 %13315 }
0x1b4e   : > { %v13319_v63 = vpop.xlane.xlu0 %13318  ;;  %20079 = vrcp.f32 %v13316_v30  ;;  %14786 = vrot.lane.b32.xlu1 %v22972_v36, %s20282_s28 }
0x1b4f   : > { %20081 = vrcp.f32 %v13319_v63 }
0x1b50   : > { %20083 = vrcp.f32 %v24251_v48 }
0x1b51   : > { %14788 = vrot.lane.b32.xlu0 %v22960_v16, %s20281_s23  ;;  %v14006_v53 = vpop.permute.xlu1 %14005 }
0x1b52   : > { %14877 = vrot.lane.b32.xlu1 %v22966_v2, %s20282_s28  ;;  %19314 = vmatprep.subr.mxu1 %v14006_v53 }
0x1b53   : > { %19315 = vmatpush3.msra.mxu1 %v14006_v53  ;;  %v13331_v21 = vpop.xlane.xlu0 %13330 }
0x1b54   : > { %20085 = vrcp.f32 %v13331_v21 }
0x1b55   : > { %14784 = vrot.lane.b32.xlu0 %v22960_v16, %s20282_s28 }
0x1b56   : > { %15160 = vrot.lane.b32.xlu1 %v23148_v50, %s20282_s28 }
0x1b57   : > { %v13919_v41 = vpop.permute.xlu0 %13918 }
0x1b59   : > { %14875 = vrot.lane.b32.xlu0 %v22956_v25, %s20282_s28 }
0x1b5b   : > { %v20080_v62 = vpop.eup %20079 }
0x1b5c   : > { %v20082_v26 = vpop.eup %20081  ;;  %v13378_v35 = vmul.f32 %v20080_v62, %v24263_v0 }
0x1b5d   : > { %v13379_v38 = vmul.f32 %v20082_v26, %v24265_v44  ;;  %v20084_v2 = vpop.eup %20083 }
0x1b5e   : > { %19269 = vmatprep.mubr.msk.f32.mxu0 %vm1551_vm2, %v13378_v35 }
0x1b5f   : > { %19270 = vmatmul.mubr.msk.f32.vlgmr.msra.gmra.mxu0 %vm1551_vm2, %v13379_v38 }
0x1b60   : > { %19280 = vmatpush3.msra.mxu0 %v24110_v9 }
0x1b61   : > { %19281 = vmatprep.subr.mxu0 %v24117_v45  ;;  %v20086_v9 = vpop.eup %20085 }
0x1b62   : > { %19282 = vmatpush3.msra.mxu0 %v24117_v45  ;;  %v13393_v45 = vmul.f32 %v20084_v2, %v24177_v55  ;;  %v13383_v13 = vmul.f32 %v20086_v9, %v24271_v60 }
0x1b63   : > { %19293 = vmatprep.subr.mxu0 %v24119_v59 }
0x1b82   : > { %v13328_v37 = vpop.xlane.xlu1 %13327 }
0x1b83   : > { %20087 = vrcp.f32 %v13328_v37 }
0x1b86   : > { %v13340_v10 = vpop.xlane.xlu1 %13339 }
0x1b87   : > { %20089 = vrcp.f32 %v13340_v10 }
0x1b88   : > { %v13343_v25 = vpop.xlane.xlu0 %13342 }
0x1b89   : > { %20091 = vrcp.f32 %v13343_v25 }
0x1b8a   : > { %v13352_v16 = vpop.xlane.xlu1 %13351 }
0x1b8b   : > { %20093 = vrcp.f32 %v13352_v16 }
0x1b8c   : > { %v13355_v36 = vpop.xlane.xlu0 %13354 }
0x1b8d   : > { %20095 = vrcp.f32 %v13355_v36 }
0x1b8e   : > { %v14004_v50 = vpop.permute.xlu1 %14003 }
0x1b8f   : > { %19316 = vmatprep.subr.mxu1 %v14004_v50 }
0x1b90   : > { %v20088_v0 = vpop.eup %20087  ;;  %v13917_v48 = vpop.permute.xlu0 %13916  ;;  %19317 = vmatpush3.msra.mxu1 %v14004_v50 }
0x1b91   : > { %19319 = vmatmul.mubr.msk.f32.vlgmr.msra.gmra.mxu1 %vm1551_vm2, %v13393_v45  ;;  %v13382_v44 = vmul.f32 %v20088_v0, %v24288_v29  ;;  %v19278_v45 = vpop.f32.mrf.mxu1 }
0x1b92   : > { %v14243_v11 = vpop.permute.xlu1 %14242 }
0x1b93   : > { %19283 = vmatprep.mubr.msk.f32.mxu0 %vm1551_vm2, %v13382_v44 }
0x1b94   : > { %v20090_v52 = vpop.eup %20089  ;;  %v14245_v40 = vpop.permute.xlu0 %14244  ;;  %19284 = vmatmul.mubr.msk.f32.vlgmr.msra.gmra.mxu0 %vm1551_vm2, %v13383_v13 }
0x1b95   : > { %19294 = vmatpush3.msra.mxu0 %v24119_v59  ;;  %19339 = vmatprep.subr.msk.mxu1 %vm842_vm1, %v14245_v40  ;;  %v13386_v55 = vmul.f32 %v20090_v52, %v24292_v7 }
0x1b96   : > { %v20092_v34 = vpop.eup %20091  ;;  %19295 = vmatprep.subr.mxu0 %v24362_v8  ;;  %19340 = vmatpush3.xpose.msk.msra.mxu1 %vm842_vm1, %v14245_v40  ;;  %v14336_v54 = vpop.permute.xlu1 %14335 }
0x1b97   : > { %v13387_v60 = vmul.f32 %v20092_v34, %v24294_v42  ;;  %19296 = vmatpush3.msra.mxu0 %v24362_v8  ;;  %19341 = vmatprep.subr.msk.mxu1 %vm842_vm1, %v14243_v11 }
0x1b98   : > { %v20094_v39 = vpop.eup %20093  ;;  %v14239_v33 = vpop.permute.xlu0 %14238  ;;  %19297 = vmatprep.mubr.msk.f32.mxu0 %vm1551_vm2, %v13386_v55  ;;  %19307 = vmatprep.subr.mxu0 %v13919_v41 }
0x1b99   : > { %19298 = vmatmul.mubr.msk.f32.vlgmr.msra.gmra.mxu0 %vm1551_vm2, %v13387_v60  ;;  %19343 = vmatprep.mubr.msk.f32.mxu1 %vm842_vm1, %v14239_v33  ;;  %v13390_v59 = vmul.f32 %v20094_v39, %v24298_v19 }
0x1b9a   : > { %v20096_v17 = vpop.eup %20095  ;;  %19308 = vmatpush3.msra.mxu0 %v13919_v41  ;;  %19342 = vmatpush3.xpose.msk.msra.mxu1 %vm842_vm1, %v14243_v11  ;;  %v14334_v51 = vpop.permute.xlu1 %14333 }
0x1b9b   : > { %v13391_v12 = vmul.f32 %v20096_v17, %v24302_v47  ;;  %19309 = vmatprep.subr.mxu0 %v13917_v48  ;;  %19346 = vmatprep.subr.msk.mxu1 %vm842_vm1, %v14336_v54 }
0x1b9c   : > { %19310 = vmatpush3.msra.mxu0 %v13917_v48  ;;  %v14241_v29 = vpop.permute.xlu0 %14240  ;;  %19311 = vmatprep.mubr.msk.f32.mxu0 %vm1551_vm2, %v13390_v59  ;;  %v13559_v48 = vpop.f32.mrf.mxu1 }
0x1b9d   : > { %19312 = vmatmul.mubr.msk.f32.vlgmr.msra.gmra.mxu0 %vm1551_vm2, %v13391_v12  ;;  %19344 = vmatmul.mubr.msk.f32.vlgmr.msra.gmra.mxu1 %vm842_vm1, %v14241_v29  ;;  %v14091_v11 = vpack.c.bf16 %v19278_v45, %v13559_v48 }
0x1b9e   : > { %19347 = vmatpush3.xpose.msk.msra.mxu1 %vm842_vm1, %v14336_v54  ;;  %v14427_v7 = vpop.permute.xlu1 %14426  ;;  %19551 = vmatprep.subr.msk.bf16.mxu0 %vm4048_vm3, %v17233_v58  ;;  %v19292_v52 = vpop.f32.mrf.mxu1 }
0x1b9f   : > { %19348 = vmatprep.subr.msk.mxu1 %vm842_vm1, %v14334_v51  ;;  %19322 = vmatpush3.bf16.msra.mxu0 %v14123_v5 }
0x1ba0   : > { %v14330_v42 = vpop.permute.xlu0 %14329  ;;  %v13733_v40 = vpop.f32.mrf.mxu1 }
0x1ba1   : > { %19350 = vmatprep.mubr.msk.f32.mxu1 %vm842_vm1, %v14330_v42  ;;  %v14093_v59 = vpack.c.bf16 %v19292_v52, %v13733_v40 }
0x1ba2   : > { %19349 = vmatpush3.xpose.msk.msra.mxu1 %vm842_vm1, %v14334_v51  ;;  %v14425_v24 = vpop.permute.xlu1 %14424  ;;  %v19306_v55 = vpop.f32.mrf.mxu1 }
0x1ba3   : > { %19353 = vmatprep.subr.msk.mxu1 %vm842_vm1, %v14427_v7 }
0x1ba4   : > { %v14332_v19 = vpop.permute.xlu0 %14331  ;;  %v13907_v54 = vpop.f32.mrf.mxu1 }
0x1ba5   : > { %19351 = vmatmul.mubr.msk.f32.vlgmr.msra.gmra.mxu1 %vm842_vm1, %v14332_v19  ;;  %v14095_v19 = vpack.c.bf16 %v19306_v55, %v13907_v54 }
0x1ba6   : > { %19354 = vmatpush3.xpose.msk.msra.mxu1 %vm842_vm1, %v14427_v7  ;;  %v14518_v14 = vpop.permute.xlu1 %14517 }
0x1ba7   : > { %19355 = vmatprep.subr.msk.mxu1 %vm842_vm1, %v14425_v24 }
0x1ba8   : > { %v14421_v47 = vpop.permute.xlu0 %14420 }
0x1ba9   : > { %19357 = vmatprep.mubr.msk.f32.mxu1 %vm842_vm1, %v14421_v47 }
0x1baa   : > { %19356 = vmatpush3.xpose.msk.msra.mxu1 %vm842_vm1, %v14425_v24  ;;  %v14516_v18 = vpop.permute.xlu1 %14515 }
0x1bab   : > { %19360 = vmatprep.subr.msk.mxu1 %vm842_vm1, %v14518_v14 }
0x1bac   : > { %v14423_v22 = vpop.permute.xlu0 %14422 }
0x1bad   : > { %19358 = vmatmul.mubr.msk.f32.vlgmr.msra.gmra.mxu1 %vm842_vm1, %v14423_v22 }
0x1bae   : > { %19361 = vmatpush3.xpose.msk.msra.mxu1 %vm842_vm1, %v14518_v14  ;;  %v14609_v8 = vpop.permute.xlu1 %14608 }
0x1baf   : > { %19362 = vmatprep.subr.msk.mxu1 %vm842_vm1, %v14516_v18  ;;  %19367 = vmatprep.subr.msk.mxu0 %vm842_vm1, %v14609_v8 }
0x1bb0   : > { %v14512_v30 = vpop.permute.xlu0 %14511 }
0x1bb1   : > { %19364 = vmatprep.mubr.msk.f32.mxu1 %vm842_vm1, %v14512_v30 }
0x1bb2   : > { %19363 = vmatpush3.xpose.msk.msra.mxu1 %vm842_vm1, %v14516_v18  ;;  %v14700_v63 = vpop.permute.xlu1 %14699 }
0x1bb3   : > { %19374 = vmatprep.subr.msk.mxu1 %vm842_vm1, %v14700_v63 }
0x1bb4   : > { %v14514_v53 = vpop.permute.xlu0 %14513 }
0x1bb5   : > { %19365 = vmatmul.mubr.msk.f32.vlgmr.msra.gmra.mxu1 %vm842_vm1, %v14514_v53 }
0x1bb6   : > { %19375 = vmatpush3.xpose.msk.msra.mxu1 %vm842_vm1, %v14700_v63  ;;  %v14698_v62 = vpop.permute.xlu1 %14697 }
0x1bb7   : > { %19376 = vmatprep.subr.msk.mxu1 %vm842_vm1, %v14698_v62 }
0x1bb8   : > { %v14607_v26 = vpop.permute.xlu0 %14606 }
0x1bba   : > { %19377 = vmatpush3.xpose.msk.msra.mxu1 %vm842_vm1, %v14698_v62  ;;  %v24440_v35 = vpop.permute.xlu1 %14604 }
0x1bbc   : > { %v24442_v38 = vpop.permute.xlu0 %14602 }
0x1bbe   : > { %v24444_v21 = vpop.permute.xlu1 %14790 }
0x1bc0   : > { %v14694_v37 = vpop.permute.xlu0 %14693 }
0x1bc1   : > { %19378 = vmatprep.mubr.msk.f32.mxu1 %vm842_vm1, %v14694_v37 }
0x1bc2   : > { %v14882_v41 = vpop.permute.xlu1 %14881 }
0x1bc3   : > { %19388 = vmatprep.subr.msk.mxu1 %vm842_vm1, %v14882_v41 }
0x1bc4   : > { %v14696_v10 = vpop.permute.xlu0 %14695 }
0x1bc5   : > { %19379 = vmatmul.mubr.msk.f32.vlgmr.msra.gmra.mxu1 %vm842_vm1, %v14696_v10 }
0x1bc6   : > { %19389 = vmatpush3.xpose.msk.msra.mxu1 %vm842_vm1, %v14882_v41  ;;  %v14880_v25 = vpop.permute.xlu1 %14879 }
0x1bc7   : > { %19390 = vmatprep.subr.msk.mxu1 %vm842_vm1, %v14880_v25 }
0x1bc8   : > { %v24451_v16 = vpop.permute.xlu0 %14788 }
0x1bca   : > { %19391 = vmatpush3.xpose.msk.msra.mxu1 %vm842_vm1, %v14880_v25  ;;  %v24454_v2 = vpop.permute.xlu1 %14786 }
0x1bcc   : > { %v24456_v36 = vpop.permute.xlu0 %14784 }
0x1bce   : > { %v14878_v9 = vpop.permute.xlu1 %14877 }
0x1bd0   : > { %v14876_v50 = vpop.permute.xlu0 %14875 }
0x1bd1   : > { %19392 = vmatprep.mubr.msk.f32.mxu1 %vm842_vm1, %v14876_v50 }
0x1bd2   : > { %19393 = vmatmul.mubr.msk.f32.vlgmr.msra.gmra.mxu1 %vm842_vm1, %v14878_v9  ;;  %v15161_v48 = vpop.permute.xlu1 %15160 }
0x1c1f   : > { %v19271_v0 = vpop.f32.mrf.mxu0 }
0x1c21   : > { %v13472_v44 = vpop.f32.mrf.mxu0 }
0x1c22   : > { %v14090_v13 = vpack.c.bf16 %v19271_v0, %v13472_v44 }
0x1c24   : > { %19323 = vmatprep.mubr.msk.bf16.mxu0 %vm842_vm1, %v14090_v13 }
0x1c25   : > { %19324 = vmatmul.mubr.msk.bf16.vlgmr.msra.gmra.mxu0 %vm842_vm1, %v14091_v11 }
0x1c26   : > { %19368 = vmatpush3.xpose.msk.msra.mxu0 %vm842_vm1, %v14609_v8 }
0x1c27   : > { %19369 = vmatprep.subr.msk.mxu0 %vm842_vm1, %v14607_v26 }
0x1c2a   : > { %19370 = vmatpush3.xpose.msk.msra.mxu0 %vm842_vm1, %v14607_v26 }
0x1c2b   : > { %19381 = vmatprep.subr.msk.mxu0 %vm842_vm1, %v24444_v21 }
0x1c51   : > { %v19320_v39 = vpop.f32.mrf.mxu1 }
0x1c53   : > { %v14081_v17 = vpop.f32.mrf.mxu1 }
0x1c54   : > { %v19285_v34 = vpop.f32.mrf.mxu0  ;;  %v14097_v53 = vpack.c.bf16 %v19320_v39, %v14081_v17 }
0x1c56   : > { %v13646_v60 = vpop.f32.mrf.mxu0 }
0x1c57   : > { %v14092_v33 = vpack.c.bf16 %v19285_v34, %v13646_v60 }
0x1c59   : > { %v19299_v58 = vpop.f32.mrf.mxu0  ;;  %19327 = vmatprep.mubr.msk.bf16.mxu0 %vm842_vm1, %v14092_v33 }
0x1c5a   : > { %19328 = vmatmul.mubr.msk.bf16.gmra.mxu0 %vm842_vm1, %v14093_v59  ;;  %v12420_v59 = vadd.f32 %v24022_v57, %v24125_v3 }
0x1c5b   : > { %v13820_v51 = vpop.f32.mrf.mxu0 }
0x1c5c   : > { %v14094_v12 = vpack.c.bf16 %v19299_v58, %v13820_v51 }
0x1c5d   : > { %v19313_v29 = vpop.f32.mrf.mxu0  ;;  %v19345_v5 = vpop.f32.mrf.mxu1 }
0x1c5e   : > { %v24470_v7 = vmul.f32 %v24190_v28, %v19345_v5  ;;  %19331 = vmatprep.mubr.msk.bf16.mxu0 %vm842_vm1, %v14094_v12  ;;  %v12415_v5 = vadd.f32 %v24030_v56, %v24135_v6 }
0x1c5f   : > { %v13994_v42 = vpop.f32.mrf.mxu0  ;;  %v14320_v24 = vpop.f32.mrf.mxu1 }
0x1c60   : > { %v24474_v14 = vmul.f32 %v24200_v4, %v14320_v24  ;;  %v14985_v47 = vsel %vm1551_vm2, %v24470_v7, -inf  ;;  %v14096_v18 = vpack.c.bf16 %v19313_v29, %v13994_v42 }
0x1c61   : > { %14986 = vmax.xlane.f32.xlu1 %v14985_v47 }
0x1c62   : > { %19332 = vmatmul.mubr.msk.bf16.gmra.mxu0 %vm842_vm1, %v14095_v19  ;;  %v14982_v22 = vsel %vm1551_vm2, %v24474_v14, -inf }
0x1c63   : > { %14983 = vmax.xlane.f32.xlu0 %v14982_v22  ;;  %19335 = vmatprep.mubr.msk.bf16.mxu0 %vm842_vm1, %v14096_v18 }
0x1c65   : > { %v19352_v8 = vpop.f32.mrf.mxu1 }
0x1c66   : > { %v24483_v30 = vmul.f32 %v24190_v28, %v19352_v8 }
0x1c67   : > { %v14411_v63 = vpop.f32.mrf.mxu1 }
0x1c68   : > { %v24486_v62 = vmul.f32 %v24200_v4, %v14411_v63  ;;  %v14991_v26 = vsel %vm1551_vm2, %v24483_v30, -inf }
0x1c69   : > { %14992 = vmax.xlane.f32.xlu0 %v14991_v26 }
0x1c6a   : > { %19336 = vmatmul.mubr.msk.bf16.gmra.mxu0 %vm842_vm1, %v14097_v53  ;;  %v14988_v37 = vsel %vm1551_vm2, %v24486_v62, -inf }
0x1c6b   : > { %19371 = vmatprep.mubr.msk.f32.mxu0 %vm842_vm1, %v24442_v38 }
0x1c6d   : > { %14989 = vmax.xlane.f32.xlu0 %v14988_v37  ;;  %v19359_v41 = vpop.f32.mrf.mxu1 }
0x1c6e   : > { %v24496_v10 = vmul.f32 %v24190_v28, %v19359_v41 }
0x1c6f   : > { %v14502_v25 = vpop.f32.mrf.mxu1 }
0x1c70   : > { %v24499_v50 = vmul.f32 %v24200_v4, %v14502_v25  ;;  %v14997_v9 = vsel %vm1551_vm2, %v24496_v10, -inf }
0x1c71   : > { %14998 = vmax.xlane.f32.xlu0 %v14997_v9 }
0x1c72   : > { %v14994_v45 = vsel %vm1551_vm2, %v24499_v50, -inf  ;;  %19372 = vmatmul.mubr.msk.f32.vlgmr.msra.gmra.mxu0 %vm842_vm1, %v24440_v35 }
0x1c73   : > { %14995 = vmax.xlane.f32.xlu1 %v14994_v45  ;;  %19382 = vmatpush3.xpose.msk.msra.mxu0 %vm842_vm1, %v24444_v21 }
0x1c74   : > { %19383 = vmatprep.subr.msk.mxu0 %vm842_vm1, %v24451_v16  ;;  %19385 = vmatprep.mubr.msk.f32.mxu0 %vm842_vm1, %v24456_v36 }
0x1c75   : > { %v19366_v38 = vpop.f32.mrf.mxu1 }
0x1c76   : > { %v24514_v0 = vmul.f32 %v24190_v28, %v19366_v38 }
0x1c77   : > { %v14593_v44 = vpop.f32.mrf.mxu1  ;;  %19384 = vmatpush3.xpose.msk.msra.mxu0 %vm842_vm1, %v24451_v16 }
0x1c78   : > { %v24519_v35 = vmul.f32 %v24200_v4, %v14593_v44  ;;  %19395 = vmatprep.subr.mxu0 %v15161_v48  ;;  %v15003_v21 = vsel %vm1551_vm2, %v24514_v0, -inf }
0x1c79   : > { %15004 = vmax.xlane.f32.xlu0 %v15003_v21 }
0x1c7a   : > { %19386 = vmatmul.mubr.msk.f32.vlgmr.msra.gmra.mxu0 %vm842_vm1, %v24454_v2  ;;  %v15000_v36 = vsel %vm1551_vm2, %v24519_v35, -inf }
0x1c7b   : > { %15001 = vmax.xlane.f32.xlu1 %v15000_v36  ;;  %19396 = vmatpush3.msra.mxu0 %v15161_v48 }
0x1c85   : > { %v19380_v13 = vpop.f32.mrf.mxu1 }
0x1c86   : > { %v24528_v11 = vmul.f32 %v24190_v28, %v19380_v13 }
0x1c87   : > { %v14775_v16 = vpop.f32.mrf.mxu1 }
0x1c88   : > { %v24531_v52 = vmul.f32 %v24200_v4, %v14775_v16  ;;  %v15015_v40 = vsel %vm1551_vm2, %v24528_v11, -inf }
0x1c89   : > { %15016 = vmax.xlane.f32.xlu0 %v15015_v40 }
0x1c8a   : > { %v15012_v2 = vsel %vm1551_vm2, %v24531_v52, -inf }
0x1c8b   : > { %15013 = vmax.xlane.f32.xlu1 %v15012_v2 }
0x1c92   : > { %v19394_v55 = vpop.f32.mrf.mxu1 }
0x1c93   : > { %v24538_v34 = vmul.f32 %v24190_v28, %v19394_v55  ;;  %v12412_v28 = vadd.f32 %v24024_v31, %v24127_v43 }
0x1c94   : > { %v14957_v54 = vpop.f32.mrf.mxu1 }
0x1c95   : > { %v24541_v60 = vmul.f32 %v24200_v4, %v14957_v54  ;;  %v15027_v39 = vsel %vm1551_vm2, %v24538_v34, -inf  ;;  %v12423_v4 = vadd.f32 %v24027_v23, %v24129_v46 }
0x1c96   : > { %15028 = vmax.xlane.f32.xlu0 %v15027_v39 }
0x1c97   : > { %v15024_v33 = vsel %vm1551_vm2, %v24541_v60, -inf }
0x1c98   : > { %15025 = vmax.xlane.f32.xlu1 %v15024_v33 }
0x1ce5   : > { %v19325_v58 = vpop.f32.mrf.mxu0 }
0x1ce6   : > { %v24551_v17 = vadd.f32 %v19325_v58, %v12420_v59 }
0x1ce7   : > { %v14159_v51 = vpop.f32.mrf.mxu0 }
0x1ce8   : > { %v24555_v12 = vadd.f32 %v14159_v51, %v12412_v28 }
0x1ce9   : > { %v19326_v29 = vpop.f32.mrf.mxu0 }
0x1cea   : > { %v24559_v42 = vadd.f32 %v19326_v29, %v12423_v4  ;;  %v14987_v24 = vpop.xlane.xlu1 %14986 }
0x1ceb   : > { %v15031_v57 = vsub.f32 %v24470_v7, %v14987_v24  ;;  %v14162_v3 = vpop.f32.mrf.mxu0  ;;  %v25732_v24 = vld [vmem:[#allocation32_spill] sm:$0xff] }
0x1cec   : > { %v24562_v19 = vadd.f32 %v14162_v3, %v12415_v5  ;;  %v14984_v43 = vpop.xlane.xlu0 %14983  ;;  %v25731_v5 = vld [vmem:[#allocation43_spill] sm:$0xff] }
0x1ced   : > { %v15048_v31 = vmul.f32 1.442695, %v15031_v57  ;;  %v15030_v47 = vsub.f32 %v24474_v14, %v14984_v43  ;;  %v25733_v43 = vld [vmem:[#allocation42_spill] sm:$0xff] }
0x1cef   : > { %20097 = vpow2.f32 %v15048_v31  ;;  %v15046_v23 = vmul.f32 1.442695, %v15030_v47  ;;  %v25734_v31 = vld [vmem:[#allocation34_spill] sm:$0xff] }
0x1cf0   : > { %v12439_v47 = vadd.f32 %v25734_v31, %v25733_v43 }
0x1cf1   : > { %20099 = vpow2.f32 %v15046_v23 }
0x1cf2   : > { %v14993_v46 = vpop.xlane.xlu0 %14992 }
0x1cf3   : > { %v15033_v18 = vsub.f32 %v24483_v30, %v14993_v46 }
0x1cf5   : > { %v15052_v22 = vmul.f32 1.442695, %v15033_v18  ;;  %v25735_v18 = vld [vmem:[#allocation44_spill] sm:$0xff] }
0x1cf6   : > { %v14990_v56 = vpop.xlane.xlu0 %14989 }
0x1cf7   : > { %20101 = vpow2.f32 %v15052_v22  ;;  %v15032_v6 = vsub.f32 %v24486_v62, %v14990_v56  ;;  %v25736_v22 = vld [vmem:[#allocation6_spill] sm:$0xff] }
0x1cf8   : > { %v12431_v56 = vadd.f32 %v25736_v22, %v25735_v18 }
0x1cf9   : > { %v15050_v8 = vmul.f32 1.442695, %v15032_v6 }
0x1cfa   : > { %v14999_v7 = vpop.xlane.xlu0 %14998 }
0x1cfb   : > { %20103 = vpow2.f32 %v15050_v8  ;;  %v15035_v63 = vsub.f32 %v24496_v10, %v14999_v7  ;;  %v25737_v8 = vld [vmem:[#allocation45_spill] sm:$0xff]  ;;  %v25738_v7 = vld [vmem:[#allocation27_spill] sm:$0xff] }
0x1cfc   : > { %v24568_v53 = vpop.eup %20097  ;;  %v14996_v26 = vpop.xlane.xlu1 %14995 }
0x1cfd   : > { %v15056_v14 = vmul.f32 1.442695, %v15035_v63  ;;  %v15034_v37 = vsub.f32 %v24499_v50, %v14996_v26  ;;  %v15081_v41 = vsel %vm1551_vm2, %v24568_v53, 0.0  ;;  %v12452_v63 = vadd.f32 %v25738_v7, %v25737_v8 }
0x1cfe   : > { %v24573_v30 = vpop.eup %20099  ;;  %15082 = vadd.xlane.f32.xlu0 %v15081_v41  ;;  %v25740_v41 = vld [vmem:[#allocation40_spill] sm:$0xff] }
0x1cff   : > { %20105 = vpow2.f32 %v15056_v14  ;;  %v15054_v25 = vmul.f32 1.442695, %v15034_v37  ;;  %v15078_v62 = vsel %vm1551_vm2, %v24573_v30, 0.0  ;;  %v25739_v37 = vld [vmem:[#allocation46_spill] sm:$0xff] }
0x1d00   : > { %15079 = vadd.xlane.f32.xlu1 %v15078_v62 }
0x1d01   : > { %20107 = vpow2.f32 %v15054_v25  ;;  %v12444_v25 = vadd.f32 %v25740_v41, %v25739_v37  ;;  %v20265_v41 = vld [vmem:[%s25417_s2 + $0x18] sm:$0xff] }
0x1d02   : > { %v15005_v10 = vpop.xlane.xlu0 %15004 }
0x1d03   : > { %v15037_v9 = vsub.f32 %v24514_v0, %v15005_v10 }
0x1d04   : > { %v24578_v45 = vpop.eup %20101  ;;  %v15002_v38 = vpop.xlane.xlu1 %15001 }
0x1d05   : > { %v15060_v50 = vmul.f32 1.442695, %v15037_v9  ;;  %v15036_v48 = vsub.f32 %v24519_v35, %v15002_v38  ;;  %v15087_v44 = vsel %vm1551_vm2, %v24578_v45, 0.0 }
0x1d06   : > { %15088 = vadd.xlane.f32.xlu0 %v15087_v44 }
0x1d07   : > { %20109 = vpow2.f32 %v15060_v50  ;;  %v15058_v21 = vmul.f32 1.442695, %v15036_v48  ;;  %v25741_v50 = vld [vmem:[#allocation47_spill] sm:$0xff] }
0x1d08   : > { %v24583_v36 = vpop.eup %20103  ;;  %v25742_v48 = vld [vmem:[#allocation11_spill] sm:$0xff] }
0x1d09   : > { %20111 = vpow2.f32 %v15058_v21  ;;  %v15084_v13 = vsel %vm1551_vm2, %v24583_v36, 0.0  ;;  %v12455_v44 = vadd.f32 %v25742_v48, %v25741_v50 }
0x1d0a   : > { %15085 = vadd.xlane.f32.xlu1 %v15084_v13 }
0x1d0c   : > { %v24587_v0 = vpop.eup %20105 }
0x1d0d   : > { %v15093_v16 = vsel %vm1551_vm2, %v24587_v0, 0.0 }
0x1d0e   : > { %v24591_v40 = vpop.eup %20107  ;;  %15094 = vadd.xlane.f32.xlu0 %v15093_v16 }
0x1d0f   : > { %v15090_v35 = vsel %vm1551_vm2, %v24591_v40, 0.0 }
0x1d10   : > { %15091 = vadd.xlane.f32.xlu1 %v15090_v35 }
0x1d12   : > { %v15017_v2 = vpop.xlane.xlu0 %15016 }
0x1d13   : > { %v15041_v55 = vsub.f32 %v24528_v11, %v15017_v2  ;;  %v12436_v11 = vadd.f32 %v24033_v61, %v24139_v32  ;;  %v25743_v2 = vld [vmem:[#allocation48_spill] sm:$0xff] }
0x1d14   : > { %v24596_v54 = vpop.eup %20109  ;;  %v15014_v39 = vpop.xlane.xlu1 %15013 }
0x1d15   : > { %v15068_v33 = vmul.f32 1.442695, %v15041_v55  ;;  %v15040_v59 = vsub.f32 %v24531_v52, %v15014_v39  ;;  %v15099_v58 = vsel %vm1551_vm2, %v24596_v54, 0.0  ;;  %v12428_v52 = vadd.f32 %v25732_v24, %v25731_v5  ;;  %v25744_v55 = vld [vmem:[#allocation36_spill] sm:$0xff]  ;;  %v25747_v24 = vld [vmem:[#allocation50_spill] sm:$0xff] }
0x1d16   : > { %v24601_v28 = vpop.eup %20111  ;;  %15100 = vadd.xlane.f32.xlu0 %v15099_v58 }
0x1d17   : > { %20113 = vpow2.f32 %v15068_v33  ;;  %v15066_v51 = vmul.f32 1.442695, %v15040_v59  ;;  %v15096_v4 = vsel %vm1551_vm2, %v24601_v28, 0.0 }
0x1d18   : > { %15097 = vadd.xlane.f32.xlu1 %v15096_v4  ;;  %v25746_v4 = vld [vmem:[#allocation29_spill] sm:$0xff] }
0x1d19   : > { %20115 = vpow2.f32 %v15066_v51  ;;  %v25745_v51 = vld [vmem:[#allocation49_spill] sm:$0xff] }
0x1d1a   : > { %v19329_v29 = vpop.f32.mrf.mxu0 }
0x1d1b   : > { %v24609_v57 = vadd.f32 %v19329_v29, %v12436_v11  ;;  %v12468_v11 = vadd.f32 %v25746_v4, %v25745_v51  ;;  %v25753_v51 = vld [vmem:[#allocation20_spill] sm:$0xff]  ;;  %v25754_v4 = vld [vmem:[#allocation14_spill] sm:$0xff] }
0x1d1c   : > { %v14175_v3 = vpop.f32.mrf.mxu0 }
0x1d1d   : > { %v24613_v23 = vadd.f32 %v14175_v3, %v12428_v52  ;;  %v25748_v52 = vld [vmem:[#allocation41_spill] sm:$0xff] }
0x1d1e   : > { %v19330_v46 = vpop.f32.mrf.mxu0  ;;  %v12460_v3 = vadd.f32 %v25748_v52, %v25747_v24  ;;  %v25756_v24 = vld [vmem:[#allocation16_spill] sm:$0xff] }
0x1d1f   : > { %v24617_v6 = vadd.f32 %v19330_v46, %v12439_v47  ;;  %v15029_v61 = vpop.xlane.xlu0 %15028  ;;  %v25749_v47 = vld [vmem:[#allocation51_spill] sm:$0xff]  ;;  %v25750_v46 = vld [vmem:[#allocation24_spill] sm:$0xff] }
0x1d20   : > { %v14178_v32 = vpop.f32.mrf.mxu0  ;;  %v15045_v62 = vsub.f32 %v24538_v34, %v15029_v61  ;;  %v12447_v34 = vadd.f32 %v25744_v55, %v25743_v2  ;;  %v12471_v18 = vadd.f32 %v25750_v46, %v25749_v47  ;;  %v25751_v61 = vld [vmem:[#allocation52_spill] sm:$0xff]  ;;  %v25758_v47 = vld [vmem:[#allocation30_spill] sm:$0xff] }
0x1d21   : > { %v24621_v26 = vadd.f32 %v14178_v32, %v12431_v56  ;;  %v25752_v32 = vld [vmem:[#allocation38_spill] sm:$0xff] }
0x1d22   : > { %v19333_v14 = vpop.f32.mrf.mxu0  ;;  %v15076_v39 = vmul.f32 1.442695, %v15045_v62  ;;  %v12463_v8 = vadd.f32 %v25752_v32, %v25751_v61  ;;  %v25760_v61 = vld [vmem:[#allocation21_spill] sm:$0xff]  ;;  %v25761_v32 = vld [vmem:[#allocation28_spill] sm:$0xff] }
0x1d23   : > { %v24626_v10 = vadd.f32 %v19333_v14, %v12452_v63 }
0x1d24   : > { %v24628_v9 = vpop.eup %20113  ;;  %v14191_v38 = vpop.f32.mrf.mxu0  ;;  %20117 = vpow2.f32 %v15076_v39 }
0x1d25   : > { %v24632_v21 = vadd.f32 %v14191_v38, %v12444_v25  ;;  %v15111_v13 = vsel %vm1551_vm2, %v24628_v9, 0.0  ;;  %v20266_v38 = vld [vmem:[%s25417_s2 + $0x10] sm:$0xff] }
0x1d26   : > { %v24636_v16 = vpop.eup %20115  ;;  %15112 = vadd.xlane.f32.xlu0 %v15111_v13  ;;  %v19334_v35 = vpop.f32.mrf.mxu0 }
0x1d27   : > { %v24640_v33 = vadd.f32 %v19334_v35, %v12455_v44  ;;  %v15108_v59 = vsel %vm1551_vm2, %v24636_v16, 0.0 }
0x1d28   : > { %15109 = vadd.xlane.f32.xlu1 %v15108_v59  ;;  %v14194_v58 = vpop.f32.mrf.mxu0 }
0x1d29   : > { %v24646_v29 = vadd.f32 %v14194_v58, %v12447_v34 }
0x1d2a   : > { %v19337_v5 = vpop.f32.mrf.mxu0 }
0x1d2b   : > { %v24650_v43 = vadd.f32 %v19337_v5, %v12468_v11  ;;  %v25755_v11 = vld [vmem:[#allocation17_spill] sm:$0xff]  ;;  %v15026_v5 = vpop.xlane.xlu1 %15025 }
0x1d2c   : > { %v14207_v31 = vpop.f32.mrf.mxu0  ;;  %v15044_v52 = vsub.f32 %v24541_v60, %v15026_v5  ;;  %v25759_v60 = vld [vmem:[#allocation22_spill] sm:$0xff] }
0x1d2d   : > { %v24654_v22 = vadd.f32 %v14207_v31, %v12460_v3  ;;  %v25757_v3 = vld [vmem:[#allocation18_spill] sm:$0xff] }
0x1d2e   : > { %v19338_v56 = vpop.f32.mrf.mxu0  ;;  %v15074_v31 = vmul.f32 1.442695, %v15044_v52 }
0x1d2f   : > { %v24658_v7 = vadd.f32 %v19338_v56, %v12471_v18 }
0x1d30   : > { %v14210_v63 = vpop.f32.mrf.mxu0  ;;  %20119 = vpow2.f32 %v15074_v31 }
0x1d31   : > { %v24660_v14 = vadd.f32 %v14210_v63, %v12463_v8  ;;  %v24670_v13 = vpop.eup %20117 }
0x1d32   : > { %v19373_v37 = vpop.f32.mrf.mxu0  ;;  %v15123_v55 = vsel %vm1551_vm2, %v24670_v13, 0.0 }
0x1d33   : > { %v14975_v25 = vmul.f32 %v20265_v41, %v19373_v37 }
0x1d34   : > { %v14684_v62 = vpop.f32.mrf.mxu0 }
0x1d35   : > { %v14974_v50 = vmul.f32 %v20266_v38, %v14684_v62  ;;  %v15009_v48 = vsel %vm1551_vm2, %v14975_v25, -inf }
0x1d36   : > { %15010 = vmax.xlane.f32.xlu0 %v15009_v48 }
0x1d37   : > { %v15006_v44 = vsel %vm1551_vm2, %v14974_v50, -inf }
0x1d38   : > { %15007 = vmax.xlane.f32.xlu1 %v15006_v44 }
0x1d3a   : > { %v19387_v35 = vpop.f32.mrf.mxu0 }
0x1d3b   : > { %v24672_v2 = vmul.f32 %v20265_v41, %v19387_v35 }
0x1d3c   : > { %v14866_v34 = vpop.f32.mrf.mxu0  ;;  %15124 = vadd.xlane.f32.xlu1 %v15123_v55 }
0x1d3d   : > { %v24676_v39 = vmul.f32 %v20266_v38, %v14866_v34  ;;  %v15021_v59 = vsel %vm1551_vm2, %v24672_v2, -inf  ;;  %v24699_v46 = vpop.eup %20119 }
0x1d3e   : > { %15022 = vmax.xlane.f32.xlu0 %v15021_v59  ;;  %v15120_v18 = vsel %vm1551_vm2, %v24699_v46, 0.0 }
0x1d3f   : > { %v15018_v58 = vsel %vm1551_vm2, %v24676_v39, -inf }
0x1d40   : > { %15019 = vmax.xlane.f32.xlu1 %v15018_v58 }
0x1d51   : > { %15247 = vrot.lane.b32.xlu1 %v25753_v51, %s20282_s28 }
0x1d54   : > { %15158 = vrot.lane.b32.xlu0 %v25754_v4, %s20282_s28 }
0x1d55   : > { %15334 = vrot.lane.b32.xlu1 %v25755_v11, %s20282_s28 }
0x1d59   : > { %15421 = vrot.lane.b32.xlu1 %v25756_v24, %s20282_s28 }
0x1d5d   : > { %15419 = vrot.lane.b32.xlu1 %v25757_v3, %s20282_s28 }
0x1d61   : > { %15595 = vrot.lane.b32.xlu1 %v25758_v47, %s20282_s28 }
0x1d65   : > { %15593 = vrot.lane.b32.xlu1 %v25727_v1, %s20282_s28 }
0x1d69   : > { %15769 = vrot.lane.b32.xlu1 %v25729_v49, %s20282_s28  ;;  %v25762_v49 = vld [vmem:[#allocation5_spill] sm:$0xff] }
0x1d73   : > { %15121 = vadd.xlane.f32.xlu0 %v15120_v18 }
0x1d87   : > { %v15083_v38 = vpop.xlane.xlu0 %15082 }
0x1d89   : > { %15245 = vrot.lane.b32.xlu0 %v25759_v60, %s20282_s28  ;;  %v15080_v56 = vpop.xlane.xlu1 %15079 }
0x1d8a   : > { %20121 = vrcp.f32 %v15080_v56 }
0x1d8d   : > { %15332 = vrot.lane.b32.xlu0 %v25760_v61, %s20282_s28 }
0x1d8f   : > { %v15089_v48 = vpop.xlane.xlu0 %15088 }
0x1d91   : > { %15508 = vrot.lane.b32.xlu0 %v25761_v32, %s20282_s28 }
0x1d93   : > { %v15086_v1 = vpop.xlane.xlu1 %15085 }
0x1d95   : > { %15506 = vrot.lane.b32.xlu0 %v25762_v49, %s20282_s28 }
0x1d97   : > { %v20122_v8 = vpop.eup %20121  ;;  %v15095_v44 = vpop.xlane.xlu0 %15094 }
0x1d98   : > { %v15142_v63 = vmul.f32 %v20122_v8, %v24573_v30 }
0x1d99   : > { %15682 = vrot.lane.b32.xlu0 %v25730_v20, %s20282_s28  ;;  %v15092_v37 = vpop.xlane.xlu1 %15091 }
0x1d9a   : > { %20123 = vrcp.f32 %v15092_v37  ;;  %19399 = vmatprep.mubr.msk.f32.mxu0 %vm1551_vm2, %v15142_v63 }
0x1d9b   : > { %20125 = vrcp.f32 %v15083_v38 }
0x1d9c   : > { %20127 = vrcp.f32 %v15086_v1 }
0x1d9f   : > { %v15101_v35 = vpop.xlane.xlu0 %15100 }
0x1da1   : > { %v15098_v55 = vpop.xlane.xlu1 %15097 }
0x1da7   : > { %v20124_v41 = vpop.eup %20123 }
0x1da8   : > { %v15146_v62 = vmul.f32 %v20124_v41, %v24591_v40  ;;  %v20126_v52 = vpop.eup %20125 }
0x1da9   : > { %v20128_v31 = vpop.eup %20127 }
0x1daa   : > { %19413 = vmatprep.mubr.msk.f32.mxu1 %vm1551_vm2, %v15146_v62  ;;  %v15144_v61 = vmul.f32 %v20128_v31, %v24583_v36 }
0x1daf   : > { %v15113_v34 = vpop.xlane.xlu0 %15112 }
0x1db1   : > { %v15110_v30 = vpop.xlane.xlu1 %15109 }
0x1dbf   : > { %v15011_v59 = vpop.xlane.xlu0 %15010 }
0x1dc0   : > { %v15039_v20 = vsub.f32 %v14975_v25, %v15011_v59  ;;  %v15143_v25 = vmul.f32 %v20126_v52, %v24568_v53 }
0x1dc1   : > { %v15008_v58 = vpop.xlane.xlu1 %15007 }
0x1dc2   : > { %v15064_v51 = vmul.f32 1.442695, %v15039_v20  ;;  %v15038_v4 = vsub.f32 %v14974_v50, %v15008_v58 }
0x1dc4   : > { %20129 = vpow2.f32 %v15064_v51  ;;  %v15062_v11 = vmul.f32 1.442695, %v15038_v4 }
0x1dc5   : > { %v24717_v5 = vpop.xlane.xlu1 %15124 }
0x1dc6   : > { %20131 = vpow2.f32 %v15062_v11 }
0x1dc7   : > { %v15023_v40 = vpop.xlane.xlu0 %15022 }
0x1dc8   : > { %v15043_v24 = vsub.f32 %v24672_v2, %v15023_v40 }
0x1dc9   : > { %v15020_v3 = vpop.xlane.xlu1 %15019 }
0x1dca   : > { %v15072_v47 = vmul.f32 1.442695, %v15043_v24  ;;  %v15042_v18 = vsub.f32 %v24676_v39, %v15020_v3 }
0x1dcb   : > { %v15159_v60 = vpop.permute.xlu0 %15158 }
0x1dcc   : > { %20133 = vpow2.f32 %v15072_v47  ;;  %v15070_v56 = vmul.f32 1.442695, %v15042_v18  ;;  %19397 = vmatprep.subr.mxu0 %v15159_v60 }
0x1dcd   : > { %19398 = vmatpush3.msra.mxu0 %v15159_v60  ;;  %v15248_v50 = vpop.permute.xlu1 %15247 }
0x1dce   : > { %20135 = vpow2.f32 %v15070_v56  ;;  %19400 = vmatmul.mubr.msk.f32.vlgmr.msra.gmra.mxu0 %vm1551_vm2, %v15143_v25  ;;  %19402 = vmatprep.subr.mxu0 %v15248_v50 }
0x1dcf   : > { %19406 = vmatprep.mubr.msk.f32.mxu0 %vm1551_vm2, %v15144_v61  ;;  %19403 = vmatpush3.msra.mxu0 %v15248_v50  ;;  %20137 = vrcp.f32 %v15089_v48 }
0x1dd0   : > { %20139 = vrcp.f32 %v15098_v55 }
0x1dd1   : > { %v24725_v2 = vpop.eup %20129  ;;  %v15335_v39 = vpop.permute.xlu1 %15334  ;;  %20141 = vrcp.f32 %v15095_v44 }
0x1dd2   : > { %19409 = vmatprep.subr.mxu1 %v15335_v39  ;;  %v15105_v53 = vsel %vm1551_vm2, %v24725_v2, 0.0  ;;  %20143 = vrcp.f32 %v15101_v35 }
0x1dd3   : > { %v24729_v32 = vpop.eup %20131  ;;  %15106 = vadd.xlane.f32.xlu0 %v15105_v53  ;;  %19410 = vmatpush3.msra.mxu1 %v15335_v39  ;;  %20145 = vrcp.f32 %v15110_v30 }
0x1dd4   : > { %v15102_v36 = vsel %vm1551_vm2, %v24729_v32, 0.0  ;;  %20147 = vrcp.f32 %v15113_v34 }
0x1dd5   : > { %15103 = vadd.xlane.f32.xlu1 %v15102_v36  ;;  %v15422_v37 = vpop.permute.xlu1 %15421 }
0x1dd9   : > { %v24733_v1 = vpop.eup %20133  ;;  %v15420_v41 = vpop.permute.xlu1 %15419 }
0x1dda   : > { %v15117_v49 = vsel %vm1551_vm2, %v24733_v1, 0.0 }
0x1ddb   : > { %v24737_v8 = vpop.eup %20135  ;;  %15118 = vadd.xlane.f32.xlu1 %v15117_v49 }
0x1ddc   : > { %v15114_v63 = vsel %vm1551_vm2, %v24737_v8, 0.0  ;;  %v20138_v38 = vpop.eup %20137 }
0x1ddd   : > { %15115 = vadd.xlane.f32.xlu0 %v15114_v63  ;;  %v20140_v59 = vpop.eup %20139  ;;  %v15596_v20 = vpop.permute.xlu1 %15595 }
0x1dde   : > { %v20142_v51 = vpop.eup %20141  ;;  %v15148_v55 = vmul.f32 %v20140_v59, %v24601_v28 }
0x1ddf   : > { %v20144_v48 = vpop.eup %20143  ;;  %v15147_v35 = vmul.f32 %v20142_v51, %v24587_v0 }
0x1de0   : > { %v15149_v34 = vmul.f32 %v20144_v48, %v24596_v54 }
0x1de1   : > { %v15594_v30 = vpop.permute.xlu1 %15593 }
0x1de5   : > { %v15770_v11 = vpop.permute.xlu1 %15769 }
0x1dec   : > { %15767 = vrot.lane.b32.xlu1 %v23231_v15, %s20282_s28  ;;  %v15145_v15 = vmul.f32 %v20138_v38, %v24578_v45 }
0x1df3   : > { %15680 = vrot.lane.b32.xlu0 %v23219_v27, %s20282_s28  ;;  %v20146_v27 = vpop.eup %20145  ;;  %s25332_s28 = scalar_lea.vmem %s25428_s13, %s16964_s15 }
0x1df4   : > { %v15152_v45 = vmul.f32 %v20146_v27, %v24636_v16  ;;  %v20148_v28 = vpop.eup %20147 }
0x1df5   : > { %v15153_v54 = vmul.f32 %v20148_v28, %v24628_v9 }
0x1dfc   : > { %v15122_v62 = vpop.xlane.xlu0 %15121 }
0x1dfd   : > { %20149 = vrcp.f32 %v15122_v62 }
0x1dfe   : > { %20151 = vrcp.f32 %v24717_v5 }
0x1e00   : > { %v15246_v58 = vpop.permute.xlu0 %15245 }
0x1e01   : > { %19404 = vmatprep.subr.mxu0 %v15246_v58 }
0x1e02   : > { %19405 = vmatpush3.msra.mxu0 %v15246_v58 }
0x1e03   : > { %19407 = vmatmul.mubr.msk.f32.vlgmr.msra.gmra.mxu0 %vm1551_vm2, %v15145_v15  ;;  %19416 = vmatprep.subr.mxu0 %v15422_v37 }
0x1e04   : > { %v15333_v44 = vpop.permute.xlu0 %15332  ;;  %19417 = vmatpush3.msra.mxu0 %v15422_v37  ;;  %19420 = vmatprep.mubr.msk.f32.mxu0 %vm1551_vm2, %v15148_v55 }
0x1e05   : > { %19411 = vmatprep.subr.mxu1 %v15333_v44  ;;  %19418 = vmatprep.subr.mxu0 %v15420_v41 }
0x1e06   : > { %19412 = vmatpush3.msra.mxu1 %v15333_v44  ;;  %19419 = vmatpush3.msra.mxu0 %v15420_v41 }
0x1e07   : > { %19414 = vmatmul.mubr.msk.f32.vlgmr.msra.gmra.mxu1 %vm1551_vm2, %v15147_v35  ;;  %19421 = vmatmul.mubr.msk.f32.vlgmr.msra.gmra.mxu0 %vm1551_vm2, %v15149_v34 }
0x1e08   : > { %19430 = vmatprep.subr.mxu0 %v15596_v20  ;;  %v15509_v4 = vpop.permute.xlu0 %15508  ;;  %19434 = vmatprep.mubr.msk.f32.mxu0 %vm1551_vm2, %v15152_v45 }
0x1e09   : > { %19431 = vmatpush3.msra.mxu0 %v15596_v20  ;;  %19423 = vmatprep.subr.mxu1 %v15509_v4 }
0x1e0a   : > { %v20150_v0 = vpop.eup %20149  ;;  %19432 = vmatprep.subr.mxu0 %v15594_v30  ;;  %19424 = vmatpush3.msra.mxu1 %v15509_v4 }
0x1e0b   : > { %19433 = vmatpush3.msra.mxu0 %v15594_v30  ;;  %v15156_v16 = vmul.f32 %v20150_v0, %v24699_v46  ;;  %v20152_v31 = vpop.eup %20151 }
0x1e0c   : > { %19435 = vmatmul.mubr.msk.f32.vlgmr.msra.gmra.mxu0 %vm1551_vm2, %v15153_v54  ;;  %19444 = vmatprep.subr.mxu0 %v15770_v11  ;;  %v15507_v40 = vpop.permute.xlu0 %15506  ;;  %v15157_v18 = vmul.f32 %v20152_v31, %v24670_v13  ;;  %v17234_v13 = vld [vmem:[%s25419_s4 + $0x1c] sm:$0xf]  ;;  %v25764_v31 = vld [vmem:[#allocation7_spill] sm:$0xff] }
0x1e0d   : > { %19445 = vmatpush3.msra.mxu0 %v15770_v11  ;;  %19425 = vmatprep.subr.mxu1 %v15507_v40 }
0x1e0e   : > { %19448 = vmatprep.mubr.msk.f32.mxu0 %vm1551_vm2, %v15156_v16  ;;  %19426 = vmatpush3.msra.mxu1 %v15507_v40 }
0x1e10   : > { %v15683_v24 = vpop.permute.xlu0 %15682 }
0x1e11   : > { %19437 = vmatprep.subr.mxu1 %v15683_v24 }
0x1e5c   : > { %v15107_v9 = vpop.xlane.xlu0 %15106 }
0x1e5d   : > { %20153 = vrcp.f32 %v15107_v9 }
0x1e5e   : > { %v15104_v52 = vpop.xlane.xlu1 %15103 }
0x1e5f   : > { %20155 = vrcp.f32 %v15104_v52 }
0x1e64   : > { %v15119_v3 = vpop.xlane.xlu1 %15118 }
0x1e65   : > { %20157 = vrcp.f32 %v15119_v3 }
0x1e66   : > { %v15116_v46 = vpop.xlane.xlu0 %15115 }
0x1e67   : > { %20159 = vrcp.f32 %v15116_v46 }
0x1e68   : > { %v15768_v47 = vpop.permute.xlu1 %15767 }
0x1e69   : > { %19446 = vmatprep.subr.mxu0 %v15768_v47 }
0x1e6a   : > { %19447 = vmatpush3.msra.mxu0 %v15768_v47  ;;  %v20154_v60 = vpop.eup %20153  ;;  %v15681_v50 = vpop.permute.xlu0 %15680 }
0x1e6b   : > { %19449 = vmatmul.mubr.msk.f32.vlgmr.msra.gmra.mxu0 %vm1551_vm2, %v15157_v18  ;;  %v15151_v56 = vmul.f32 %v20154_v60, %v24725_v2 }
0x1e6c   : > { %v20156_v25 = vpop.eup %20155 }
0x1e6d   : > { %v15150_v5 = vmul.f32 %v20156_v25, %v24729_v32  ;;  %v15887_v32 = vsel %vm4048_vm3, %v17234_v13, 0 }
0x1e6f   : > { %19427 = vmatprep.mubr.msk.f32.mxu1 %vm1551_vm2, %v15150_v5 }
0x1e70   : > { %19428 = vmatmul.mubr.msk.f32.vlgmr.msra.gmra.mxu1 %vm1551_vm2, %v15151_v56 }
0x1e71   : > { %19438 = vmatpush3.msra.mxu1 %v15683_v24  ;;  %v25763_v24 = vld [vmem:[#allocation3_spill] sm:$0xff] }
0x1e72   : > { %19439 = vmatprep.subr.mxu1 %v15681_v50  ;;  %v20158_v61 = vpop.eup %20157 }
0x1e73   : > { %19440 = vmatpush3.msra.mxu1 %v15681_v50  ;;  %v15155_v2 = vmul.f32 %v20158_v61, %v24733_v1 }
0x1e74   : > { %v20160_v39 = vpop.eup %20159  ;;  %19552 = vmatprep.subr.msk.bf16.mxu1 %vm4048_vm3, %v17234_v13 }
0x1e75   : > { %v15154_v53 = vmul.f32 %v20160_v39, %v24737_v8  ;;  %v25767_v39 = vld [vmem:[#allocation33_spill] sm:$0xff] }
0x1e77   : > { %19441 = vmatprep.mubr.msk.f32.mxu1 %vm1551_vm2, %v15154_v53 }
0x1e78   : > { %19442 = vmatmul.mubr.msk.f32.vlgmr.msra.gmra.mxu1 %vm1551_vm2, %v15155_v2 }
0x1e79   : > { %19452 = vmatpush3.bf16.msra.mxu1 %v15887_v32 }
0x1e8e   : > { %v19401_v36 = vpop.f32.mrf.mxu0 }
0x1e90   : > { %v15236_v49 = vpop.f32.mrf.mxu0 }
0x1e91   : > { %v15854_v63 = vpack.c.bf16 %v19401_v36, %v15236_v49  ;;  %v25768_v36 = vld [vmem:[#allocation35_spill] sm:$0xff] }
0x1e93   : > { %19453 = vmatprep.mubr.msk.bf16.mxu1 %vm842_vm1, %v15854_v63 }
0x1ec3   : > { %v19408_v37 = vpop.f32.mrf.mxu0 }
0x1ec5   : > { %v15323_v41 = vpop.f32.mrf.mxu0 }
0x1ec6   : > { %v15855_v62 = vpack.c.bf16 %v19408_v37, %v15323_v41  ;;  %v25769_v37 = vld [vmem:[#allocation8_spill] sm:$0xff] }
0x1ec7   : > { %v19415_v38 = vpop.f32.mrf.mxu1  ;;  %v19422_v59 = vpop.f32.mrf.mxu0 }
0x1ec8   : > { %19454 = vmatmul.mubr.msk.bf16.vlgmr.msra.gmra.mxu1 %vm842_vm1, %v15855_v62  ;;  %v25770_v62 = vld [vmem:[#allocation10_spill] sm:$0xff] }
0x1ec9   : > { %v15410_v1 = vpop.f32.mrf.mxu1  ;;  %v15497_v20 = vpop.f32.mrf.mxu0 }
0x1eca   : > { %v15856_v8 = vpack.c.bf16 %v19415_v38, %v15410_v1  ;;  %v15857_v58 = vpack.c.bf16 %v19422_v59, %v15497_v20 }
0x1ecc   : > { %19457 = vmatprep.mubr.msk.bf16.mxu1 %vm842_vm1, %v15856_v8  ;;  %v19436_v51 = vpop.f32.mrf.mxu0 }
0x1ece   : > { %v15671_v48 = vpop.f32.mrf.mxu0 }
0x1ecf   : > { %v15859_v44 = vpack.c.bf16 %v19436_v51, %v15671_v48 }
0x1ed0   : > { %19458 = vmatmul.mubr.msk.bf16.gmra.mxu1 %vm842_vm1, %v15857_v58 }
0x1f2b   : > { %v19450_v35 = vpop.f32.mrf.mxu0 }
0x1f2d   : > { %v15845_v30 = vpop.f32.mrf.mxu0 }
0x1f2e   : > { %v15861_v4 = vpack.c.bf16 %v19450_v35, %v15845_v30 }
0x1f30   : > { %v19429_v15 = vpop.f32.mrf.mxu1 }
0x1f32   : > { %v15584_v55 = vpop.f32.mrf.mxu1 }
0x1f33   : > { %v15858_v27 = vpack.c.bf16 %v19429_v15, %v15584_v55  ;;  %v25771_v15 = vld [vmem:[#allocation37_spill] sm:$0xff] }
0x1f35   : > { %19461 = vmatprep.mubr.msk.bf16.mxu1 %vm842_vm1, %v15858_v27 }
0x1f36   : > { %19462 = vmatmul.mubr.msk.bf16.gmra.mxu1 %vm842_vm1, %v15859_v44  ;;  %v25772_v44 = vld [vmem:[#allocation39_spill] sm:$0xff] }
0x1f38   : > { %v19443_v34 = vpop.f32.mrf.mxu1 }
0x1f3a   : > { %v15758_v45 = vpop.f32.mrf.mxu1 }
0x1f3b   : > { %v15860_v28 = vpack.c.bf16 %v19443_v34, %v15758_v45 }
0x1f3d   : > { %19465 = vmatprep.mubr.msk.bf16.mxu1 %vm842_vm1, %v15860_v28 }
0x1f3e   : > { %19466 = vmatmul.mubr.msk.bf16.gmra.mxu1 %vm842_vm1, %v15861_v4 }
0x1f88   : > { %v19455_v0 = vpop.f32.mrf.mxu1 }
0x1f89   : > { %v15988_v11 = vadd.f32 %v19455_v0, %v24551_v17  ;;  %v25765_v17 = vld [vmem:[#allocation25_spill] sm:$0xff] }
0x1f8a   : > { %v15923_v54 = vpop.f32.mrf.mxu1 }
0x1f8b   : > { %v15986_v16 = vadd.f32 %v15923_v54, %v24555_v12  ;;  %v24790_v46 = vadd.f32 %v15988_v11, %v25764_v31  ;;  %v25766_v12 = vld [vmem:[#allocation9_spill] sm:$0xff]  ;;  %v25776_v31 = vld [vmem:[#allocation19_spill] sm:$0xff] }
0x1f8c   : > { %v19456_v40 = vpop.f32.mrf.mxu1 }
0x1f8d   : > { %v24786_v9 = vadd.f32 %v15986_v16, %v25763_v24  ;;  %v15989_v52 = vadd.f32 %v19456_v40, %v24559_v42  ;;  %v16028_v13 = vsel %vm507_vm0, %v24790_v46, 0.0  ;;  %v25775_v40 = vld [vmem:[#allocation15_spill] sm:$0xff] }
0x1f8e   : > { %v15926_v3 = vpop.f32.mrf.mxu1 }
0x1f8f   : > { %v15987_v47 = vadd.f32 %v15926_v3, %v24562_v19  ;;  %v16022_v18 = vsel %vm507_vm0, %v24786_v9, 0.0  ;;  %v24799_v5 = vadd.f32 %v15989_v52, %v25766_v12  ;;  %v25778_v12 = vld [vmem:[#allocation12_spill] sm:$0xff] }
0x1f90   : > { %16023 = vadd.xlane.f32.xlu0 %v16022_v18  ;;  %v19459_v60 = vpop.f32.mrf.mxu1 }
0x1f91   : > { %v24796_v25 = vadd.f32 %v15987_v47, %v25765_v17  ;;  %v15992_v42 = vadd.f32 %v19459_v60, %v24609_v57  ;;  %v16031_v32 = vsel %vm507_vm0, %v24799_v5, 0.0  ;;  %v25777_v60 = vld [vmem:[#allocation13_spill] sm:$0xff] }
0x1f92   : > { %v15939_v56 = vpop.f32.mrf.mxu1 }
0x1f93   : > { %v15990_v50 = vadd.f32 %v15939_v56, %v24613_v23  ;;  %v16025_v19 = vsel %vm507_vm0, %v24796_v25, 0.0  ;;  %v24813_v57 = vadd.f32 %v15992_v42, %v25768_v36 }
0x1f94   : > { %16029 = vadd.xlane.f32.xlu0 %v16028_v13  ;;  %16026 = vadd.xlane.f32.xlu1 %v16025_v19  ;;  %v19460_v61 = vpop.f32.mrf.mxu1 }
0x1f95   : > { %v24808_v53 = vadd.f32 %v15990_v50, %v25767_v39  ;;  %v15993_v23 = vadd.f32 %v19460_v61, %v24617_v6  ;;  %v16040_v59 = vsel %vm507_vm0, %v24813_v57, 0.0 }
0x1f96   : > { %v15942_v2 = vpop.f32.mrf.mxu1 }
0x1f97   : > { %v15991_v49 = vadd.f32 %v15942_v2, %v24621_v26  ;;  %v16034_v63 = vsel %vm507_vm0, %v24808_v53, 0.0  ;;  %v24823_v38 = vadd.f32 %v15993_v23, %v25770_v62 }
0x1f98   : > { %16032 = vadd.xlane.f32.xlu0 %v16031_v32  ;;  %16035 = vadd.xlane.f32.xlu1 %v16034_v63 }
0x1f99   : > { %v24820_v41 = vadd.f32 %v15991_v49, %v25769_v37  ;;  %v16043_v6 = vsel %vm507_vm0, %v24823_v38, 0.0 }
0x1f9b   : > { %v16037_v1 = vsel %vm507_vm0, %v24820_v41, 0.0 }
0x1f9c   : > { %16041 = vadd.xlane.f32.xlu1 %v16040_v59  ;;  %16038 = vadd.xlane.f32.xlu0 %v16037_v1 }
0x1fa0   : > { %16044 = vadd.xlane.f32.xlu0 %v16043_v6 }
0x1ff6   : > { %v19463_v26 = vpop.f32.mrf.mxu1 }
0x1ff7   : > { %v15996_v20 = vadd.f32 %v19463_v26, %v24626_v10  ;;  %v25773_v10 = vld [vmem:[#allocation23_spill] sm:$0xff] }
0x1ff8   : > { %v15955_v8 = vpop.f32.mrf.mxu1 }
0x1ff9   : > { %v15994_v58 = vadd.f32 %v15955_v8, %v24632_v21  ;;  %v24838_v35 = vadd.f32 %v15996_v20, %v25772_v44  ;;  %v25774_v21 = vld [vmem:[#allocation26_spill] sm:$0xff] }
0x1ffa   : > { %v19464_v51 = vpop.f32.mrf.mxu1 }
0x1ffb   : > { %v24834_v48 = vadd.f32 %v15994_v58, %v25771_v15  ;;  %v15997_v55 = vadd.f32 %v19464_v51, %v24640_v33  ;;  %v16052_v11 = vsel %vm507_vm0, %v24838_v35, 0.0 }
0x1ffc   : > { %v15958_v27 = vpop.f32.mrf.mxu1 }
0x1ffd   : > { %v15995_v34 = vadd.f32 %v15958_v27, %v24646_v29  ;;  %v16046_v30 = vsel %vm507_vm0, %v24834_v48, 0.0  ;;  %v24847_v4 = vadd.f32 %v15997_v55, %v25774_v21 }
0x1ffe   : > { %16047 = vadd.xlane.f32.xlu1 %v16046_v30  ;;  %v19467_v45 = vpop.f32.mrf.mxu1 }
0x1fff   : > { %v24844_v28 = vadd.f32 %v15995_v34, %v25773_v10  ;;  %v16000_v33 = vadd.f32 %v19467_v45, %v24650_v43  ;;  %v16055_v3 = vsel %vm507_vm0, %v24847_v4, 0.0 }
0x2000   : > { %v15971_v0 = vpop.f32.mrf.mxu1 }
0x2001   : > { %v15998_v54 = vadd.f32 %v15971_v0, %v24654_v22  ;;  %v16049_v29 = vsel %vm507_vm0, %v24844_v28, 0.0  ;;  %v24861_v43 = vadd.f32 %v16000_v33, %v25776_v31 }
0x2002   : > { %16053 = vadd.xlane.f32.xlu1 %v16052_v11  ;;  %16050 = vadd.xlane.f32.xlu0 %v16049_v29  ;;  %v19468_v16 = vpop.f32.mrf.mxu1  ;;  %v19579_v11 = vld [vmem:[%s25422_s7 + $0x18] sm:$0xff]  }
0x2003   : > { %v24856_v24 = vadd.f32 %v15998_v54, %v25775_v40  ;;  %v16001_v22 = vadd.f32 %v19468_v16, %v24658_v7  ;;  %v16064_v42 = vsel %vm507_vm0, %v24861_v43, 0.0  ;;  %19469 = vmatprep.subr.bf16.mxu0 %v19579_v11 }
0x2004   : > { %v15974_v52 = vpop.f32.mrf.mxu1  ;;  %19470 = vmatpush3.bf16.msra.mxu0 %v19579_v11 }
0x2005   : > { %v15999_v47 = vadd.f32 %v15974_v52, %v24660_v14  ;;  %v16058_v18 = vsel %vm507_vm0, %v24856_v24, 0.0  ;;  %v24871_v56 = vadd.f32 %v16001_v22, %v25778_v12 }
0x2006   : > { %16056 = vadd.xlane.f32.xlu0 %v16055_v3  ;;  %16059 = vadd.xlane.f32.xlu1 %v16058_v18 }
0x2007   : > { %v24868_v17 = vadd.f32 %v15999_v47, %v25777_v60  ;;  %v16067_v7 = vsel %vm507_vm0, %v24871_v56, 0.0 }
0x2009   : > { %v16061_v50 = vsel %vm507_vm0, %v24868_v17, 0.0 }
0x200a   : > { %16065 = vadd.xlane.f32.xlu1 %v16064_v42  ;;  %16062 = vadd.xlane.f32.xlu0 %v16061_v50 }
0x200e   : > { %16068 = vadd.xlane.f32.xlu0 %v16067_v7 }
0x2019   : > { %v16024_v14 = vpop.xlane.xlu0 %16023 }
0x201a   : > { %v16070_v13 = vmul.f32 0.03125, %v16024_v14 }
0x201c   : > { %v24880_v19 = vsub.f32 %v24786_v9, %v16070_v13 }
0x201d   : > { %v16030_v61 = vpop.xlane.xlu0 %16029  ;;  %v16027_v39 = vpop.xlane.xlu1 %16026 }
0x201e   : > { %v16072_v2 = vmul.f32 0.03125, %v16030_v61  ;;  %v16071_v32 = vmul.f32 0.03125, %v16027_v39  ;;  %v16102_v36 = vmul.f32 %v24880_v19, %v24880_v19 }
0x2020   : > { %v24885_v23 = vsub.f32 %v24790_v46, %v16072_v2  ;;  %v24888_v49 = vsub.f32 %v24796_v25, %v16071_v32  ;;  %v16118_v63 = vsel %vm507_vm0, %v16102_v36, 0.0 }
0x2021   : > { %v16033_v37 = vpop.xlane.xlu0 %16032  ;;  %16119 = vadd.xlane.f32.xlu1 %v16118_v63  ;;  %v16036_v62 = vpop.xlane.xlu1 %16035 }
0x2022   : > { %v16073_v9 = vmul.f32 0.03125, %v16033_v37  ;;  %v16074_v59 = vmul.f32 0.03125, %v16036_v62  ;;  %v16104_v1 = vmul.f32 %v24885_v23, %v24885_v23  ;;  %v16103_v6 = vmul.f32 %v24888_v49, %v24888_v49 }
0x2024   : > { %v24896_v26 = vsub.f32 %v24799_v5, %v16073_v9  ;;  %v24899_v46 = vsub.f32 %v24808_v53, %v16074_v59  ;;  %v16124_v25 = vsel %vm507_vm0, %v16104_v1, 0.0  ;;  %v16121_v8 = vsel %vm507_vm0, %v16103_v6, 0.0 }
0x2025   : > { %v16039_v20 = vpop.xlane.xlu0 %16038  ;;  %16125 = vadd.xlane.f32.xlu1 %v16124_v25  ;;  %16122 = vadd.xlane.f32.xlu0 %v16121_v8  ;;  %v16042_v58 = vpop.xlane.xlu1 %16041 }
0x2026   : > { %v16075_v51 = vmul.f32 0.03125, %v16039_v20  ;;  %v16076_v15 = vmul.f32 0.03125, %v16042_v58  ;;  %v16105_v55 = vmul.f32 %v24896_v26, %v24896_v26  ;;  %v16106_v5 = vmul.f32 %v24899_v46, %v24899_v46 }
0x2028   : > { %v24908_v27 = vsub.f32 %v24820_v41, %v16075_v51  ;;  %v24911_v53 = vsub.f32 %v24813_v57, %v16076_v15  ;;  %v16127_v44 = vsel %vm507_vm0, %v16105_v55, 0.0  ;;  %v16130_v34 = vsel %vm507_vm0, %v16106_v5, 0.0 }
0x2029   : > { %v16045_v30 = vpop.xlane.xlu0 %16044  ;;  %16128 = vadd.xlane.f32.xlu0 %v16127_v44  ;;  %16131 = vadd.xlane.f32.xlu1 %v16130_v34 }
0x202a   : > { %v16077_v45 = vmul.f32 0.03125, %v16045_v30  ;;  %v16107_v10 = vmul.f32 %v24908_v27, %v24908_v27  ;;  %v16108_v21 = vmul.f32 %v24911_v53, %v24911_v53 }
0x202c   : > { %v24920_v41 = vsub.f32 %v24823_v38, %v16077_v45  ;;  %v16133_v57 = vsel %vm507_vm0, %v16107_v10, 0.0  ;;  %v16136_v0 = vsel %vm507_vm0, %v16108_v21, 0.0  ;;  %v19580_v38 = vld [vmem:[%s25422_s7 + $0x10] sm:$0xff]  }
0x202d   : > { %16134 = vadd.xlane.f32.xlu0 %v16133_v57  ;;  %16137 = vadd.xlane.f32.xlu1 %v16136_v0 }
0x202e   : > { %v16109_v33 = vmul.f32 %v24920_v41, %v24920_v41  ;;  %19471 = vmatprep.subr.bf16.mxu0 %v19580_v38 }
0x202f   : > { %19472 = vmatpush3.bf16.msra.mxu0 %v19580_v38 }
0x2030   : > { %v16139_v54 = vsel %vm507_vm0, %v16109_v33, 0.0 }
0x2031   : > { %16140 = vadd.xlane.f32.xlu0 %v16139_v54 }
0x2087   : > { %v16048_v29 = vpop.xlane.xlu1 %16047 }
0x2088   : > { %v16078_v16 = vmul.f32 0.03125, %v16048_v29 }
0x208a   : > { %v24934_v40 = vsub.f32 %v24834_v48, %v16078_v16 }
0x208b   : > { %v16051_v52 = vpop.xlane.xlu0 %16050  ;;  %v16054_v3 = vpop.xlane.xlu1 %16053 }
0x208c   : > { %v16079_v31 = vmul.f32 0.03125, %v16051_v52  ;;  %v16080_v22 = vmul.f32 0.03125, %v16054_v3  ;;  %v16110_v47 = vmul.f32 %v24934_v40, %v24934_v40 }
0x208e   : > { %v24939_v18 = vsub.f32 %v24844_v28, %v16079_v31  ;;  %v24942_v60 = vsub.f32 %v24838_v35, %v16080_v22  ;;  %v16142_v12 = vsel %vm507_vm0, %v16110_v47, 0.0 }
0x208f   : > { %v16057_v42 = vpop.xlane.xlu0 %16056  ;;  %16143 = vadd.xlane.f32.xlu1 %v16142_v12  ;;  %v16060_v50 = vpop.xlane.xlu1 %16059 }
0x2090   : > { %v16081_v48 = vmul.f32 0.03125, %v16057_v42  ;;  %v16082_v7 = vmul.f32 0.03125, %v16060_v50  ;;  %v16111_v14 = vmul.f32 %v24939_v18, %v24939_v18  ;;  %v16112_v13 = vmul.f32 %v24942_v60, %v24942_v60 }
0x2092   : > { %v24950_v61 = vsub.f32 %v24847_v4, %v16081_v48  ;;  %v24953_v28 = vsub.f32 %v24856_v24, %v16082_v7  ;;  %v16145_v35 = vsel %vm507_vm0, %v16111_v14, 0.0  ;;  %v16148_v39 = vsel %vm507_vm0, %v16112_v13, 0.0  ;;  %v24985_v48 = vld [vmem:[%s25420_s5 + $0x1] ss:$0 sm:$0xff] }
0x2093   : > { %v16063_v2 = vpop.xlane.xlu0 %16062  ;;  %16146 = vadd.xlane.f32.xlu0 %v16145_v35  ;;  %16149 = vadd.xlane.f32.xlu1 %v16148_v39  ;;  %v16066_v32 = vpop.xlane.xlu1 %16065 }
0x2094   : > { %v16083_v36 = vmul.f32 0.03125, %v16063_v2  ;;  %v16084_v63 = vmul.f32 0.03125, %v16066_v32  ;;  %v16113_v37 = vmul.f32 %v24950_v61, %v24950_v61  ;;  %v16114_v4 = vmul.f32 %v24953_v28, %v24953_v28  ;;  %v24993_v2 = vld [vmem:[%s25421_s6 + $0x1] ss:$0 sm:$0xff]  ;;  %v19581_v32 = vld [vmem:[%s25424_s9 + $0x38] sm:$0xff]  }
0x2095   : > { %19489 = vmatprep.subr.bf16.mxu1 %v19581_v32 }
0x2096   : > { %v24962_v62 = vsub.f32 %v24868_v17, %v16083_v36  ;;  %v24965_v24 = vsub.f32 %v24861_v43, %v16084_v63  ;;  %v16151_v9 = vsel %vm507_vm0, %v16113_v37, 0.0  ;;  %v16154_v59 = vsel %vm507_vm0, %v16114_v4, 0.0  ;;  %19490 = vmatpush3.bf16.msra.mxu1 %v19581_v32 }
0x2097   : > { %v16069_v1 = vpop.xlane.xlu0 %16068  ;;  %16152 = vadd.xlane.f32.xlu0 %v16151_v9  ;;  %16155 = vadd.xlane.f32.xlu1 %v16154_v59 }
0x2098   : > { %v16085_v6 = vmul.f32 0.03125, %v16069_v1  ;;  %v16115_v25 = vmul.f32 %v24962_v62, %v24962_v62  ;;  %v16116_v8 = vmul.f32 %v24965_v24, %v24965_v24 }
0x209a   : > { %v24974_v17 = vsub.f32 %v24871_v56, %v16085_v6  ;;  %v16157_v43 = vsel %vm507_vm0, %v16115_v25, 0.0  ;;  %v16160_v20 = vsel %vm507_vm0, %v16116_v8, 0.0 }
0x209b   : > { %16158 = vadd.xlane.f32.xlu0 %v16157_v43  ;;  %16161 = vadd.xlane.f32.xlu1 %v16160_v20 }
0x209c   : > { %v16117_v58 = vmul.f32 %v24974_v17, %v24974_v17 }
0x209e   : > { %v16163_v51 = vsel %vm507_vm0, %v16117_v58, 0.0 }
0x209f   : > { %16164 = vadd.xlane.f32.xlu0 %v16163_v51 }
0x20aa   : > { %v16120_v15 = vpop.xlane.xlu1 %16119 }
0x20ab   : > { %v16166_v55 = vmul.f32 0.03125, %v16120_v15 }
0x20ad   : > { %v16182_v5 = vadd.f32 1e-06, %v16166_v55 }
0x20ae   : > { %v16123_v44 = vpop.xlane.xlu0 %16122  ;;  %v16126_v34 = vpop.xlane.xlu1 %16125 }
0x20af   : > { %20161 = vrsqrt.f32 %v16182_v5  ;;  %v16167_v56 = vmul.f32 0.03125, %v16123_v44  ;;  %v16168_v30 = vmul.f32 0.03125, %v16126_v34 }
0x20b1   : > { %v16183_v45 = vadd.f32 1e-06, %v16167_v56  ;;  %v16184_v10 = vadd.f32 1e-06, %v16168_v30 }
0x20b2   : > { %v16129_v21 = vpop.xlane.xlu0 %16128  ;;  %v16132_v57 = vpop.xlane.xlu1 %16131 }
0x20b3   : > { %20163 = vrsqrt.f32 %v16183_v45  ;;  %v16169_v0 = vmul.f32 0.03125, %v16129_v21  ;;  %v16170_v33 = vmul.f32 0.03125, %v16132_v57  ;;  %v19582_v45 = vld [vmem:[%s25424_s9 + $0x30] sm:$0xff]   ;;  %v19584_v21 = vld [vmem:[%s25424_s9 + $0x20] sm:$0xff]  }
0x20b4   : > { %20165 = vrsqrt.f32 %v16184_v10  ;;  %19491 = vmatprep.subr.bf16.mxu1 %v19582_v45  ;;  %v19583_v10 = vld [vmem:[%s25424_s9 + $0x28] sm:$0xff]  }
0x20b5   : > { %v16185_v54 = vadd.f32 1e-06, %v16169_v0  ;;  %v16186_v11 = vadd.f32 1e-06, %v16170_v33  ;;  %19492 = vmatpush3.bf16.msra.mxu1 %v19582_v45 }
0x20b6   : > { %v16135_v38 = vpop.xlane.xlu0 %16134  ;;  %v16138_v29 = vpop.xlane.xlu1 %16137  ;;  %19493 = vmatprep.subr.bf16.mxu1 %v19583_v10 }
0x20b7   : > { %20167 = vrsqrt.f32 %v16185_v54  ;;  %v16171_v16 = vmul.f32 0.03125, %v16135_v38  ;;  %v16172_v52 = vmul.f32 0.03125, %v16138_v29 }
0x20b8   : > { %20169 = vrsqrt.f32 %v16186_v11 }
0x20b9   : > { %v16187_v3 = vadd.f32 1e-06, %v16171_v16  ;;  %v16188_v31 = vadd.f32 1e-06, %v16172_v52  ;;  %19494 = vmatpush3.bf16.msra.mxu1 %v19583_v10 }
0x20ba   : > { %v16141_v22 = vpop.xlane.xlu0 %16140  ;;  %19495 = vmatprep.subr.bf16.mxu1 %v19584_v21 }
0x20bb   : > { %20171 = vrsqrt.f32 %v16187_v3  ;;  %v16173_v47 = vmul.f32 0.03125, %v16141_v22 }
0x20bc   : > { %v20162_v12 = vpop.eup %20161  ;;  %20173 = vrsqrt.f32 %v16188_v31 }
0x20bd   : > { %v16189_v42 = vadd.f32 1e-06, %v16173_v47  ;;  %v16214_v50 = vmul.f32 %v20162_v12, %v24880_v19  ;;  %19496 = vmatpush3.bf16.msra.mxu1 %v19584_v21 }
0x20bf   : > { %20175 = vrsqrt.f32 %v16189_v42  ;;  %v16236_v35 = vmul.f32 %v24985_v48, %v16214_v50 }
0x20c0   : > { %v20164_v7 = vpop.eup %20163 }
0x20c1   : > { %v20166_v14 = vpop.eup %20165  ;;  %v16215_v13 = vmul.f32 %v20164_v7, %v24888_v49  ;;  %v25002_v4 = vadd.f32 %v24993_v2, %v16236_v35 }
0x20c2   : > { %v16216_v39 = vmul.f32 %v20166_v14, %v24885_v23 }
0x20c3   : > { %v16237_v19 = vmul.f32 %v24985_v48, %v16215_v13 }
0x20c4   : > { %v20168_v36 = vpop.eup %20167  ;;  %v16238_v37 = vmul.f32 %v24985_v48, %v16216_v39 }
0x20c5   : > { %v20170_v63 = vpop.eup %20169  ;;  %v16217_v49 = vmul.f32 %v20168_v36, %v24896_v26  ;;  %v25005_v23 = vadd.f32 %v24993_v2, %v16237_v19 }
0x20c6   : > { %v16218_v9 = vmul.f32 %v20170_v63, %v24899_v46  ;;  %v25013_v26 = vadd.f32 %v24993_v2, %v16238_v37 }
0x20c7   : > { %v16239_v59 = vmul.f32 %v24985_v48, %v16217_v49  ;;  %v16274_v1 = vpack.c.bf16 %v25005_v23, %v25002_v4 }
0x20c8   : > { %v20172_v6 = vpop.eup %20171  ;;  %v16240_v46 = vmul.f32 %v24985_v48, %v16218_v9 }
0x20c9   : > { %v20174_v25 = vpop.eup %20173  ;;  %19473 = vmatprep.mubr.msk.bf16.mxu0 %vm507_vm0, %v16274_v1  ;;  %v25016_v8 = vadd.f32 %v24993_v2, %v16239_v59  ;;  %v16219_v43 = vmul.f32 %v20172_v6, %v24908_v27 }
0x20ca   : > { %v16220_v20 = vmul.f32 %v20174_v25, %v24911_v53  ;;  %v25027_v5 = vadd.f32 %v24993_v2, %v16240_v46 }
0x20cb   : > { %v16275_v58 = vpack.c.bf16 %v25016_v8, %v25013_v26  ;;  %v16241_v51 = vmul.f32 %v24985_v48, %v16219_v43 }
0x20cc   : > { %v20176_v15 = vpop.eup %20175  ;;  %v16242_v27 = vmul.f32 %v24985_v48, %v16220_v20 }
0x20cd   : > { %v16221_v55 = vmul.f32 %v20176_v15, %v24920_v41  ;;  %19474 = vmatmul.mubr.msk.bf16.vlgmr.msra.gmra.mxu0 %vm507_vm0, %v16275_v58  ;;  %v25030_v44 = vadd.f32 %v24993_v2, %v16241_v51 }
0x20ce   : > { %v25038_v56 = vadd.f32 %v24993_v2, %v16242_v27 }
0x20cf   : > { %v16276_v53 = vpack.c.bf16 %v25030_v44, %v25027_v5  ;;  %v16243_v34 = vmul.f32 %v24985_v48, %v16221_v55 }
0x20d1   : > { %19477 = vmatprep.mubr.msk.bf16.mxu0 %vm507_vm0, %v16276_v53  ;;  %v25041_v41 = vadd.f32 %v24993_v2, %v16243_v34 }
0x20d3   : > { %v16277_v30 = vpack.c.bf16 %v25041_v41, %v25038_v56 }
0x20d5   : > { %19478 = vmatmul.mubr.msk.bf16.gmra.mxu0 %vm507_vm0, %v16277_v30 }
0x2118   : > { %v16144_v57 = vpop.xlane.xlu1 %16143 }
0x2119   : > { %v16174_v0 = vmul.f32 0.03125, %v16144_v57 }
0x211b   : > { %v16190_v33 = vadd.f32 1e-06, %v16174_v0 }
0x211c   : > { %v16147_v54 = vpop.xlane.xlu0 %16146  ;;  %v16150_v11 = vpop.xlane.xlu1 %16149 }
0x211d   : > { %20177 = vrsqrt.f32 %v16190_v33  ;;  %v16175_v38 = vmul.f32 0.03125, %v16147_v54  ;;  %v16176_v29 = vmul.f32 0.03125, %v16150_v11 }
0x211f   : > { %v16191_v16 = vadd.f32 1e-06, %v16175_v38  ;;  %v16192_v52 = vadd.f32 1e-06, %v16176_v29 }
0x2120   : > { %v16153_v3 = vpop.xlane.xlu0 %16152  ;;  %v16156_v31 = vpop.xlane.xlu1 %16155 }
0x2121   : > { %20179 = vrsqrt.f32 %v16191_v16  ;;  %v16177_v22 = vmul.f32 0.03125, %v16153_v3  ;;  %v16178_v47 = vmul.f32 0.03125, %v16156_v31 }
0x2122   : > { %20181 = vrsqrt.f32 %v16192_v52  ;;  %v17482_v52 = vld [vmem:[%s25423_s8 + $0x1] ss:$0 sm:$0xff] }
0x2123   : > { %v16193_v12 = vadd.f32 1e-06, %v16177_v22  ;;  %v16194_v42 = vadd.f32 1e-06, %v16178_v47 }
0x2124   : > { %v16159_v50 = vpop.xlane.xlu0 %16158  ;;  %v16162_v7 = vpop.xlane.xlu1 %16161 }
0x2125   : > { %20183 = vrsqrt.f32 %v16193_v12  ;;  %v16179_v14 = vmul.f32 0.03125, %v16159_v50  ;;  %v16180_v13 = vmul.f32 0.03125, %v16162_v7 }
0x2126   : > { %20185 = vrsqrt.f32 %v16194_v42 }
0x2127   : > { %v16195_v35 = vadd.f32 1e-06, %v16179_v14  ;;  %v16196_v39 = vadd.f32 1e-06, %v16180_v13 }
0x2128   : > { %v16165_v19 = vpop.xlane.xlu0 %16164 }
0x2129   : > { %20187 = vrsqrt.f32 %v16195_v35  ;;  %v16181_v32 = vmul.f32 0.03125, %v16165_v19 }
0x212a   : > { %v20178_v36 = vpop.eup %20177  ;;  %20189 = vrsqrt.f32 %v16196_v39 }
0x212b   : > { %v16197_v63 = vadd.f32 1e-06, %v16181_v32  ;;  %v16222_v37 = vmul.f32 %v20178_v36, %v24934_v40 }
0x212d   : > { %20191 = vrsqrt.f32 %v16197_v63  ;;  %v16244_v1 = vmul.f32 %v24985_v48, %v16222_v37 }
0x212e   : > { %v20180_v49 = vpop.eup %20179 }
0x212f   : > { %v20182_v9 = vpop.eup %20181  ;;  %v16223_v59 = vmul.f32 %v20180_v49, %v24939_v18  ;;  %v25062_v58 = vadd.f32 %v24993_v2, %v16244_v1 }
0x2130   : > { %v16224_v6 = vmul.f32 %v20182_v9, %v24942_v60 }
0x2131   : > { %v16245_v25 = vmul.f32 %v24985_v48, %v16223_v59 }
0x2132   : > { %v20184_v43 = vpop.eup %20183  ;;  %v16246_v51 = vmul.f32 %v24985_v48, %v16224_v6 }
0x2133   : > { %v20186_v46 = vpop.eup %20185  ;;  %v16225_v20 = vmul.f32 %v20184_v43, %v24950_v61  ;;  %v25065_v40 = vadd.f32 %v24993_v2, %v16245_v25 }
0x2134   : > { %v16226_v18 = vmul.f32 %v20186_v46, %v24953_v28  ;;  %v25074_v61 = vadd.f32 %v24993_v2, %v16246_v51 }
0x2135   : > { %v16278_v15 = vpack.c.bf16 %v25065_v40, %v25062_v58  ;;  %v16247_v60 = vmul.f32 %v24985_v48, %v16225_v20 }
0x2136   : > { %v20188_v55 = vpop.eup %20187  ;;  %v16248_v30 = vmul.f32 %v24985_v48, %v16226_v18 }
0x2137   : > { %v20190_v27 = vpop.eup %20189  ;;  %19481 = vmatprep.mubr.msk.bf16.mxu0 %vm507_vm0, %v16278_v15  ;;  %v25077_v53 = vadd.f32 %v24993_v2, %v16247_v60  ;;  %v16227_v34 = vmul.f32 %v20188_v55, %v24962_v62 }
0x2138   : > { %v16228_v28 = vmul.f32 %v20190_v27, %v24965_v24  ;;  %v25088_v0 = vadd.f32 %v24993_v2, %v16248_v30 }
0x2139   : > { %v16279_v45 = vpack.c.bf16 %v25077_v53, %v25074_v61  ;;  %v16249_v10 = vmul.f32 %v24985_v48, %v16227_v34 }
0x213a   : > { %v20192_v21 = vpop.eup %20191  ;;  %v16250_v62 = vmul.f32 %v24985_v48, %v16228_v28 }
0x213b   : > { %v16229_v57 = vmul.f32 %v20192_v21, %v24974_v17  ;;  %19482 = vmatmul.mubr.msk.bf16.gmra.mxu0 %vm507_vm0, %v16279_v45  ;;  %v25091_v33 = vadd.f32 %v24993_v2, %v16249_v10 }
0x213c   : > { %v25099_v11 = vadd.f32 %v24993_v2, %v16250_v62 }
0x213d   : > { %v16280_v24 = vpack.c.bf16 %v25091_v33, %v25088_v0  ;;  %v16251_v54 = vmul.f32 %v24985_v48, %v16229_v57 }
0x213f   : > { %19485 = vmatprep.mubr.msk.bf16.mxu0 %vm507_vm0, %v16280_v24  ;;  %v25102_v17 = vadd.f32 %v24993_v2, %v16251_v54 }
0x2141   : > { %v16281_v38 = vpack.c.bf16 %v25102_v17, %v25099_v11 }
0x2143   : > { %19486 = vmatmul.mubr.msk.bf16.gmra.mxu0 %vm507_vm0, %v16281_v38 }
0x218d   : > { %v19475_v29 = vpop.f32.mrf.mxu0 }
0x218e   : > { %v16374_v22 = vadd.f32 %v19475_v29, %v17482_v52 }
0x218f   : > { %v16365_v16 = vpop.f32.mrf.mxu0 }
0x2190   : > { %v16366_v3 = vadd.f32 %v17482_v52, %v16365_v16  ;;  %v16430_v14 = vmax.f32 %v16374_v22, 0.0 }
0x2191   : > { %v19476_v48 = vpop.f32.mrf.mxu0 }
0x2192   : > { %v16377_v31 = vadd.f32 %v19476_v48, %v17482_v52  ;;  %v16428_v50 = vmax.f32 %v16366_v3, 0.0 }
0x2193   : > { %v16368_v47 = vpop.f32.mrf.mxu0 }
0x2194   : > { %v16369_v12 = vadd.f32 %v17482_v52, %v16368_v47  ;;  %v16431_v42 = vmax.f32 %v16377_v31, 0.0 }
0x2195   : > { %v19479_v2 = vpop.f32.mrf.mxu0 }
0x2196   : > { %v16429_v7 = vmax.f32 %v16369_v12, 0.0  ;;  %v16445_v39 = vpack.c.bf16 %v16431_v42, %v16430_v14  ;;  %v16390_v63 = vadd.f32 %v19479_v2, %v17482_v52  ;;  %v25121_v2 = vld [vmem:[%s25425_s10 + $0x1] ss:$0 sm:$0xff] }
0x2197   : > { %v16381_v13 = vpop.f32.mrf.mxu0 }
0x2198   : > { %v16444_v35 = vpack.c.bf16 %v16429_v7, %v16428_v50  ;;  %v16382_v32 = vadd.f32 %v17482_v52, %v16381_v13  ;;  %v16434_v6 = vmax.f32 %v16390_v63, 0.0 }
0x2199   : > { %v19480_v19 = vpop.f32.mrf.mxu0 }
0x219a   : > { %v16393_v36 = vadd.f32 %v19480_v19, %v17482_v52  ;;  %19497 = vmatprep.mubr.msk.bf16.mxu1 %vm8287_vm4, %v16444_v35  ;;  %v16432_v59 = vmax.f32 %v16382_v32, 0.0 }
0x219b   : > { %v16384_v37 = vpop.f32.mrf.mxu0  ;;  %19498 = vmatmul.mubr.msk.bf16.vlgmr.msra.gmra.mxu1 %vm8287_vm4, %v16445_v39 }
0x219c   : > { %v16385_v49 = vadd.f32 %v17482_v52, %v16384_v37  ;;  %v16435_v9 = vmax.f32 %v16393_v36, 0.0 }
0x219e   : > { %v16433_v1 = vmax.f32 %v16385_v49, 0.0  ;;  %v16447_v43 = vpack.c.bf16 %v16435_v9, %v16434_v6 }
0x21a0   : > { %v16446_v25 = vpack.c.bf16 %v16433_v1, %v16432_v59 }
0x21a2   : > { %19501 = vmatprep.mubr.msk.bf16.mxu1 %vm8287_vm4, %v16446_v25 }
0x21a3   : > { %19502 = vmatmul.mubr.msk.bf16.gmra.mxu1 %vm8287_vm4, %v16447_v43 }
0x21fb   : > { %v19483_v46 = vpop.f32.mrf.mxu0 }
0x21fc   : > { %v16406_v60 = vadd.f32 %v19483_v46, %v17482_v52 }
0x21fd   : > { %v16397_v20 = vpop.f32.mrf.mxu0 }
0x21fe   : > { %v16398_v18 = vadd.f32 %v17482_v52, %v16397_v20  ;;  %v16438_v10 = vmax.f32 %v16406_v60, 0.0 }
0x21ff   : > { %v19484_v51 = vpop.f32.mrf.mxu0 }
0x2200   : > { %v16409_v15 = vadd.f32 %v19484_v51, %v17482_v52  ;;  %v16436_v28 = vmax.f32 %v16398_v18, 0.0 }
0x2201   : > { %v16400_v55 = vpop.f32.mrf.mxu0 }
0x2202   : > { %v16401_v27 = vadd.f32 %v17482_v52, %v16400_v55  ;;  %v16439_v34 = vmax.f32 %v16409_v15, 0.0 }
0x2203   : > { %v19487_v30 = vpop.f32.mrf.mxu0 }
0x2204   : > { %v16437_v45 = vmax.f32 %v16401_v27, 0.0  ;;  %v16449_v62 = vpack.c.bf16 %v16439_v34, %v16438_v10  ;;  %v16422_v29 = vadd.f32 %v19487_v30, %v17482_v52 }
0x2205   : > { %v16413_v21 = vpop.f32.mrf.mxu0 }
0x2206   : > { %v16448_v57 = vpack.c.bf16 %v16437_v45, %v16436_v28  ;;  %v16414_v54 = vadd.f32 %v17482_v52, %v16413_v21  ;;  %v16442_v47 = vmax.f32 %v16422_v29, 0.0 }
0x2207   : > { %v19488_v24 = vpop.f32.mrf.mxu0 }
0x2208   : > { %v16425_v38 = vadd.f32 %v19488_v24, %v17482_v52  ;;  %19505 = vmatprep.mubr.msk.bf16.mxu1 %vm8287_vm4, %v16448_v57  ;;  %v16440_v31 = vmax.f32 %v16414_v54, 0.0 }
0x2209   : > { %v16416_v16 = vpop.f32.mrf.mxu0  ;;  %19506 = vmatmul.mubr.msk.bf16.gmra.mxu1 %vm8287_vm4, %v16449_v62 }
0x220a   : > { %v16417_v48 = vadd.f32 %v17482_v52, %v16416_v16  ;;  %v16443_v3 = vmax.f32 %v16425_v38, 0.0 }
0x220c   : > { %v16441_v22 = vmax.f32 %v16417_v48, 0.0  ;;  %v16451_v42 = vpack.c.bf16 %v16443_v3, %v16442_v47 }
0x220e   : > { %v16450_v12 = vpack.c.bf16 %v16441_v22, %v16440_v31 }
0x2210   : > { %19509 = vmatprep.mubr.msk.bf16.mxu1 %vm8287_vm4, %v16450_v12 }
0x2211   : > { %19510 = vmatmul.mubr.msk.bf16.gmra.mxu1 %vm8287_vm4, %v16451_v42 }
0x225b   : > { %v19499_v50 = vpop.f32.mrf.mxu1 }
0x225c   : > { %v16560_v7 = vadd.f32 %v19499_v50, %v25121_v2 }
0x225d   : > { %v16551_v14 = vpop.f32.mrf.mxu1 }
0x225e   : > { %v25125_v52 = vadd.f32 %v16560_v7, %v25013_v26  ;;  %v16552_v13 = vadd.f32 %v25121_v2, %v16551_v14 }
0x225f   : > { %v19500_v35 = vpop.f32.mrf.mxu1 }
0x2260   : > { %v25129_v39 = vadd.f32 %v16552_v13, %v25002_v4  ;;  %v16563_v19 = vadd.f32 %v19500_v35, %v25121_v2  ;;  %v16640_v32 = vsel %vm507_vm0, %v25125_v52, 0.0 }
0x2261   : > { %16641 = vadd.xlane.f32.xlu1 %v16640_v32  ;;  %v16554_v36 = vpop.f32.mrf.mxu1 }
0x2262   : > { %v25135_v63 = vadd.f32 %v16563_v19, %v25016_v8  ;;  %v16555_v37 = vadd.f32 %v25121_v2, %v16554_v36  ;;  %v16634_v59 = vsel %vm507_vm0, %v25129_v39, 0.0 }
0x2263   : > { %v19503_v26 = vpop.f32.mrf.mxu1 }
0x2264   : > { %v25139_v49 = vadd.f32 %v16555_v37, %v25005_v23  ;;  %v16576_v9 = vadd.f32 %v19503_v26, %v25121_v2  ;;  %v16643_v4 = vsel %vm507_vm0, %v25135_v63, 0.0 }
0x2265   : > { %16644 = vadd.xlane.f32.xlu0 %v16643_v4  ;;  %16635 = vadd.xlane.f32.xlu1 %v16634_v59  ;;  %v16567_v1 = vpop.f32.mrf.mxu1 }
0x2266   : > { %v25147_v8 = vadd.f32 %v16576_v9, %v25038_v56  ;;  %v16568_v6 = vadd.f32 %v25121_v2, %v16567_v1  ;;  %v16637_v46 = vsel %vm507_vm0, %v25139_v49, 0.0 }
0x2267   : > { %v19504_v25 = vpop.f32.mrf.mxu1 }
0x2268   : > { %v25151_v23 = vadd.f32 %v16568_v6, %v25027_v5  ;;  %v16579_v43 = vadd.f32 %v19504_v25, %v25121_v2  ;;  %v16652_v20 = vsel %vm507_vm0, %v25147_v8, 0.0 }
0x2269   : > { %16638 = vadd.xlane.f32.xlu0 %v16637_v46  ;;  %16653 = vadd.xlane.f32.xlu1 %v16652_v20  ;;  %v16570_v51 = vpop.f32.mrf.mxu1 }
0x226a   : > { %v25159_v56 = vadd.f32 %v16579_v43, %v25041_v41  ;;  %v16571_v18 = vadd.f32 %v25121_v2, %v16570_v51  ;;  %v16646_v60 = vsel %vm507_vm0, %v25151_v23, 0.0 }
0x226c   : > { %v25163_v15 = vadd.f32 %v16571_v18, %v25030_v44  ;;  %v16655_v5 = vsel %vm507_vm0, %v25159_v56, 0.0 }
0x226d   : > { %16656 = vadd.xlane.f32.xlu0 %v16655_v5  ;;  %16647 = vadd.xlane.f32.xlu1 %v16646_v60 }
0x226e   : > { %v16649_v55 = vsel %vm507_vm0, %v25163_v15, 0.0 }
0x2271   : > { %16650 = vadd.xlane.f32.xlu0 %v16649_v55 }
0x22c9   : > { %v19507_v27 = vpop.f32.mrf.mxu1 }
0x22ca   : > { %v16592_v41 = vadd.f32 %v19507_v27, %v25121_v2 }
0x22cb   : > { %v16583_v34 = vpop.f32.mrf.mxu1 }
0x22cc   : > { %v25173_v30 = vadd.f32 %v16592_v41, %v25074_v61  ;;  %v16584_v44 = vadd.f32 %v25121_v2, %v16583_v34 }
0x22cd   : > { %v19508_v28 = vpop.f32.mrf.mxu1 }
0x22ce   : > { %v25177_v45 = vadd.f32 %v16584_v44, %v25062_v58  ;;  %v16595_v10 = vadd.f32 %v19508_v28, %v25121_v2  ;;  %v16664_v21 = vsel %vm507_vm0, %v25173_v30, 0.0 }
0x22cf   : > { %16665 = vadd.xlane.f32.xlu1 %v16664_v21  ;;  %v16586_v57 = vpop.f32.mrf.mxu1 }
0x22d0   : > { %v25183_v62 = vadd.f32 %v16595_v10, %v25077_v53  ;;  %v16587_v24 = vadd.f32 %v25121_v2, %v16586_v57  ;;  %v16658_v38 = vsel %vm507_vm0, %v25177_v45, 0.0 }
0x22d1   : > { %v19511_v61 = vpop.f32.mrf.mxu1 }
0x22d2   : > { %v25187_v54 = vadd.f32 %v16587_v24, %v25065_v40  ;;  %v16667_v58 = vsel %vm507_vm0, %v25183_v62, 0.0  ;;  %v16608_v16 = vadd.f32 %v19511_v61, %v25121_v2 }
0x22d3   : > { %16668 = vadd.xlane.f32.xlu0 %v16667_v58  ;;  %16659 = vadd.xlane.f32.xlu1 %v16658_v38  ;;  %v16599_v29 = vpop.f32.mrf.mxu1 }
0x22d4   : > { %v16600_v53 = vadd.f32 %v25121_v2, %v16599_v29  ;;  %v16661_v40 = vsel %vm507_vm0, %v25187_v54, 0.0  ;;  %v25201_v22 = vadd.f32 %v16608_v16, %v25099_v11 }
0x22d5   : > { %v19512_v48 = vpop.f32.mrf.mxu1 }
0x22d6   : > { %v25196_v3 = vadd.f32 %v16600_v53, %v25088_v0  ;;  %v16611_v47 = vadd.f32 %v19512_v48, %v25121_v2  ;;  %v16676_v11 = vsel %vm507_vm0, %v25201_v22, 0.0 }
0x22d7   : > { %16662 = vadd.xlane.f32.xlu0 %v16661_v40  ;;  %v16602_v31 = vpop.f32.mrf.mxu1 }
0x22d8   : > { %v16603_v12 = vadd.f32 %v25121_v2, %v16602_v31  ;;  %v16670_v42 = vsel %vm507_vm0, %v25196_v3, 0.0  ;;  %v25211_v0 = vadd.f32 %v16611_v47, %v25102_v17 }
0x22d9   : > { %16671 = vadd.xlane.f32.xlu1 %v16670_v42 }
0x22da   : > { %v25208_v50 = vadd.f32 %v16603_v12, %v25091_v33  ;;  %v16679_v2 = vsel %vm507_vm0, %v25211_v0, 0.0 }
0x22dc   : > { %v16673_v7 = vsel %vm507_vm0, %v25208_v50, 0.0 }
0x22dd   : > { %16674 = vadd.xlane.f32.xlu0 %v16673_v7  ;;  %16677 = vadd.xlane.f32.xlu1 %v16676_v11 }
0x22e1   : > { %16680 = vadd.xlane.f32.xlu0 %v16679_v2 }
0x22ea   : > { %v16642_v14 = vpop.xlane.xlu1 %16641 }
0x22eb   : > { %v16684_v13 = vmul.f32 0.03125, %v16642_v14 }
0x22ed   : > { %v25220_v17 = vsub.f32 %v25125_v52, %v16684_v13 }
0x22ee   : > { %v16645_v35 = vpop.xlane.xlu0 %16644  ;;  %v16636_v33 = vpop.xlane.xlu1 %16635 }
0x22ef   : > { %v16682_v19 = vmul.f32 0.03125, %v16636_v33  ;;  %v16685_v32 = vmul.f32 0.03125, %v16645_v35  ;;  %v16716_v1 = vmul.f32 %v25220_v17, %v25220_v17 }
0x22f1   : > { %v25223_v36 = vsub.f32 %v25129_v39, %v16682_v19  ;;  %v25228_v59 = vsub.f32 %v25135_v63, %v16685_v32  ;;  %v16736_v51 = vsel %vm507_vm0, %v16716_v1, 0.0 }
0x22f2   : > { %v16639_v37 = vpop.xlane.xlu0 %16638  ;;  %v16654_v26 = vpop.xlane.xlu1 %16653 }
0x22f3   : > { %v16683_v9 = vmul.f32 0.03125, %v16639_v37  ;;  %v16714_v4 = vmul.f32 %v25223_v36, %v25223_v36  ;;  %v16688_v52 = vmul.f32 0.03125, %v16654_v26  ;;  %v16717_v63 = vmul.f32 %v25228_v59, %v25228_v59 }
0x22f5   : > { %v25233_v6 = vsub.f32 %v25139_v49, %v16683_v9  ;;  %v16730_v25 = vsel %vm507_vm0, %v16714_v4, 0.0  ;;  %v25242_v18 = vsub.f32 %v25147_v8, %v16688_v52  ;;  %v16739_v34 = vsel %vm507_vm0, %v16717_v63, 0.0 }
0x22f6   : > { %v16657_v39 = vpop.xlane.xlu0 %16656  ;;  %16731 = vadd.xlane.f32.xlu1 %v16730_v25  ;;  %v16648_v43 = vpop.xlane.xlu1 %16647 }
0x22f7   : > { %v16686_v46 = vmul.f32 0.03125, %v16648_v43  ;;  %v16715_v20 = vmul.f32 %v25233_v6, %v25233_v6  ;;  %v16689_v49 = vmul.f32 0.03125, %v16657_v39  ;;  %v16720_v28 = vmul.f32 %v25242_v18, %v25242_v18 }
0x22f9   : > { %v25245_v5 = vsub.f32 %v25151_v23, %v16686_v46  ;;  %v16733_v60 = vsel %vm507_vm0, %v16715_v20, 0.0  ;;  %v25252_v44 = vsub.f32 %v25159_v56, %v16689_v49  ;;  %v16748_v57 = vsel %vm507_vm0, %v16720_v28, 0.0 }
0x22fa   : > { %v16651_v55 = vpop.xlane.xlu0 %16650  ;;  %16734 = vadd.xlane.f32.xlu0 %v16733_v60  ;;  %16737 = vadd.xlane.f32.xlu1 %v16736_v51 }
0x22fb   : > { %v16687_v27 = vmul.f32 0.03125, %v16651_v55  ;;  %v16718_v41 = vmul.f32 %v25245_v5, %v25245_v5  ;;  %v16721_v56 = vmul.f32 %v25252_v44, %v25252_v44 }
0x22fd   : > { %v25255_v8 = vsub.f32 %v25163_v15, %v16687_v27  ;;  %v16742_v23 = vsel %vm507_vm0, %v16718_v41, 0.0  ;;  %v16751_v15 = vsel %vm507_vm0, %v16721_v56, 0.0 }
0x22fe   : > { %16740 = vadd.xlane.f32.xlu0 %v16739_v34  ;;  %16743 = vadd.xlane.f32.xlu1 %v16742_v23 }
0x22ff   : > { %v16719_v10 = vmul.f32 %v25255_v8, %v25255_v8 }
0x2301   : > { %v16745_v21 = vsel %vm507_vm0, %v16719_v10, 0.0 }
0x2302   : > { %16746 = vadd.xlane.f32.xlu0 %v16745_v21  ;;  %16749 = vadd.xlane.f32.xlu1 %v16748_v57 }
0x2306   : > { %16752 = vadd.xlane.f32.xlu0 %v16751_v15 }
0x2358   : > { %v16666_v24 = vpop.xlane.xlu1 %16665 }
0x2359   : > { %v16692_v61 = vmul.f32 0.03125, %v16666_v24 }
0x235b   : > { %v25268_v58 = vsub.f32 %v25173_v30, %v16692_v61 }
0x235c   : > { %v16669_v38 = vpop.xlane.xlu0 %16668  ;;  %v16660_v29 = vpop.xlane.xlu1 %16659 }
0x235d   : > { %v16693_v16 = vmul.f32 0.03125, %v16669_v38  ;;  %v16690_v53 = vmul.f32 0.03125, %v16660_v29  ;;  %v16724_v48 = vmul.f32 %v25268_v58, %v25268_v58 }
0x235f   : > { %v25273_v40 = vsub.f32 %v25183_v62, %v16693_v16  ;;  %v25276_v31 = vsub.f32 %v25177_v45, %v16690_v53  ;;  %v16760_v47 = vsel %vm507_vm0, %v16724_v48, 0.0 }
0x2360   : > { %v16663_v12 = vpop.xlane.xlu0 %16662  ;;  %16761 = vadd.xlane.f32.xlu1 %v16760_v47 }
0x2361   : > { %v16691_v42 = vmul.f32 0.03125, %v16663_v12  ;;  %v16725_v30 = vmul.f32 %v25273_v40, %v25273_v40  ;;  %v16722_v7 = vmul.f32 %v25276_v31, %v25276_v31  ;;  %v25318_v12 = vld [vmem:[%s25426_s11 + $0x1] ss:$0 sm:$0xff] }
0x2362   : > { %v16672_v11 = vpop.xlane.xlu1 %16671 }
0x2363   : > { %v25284_v2 = vsub.f32 %v25187_v54, %v16691_v42  ;;  %v16694_v62 = vmul.f32 0.03125, %v16672_v11  ;;  %v16763_v14 = vsel %vm507_vm0, %v16725_v30, 0.0  ;;  %v16754_v45 = vsel %vm507_vm0, %v16722_v7, 0.0  ;;  %v25324_v7 = vld [vmem:[%s25427_s12 + $0x1] ss:$0 sm:$0xff] }
0x2364   : > { %16764 = vadd.xlane.f32.xlu0 %v16763_v14  ;;  %16755 = vadd.xlane.f32.xlu1 %v16754_v45 }
0x2365   : > { %v25289_v13 = vsub.f32 %v25196_v3, %v16694_v62  ;;  %v16723_v35 = vmul.f32 %v25284_v2, %v25284_v2 }
0x2366   : > { %v16675_v33 = vpop.xlane.xlu0 %16674  ;;  %v16678_v19 = vpop.xlane.xlu1 %16677 }
0x2367   : > { %v16695_v32 = vmul.f32 0.03125, %v16675_v33  ;;  %v16696_v37 = vmul.f32 0.03125, %v16678_v19  ;;  %v16757_v54 = vsel %vm507_vm0, %v16723_v35, 0.0  ;;  %v16726_v26 = vmul.f32 %v25289_v13, %v25289_v13 }
0x2368   : > { %16758 = vadd.xlane.f32.xlu0 %v16757_v54 }
0x2369   : > { %v25297_v9 = vsub.f32 %v25208_v50, %v16695_v32  ;;  %v25300_v4 = vsub.f32 %v25201_v22, %v16696_v37  ;;  %v16766_v3 = vsel %vm507_vm0, %v16726_v26, 0.0 }
0x236a   : > { %v16681_v1 = vpop.xlane.xlu0 %16680  ;;  %16767 = vadd.xlane.f32.xlu1 %v16766_v3 }
0x236b   : > { %v16697_v52 = vmul.f32 0.03125, %v16681_v1  ;;  %v16727_v25 = vmul.f32 %v25297_v9, %v25297_v9  ;;  %v16728_v39 = vmul.f32 %v25300_v4, %v25300_v4 }
0x236d   : > { %v25308_v43 = vsub.f32 %v25211_v0, %v16697_v52  ;;  %v16769_v50 = vsel %vm507_vm0, %v16727_v25, 0.0  ;;  %v16772_v46 = vsel %vm507_vm0, %v16728_v39, 0.0 }
0x236e   : > { %16770 = vadd.xlane.f32.xlu0 %v16769_v50  ;;  %16773 = vadd.xlane.f32.xlu1 %v16772_v46 }
0x236f   : > { %v16729_v22 = vmul.f32 %v25308_v43, %v25308_v43 }
0x2371   : > { %v16775_v20 = vsel %vm507_vm0, %v16729_v22, 0.0 }
0x2372   : > { %16776 = vadd.xlane.f32.xlu0 %v16775_v20 }
0x237f   : > { %v16732_v51 = vpop.xlane.xlu1 %16731 }
0x2380   : > { %v16778_v63 = vmul.f32 0.03125, %v16732_v51 }
0x2382   : > { %v16794_v49 = vadd.f32 1e-06, %v16778_v63 }
0x2383   : > { %v16735_v60 = vpop.xlane.xlu0 %16734  ;;  %v16738_v55 = vpop.xlane.xlu1 %16737 }
0x2384   : > { %20193 = vrsqrt.f32 %v16794_v49  ;;  %v16779_v0 = vmul.f32 0.03125, %v16735_v60  ;;  %v16780_v27 = vmul.f32 0.03125, %v16738_v55 }
0x2386   : > { %v16795_v41 = vadd.f32 1e-06, %v16779_v0  ;;  %v16796_v34 = vadd.f32 1e-06, %v16780_v27 }
0x2387   : > { %v16741_v23 = vpop.xlane.xlu0 %16740  ;;  %v16744_v28 = vpop.xlane.xlu1 %16743 }
0x2388   : > { %20195 = vrsqrt.f32 %v16795_v41  ;;  %v16781_v10 = vmul.f32 0.03125, %v16741_v23  ;;  %v16782_v21 = vmul.f32 0.03125, %v16744_v28 }
0x2389   : > { %20197 = vrsqrt.f32 %v16796_v34 }
0x238a   : > { %v16797_v57 = vadd.f32 1e-06, %v16781_v10  ;;  %v16798_v56 = vadd.f32 1e-06, %v16782_v21 }
0x238b   : > { %v16747_v15 = vpop.xlane.xlu0 %16746  ;;  %v16750_v24 = vpop.xlane.xlu1 %16749 }
0x238c   : > { %20199 = vrsqrt.f32 %v16797_v57  ;;  %v16783_v61 = vmul.f32 0.03125, %v16747_v15  ;;  %v16784_v38 = vmul.f32 0.03125, %v16750_v24 }
0x238d   : > { %20201 = vrsqrt.f32 %v16798_v56 }
0x238e   : > { %v16799_v29 = vadd.f32 1e-06, %v16783_v61  ;;  %v16800_v16 = vadd.f32 1e-06, %v16784_v38 }
0x238f   : > { %v16753_v53 = vpop.xlane.xlu0 %16752 }
0x2390   : > { %20203 = vrsqrt.f32 %v16799_v29  ;;  %v16785_v48 = vmul.f32 0.03125, %v16753_v53 }
0x2391   : > { %v20194_v47 = vpop.eup %20193  ;;  %20205 = vrsqrt.f32 %v16800_v16 }
0x2392   : > { %v16826_v42 = vmul.f32 %v20194_v47, %v25223_v36  ;;  %v16801_v30 = vadd.f32 1e-06, %v16785_v48 }
0x2394   : > { %v16848_v11 = vmul.f32 %v25318_v12, %v16826_v42  ;;  %20207 = vrsqrt.f32 %v16801_v30 }
0x2395   : > { %v20196_v62 = vpop.eup %20195 }
0x2396   : > { %v20198_v14 = vpop.eup %20197  ;;  %v16870_v36 = vadd.f32 %v25324_v7, %v16848_v11  ;;  %v16827_v45 = vmul.f32 %v20196_v62, %v25233_v6 }
0x2397   : > { %v16828_v35 = vmul.f32 %v20198_v14, %v25220_v17 }
0x2398   : > { %16886 = vst.msk [vmem:[%s25332_s28] sm:$0xff] %vm507_vm0, %v16870_v36  ;;  %v16849_v33 = vmul.f32 %v25318_v12, %v16827_v45 }
0x2399   : > { %v20200_v19 = vpop.eup %20199  ;;  %v16850_v32 = vmul.f32 %v25318_v12, %v16828_v35 }
0x239a   : > { %v20202_v37 = vpop.eup %20201  ;;  %v16871_v54 = vadd.f32 %v25324_v7, %v16849_v33  ;;  %v16829_v26 = vmul.f32 %v20200_v19, %v25228_v59 }
0x239b   : > { %v16872_v3 = vadd.f32 %v25324_v7, %v16850_v32  ;;  %v16830_v6 = vmul.f32 %v20202_v37, %v25245_v5 }
0x239c   : > { %16887 = vst.msk [vmem:[%s25332_s28 + $0x8] sm:$0xff] %vm507_vm0, %v16871_v54  ;;  %v16851_v17 = vmul.f32 %v25318_v12, %v16829_v26 }
0x239d   : > { %v20204_v1 = vpop.eup %20203  ;;  %16888 = vst.msk [vmem:[%s25332_s28 + $0x10] sm:$0xff] %vm507_vm0, %v16872_v3  ;;  %v16852_v52 = vmul.f32 %v25318_v12, %v16830_v6 }
0x239e   : > { %v20206_v25 = vpop.eup %20205  ;;  %v16873_v39 = vadd.f32 %v25324_v7, %v16851_v17  ;;  %v16831_v59 = vmul.f32 %v20204_v1, %v25255_v8 }
0x239f   : > { %v16874_v50 = vadd.f32 %v25324_v7, %v16852_v52  ;;  %v16832_v5 = vmul.f32 %v20206_v25, %v25242_v18 }
0x23a0   : > { %16889 = vst.msk [vmem:[%s25332_s28 + $0x18] sm:$0xff] %vm507_vm0, %v16873_v39  ;;  %v16853_v46 = vmul.f32 %v25318_v12, %v16831_v59 }
0x23a1   : > { %v20208_v22 = vpop.eup %20207  ;;  %16890 = vst.msk [vmem:[%s25332_s28 + $0x20] sm:$0xff] %vm507_vm0, %v16874_v50  ;;  %v16854_v20 = vmul.f32 %v25318_v12, %v16832_v5 }
0x23a2   : > { %v16875_v51 = vadd.f32 %v25324_v7, %v16853_v46  ;;  %v16833_v63 = vmul.f32 %v20208_v22, %v25252_v44 }
0x23a3   : > { %v16876_v49 = vadd.f32 %v25324_v7, %v16854_v20 }
0x23a4   : > { %16891 = vst.msk [vmem:[%s25332_s28 + $0x28] sm:$0xff] %vm507_vm0, %v16875_v51  ;;  %v16855_v8 = vmul.f32 %v25318_v12, %v16833_v63 }
0x23a5   : > { %16892 = vst.msk [vmem:[%s25332_s28 + $0x30] sm:$0xff] %vm507_vm0, %v16876_v49 }
0x23a6   : > { %v16877_v18 = vadd.f32 %v25324_v7, %v16855_v8 }
0x23a8   : > { %16893 = vst.msk [vmem:[%s25332_s28 + $0x38] sm:$0xff] %vm507_vm0, %v16877_v18 }
0x23e9   : > { %v16762_v60 = vpop.xlane.xlu1 %16761 }
0x23ea   : > { %v16788_v55 = vmul.f32 0.03125, %v16762_v60 }
0x23ec   : > { %v16804_v0 = vadd.f32 1e-06, %v16788_v55 }
0x23ed   : > { %v16765_v27 = vpop.xlane.xlu0 %16764  ;;  %v16756_v41 = vpop.xlane.xlu1 %16755 }
0x23ee   : > { %20209 = vrsqrt.f32 %v16804_v0  ;;  %v16789_v34 = vmul.f32 0.03125, %v16765_v27  ;;  %v16786_v44 = vmul.f32 0.03125, %v16756_v41 }
0x23f0   : > { %v16805_v23 = vadd.f32 1e-06, %v16789_v34  ;;  %v16802_v28 = vadd.f32 1e-06, %v16786_v44 }
0x23f1   : > { %v16759_v10 = vpop.xlane.xlu0 %16758 }
0x23f2   : > { %20211 = vrsqrt.f32 %v16805_v23  ;;  %v16787_v21 = vmul.f32 0.03125, %v16759_v10 }
0x23f3   : > { %20213 = vrsqrt.f32 %v16802_v28  ;;  %v16768_v57 = vpop.xlane.xlu1 %16767 }
0x23f4   : > { %v16803_v56 = vadd.f32 1e-06, %v16787_v21  ;;  %v16790_v15 = vmul.f32 0.03125, %v16768_v57 }
0x23f6   : > { %20215 = vrsqrt.f32 %v16803_v56  ;;  %v16806_v24 = vadd.f32 1e-06, %v16790_v15 }
0x23f7   : > { %v16771_v61 = vpop.xlane.xlu0 %16770  ;;  %v16774_v38 = vpop.xlane.xlu1 %16773 }
0x23f8   : > { %20217 = vrsqrt.f32 %v16806_v24  ;;  %v16791_v29 = vmul.f32 0.03125, %v16771_v61  ;;  %v16792_v16 = vmul.f32 0.03125, %v16774_v38 }
0x23fa   : > { %v16807_v53 = vadd.f32 1e-06, %v16791_v29  ;;  %v16808_v48 = vadd.f32 1e-06, %v16792_v16 }
0x23fb   : > { %v20210_v47 = vpop.eup %20209  ;;  %v16777_v42 = vpop.xlane.xlu0 %16776 }
0x23fc   : > { %v16836_v30 = vmul.f32 %v20210_v47, %v25268_v58  ;;  %20219 = vrsqrt.f32 %v16807_v53  ;;  %v16793_v11 = vmul.f32 0.03125, %v16777_v42 }
0x23fd   : > { %20221 = vrsqrt.f32 %v16808_v48 }
0x23fe   : > { %v16858_v62 = vmul.f32 %v25318_v12, %v16836_v30  ;;  %v16809_v14 = vadd.f32 1e-06, %v16793_v11 }
0x23ff   : > { %v20212_v36 = vpop.eup %20211 }
0x2400   : > { %v20214_v45 = vpop.eup %20213  ;;  %v16880_v35 = vadd.f32 %v25324_v7, %v16858_v62  ;;  %v16837_v33 = vmul.f32 %v20212_v36, %v25273_v40  ;;  %20223 = vrsqrt.f32 %v16809_v14 }
0x2401   : > { %v16834_v19 = vmul.f32 %v20214_v45, %v25276_v31 }
0x2402   : > { %16896 = vst.msk [vmem:[%s25332_s28 + $0x50] sm:$0xff] %vm507_vm0, %v16880_v35  ;;  %v16859_v58 = vmul.f32 %v25318_v12, %v16837_v33 }
0x2403   : > { %v20216_v32 = vpop.eup %20215  ;;  %v16856_v37 = vmul.f32 %v25318_v12, %v16834_v19 }
0x2404   : > { %v16881_v54 = vadd.f32 %v25324_v7, %v16859_v58  ;;  %v16835_v26 = vmul.f32 %v20216_v32, %v25284_v2 }
0x2405   : > { %v20218_v3 = vpop.eup %20217  ;;  %v16878_v6 = vadd.f32 %v25324_v7, %v16856_v37 }
0x2406   : > { %16897 = vst.msk [vmem:[%s25332_s28 + $0x58] sm:$0xff] %vm507_vm0, %v16881_v54  ;;  %v16857_v40 = vmul.f32 %v25318_v12, %v16835_v26  ;;  %v16838_v31 = vmul.f32 %v20218_v3, %v25289_v13 }
0x2407   : > { %16894 = vst.msk [vmem:[%s25332_s28 + $0x40] sm:$0xff] %vm507_vm0, %v16878_v6 }
0x2408   : > { %v16879_v17 = vadd.f32 %v25324_v7, %v16857_v40  ;;  %v16860_v1 = vmul.f32 %v25318_v12, %v16838_v31 }
0x2409   : > { %v20220_v52 = vpop.eup %20219 }
0x240a   : > { %v20222_v25 = vpop.eup %20221  ;;  %16895 = vst.msk [vmem:[%s25332_s28 + $0x48] sm:$0xff] %vm507_vm0, %v16879_v17  ;;  %v16882_v2 = vadd.f32 %v25324_v7, %v16860_v1  ;;  %v16839_v39 = vmul.f32 %v20220_v52, %v25297_v9 }
0x240b   : > { %v16840_v59 = vmul.f32 %v20222_v25, %v25300_v4 }
0x240c   : > { %16898 = vst.msk [vmem:[%s25332_s28 + $0x60] sm:$0xff] %vm507_vm0, %v16882_v2  ;;  %v16861_v13 = vmul.f32 %v25318_v12, %v16839_v39 }
0x240d   : > { %v20224_v50 = vpop.eup %20223  ;;  %v16862_v5 = vmul.f32 %v25318_v12, %v16840_v59 }
0x240e   : > { %v16883_v46 = vadd.f32 %v25324_v7, %v16861_v13  ;;  %v16841_v22 = vmul.f32 %v20224_v50, %v25308_v43 }
0x240f   : > { %v16884_v20 = vadd.f32 %v25324_v7, %v16862_v5 }
0x2410   : > { %16899 = vst.msk [vmem:[%s25332_s28 + $0x68] sm:$0xff] %vm507_vm0, %v16883_v46  ;;  %v16863_v51 = vmul.f32 %v25318_v12, %v16841_v22 }
0x2411   : > { %16900 = vst.msk [vmem:[%s25332_s28 + $0x70] sm:$0xff] %vm507_vm0, %v16884_v20 }
0x2412   : > { %v16885_v9 = vadd.f32 %v25324_v7, %v16863_v51 }
0x2414   : > { %16901 = vst.msk [vmem:[%s25332_s28 + $0x78] sm:$0xff] %vm507_vm0, %v16885_v9 }
0x2415 PF: > { %s23_s25 = sadd.s32 1, %s20273_s25  }
0x2416   : > { %p20_p4 = scmp.ge.s32.totalorder %s23_s25, 4  }
0x2418   :  { %22 = sbr.rel (!%p20_p4) target bundleno = 1 (0x1), region = 113 }

</bundles_post_ra>
